<compile_context>
chip_gen: v6e
topology: v6e:2x2x1
jax: 0.10.0
libtpu: 0.0.40
codegen_flags: <defaults>
</compile_context>

<pallas_src>
import functools

import numpy as np
import jax
import jax.numpy as jnp
from jax import lax
from jax.experimental import pallas as pl
from jax.experimental.pallas import tpu as pltpu

F32 = jnp.float32
BF16 = jnp.bfloat16
BN_EPS = 1e-5
VMEM_LIMIT = 48 * 1024 * 1024     # explicit scoped-VMEM cap (fits v7x's 64 MiB)
VMEM_BUDGET = 20 * 1024 * 1024    # target per-grid-step working set for batch tiling


# ----------------------------------------------------------------------------
# Small helpers
# ----------------------------------------------------------------------------
def _pick_nb(N, H, W, cin, cout):
    """Images per grid step: largest divisor of N whose working set fits the budget."""
    per_img = ((H + 2) * (W + 2) * cin * 4          # padded VMEM scratch (f32 worst case)
               + H * W * (2 * cin + 2 * cout)       # bf16 in/out tiles
               + H * W * cout * 4                   # f32 accumulator
               + H * W * cin * 4)                   # one live tap copy
    for nb in range(N, 0, -1):
        if N % nb == 0 and nb * per_img <= VMEM_BUDGET:
            return nb
    return 1
    # TODO(synk): at non-toy resolutions add spatial (row) tiling with a halo on
    #             top of the batch tiling so a single image never has to fit VMEM.


def _row_tile(p, cap=2048):
    """Largest tile <= cap that divides p (multiple of 8 when tiling)."""
    if p <= cap:
        return p
    t = cap - (cap % 8)
    while t >= 8:
        if p % t == 0:
            return t
        t -= 8
    return p   # TODO(synk): ragged-tail masked tiling for pathological row counts


def _compiler_params():
    return pltpu.CompilerParams(dimension_semantics=("parallel",),
                                vmem_limit_bytes=VMEM_LIMIT)


def _bn_scale_shift(stats, gamma, beta, count):
    """Fold training-mode BN (batch mean, biased var) into per-channel scale/shift."""
    s = jnp.sum(stats, axis=0)                        # reduce per-grid-step partials
    inv = 1.0 / float(count)
    mean = s[0] * inv
    var = s[1] * inv - mean * mean
    scale = gamma * lax.rsqrt(var + BN_EPS)
    shift = beta - mean * scale
    return scale.reshape(1, -1), shift.reshape(1, -1)


# ----------------------------------------------------------------------------
# Pallas kernels
# ----------------------------------------------------------------------------
def _load_normalized(x_ref, sc_ref, sh_ref, pre_bn):
    """Apply the deferred BN(batch stats) + clamp(0) of the producing layer."""
    x = x_ref[...].astype(F32)
    if pre_bn:
        x = jnp.maximum(x * sc_ref[...] + sh_ref[...], 0.0)
    return x


def _stats_partial(acc):
    return jnp.concatenate(
        [jnp.sum(acc, axis=0, keepdims=True),
         jnp.sum(acc * acc, axis=0, keepdims=True)], axis=0)   # (2, Cout)


def _conv3x3_kernel(*refs, NB, H, W, two_inputs, pre_bn):
    """Full 3x3 conv: fused input-BN+ReLU, fused zero pad, fused channel concat,
    in-kernel im2col (9 bf16 MXU dots, f32 accumulation), per-step BN partials."""
    if two_inputs:
        (xa_ref, sca_ref, sha_ref, xb_ref, w_ref, b_ref,
         y_ref, st_ref, scr_ref) = refs
    else:
        (xa_ref, sca_ref, sha_ref, w_ref, b_ref,
         y_ref, st_ref, scr_ref) = refs
    cin = scr_ref.shape[-1]
    cout = w_ref.shape[-1]
    ca = xa_ref.shape[-1]

    # Build the zero-padded (and channel-concatenated) input tile directly in VMEM.
    scr_ref[...] = jnp.zeros(scr_ref.shape, scr_ref.dtype)
    xa = _load_normalized(xa_ref, sca_ref, sha_ref, pre_bn)
    scr_ref[:, 1:H + 1, 1:W + 1, 0:ca] = xa.astype(scr_ref.dtype)
    if two_inputs:
        scr_ref[:, 1:H + 1, 1:W + 1, ca:cin] = xb_ref[...].astype(scr_ref.dtype)

    xp = scr_ref[...]                                  # (NB, H+2, W+2, Cin) bf16
    acc = jnp.zeros((NB * H * W, cout), F32)
    for dy in range(3):
        for dx in range(3):
            tap = xp[:, dy:dy + H, dx:dx + W, :].reshape(NB * H * W, cin)
            acc = acc + jnp.dot(tap, w_ref[dy, dx], preferred_element_type=F32)
    acc = acc + b_ref[...]
    y_ref[...] = acc.reshape(NB, H * W, cout).astype(y_ref.dtype)
    st_ref[0] = _stats_partial(acc)


def _sepconv_kernel(*refs, NB, H, W, two_inputs, pre_bn):
    """Depthwise 3x3 (f32 VPU) fused with pointwise 1x1 (bf16 MXU): fused input BN,
    fused zero pad, fused channel concat, per-step BN partials."""
    if two_inputs:
        (xa_ref, sca_ref, sha_ref, xb_ref, sw_ref, sb_ref, pw_ref, pb_ref,
         y_ref, st_ref, scr_ref) = refs
    else:
        (xa_ref, sca_ref, sha_ref, sw_ref, sb_ref, pw_ref, pb_ref,
         y_ref, st_ref, scr_ref) = refs
    cin = scr_ref.shape[-1]
    cout = pw_ref.shape[-1]
    ca = xa_ref.shape[-1]

    scr_ref[...] = jnp.zeros(scr_ref.shape, scr_ref.dtype)
    xa = _load_normalized(xa_ref, sca_ref, sha_ref, pre_bn)
    scr_ref[:, 1:H + 1, 1:W + 1, 0:ca] = xa.astype(scr_ref.dtype)
    if two_inputs:
        scr_ref[:, 1:H + 1, 1:W + 1, ca:cin] = xb_ref[...].astype(scr_ref.dtype)

    xp = scr_ref[...]                                  # (NB, H+2, W+2, C) f32
    dw = jnp.zeros((NB * H * W, cin), F32) + sb_ref[...]
    for k in range(9):
        dy, dx = k // 3, k % 3
        tap = xp[:, dy:dy + H, dx:dx + W, :].reshape(NB * H * W, cin)
        dw = dw + tap * sw_ref[k]                      # (1, C) broadcast
    acc = jnp.dot(dw.astype(BF16), pw_ref[...],
                  preferred_element_type=F32) + pb_ref[...]
    y_ref[...] = acc.reshape(NB, H * W, cout).astype(y_ref.dtype)
    st_ref[0] = _stats_partial(acc)


def _convT_kernel(x_ref, sc_ref, sh_ref, w_ref, b_ref, o_ref, scr_ref, *, NB, H, W):
    """Polyphase ConvTranspose2d(k=3, s=2, p=1, op=1) with fused input BN+ReLU."""
    cin = scr_ref.shape[-1]
    cout = w_ref.shape[-1]
    scr_ref[...] = jnp.zeros(scr_ref.shape, scr_ref.dtype)   # bottom/right zero halo
    x = jnp.maximum(x_ref[...].astype(F32) * sc_ref[...] + sh_ref[...], 0.0)
    scr_ref[:, 0:H, 0:W, :] = x.astype(scr_ref.dtype)
    xp = scr_ref[...]                                        # (NB, H+1, W+1, Cin)

    def tap(sy, sx):
        return xp[:, sy:sy + H, sx:sx + W, :].reshape(NB * H * W, cin)

    x00, x01 = tap(0, 0), tap(0, 1)
    x10, x11 = tap(1, 0), tap(1, 1)
    b = b_ref[...]

    def mm(t, ky, kx):
        return jnp.dot(t, w_ref[ky, kx], preferred_element_type=F32)

    def put(idx, val):
        o_ref[:, idx:idx + 1, :, :] = val.reshape(NB, 1, H * W, cout).astype(o_ref.dtype)

    put(0, b + mm(x00, 1, 1))                                            # (2a,   2b)
    put(1, b + mm(x01, 1, 0) + mm(x00, 1, 2))                            # (2a,   2b+1)
    put(2, b + mm(x10, 0, 1) + mm(x00, 2, 1))                            # (2a+1, 2b)
    put(3, b + mm(x11, 0, 0) + mm(x10, 0, 2)
           + mm(x01, 2, 0) + mm(x00, 2, 2))                              # (2a+1, 2b+1)


def _conv1x1_kernel(x_ref, sc_ref, sh_ref, w_ref, b_ref, o_ref, *, pre_bn, softmax):
    """Pointwise conv with fused input BN+ReLU (+ exact channel softmax)."""
    x = x_ref[...].astype(F32)
    if pre_bn:
        x = jnp.maximum(x * sc_ref[...] + sh_ref[...], 0.0)
    y = jnp.dot(x.astype(BF16), w_ref[...], preferred_element_type=F32) + b_ref[...]
    if softmax:
        y = y - jnp.max(y, axis=-1, keepdims=True)
        e = jnp.exp(y)
        y = e / jnp.sum(e, axis=-1, keepdims=True)     # exact (matches F.softmax)
    o_ref[...] = y.astype(o_ref.dtype)


# ----------------------------------------------------------------------------
# Layer wrappers (each returns raw bf16 output + the pending BN scale/shift)
# ----------------------------------------------------------------------------
@jax.jit
def conv3x3_layer(x, x_sc, x_sh, w, b, gamma, beta, x_extra=None):
    N, H, W, ca = x.shape
    cb = 0 if x_extra is None else x_extra.shape[-1]
    cin = ca + cb
    cout = w.shape[-1]
    pre_bn = x_sc is not None
    if not pre_bn:
        x_sc = jnp.ones((1, ca), F32)
        x_sh = jnp.zeros((1, ca), F32)
    NB = _pick_nb(N, H, W, cin, cout)
    G = N // NB

    in_specs = [pl.BlockSpec((NB, H, W, ca), lambda n: (n, 0, 0, 0)),
                pl.BlockSpec((1, ca), lambda n: (0, 0)),
                pl.BlockSpec((1, ca), lambda n: (0, 0))]
    args = [x, x_sc, x_sh]
    if x_extra is not None:
        in_specs.append(pl.BlockSpec((NB, H, W, cb), lambda n: (n, 0, 0, 0)))
        args.append(x_extra)
    in_specs += [pl.BlockSpec((3, 3, cin, cout), lambda n: (0, 0, 0, 0)),
                 pl.BlockSpec((1, cout), lambda n: (0, 0))]
    args += [w, b.reshape(1, cout)]

    y, stats = pl.pallas_call(
        functools.partial(_conv3x3_kernel, NB=NB, H=H, W=W,
                          two_inputs=x_extra is not None, pre_bn=pre_bn),
        grid=(G,),
        in_specs=in_specs,
        out_specs=(pl.BlockSpec((NB, H * W, cout), lambda n: (n, 0, 0)),
                   pl.BlockSpec((1, 2, cout), lambda n: (n, 0, 0))),
        out_shape=(jax.ShapeDtypeStruct((N, H * W, cout), BF16),
                   jax.ShapeDtypeStruct((G, 2, cout), F32)),
        scratch_shapes=[pltpu.VMEM((NB, H + 2, W + 2, cin), BF16)],
        compiler_params=_compiler_params(),
    )(*args)
    scale, shift = _bn_scale_shift(stats, gamma, beta, N * H * W)
    return y.reshape(N, H, W, cout), scale, shift


@jax.jit
def sepconv_layer(x, x_sc, x_sh, sw, sb, pw, pb, gamma, beta, x_extra=None):
    N, H, W, ca = x.shape
    cb = 0 if x_extra is None else x_extra.shape[-1]
    cin = ca + cb
    cout = pw.shape[-1]
    pre_bn = x_sc is not None
    if not pre_bn:
        x_sc = jnp.ones((1, ca), F32)
        x_sh = jnp.zeros((1, ca), F32)
    NB = _pick_nb(N, H, W, cin, cout)
    G = N // NB

    in_specs = [pl.BlockSpec((NB, H, W, ca), lambda n: (n, 0, 0, 0)),
                pl.BlockSpec((1, ca), lambda n: (0, 0)),
                pl.BlockSpec((1, ca), lambda n: (0, 0))]
    args = [x, x_sc, x_sh]
    if x_extra is not None:
        in_specs.append(pl.BlockSpec((NB, H, W, cb), lambda n: (n, 0, 0, 0)))
        args.append(x_extra)
    in_specs += [pl.BlockSpec((9, 1, cin), lambda n: (0, 0, 0)),
                 pl.BlockSpec((1, cin), lambda n: (0, 0)),
                 pl.BlockSpec((cin, cout), lambda n: (0, 0)),
                 pl.BlockSpec((1, cout), lambda n: (0, 0))]
    args += [sw, sb.reshape(1, cin), pw, pb.reshape(1, cout)]

    y, stats = pl.pallas_call(
        functools.partial(_sepconv_kernel, NB=NB, H=H, W=W,
                          two_inputs=x_extra is not None, pre_bn=pre_bn),
        grid=(G,),
        in_specs=in_specs,
        out_specs=(pl.BlockSpec((NB, H * W, cout), lambda n: (n, 0, 0)),
                   pl.BlockSpec((1, 2, cout), lambda n: (n, 0, 0))),
        out_shape=(jax.ShapeDtypeStruct((N, H * W, cout), BF16),
                   jax.ShapeDtypeStruct((G, 2, cout), F32)),
        scratch_shapes=[pltpu.VMEM((NB, H + 2, W + 2, cin), F32)],
        compiler_params=_compiler_params(),
    )(*args)
    scale, shift = _bn_scale_shift(stats, gamma, beta, N * H * W)
    return y.reshape(N, H, W, cout), scale, shift


@jax.jit
def conv_transpose2x(x, x_sc, x_sh, w, b):
    """ConvTranspose2d(k=3, stride=2, padding=1, output_padding=1), bf16 output."""
    N, H, W, cin = x.shape
    cout = w.shape[-1]
    NB = _pick_nb(N, H, W, cin, cout)
    G = N // NB
    z = pl.pallas_call(
        functools.partial(_convT_kernel, NB=NB, H=H, W=W),
        grid=(G,),
        in_specs=[pl.BlockSpec((NB, H, W, cin), lambda n: (n, 0, 0, 0)),
                  pl.BlockSpec((1, cin), lambda n: (0, 0)),
                  pl.BlockSpec((1, cin), lambda n: (0, 0)),
                  pl.BlockSpec((3, 3, cin, cout), lambda n: (0, 0, 0, 0)),
                  pl.BlockSpec((1, cout), lambda n: (0, 0))],
        out_specs=pl.BlockSpec((NB, 4, H * W, cout), lambda n: (n, 0, 0, 0)),
        out_shape=jax.ShapeDtypeStruct((N, 4, H * W, cout), BF16),
        scratch_shapes=[pltpu.VMEM((NB, H + 1, W + 1, cin), BF16)],
        compiler_params=_compiler_params(),
    )(x, x_sc, x_sh, w, b.reshape(1, cout))
    # Parity interleave: (N,4,H*W,C) -> (N,2H,2W,C).  Cheap bf16 XLA glue.
    # TODO(synk): could be fused into the output store via strided parity placement.
    z = z.reshape(N, 2, 2, H, W, cout).transpose(0, 3, 1, 4, 2, 5)
    return z.reshape(N, 2 * H, 2 * W, cout)


@functools.partial(jax.jit, static_argnames=("softmax",))
def conv1x1(x, x_sc, x_sh, w, b, softmax=False):
    N, H, W, cin = x.shape
    cout = w.shape[-1]
    P = N * H * W
    pre_bn = x_sc is not None
    if not pre_bn:
        x_sc = jnp.ones((1, cin), F32)
        x_sh = jnp.zeros((1, cin), F32)
    tp = _row_tile(P)
    y = pl.pallas_call(
        functools.partial(_conv1x1_kernel, pre_bn=pre_bn, softmax=softmax),
        grid=(P // tp,),
        in_specs=[pl.BlockSpec((tp, cin), lambda i: (i, 0)),
                  pl.BlockSpec((1, cin), lambda i: (0, 0)),
                  pl.BlockSpec((1, cin), lambda i: (0, 0)),
                  pl.BlockSpec((cin, cout), lambda i: (0, 0)),
                  pl.BlockSpec((1, cout), lambda i: (0, 0))],
        out_specs=pl.BlockSpec((tp, cout), lambda i: (i, 0)),
        out_shape=jax.ShapeDtypeStruct((P, cout), F32),
        compiler_params=_compiler_params(),
    )(x.reshape(P, cin), x_sc, x_sh, w, b.reshape(1, cout))
    return y.reshape(N, H, W, cout)


@jax.jit
def maxpool2(x):
    # 2x2 max-pool on the RAW bf16 conv output.  This commutes with the deferred
    # per-channel BN affine + clamp(0) because scale = gamma*rsqrt(var+eps) > 0
    # (default gamma=1).  TODO(synk): fold into the producing kernel as a 2nd output.
    N, H, W, C = x.shape
    return x.reshape(N, H // 2, 2, W // 2, 2, C).max(axis=(2, 4))


# ----------------------------------------------------------------------------
# Parameter construction (deterministic, synthetic; numpy RNG -> no extra compiles)
# ----------------------------------------------------------------------------
class ParamGen:
    def __init__(self, seed):
        self.rng = np.random.default_rng(seed)

    def f32(self, shape, scale=0.05):
        return jnp.asarray(scale * self.rng.standard_normal(shape), dtype=F32)

    def bf16(self, shape, scale=0.05):
        return jnp.asarray(scale * self.rng.standard_normal(shape),
                           dtype=F32).astype(BF16)


def init_block(pg, cin, cout, seperable):
    p = {"seperable": seperable}
    if seperable:
        p["sw1"] = pg.f32((9, 1, cin));   p["sb1"] = pg.f32((cin,))
        p["pw1"] = pg.bf16((cin, cout));  p["pb1"] = pg.f32((cout,))
        p["sw2"] = pg.f32((9, 1, cout));  p["sb2"] = pg.f32((cout,))
        p["pw2"] = pg.bf16((cout, cout)); p["pb2"] = pg.f32((cout,))
    else:
        p["w1"] = pg.bf16((3, 3, cin, cout));  p["b1"] = pg.f32((cout,))
        p["w2"] = pg.bf16((3, 3, cout, cout)); p["b2"] = pg.f32((cout,))
    p["g1"] = jnp.ones((cout,), F32); p["bt1"] = jnp.zeros((cout,), F32)
    p["g2"] = jnp.ones((cout,), F32); p["bt2"] = jnp.zeros((cout,), F32)
    return p


def block_fwd(p, x, x_sc, x_sh, x_extra=None):
    """Block forward in deferred-BN form: returns (raw bf16 output, scale, shift)."""
    if p["seperable"]:
        y1, s1, h1 = sepconv_layer(x, x_sc, x_sh, p["sw1"], p["sb1"], p["pw1"],
                                   p["pb1"], p["g1"], p["bt1"], x_extra=x_extra)
        y2, s2, h2 = sepconv_layer(y1, s1, h1, p["sw2"], p["sb2"], p["pw2"],
                                   p["pb2"], p["g2"], p["bt2"])
    else:
        y1, s1, h1 = conv3x3_layer(x, x_sc, x_sh, p["w1"], p["b1"], p["g1"],
                                   p["bt1"], x_extra=x_extra)
        y2, s2, h2 = conv3x3_layer(y1, s1, h1, p["w2"], p["b2"], p["g2"], p["bt2"])
    # activation=False (default) -> LeakyReLU / Dropout(0.65) never applied
    return y2, s2, h2


def init_uenc(pg, in_chans, n_classes, ch_mul=64):
    p = {}
    p["enc1"] = init_block(pg, in_chans, ch_mul, False)
    p["enc2"] = init_block(pg, ch_mul, 2 * ch_mul, True)
    p["enc3"] = init_block(pg, 2 * ch_mul, 4 * ch_mul, True)
    p["enc4"] = init_block(pg, 4 * ch_mul, 8 * ch_mul, True)
    p["middle"] = init_block(pg, 8 * ch_mul, 16 * ch_mul, True)
    p["up1_w"] = pg.bf16((3, 3, 16 * ch_mul, 8 * ch_mul)); p["up1_b"] = pg.f32((8 * ch_mul,))
    p["dec1"] = init_block(pg, 16 * ch_mul, 8 * ch_mul, True)
    p["up2_w"] = pg.bf16((3, 3, 8 * ch_mul, 4 * ch_mul)); p["up2_b"] = pg.f32((4 * ch_mul,))
    p["dec2"] = init_block(pg, 8 * ch_mul, 4 * ch_mul, True)
    p["up3_w"] = pg.bf16((3, 3, 4 * ch_mul, 2 * ch_mul)); p["up3_b"] = pg.f32((2 * ch_mul,))
    p["dec3"] = init_block(pg, 4 * ch_mul, 2 * ch_mul, True)
    p["up4_w"] = pg.bf16((3, 3, 2 * ch_mul, ch_mul)); p["up4_b"] = pg.f32((ch_mul,))
    p["dec4"] = init_block(pg, 2 * ch_mul, ch_mul, False)
    p["final_w"] = pg.bf16((ch_mul, n_classes)); p["final_b"] = pg.f32((n_classes,))
    return p


def uenc_forward(p, x):
    e1, e1s, e1h = block_fwd(p["enc1"], x, None, None)
    e2, e2s, e2h = block_fwd(p["enc2"], maxpool2(e1), e1s, e1h)
    e3, e3s, e3h = block_fwd(p["enc3"], maxpool2(e2), e2s, e2h)
    e4, e4s, e4h = block_fwd(p["enc4"], maxpool2(e3), e3s, e3h)
    m, ms, mh = block_fwd(p["middle"], maxpool2(e4), e4s, e4h)
    u1 = conv_transpose2x(m, ms, mh, p["up1_w"], p["up1_b"])
    d1, d1s, d1h = block_fwd(p["dec1"], e4, e4s, e4h, x_extra=u1)    # cat([enc4, up1])
    u2 = conv_transpose2x(d1, d1s, d1h, p["up2_w"], p["up2_b"])
    d2, d2s, d2h = block_fwd(p["dec2"], e3, e3s, e3h, x_extra=u2)
    u3 = conv_transpose2x(d2, d2s, d2h, p["up3_w"], p["up3_b"])
    d3, d3s, d3h = block_fwd(p["dec3"], e2, e2s, e2h, x_extra=u3)
    u4 = conv_transpose2x(d3, d3s, d3h, p["up4_w"], p["up4_b"])
    d4, d4s, d4h = block_fwd(p["dec4"], e1, e1s, e1h, x_extra=u4)
    return conv1x1(d4, d4s, d4h, p["final_w"], p["final_b"], softmax=True)  # F.softmax(.,1)


def init_udec(pg, n_classes, out_chans, depth=4, ch_mul=64):
    p = {"downs": [], "ups": [], "decs": []}
    p["downs"].append(init_block(pg, n_classes, ch_mul, False))
    ch_in = ch_mul
    ch_out = ch_in
    for _ in range(depth - 1):
        ch_out = 2 * ch_in
        p["downs"].append(init_block(pg, ch_in, ch_out, True))
        ch_in = ch_out
    p["middle"] = init_block(pg, ch_out, ch_out * 2, True)
    ch_in = ch_out * 2
    for i in range(depth):
        ch_out = ch_in // 2
        sep = i != depth - 1
        p["ups"].append({"w": pg.bf16((3, 3, ch_in, ch_out)), "b": pg.f32((ch_out,))})
        p["decs"].append(init_block(pg, ch_in, ch_out, sep))
        ch_in = ch_out
    p["final_w"] = pg.bf16((ch_mul, out_chans)); p["final_b"] = pg.f32((out_chans,))
    return p


def udec_forward(p, x):
    y, sc, sh = block_fwd(p["downs"][0], x, None, None)   # softmax output consumed raw
    skips = [(y, sc, sh)]
    for i in range(len(p["downs"]) - 1):
        y, sc, sh = block_fwd(p["downs"][i + 1], maxpool2(y), sc, sh)
        skips.append((y, sc, sh))
    y, sc, sh = block_fwd(p["middle"], maxpool2(y), sc, sh)
    for i in range(len(p["ups"])):
        sk, sks, skh = skips[-(i + 1)]
        up = conv_transpose2x(y, sc, sh, p["ups"][i]["w"], p["ups"][i]["b"])
        y, sc, sh = block_fwd(p["decs"][i], sk, sks, skh, x_extra=up)  # cat([skip, up])
    return conv1x1(y, sc, sh, p["final_w"], p["final_b"])


def init_wnet(seed, in_chans, n_classes, out_chans=1000, dec_depth=4, dec_ch_mul=64):
    if out_chans == 1000:
        out_chans = in_chans
    pg = ParamGen(seed)
    # TODO(synk): pretrained_dec checkpoint loading omitted (synthetic weights; a real
    #             ConvTranspose2d checkpoint would need (Cin,Cout,kH,kW)->(kH,kW,Cin,Cout)).
    return {
        "uenc": init_uenc(pg, in_chans, n_classes, ch_mul=64),
        "udec": init_udec(pg, n_classes, out_chans, depth=dec_depth, ch_mul=dec_ch_mul),
    }


def wnet_forward(params, x, compute_dec):
    enc = uenc_forward(params["uenc"], x)
    if compute_dec is False:
        return enc
    return udec_forward(params["udec"], enc)


# ----------------------------------------------------------------------------
if __name__ == "__main__":
    N, H, W = 2, 16, 16
    in_chans, n_classes = 3, 4

    key = jax.random.PRNGKey(0)
    # PyTorch input is NCHW (2, 3, 16, 16); transpose to the NHWC kernel layout.
    x_nchw = jax.random.normal(key, (N, in_chans, H, W), dtype=jnp.float32)
    x = jnp.transpose(x_nchw, (0, 2, 3, 1))

    params = init_wnet(seed=42, in_chans=in_chans, n_classes=n_classes,
                       dec_depth=4, dec_ch_mul=64)

    dec = wnet_forward(params, x, compute_dec=True)   # full W-Net (enc -> dec)
    dec = jax.block_until_ready(dec)
    assert dec.shape == (N, H, W, in_chans)
    print("KERNEL_OK")
</pallas_src>

<mosaic_0001>
module attributes {stable_mosaic.version = 11 : i64} {
  func.func @_conv3x3_kernel(%arg0: i32, %arg1: memref<2x16x16x3xf32, #tpu.memory_space<vmem>>, %arg2: memref<1x3xf32, #tpu.memory_space<vmem>>, %arg3: memref<1x3xf32, #tpu.memory_space<vmem>>, %arg4: memref<3x3x3x64xbf16, #tpu.memory_space<vmem>>, %arg5: memref<1x64xf32, #tpu.memory_space<vmem>>, %arg6: memref<2x256x64xbf16, #tpu.memory_space<vmem>>, %arg7: memref<1x2x64xf32, #tpu.memory_space<vmem>>, %arg8: memref<2x18x18x3xbf16, #tpu.memory_space<vmem>>) attributes {dimension_semantics = [#tpu.dimension_semantics<parallel>], iteration_bounds = array<i64: 1>, scalar_prefetch = 0 : i64, scratch_operands = 1 : i64, tpu.core_type = #tpu.core_type<tc>, window_params = [{transform_indices = @transform_0, window_bounds = array<i64: 2, 16, 16, 3>}, {pipeline_mode = #tpu.pipeline_mode<synchronous>, transform_indices = @transform_1, window_bounds = array<i64: 1, 3>}, {pipeline_mode = #tpu.pipeline_mode<synchronous>, transform_indices = @transform_2, window_bounds = array<i64: 1, 3>}, {pipeline_mode = #tpu.pipeline_mode<synchronous>, transform_indices = @transform_3, window_bounds = array<i64: 3, 3, 3, 64>}, {pipeline_mode = #tpu.pipeline_mode<synchronous>, transform_indices = @transform_4, window_bounds = array<i64: 1, 64>}, {transform_indices = @transform_5, window_bounds = array<i64: 2, 256, 64>}, {transform_indices = @transform_6, window_bounds = array<i64: 1, 2, 64>}]} {
    %cst = arith.constant 0.000000e+00 : bf16
    %0 = vector.broadcast %cst : bf16 to vector<2x18x18x3xbf16>
    %c0 = arith.constant 0 : index
    %c0_0 = arith.constant 0 : index
    %c0_1 = arith.constant 0 : index
    %c0_2 = arith.constant 0 : index
    %1 = vector.load %arg8[%c0, %c0_0, %c0_1, %c0_2] : memref<2x18x18x3xbf16, #tpu.memory_space<vmem>>, vector<2x18x18x3xbf16>
    tpu.vector_store %arg8[%c0, %c0_0, %c0_1, %c0_2], %0 {strides = array<i32>} : memref<2x18x18x3xbf16, #tpu.memory_space<vmem>>, vector<2x18x18x3xbf16>,
    %c0_3 = arith.constant 0 : index
    %c0_4 = arith.constant 0 : index
    %c0_5 = arith.constant 0 : index
    %c0_6 = arith.constant 0 : index
    %2 = vector.load %arg1[%c0_3, %c0_4, %c0_5, %c0_6] : memref<2x16x16x3xf32, #tpu.memory_space<vmem>>, vector<2x16x16x3xf32>
    %3 = arith.truncf %2 : vector<2x16x16x3xf32> to vector<2x16x16x3xbf16>
    %c0_7 = arith.constant 0 : index
    %c1 = arith.constant 1 : index
    %c1_8 = arith.constant 1 : index
    %c0_9 = arith.constant 0 : index
    %4 = vector.load %arg8[%c0_7, %c1, %c1_8, %c0_9] : memref<2x18x18x3xbf16, #tpu.memory_space<vmem>>, vector<2x16x16x3xbf16>
    tpu.vector_store %arg8[%c0_7, %c1, %c1_8, %c0_9], %3 {strides = array<i32>} : memref<2x18x18x3xbf16, #tpu.memory_space<vmem>>, vector<2x16x16x3xbf16>,
    %c0_10 = arith.constant 0 : index
    %c0_11 = arith.constant 0 : index
    %c0_12 = arith.constant 0 : index
    %c0_13 = arith.constant 0 : index
    %5 = vector.load %arg8[%c0_10, %c0_11, %c0_12, %c0_13] : memref<2x18x18x3xbf16, #tpu.memory_space<vmem>>, vector<2x18x18x3xbf16>
    %cst_14 = arith.constant 0.000000e+00 : f32
    %6 = vector.broadcast %cst_14 : f32 to vector<512x64xf32>
    %7 = vector.extract_strided_slice %5 {offsets = [0, 0, 0, 0], sizes = [2, 16, 16, 3], strides = [1, 1, 1, 1]} : vector<2x18x18x3xbf16> to vector<2x16x16x3xbf16>
    %8 = vector.shape_cast %7 : vector<2x16x16x3xbf16> to vector<512x3xbf16>
    %c0_15 = arith.constant 0 : index
    %c0_16 = arith.constant 0 : index
    %c0_17 = arith.constant 0 : index
    %c0_18 = arith.constant 0 : index
    %9 = vector.load %arg4[%c0_15, %c0_16, %c0_17, %c0_18] : memref<3x3x3x64xbf16, #tpu.memory_space<vmem>>, vector<1x1x3x64xbf16>
    %10 = vector.shape_cast %9 : vector<1x1x3x64xbf16> to vector<3x64xbf16>
    %cst_19 = arith.constant dense<0.000000e+00> : vector<512x64xf32>
    %11 = tpu.matmul %8, %10, %cst_19 {dimension_numbers = #tpu.dot_dimension_numbers<[1], [0], [0], [1], [0, 0, 1, 1], [], []>} : vector<512x3xbf16>, vector<3x64xbf16>, vector<512x64xf32> -> vector<512x64xf32>
    %12 = arith.addf %6, %11 : vector<512x64xf32>
    %13 = vector.extract_strided_slice %5 {offsets = [0, 0, 1, 0], sizes = [2, 16, 16, 3], strides = [1, 1, 1, 1]} : vector<2x18x18x3xbf16> to vector<2x16x16x3xbf16>
    %14 = vector.shape_cast %13 : vector<2x16x16x3xbf16> to vector<512x3xbf16>
    %c0_20 = arith.constant 0 : index
    %c1_21 = arith.constant 1 : index
    %c0_22 = arith.constant 0 : index
    %c0_23 = arith.constant 0 : index
    %15 = vector.load %arg4[%c0_20, %c1_21, %c0_22, %c0_23] : memref<3x3x3x64xbf16, #tpu.memory_space<vmem>>, vector<1x1x3x64xbf16>
    %16 = vector.shape_cast %15 : vector<1x1x3x64xbf16> to vector<3x64xbf16>
    %cst_24 = arith.constant dense<0.000000e+00> : vector<512x64xf32>
    %17 = tpu.matmul %14, %16, %cst_24 {dimension_numbers = #tpu.dot_dimension_numbers<[1], [0], [0], [1], [0, 0, 1, 1], [], []>} : vector<512x3xbf16>, vector<3x64xbf16>, vector<512x64xf32> -> vector<512x64xf32>
    %18 = arith.addf %12, %17 : vector<512x64xf32>
    %19 = vector.extract_strided_slice %5 {offsets = [0, 0, 2, 0], sizes = [2, 16, 16, 3], strides = [1, 1, 1, 1]} : vector<2x18x18x3xbf16> to vector<2x16x16x3xbf16>
    %20 = vector.shape_cast %19 : vector<2x16x16x3xbf16> to vector<512x3xbf16>
    %c0_25 = arith.constant 0 : index
    %c2 = arith.constant 2 : index
    %c0_26 = arith.constant 0 : index
    %c0_27 = arith.constant 0 : index
    %21 = vector.load %arg4[%c0_25, %c2, %c0_26, %c0_27] : memref<3x3x3x64xbf16, #tpu.memory_space<vmem>>, vector<1x1x3x64xbf16>
    %22 = vector.shape_cast %21 : vector<1x1x3x64xbf16> to vector<3x64xbf16>
    %cst_28 = arith.constant dense<0.000000e+00> : vector<512x64xf32>
    %23 = tpu.matmul %20, %22, %cst_28 {dimension_numbers = #tpu.dot_dimension_numbers<[1], [0], [0], [1], [0, 0, 1, 1], [], []>} : vector<512x3xbf16>, vector<3x64xbf16>, vector<512x64xf32> -> vector<512x64xf32>
    %24 = arith.addf %18, %23 : vector<512x64xf32>
    %25 = vector.extract_strided_slice %5 {offsets = [0, 1, 0, 0], sizes = [2, 16, 16, 3], strides = [1, 1, 1, 1]} : vector<2x18x18x3xbf16> to vector<2x16x16x3xbf16>
    %26 = vector.shape_cast %25 : vector<2x16x16x3xbf16> to vector<512x3xbf16>
    %c1_29 = arith.constant 1 : index
    %c0_30 = arith.constant 0 : index
    %c0_31 = arith.constant 0 : index
    %c0_32 = arith.constant 0 : index
    %27 = vector.load %arg4[%c1_29, %c0_30, %c0_31, %c0_32] : memref<3x3x3x64xbf16, #tpu.memory_space<vmem>>, vector<1x1x3x64xbf16>
    %28 = vector.shape_cast %27 : vector<1x1x3x64xbf16> to vector<3x64xbf16>
    %cst_33 = arith.constant dense<0.000000e+00> : vector<512x64xf32>
    %29 = tpu.matmul %26, %28, %cst_33 {dimension_numbers = #tpu.dot_dimension_numbers<[1], [0], [0], [1], [0, 0, 1, 1], [], []>} : vector<512x3xbf16>, vector<3x64xbf16>, vector<512x64xf32> -> vector<512x64xf32>
    %30 = arith.addf %24, %29 : vector<512x64xf32>
    %31 = vector.extract_strided_slice %5 {offsets = [0, 1, 1, 0], sizes = [2, 16, 16, 3], strides = [1, 1, 1, 1]} : vector<2x18x18x3xbf16> to vector<2x16x16x3xbf16>
    %32 = vector.shape_cast %31 : vector<2x16x16x3xbf16> to vector<512x3xbf16>
    %c1_34 = arith.constant 1 : index
    %c1_35 = arith.constant 1 : index
    %c0_36 = arith.constant 0 : index
    %c0_37 = arith.constant 0 : index
    %33 = vector.load %arg4[%c1_34, %c1_35, %c0_36, %c0_37] : memref<3x3x3x64xbf16, #tpu.memory_space<vmem>>, vector<1x1x3x64xbf16>
    %34 = vector.shape_cast %33 : vector<1x1x3x64xbf16> to vector<3x64xbf16>
    %cst_38 = arith.constant dense<0.000000e+00> : vector<512x64xf32>
    %35 = tpu.matmul %32, %34, %cst_38 {dimension_numbers = #tpu.dot_dimension_numbers<[1], [0], [0], [1], [0, 0, 1, 1], [], []>} : vector<512x3xbf16>, vector<3x64xbf16>, vector<512x64xf32> -> vector<512x64xf32>
    %36 = arith.addf %30, %35 : vector<512x64xf32>
    %37 = vector.extract_strided_slice %5 {offsets = [0, 1, 2, 0], sizes = [2, 16, 16, 3], strides = [1, 1, 1, 1]} : vector<2x18x18x3xbf16> to vector<2x16x16x3xbf16>
    %38 = vector.shape_cast %37 : vector<2x16x16x3xbf16> to vector<512x3xbf16>
    %c1_39 = arith.constant 1 : index
    %c2_40 = arith.constant 2 : index
    %c0_41 = arith.constant 0 : index
    %c0_42 = arith.constant 0 : index
    %39 = vector.load %arg4[%c1_39, %c2_40, %c0_41, %c0_42] : memref<3x3x3x64xbf16, #tpu.memory_space<vmem>>, vector<1x1x3x64xbf16>
    %40 = vector.shape_cast %39 : vector<1x1x3x64xbf16> to vector<3x64xbf16>
    %cst_43 = arith.constant dense<0.000000e+00> : vector<512x64xf32>
    %41 = tpu.matmul %38, %40, %cst_43 {dimension_numbers = #tpu.dot_dimension_numbers<[1], [0], [0], [1], [0, 0, 1, 1], [], []>} : vector<512x3xbf16>, vector<3x64xbf16>, vector<512x64xf32> -> vector<512x64xf32>
    %42 = arith.addf %36, %41 : vector<512x64xf32>
    %43 = vector.extract_strided_slice %5 {offsets = [0, 2, 0, 0], sizes = [2, 16, 16, 3], strides = [1, 1, 1, 1]} : vector<2x18x18x3xbf16> to vector<2x16x16x3xbf16>
    %44 = vector.shape_cast %43 : vector<2x16x16x3xbf16> to vector<512x3xbf16>
    %c2_44 = arith.constant 2 : index
    %c0_45 = arith.constant 0 : index
    %c0_46 = arith.constant 0 : index
    %c0_47 = arith.constant 0 : index
    %45 = vector.load %arg4[%c2_44, %c0_45, %c0_46, %c0_47] : memref<3x3x3x64xbf16, #tpu.memory_space<vmem>>, vector<1x1x3x64xbf16>
    %46 = vector.shape_cast %45 : vector<1x1x3x64xbf16> to vector<3x64xbf16>
    %cst_48 = arith.constant dense<0.000000e+00> : vector<512x64xf32>
    %47 = tpu.matmul %44, %46, %cst_48 {dimension_numbers = #tpu.dot_dimension_numbers<[1], [0], [0], [1], [0, 0, 1, 1], [], []>} : vector<512x3xbf16>, vector<3x64xbf16>, vector<512x64xf32> -> vector<512x64xf32>
    %48 = arith.addf %42, %47 : vector<512x64xf32>
    %49 = vector.extract_strided_slice %5 {offsets = [0, 2, 1, 0], sizes = [2, 16, 16, 3], strides = [1, 1, 1, 1]} : vector<2x18x18x3xbf16> to vector<2x16x16x3xbf16>
    %50 = vector.shape_cast %49 : vector<2x16x16x3xbf16> to vector<512x3xbf16>
    %c2_49 = arith.constant 2 : index
    %c1_50 = arith.constant 1 : index
    %c0_51 = arith.constant 0 : index
    %c0_52 = arith.constant 0 : index
    %51 = vector.load %arg4[%c2_49, %c1_50, %c0_51, %c0_52] : memref<3x3x3x64xbf16, #tpu.memory_space<vmem>>, vector<1x1x3x64xbf16>
    %52 = vector.shape_cast %51 : vector<1x1x3x64xbf16> to vector<3x64xbf16>
    %cst_53 = arith.constant dense<0.000000e+00> : vector<512x64xf32>
    %53 = tpu.matmul %50, %52, %cst_53 {dimension_numbers = #tpu.dot_dimension_numbers<[1], [0], [0], [1], [0, 0, 1, 1], [], []>} : vector<512x3xbf16>, vector<3x64xbf16>, vector<512x64xf32> -> vector<512x64xf32>
    %54 = arith.addf %48, %53 : vector<512x64xf32>
    %55 = vector.extract_strided_slice %5 {offsets = [0, 2, 2, 0], sizes = [2, 16, 16, 3], strides = [1, 1, 1, 1]} : vector<2x18x18x3xbf16> to vector<2x16x16x3xbf16>
    %56 = vector.shape_cast %55 : vector<2x16x16x3xbf16> to vector<512x3xbf16>
    %c2_54 = arith.constant 2 : index
    %c2_55 = arith.constant 2 : index
    %c0_56 = arith.constant 0 : index
    %c0_57 = arith.constant 0 : index
    %57 = vector.load %arg4[%c2_54, %c2_55, %c0_56, %c0_57] : memref<3x3x3x64xbf16, #tpu.memory_space<vmem>>, vector<1x1x3x64xbf16>
    %58 = vector.shape_cast %57 : vector<1x1x3x64xbf16> to vector<3x64xbf16>
    %cst_58 = arith.constant dense<0.000000e+00> : vector<512x64xf32>
    %59 = tpu.matmul %56, %58, %cst_58 {dimension_numbers = #tpu.dot_dimension_numbers<[1], [0], [0], [1], [0, 0, 1, 1], [], []>} : vector<512x3xbf16>, vector<3x64xbf16>, vector<512x64xf32> -> vector<512x64xf32>
    %60 = arith.addf %54, %59 : vector<512x64xf32>
    %c0_59 = arith.constant 0 : index
    %c0_60 = arith.constant 0 : index
    %61 = vector.load %arg5[%c0_59, %c0_60] : memref<1x64xf32, #tpu.memory_space<vmem>>, vector<1x64xf32>
    %62 = vector.broadcast %61 : vector<1x64xf32> to vector<512x64xf32>
    %63 = arith.addf %60, %62 : vector<512x64xf32>
    %64 = vector.shape_cast %63 : vector<512x64xf32> to vector<2x256x64xf32>
    %65 = arith.truncf %64 : vector<2x256x64xf32> to vector<2x256x64xbf16>
    %c0_61 = arith.constant 0 : index
    %c0_62 = arith.constant 0 : index
    %c0_63 = arith.constant 0 : index
    %66 = vector.load %arg6[%c0_61, %c0_62, %c0_63] : memref<2x256x64xbf16, #tpu.memory_space<vmem>>, vector<2x256x64xbf16>
    tpu.vector_store %arg6[%c0_61, %c0_62, %c0_63], %65 {strides = array<i32>} : memref<2x256x64xbf16, #tpu.memory_space<vmem>>, vector<2x256x64xbf16>,
    %cst_64 = arith.constant dense<0.000000e+00> : vector<64xf32>
    %67 = vector.multi_reduction <add>, %63, %cst_64 [0] : vector<512x64xf32> to vector<64xf32>
    %68 = vector.shape_cast %67 : vector<64xf32> to vector<1x64xf32>
    %69 = arith.mulf %63, %63 : vector<512x64xf32>
    %cst_65 = arith.constant dense<0.000000e+00> : vector<64xf32>
    %70 = vector.multi_reduction <add>, %69, %cst_65 [0] : vector<512x64xf32> to vector<64xf32>
    %71 = vector.shape_cast %70 : vector<64xf32> to vector<1x64xf32>
    %72 = tpu.concatenate %68, %71 in 0 : vector<1x64xf32>, vector<1x64xf32> -> vector<2x64xf32>
    %c0_66 = arith.constant 0 : index
    %c0_67 = arith.constant 0 : index
    %c0_68 = arith.constant 0 : index
    %73 = vector.load %arg7[%c0_66, %c0_67, %c0_68] : memref<1x2x64xf32, #tpu.memory_space<vmem>>, vector<1x2x64xf32>
    %74 = vector.shape_cast %73 : vector<1x2x64xf32> to vector<2x64xf32>
    %75 = vector.shape_cast %72 : vector<2x64xf32> to vector<1x2x64xf32>
    tpu.vector_store %arg7[%c0_66, %c0_67, %c0_68], %75 {strides = array<i32>} : memref<1x2x64xf32, #tpu.memory_space<vmem>>, vector<1x2x64xf32>,
    return
  }
  func.func @transform_0(%arg0: i32) -> (i32, i32, i32, i32) {
    %c0_i32 = arith.constant 0 : i32
    %c0_i32_0 = arith.constant 0 : i32
    %c0_i32_1 = arith.constant 0 : i32
    %c0_i32_2 = arith.constant 0 : i32
    return %arg0, %c0_i32, %c0_i32_0, %c0_i32_1 : i32, i32, i32, i32
  }
  func.func @transform_1(%arg0: i32) -> (i32, i32) {
    %c0_i32 = arith.constant 0 : i32
    %c0_i32_0 = arith.constant 0 : i32
    %c0_i32_1 = arith.constant 0 : i32
    return %c0_i32, %c0_i32_0 : i32, i32
  }
  func.func @transform_2(%arg0: i32) -> (i32, i32) {
    %c0_i32 = arith.constant 0 : i32
    %c0_i32_0 = arith.constant 0 : i32
    %c0_i32_1 = arith.constant 0 : i32
    return %c0_i32, %c0_i32_0 : i32, i32
  }
  func.func @transform_3(%arg0: i32) -> (i32, i32, i32, i32) {
    %c0_i32 = arith.constant 0 : i32
    %c0_i32_0 = arith.constant 0 : i32
    %c0_i32_1 = arith.constant 0 : i32
    %c0_i32_2 = arith.constant 0 : i32
    %c0_i32_3 = arith.constant 0 : i32
    return %c0_i32, %c0_i32_0, %c0_i32_1, %c0_i32_2 : i32, i32, i32, i32
  }
  func.func @transform_4(%arg0: i32) -> (i32, i32) {
    %c0_i32 = arith.constant 0 : i32
    %c0_i32_0 = arith.constant 0 : i32
    %c0_i32_1 = arith.constant 0 : i32
    return %c0_i32, %c0_i32_0 : i32, i32
  }
  func.func @transform_5(%arg0: i32) -> (i32, i32, i32) {
    %c0_i32 = arith.constant 0 : i32
    %c0_i32_0 = arith.constant 0 : i32
    %c0_i32_1 = arith.constant 0 : i32
    return %arg0, %c0_i32, %c0_i32_0 : i32, i32, i32
  }
  func.func @transform_6(%arg0: i32) -> (i32, i32, i32) {
    %c0_i32 = arith.constant 0 : i32
    %c0_i32_0 = arith.constant 0 : i32
    %c0_i32_1 = arith.constant 0 : i32
    return %arg0, %c0_i32, %c0_i32_0 : i32, i32, i32
  }
}

</mosaic_0001>

<bundles_post_ra>
// kernel: conv3x3_layer.1
= control target key start
LH: loop header
LB: loop body
LE: loop exit
PB: predicated region body
PF: predicated region fallthrough
CT: control target
= control target key end

     0   :  { %vm2338_vm0 = vcmask 1040384   ;;  %vm2339_vm1 = vcmask 1041408   ;;  %vm24_vm2 = vcmask 19456   ;;  %v8793_v1 = vmov 65535   ;;  %s12219_s0 = inlined_call_operand.vmem [shape: f32[2,16,16,3], index: 0, kind: input, shape index: {}]   ;;  %s12220_s1 = inlined_call_operand.vmem [shape: f32[1,3], index: 1, kind: input, shape index: {}]   ;;  %s12221_s2 = inlined_call_operand.vmem [shape: f32[1,3], index: 2, kind: input, shape index: {}]   ;;  %s12222_s3 = inlined_call_operand.vmem [shape: bf16[3,3,3,64], index: 3, kind: input, shape index: {}]   ;;  %s12223_s4 = inlined_call_operand.vmem [shape: f32[1,64], index: 4, kind: input, shape index: {}]   ;;  %s12224_s5 = inlined_call_operand.hbm [shape: bf16[2,256,64], index: 5, kind: output, shape index: {0}]   ;;  %s12225_s6 = inlined_call_operand.vmem [shape: f32[1,2,64], index: 6, kind: output, shape index: {1}]  }
   0x1   :  { %v8836_v0 = vld [vmem:[%s12222_s3 + $0x2] sm:$0x3]  ;;  %v2340_v2 = vsel %vm2338_vm0, 4294967295, %v8793_v1  ;;  %vm27_vm3 = vcmask 16384   ;;  %v8794_v5 = vmov 0   ;;  %v135_v10 = vld [vmem:[%s12219_s0 + $0x8] sm:$0xff] }
   0x2   :  { %v8842_v3 = vld [vmem:[%s12219_s0] sm:$0xff]  ;;  %v8844_v4 = vsel %vm2339_vm1, %v2340_v2, 0  ;;  %25 = vst.msk [vmem:[#allocation2] sm:$0xf] %vm24_vm2, %v8794_v5  ;;  %26 = vst.msk [vmem:[#allocation2 + $0x4] sm:$0xf] %vm24_vm2, %v8794_v5  ;;  %v7663_v12 = vpack.c.bf16 %v135_v10, %v135_v10 }
   0x3   :  { %28 = vst.msk [vmem:[#allocation2 + $0x8] sm:$0x1] %vm27_vm3, %v8794_v5  ;;  %31 = vst.msk [vmem:[#allocation2 + $0x14] sm:$0x1] %vm27_vm3, %v8794_v5  ;;  %v1371_v6 = vld [vmem:[%s12222_s3] sm:$0x3]  ;;  %v7662_v7 = vpack.c.bf16 %v8842_v3, %v8842_v3  ;;  %v2343_v8 = vand.u32 %v8836_v0, %v8844_v4 }
   0x4   :  { %29 = vst.msk [vmem:[#allocation2 + $0xc] sm:$0xf] %vm24_vm2, %v8794_v5  ;;  %30 = vst.msk [vmem:[#allocation2 + $0x10] sm:$0xf] %vm24_vm2, %v8794_v5  ;;  %v9070_v9 = vand.u32 %v8844_v4, %v1371_v6  ;;  %v166_v11 = vld [vmem:[%s12219_s0 + $0x100] sm:$0xff]  ;;  %v167_v14 = vld [vmem:[%s12219_s0 + $0x108] sm:$0xff] }
   0x5   :  { %32 = vst.msk [vmem:[#allocation2 + $0x18] sm:$0xf] %vm24_vm2, %v8794_v5  ;;  %33 = vst.msk [vmem:[#allocation2 + $0x1c] sm:$0xf] %vm24_vm2, %v8794_v5  ;;  %vm1372_vm4 = vsmask.f32 3328  ;;  %8681 = vmatprep.subr.bf16.mxu1 %v2343_v8  ;;  %8087 = vmatprep.subr.bf16.mxu0 %v2343_v8  ;;  %v9081_v16 = vpack.c.bf16 %v166_v11, %v166_v11  ;;  %v9083_v17 = vpack.c.bf16 %v167_v14, %v167_v14 }
   0x6   :  { %34 = vst.msk [vmem:[#allocation2 + $0x20] sm:$0x1] %vm27_vm3, %v8794_v5  ;;  %37 = vst.msk [vmem:[#allocation2 + $0x2c] sm:$0x1] %vm27_vm3, %v8794_v5  ;;  %vm1373_vm5 = vsmask.f32 7440  ;;  %8682 = vmatpush3.bf16.msra.mxu1 %v2343_v8  ;;  %8088 = vmatpush3.bf16.msra.mxu0 %v2343_v8 }
   0x7   :  { %35 = vst.msk [vmem:[#allocation2 + $0x24] sm:$0xf] %vm24_vm2, %v8794_v5  ;;  %36 = vst.msk [vmem:[#allocation2 + $0x28] sm:$0xf] %vm24_vm2, %v8794_v5  ;;  %v394_v13 = vshrl.u32 %v7662_v7, 16  ;;  %v397_v15 = vshll.u32 %v7662_v7, 16  ;;  %8153 = vmatprep.subr.bf16.mxu1 %v9070_v9 }
   0x8   :  { %38 = vst.msk [vmem:[#allocation2 + $0x30] sm:$0xf] %vm24_vm2, %v8794_v5  ;;  %39 = vst.msk [vmem:[#allocation2 + $0x34] sm:$0xf] %vm24_vm2, %v8794_v5  ;;  %vm390_vm6 = vsmask.f32 256 }
   0x9   :  { %40 = vst.msk [vmem:[#allocation2 + $0x38] sm:$0x1] %vm27_vm3, %v8794_v5  ;;  %43 = vst.msk [vmem:[#allocation2 + $0x44] sm:$0x1] %vm27_vm3, %v8794_v5  ;;  %v7318_v18 = vld [vmem:[%s12222_s3 + $0x4] sm:$0x3] }
   0xa   :  { %41 = vst.msk [vmem:[#allocation2 + $0x3c] sm:$0xf] %vm24_vm2, %v8794_v5  ;;  %42 = vst.msk [vmem:[#allocation2 + $0x40] sm:$0xf] %vm24_vm2, %v8794_v5  ;;  %vm391_vm7 = vsmask.f32 4368  ;;  %v9091_v21 = vand.u32 %v7318_v18, %v8844_v4 }
   0xb   :  { %44 = vst.msk [vmem:[#allocation2 + $0x48] sm:$0xf] %vm24_vm2, %v8794_v5  ;;  %45 = vst.msk [vmem:[#allocation2 + $0x4c] sm:$0xf] %vm24_vm2, %v8794_v5  ;;  %v9088_v19 = vrot.slane %v394_v13, 7  ;;  %v402_v20 = vshrl.u32 %v7663_v12, 16 }
   0xc   :  { %46 = vst.msk [vmem:[#allocation2 + $0x50] sm:$0x1] %vm27_vm3, %v8794_v5  ;;  %49 = vst.msk [vmem:[#allocation2 + $0x5c] sm:$0x1] %vm27_vm3, %v8794_v5  ;;  %v136_v22 = vld [vmem:[%s12219_s0 + $0x10] sm:$0xff]  ;;  %v137_v23 = vld [vmem:[%s12219_s0 + $0x18] sm:$0xff]  ;;  %8219 = vmatprep.subr.bf16.mxu0 %v9091_v21 }
   0xd   :  { %47 = vst.msk [vmem:[#allocation2 + $0x54] sm:$0xf] %vm24_vm2, %v8794_v5  ;;  %48 = vst.msk [vmem:[#allocation2 + $0x58] sm:$0xf] %vm24_vm2, %v8794_v5  ;;  %v405_v24 = vshll.u32 %v7663_v12, 16  ;;  %v666_v25 = vshrl.u32 %v9081_v16, 16  ;;  %v399_v36 = vor.u32 %v397_v15, %v9088_v19  ;;  %v9115_v37 = vpack.c.bf16 %v136_v22, %v136_v22 }
   0xe   :  { %50 = vst.msk [vmem:[#allocation2 + $0x60] sm:$0xf] %vm24_vm2, %v8794_v5  ;;  %51 = vst.msk [vmem:[#allocation2 + $0x64] sm:$0xf] %vm24_vm2, %v8794_v5  ;;  %vm1035_vm8 = vsmask.f32 7938  ;;  %v9117_v38 = vpack.c.bf16 %v137_v23, %v137_v23 }
   0xf   :  { %52 = vst.msk [vmem:[#allocation2 + $0x68] sm:$0x1] %vm27_vm3, %v8794_v5  ;;  %55 = vst.msk [vmem:[#allocation2 + $0x74] sm:$0x1] %vm27_vm3, %v8794_v5  ;;  %v669_v26 = vshll.u32 %v9081_v16, 16  ;;  %v400_v27 = vrot.slane %v9088_v19, 4 }
  0x10   :  { %53 = vst.msk [vmem:[#allocation2 + $0x6c] sm:$0xf] %vm24_vm2, %v8794_v5  ;;  %54 = vst.msk [vmem:[#allocation2 + $0x70] sm:$0xf] %vm24_vm2, %v8794_v5  ;;  %v9103_v28 = vrot.slane %v402_v20, 7  ;;  %v674_v29 = vshrl.u32 %v9083_v17, 16 }
  0x11   :  { %56 = vst.msk [vmem:[#allocation2 + $0x78] sm:$0xf] %vm24_vm2, %v8794_v5  ;;  %57 = vst.msk [vmem:[#allocation2 + $0x7c] sm:$0xf] %vm24_vm2, %v8794_v5  ;;  %v677_v30 = vshll.u32 %v9083_v17, 16  ;;  %v168_v31 = vld [vmem:[%s12219_s0 + $0x110] sm:$0xff] }
  0x12   :  { %58 = vst.msk [vmem:[#allocation2 + $0x80] sm:$0x1] %vm27_vm3, %v8794_v5  ;;  %61 = vst.msk [vmem:[#allocation2 + $0x8c] sm:$0x1] %vm27_vm3, %v8794_v5  ;;  %v169_v32 = vld [vmem:[%s12219_s0 + $0x118] sm:$0xff]  ;;  %vm2241_vm9 = vcmask 23552   ;;  %v407_v47 = vor.u32 %v405_v24, %v9103_v28  ;;  %v9120_v48 = vpack.c.bf16 %v168_v31, %v168_v31 }
  0x13   :  { %59 = vst.msk [vmem:[#allocation2 + $0x84] sm:$0xf] %vm24_vm2, %v8794_v5  ;;  %60 = vst.msk [vmem:[#allocation2 + $0x88] sm:$0xf] %vm24_vm2, %v8794_v5  ;;  %v1263_v33 = vld [vmem:[#allocation2] sm:$0xf]  ;;  %v9122_v49 = vpack.c.bf16 %v169_v32, %v169_v32 }
  0x14   :  { %62 = vst.msk [vmem:[#allocation2 + $0x90] sm:$0xf] %vm24_vm2, %v8794_v5  ;;  %63 = vst.msk [vmem:[#allocation2 + $0x94] sm:$0xf] %vm24_vm2, %v8794_v5  ;;  %v1264_v34 = vld [vmem:[#allocation2 + $0x4] sm:$0xf] }
  0x15   :  { %64 = vst.msk [vmem:[#allocation2 + $0x98] sm:$0x1] %vm27_vm3, %v8794_v5  ;;  %67 = vst.msk [vmem:[#allocation2 + $0xa4] sm:$0x1] %vm27_vm3, %v8794_v5  ;;  %v1265_v35 = vld [vmem:[#allocation2 + $0x8] sm:$0x1] }
  0x16   :  { %65 = vst.msk [vmem:[#allocation2 + $0x9c] sm:$0xf] %vm24_vm2, %v8794_v5  ;;  %66 = vst.msk [vmem:[#allocation2 + $0xa0] sm:$0xf] %vm24_vm2, %v8794_v5  ;;  %v1376_v39 = vshrl.u32 %v1263_v33, 16  ;;  %v1379_v40 = vshll.u32 %v1263_v33, 16 }
  0x17   :  { %68 = vst.msk [vmem:[#allocation2 + $0xa8] sm:$0xf] %vm24_vm2, %v8794_v5  ;;  %69 = vst.msk [vmem:[#allocation2 + $0xac] sm:$0xf] %vm24_vm2, %v8794_v5  ;;  %v1385_v41 = vshll.u32 %v1264_v34, 16  ;;  %v1389_v42 = vshrl.u32 %v1264_v34, 16 }
  0x18   :  { %70 = vst.msk [vmem:[#allocation2 + $0xb0] sm:$0x1] %vm27_vm3, %v8794_v5  ;;  %73 = vst.msk [vmem:[#allocation2 + $0xbc] sm:$0x1] %vm27_vm3, %v8794_v5  ;;  %v1395_v44 = vshll.u32 %v1265_v35, 16  ;;  %v1378_v50 = vrot.slane %v1376_v39, 4 }
  0x19   :  { %71 = vst.msk [vmem:[#allocation2 + $0xb4] sm:$0xf] %vm24_vm2, %v8794_v5  ;;  %72 = vst.msk [vmem:[#allocation2 + $0xb8] sm:$0xf] %vm24_vm2, %v8794_v5  ;;  %v1381_v51 = vrot.slane %v1379_v40, 5  ;;  %v1387_v52 = vrot.slane %v1385_v41, 5 }
  0x1a   :  { %74 = vst.msk [vmem:[#allocation2 + $0xc0] sm:$0xf] %vm24_vm2, %v8794_v5  ;;  %75 = vst.msk [vmem:[#allocation2 + $0xc4] sm:$0xf] %vm24_vm2, %v8794_v5  ;;  %v1391_v53 = vrot.slane %v1389_v42, 4  ;;  %v138_v54 = vld [vmem:[%s12219_s0 + $0x20] sm:$0xff] }
  0x1b   :  { %76 = vst.msk [vmem:[#allocation2 + $0xc8] sm:$0x1] %vm27_vm3, %v8794_v5  ;;  %79 = vst.msk [vmem:[#allocation2 + $0xd4] sm:$0x1] %vm27_vm3, %v8794_v5  ;;  %v1397_v55 = vrot.slane %v1395_v44, 5  ;;  %v1382_v60 = vor.u32 %v1381_v51, %v1378_v50  ;;  %v12374_v2 = vmov 0  ;;  %v9145_v7 = vpack.c.bf16 %v138_v54, %v138_v54 }
  0x1c   :  { %77 = vst.msk [vmem:[#allocation2 + $0xcc] sm:$0xf] %vm24_vm2, %v8794_v5  ;;  %78 = vst.msk [vmem:[#allocation2 + $0xd0] sm:$0xf] %vm24_vm2, %v8794_v5  ;;  %v1392_v61 = vor.u32 %v1391_v53, %v1387_v52  ;;  %v1037_v1 = vld [vmem:[#allocation2 + $0xc] sm:$0xf] }
  0x1d   :  { %80 = vst.msk [vmem:[#allocation2 + $0xd8] sm:$0xf] %vm24_vm2, %v8794_v5  ;;  %81 = vst.msk [vmem:[#allocation2 + $0xdc] sm:$0xf] %vm24_vm2, %v8794_v5  ;;  %v1383_v8 = vrot.slane %v1382_v60, 4  ;;  %v409_v19 = vrot.slane %v9103_v28, 4 }
  0x1e   :  { %82 = vst.msk [vmem:[#allocation2 + $0xe0] sm:$0x1] %vm27_vm3, %v8794_v5  ;;  %85 = vst.msk [vmem:[#allocation2 + $0xec] sm:$0x1] %vm27_vm3, %v8794_v5  ;;  %v1393_v10 = vrot.slane %v1392_v61, 4  ;;  %v668_v31 = vrot.slane %v666_v25, 7 }
  0x1f   :  { %83 = vst.msk [vmem:[#allocation2 + $0xe4] sm:$0xf] %vm24_vm2, %v8794_v5  ;;  %84 = vst.msk [vmem:[#allocation2 + $0xe8] sm:$0xf] %vm24_vm2, %v8794_v5  ;;  %v1043_v14 = vld [vmem:[#allocation2 + $0x14] sm:$0x1] }
  0x20   :  { %86 = vst.msk [vmem:[#allocation2 + $0xf0] sm:$0xf] %vm24_vm2, %v8794_v5  ;;  %87 = vst.msk [vmem:[#allocation2 + $0xf4] sm:$0xf] %vm24_vm2, %v8794_v5  ;;  %v676_v33 = vrot.slane %v674_v29, 7  ;;  %v672_v39 = vrot.slane %v668_v31, 4 }
  0x21   :  { %88 = vst.msk [vmem:[#allocation2 + $0xf8] sm:$0x1] %vm27_vm3, %v8794_v5  ;;  %91 = vst.msk [vmem:[#allocation2 + $0x104] sm:$0x1] %vm27_vm3, %v8794_v5  ;;  %v411_v41 = vshrl.u32 %v9115_v37, 16  ;;  %v414_v29 = vshll.u32 %v9115_v37, 16 }
  0x22   :  { %89 = vst.msk [vmem:[#allocation2 + $0xfc] sm:$0xf] %vm24_vm2, %v8794_v5  ;;  %90 = vst.msk [vmem:[#allocation2 + $0x100] sm:$0xf] %vm24_vm2, %v8794_v5  ;;  %v679_v42 = vor.u32 %v677_v30, %v676_v33  ;;  %v170_v17 = vld [vmem:[%s12219_s0 + $0x120] sm:$0xff]  ;;  %v422_v50 = vshll.u32 %v9117_v38, 16 }
  0x23   :  { %92 = vst.msk [vmem:[#allocation2 + $0x108] sm:$0xf] %vm24_vm2, %v8794_v5  ;;  %93 = vst.msk [vmem:[#allocation2 + $0x10c] sm:$0xf] %vm24_vm2, %v8794_v5  ;;  %v171_v51 = vld [vmem:[%s12219_s0 + $0x128] sm:$0xff]  ;;  %v686_v60 = vshll.u32 %v9120_v48, 16 }
  0x24   :  { %94 = vst.msk [vmem:[#allocation2 + $0x110] sm:$0x1] %vm27_vm3, %v8794_v5  ;;  %97 = vst.msk [vmem:[#allocation2 + $0x11c] sm:$0x1] %vm27_vm3, %v8794_v5  ;;  %v1317_v43 = vld [vmem:[#allocation2 + $0xd8] sm:$0xf] }
  0x25   :  { %95 = vst.msk [vmem:[#allocation2 + $0x114] sm:$0xf] %vm24_vm2, %v8794_v5  ;;  %96 = vst.msk [vmem:[#allocation2 + $0x118] sm:$0xf] %vm24_vm2, %v8794_v5  ;;  %v1318_v45 = vld [vmem:[#allocation2 + $0xdc] sm:$0xf] }
  0x26   :  { %98 = vst.msk [vmem:[#allocation2 + $0x120] sm:$0xf] %vm24_vm2, %v8794_v5  ;;  %99 = vst.msk [vmem:[#allocation2 + $0x124] sm:$0xf] %vm24_vm2, %v8794_v5  ;;  %v1319_v46 = vld [vmem:[#allocation2 + $0xe0] sm:$0x1] }
  0x27   :  { %100 = vst.msk [vmem:[#allocation2 + $0x128] sm:$0x1] %vm27_vm3, %v8794_v5  ;;  %103 = vst.msk [vmem:[#allocation2 + $0x134] sm:$0x1] %vm27_vm3, %v8794_v5  ;;  %v1760_v56 = vshrl.u32 %v1317_v43, 16  ;;  %v1763_v57 = vshll.u32 %v1317_v43, 16 }
  0x28   :  { %101 = vst.msk [vmem:[#allocation2 + $0x12c] sm:$0xf] %vm24_vm2, %v8794_v5  ;;  %102 = vst.msk [vmem:[#allocation2 + $0x130] sm:$0xf] %vm24_vm2, %v8794_v5  ;;  %v1769_v58 = vshll.u32 %v1318_v45, 16  ;;  %v1773_v62 = vshrl.u32 %v1318_v45, 16 }
  0x29   :  { %104 = vst.msk [vmem:[#allocation2 + $0x138] sm:$0xf] %vm24_vm2, %v8794_v5  ;;  %105 = vst.msk [vmem:[#allocation2 + $0x13c] sm:$0xf] %vm24_vm2, %v8794_v5  ;;  %v1779_v63 = vshll.u32 %v1319_v46, 16  ;;  %v1762_v3 = vrot.slane %v1760_v56, 4 }
  0x2a   :  { %106 = vst.msk [vmem:[#allocation2 + $0x140] sm:$0x1] %vm27_vm3, %v8794_v5  ;;  %109 = vst.msk [vmem:[#allocation2 + $0x14c] sm:$0x1] %vm27_vm3, %v8794_v5  ;;  %v1771_v6 = vrot.slane %v1769_v58, 5  ;;  %v1775_v11 = vrot.slane %v1773_v62, 4 }
  0x2b   :  { %107 = vst.msk [vmem:[#allocation2 + $0x144] sm:$0xf] %vm24_vm2, %v8794_v5  ;;  %108 = vst.msk [vmem:[#allocation2 + $0x148] sm:$0xf] %vm24_vm2, %v8794_v5  ;;  %v1781_v12 = vrot.slane %v1779_v63, 5  ;;  %v681_v43 = vrot.slane %v676_v33, 4  ;;  %v9207_v63 = vpack.c.bf16 %v170_v17, %v170_v17 }
  0x2c   :  { %110 = vst.msk [vmem:[#allocation2 + $0x150] sm:$0xf] %vm24_vm2, %v8794_v5  ;;  %111 = vst.msk [vmem:[#allocation2 + $0x154] sm:$0xf] %vm24_vm2, %v8794_v5  ;;  %v1776_v24 = vor.u32 %v1775_v11, %v1771_v6  ;;  %v1151_v34 = vld [vmem:[#allocation2 + $0xe4] sm:$0xf] }
  0x2d   :  { %112 = vst.msk [vmem:[#allocation2 + $0x158] sm:$0x1] %vm27_vm3, %v8794_v5  ;;  %115 = vst.msk [vmem:[#allocation2 + $0x164] sm:$0x1] %vm27_vm3, %v8794_v5  ;;  %v1155_v40 = vld [vmem:[#allocation2 + $0xec] sm:$0x1] }
  0x2e   :  { %113 = vst.msk [vmem:[#allocation2 + $0x15c] sm:$0xf] %vm24_vm2, %v8794_v5  ;;  %114 = vst.msk [vmem:[#allocation2 + $0x160] sm:$0xf] %vm24_vm2, %v8794_v5  ;;  %v1777_v35 = vrot.slane %v1776_v24, 4  ;;  %v419_v45 = vshrl.u32 %v9117_v38, 16 }
  0x2f   :  { %116 = vst.msk [vmem:[#allocation2 + $0x168] sm:$0xf] %vm24_vm2, %v8794_v5  ;;  %117 = vst.msk [vmem:[#allocation2 + $0x16c] sm:$0xf] %vm24_vm2, %v8794_v5  ;;  %v139_v46 = vld [vmem:[%s12219_s0 + $0x28] sm:$0xff]  ;;  %v683_v56 = vshrl.u32 %v9120_v48, 16 }
  0x30   :  { %118 = vst.msk [vmem:[#allocation2 + $0x170] sm:$0x1] %vm27_vm3, %v8794_v5  ;;  %121 = vst.msk [vmem:[#allocation2 + $0x17c] sm:$0x1] %vm27_vm3, %v8794_v5  ;;  %v421_v54 = vrot.slane %v419_v45, 7  ;;  %v691_v61 = vshrl.u32 %v9122_v49, 16  ;;  %v9205_v62 = vpack.c.bf16 %v139_v46, %v139_v46 }
  0x31   :  { %119 = vst.msk [vmem:[#allocation2 + $0x174] sm:$0xf] %vm24_vm2, %v8794_v5  ;;  %120 = vst.msk [vmem:[#allocation2 + $0x178] sm:$0xf] %vm24_vm2, %v8794_v5 }
  0x32   :  { %122 = vst.msk [vmem:[#allocation2 + $0x180] sm:$0xf] %vm24_vm2, %v8794_v5  ;;  %123 = vst.msk [vmem:[#allocation2 + $0x184] sm:$0xf] %vm24_vm2, %v8794_v5  ;;  %v424_v11 = vor.u32 %v422_v50, %v421_v54 }
  0x33   :  { %124 = vst.msk [vmem:[#allocation2 + $0x188] sm:$0x1] %vm27_vm3, %v8794_v5  ;;  %127 = vst.msk [vmem:[#allocation2 + $0x194] sm:$0x1] %vm27_vm3, %v8794_v5 }
  0x34   :  { %125 = vst.msk [vmem:[#allocation2 + $0x18c] sm:$0xf] %vm24_vm2, %v8794_v5  ;;  %126 = vst.msk [vmem:[#allocation2 + $0x190] sm:$0xf] %vm24_vm2, %v8794_v5 }
  0x35   :  { %128 = vst.msk [vmem:[#allocation2 + $0x198] sm:$0xf] %vm24_vm2, %v8794_v5  ;;  %129 = vst.msk [vmem:[#allocation2 + $0x19c] sm:$0xf] %vm24_vm2, %v8794_v5 }
  0x36   :  { %130 = vst.msk [vmem:[#allocation2 + $0x1a0] sm:$0x1] %vm27_vm3, %v8794_v5  ;;  %133 = vst.msk [vmem:[#allocation2 + $0x1ac] sm:$0x1] %vm27_vm3, %v8794_v5 }
  0x37   :  { %131 = vst.msk [vmem:[#allocation2 + $0x1a4] sm:$0xf] %vm24_vm2, %v8794_v5  ;;  %132 = vst.msk [vmem:[#allocation2 + $0x1a8] sm:$0xf] %vm24_vm2, %v8794_v5  ;;  %v1765_v5 = vrot.slane %v1763_v57, 5  ;;  %v140_v57 = vld [vmem:[%s12219_s0 + $0x30] sm:$0xff] }
  0x38   :  { %vm9129_vm10 = vmor %vm390_vm6, %vm391_vm7 }
  0x39   :  { %vm9135_vm11 = vmand %vm24_vm2, %vm1035_vm8  ;;  %v1766_v15 = vor.u32 %v1765_v5, %v1762_v3  ;;  %v408_v18 = vsel %vm9129_vm10, %v400_v27, %v407_v47  ;;  %v680_v37 = vsel %vm9129_vm10, %v672_v39, %v679_v42 }
  0x3a   :  { %vm9141_vm12 = vmor %vm1372_vm4, %vm1373_vm5  ;;  %v1038_v20 = vsel %vm9135_vm11, %v399_v36, %v1037_v1  ;;  %1040 = vst.msk [vmem:[#allocation2 + $0x10] sm:$0xf] %vm24_vm2, %v408_v18  ;;  %v671_v36 = vor.u32 %v669_v26, %v668_v31  ;;  %v413_v26 = vrot.slane %v411_v41, 7 }
  0x3b   :  { %v12375_v2 = vsel %vm9141_vm12, 4294967295, %v12374_v2  ;;  %vm9149_vm13 = vmand %vm27_vm3, %vm390_vm6  ;;  %v1388_v22 = vsel %vm9141_vm12, %v1383_v8, %v1387_v52  ;;  %v1398_v23 = vsel %vm9141_vm12, %v1393_v10, %v1397_v55  ;;  %1039 = vst [vmem:[#allocation2 + $0xc] sm:$0xf] %v1038_v20  ;;  %v1767_v27 = vrot.slane %v1766_v15, 4  ;;  %v1046_v55 = vld [vmem:[#allocation2 + $0x18] sm:$0xf] }
  0x3c   :  { %12376 = vst [vmem:[#allocation6_spill] sm:$0xff] %v12375_v2  ;;  %v7158_v32 = vcombine.low %v1388_v22, %v1398_v23  ;;  %v1044_v28 = vsel %vm9149_vm13, %v409_v19, %v1043_v14  ;;  %v1782_v44 = vsel %vm9141_vm12, %v1777_v35, %v1781_v12  ;;  %v1152_v16 = vsel %vm9135_vm11, %v671_v36, %v1151_v34  ;;  %v1050_v8 = vld [vmem:[#allocation2 + $0x20] sm:$0x1]  ;;  %v141_v22 = vld [vmem:[%s12219_s0 + $0x38] sm:$0xff]  ;;  %v172_v23 = vld [vmem:[%s12219_s0 + $0x130] sm:$0xff] }
  0x3d   :  { %1045 = vst [vmem:[#allocation2 + $0x14] sm:$0x1] %v1044_v28  ;;  %v1772_v25 = vsel %vm9141_vm12, %v1767_v27, %v1771_v6  ;;  %1153 = vst [vmem:[#allocation2 + $0xe4] sm:$0xf] %v1152_v16  ;;  %v1156_v47 = vsel %vm9149_vm13, %v681_v43, %v1155_v40  ;;  %v416_v52 = vor.u32 %v414_v29, %v413_v26  ;;  %v417_v53 = vrot.slane %v413_v26, 4 }
  0x3e   :  { %8089 = vmatprep.mubr.msk.bf16.mxu0 %vm2241_vm9, %v7158_v32  ;;  %v7174_v30 = vcombine.low %v1772_v25, %v1782_v44  ;;  %1154 = vst.msk [vmem:[#allocation2 + $0xe8] sm:$0xf] %vm24_vm2, %v680_v37  ;;  %1157 = vst [vmem:[#allocation2 + $0xec] sm:$0x1] %v1156_v47  ;;  %v426_v12 = vrot.slane %v421_v54, 4  ;;  %v9211_v15 = vpack.c.bf16 %v171_v51, %v171_v51  ;;  %v685_v35 = vrot.slane %v683_v56, 7 }
  0x3f   :  { %v1047_v14 = vsel %vm9135_vm11, %v416_v52, %v1046_v55  ;;  %v425_v31 = vsel %vm9129_vm10, %v417_v53, %v424_v11  ;;  %v9223_v27 = vpack.c.bf16 %v140_v57, %v140_v57  ;;  %v693_v36 = vrot.slane %v691_v61, 7  ;;  %v1158_v52 = vld [vmem:[#allocation2 + $0xf0] sm:$0xf] }
  0x40   :  { %8121 = vmatprep.mubr.msk.bf16.mxu1 %vm2241_vm9, %v7174_v30  ;;  %1048 = vst [vmem:[#allocation2 + $0x18] sm:$0xf] %v1047_v14  ;;  %v1051_v32 = vsel %vm9149_vm13, %v426_v12, %v1050_v8  ;;  %1049 = vst.msk [vmem:[#allocation2 + $0x1c] sm:$0xf] %vm24_vm2, %v425_v31  ;;  %v9226_v42 = vpack.c.bf16 %v141_v22, %v141_v22  ;;  %v9228_v43 = vpack.c.bf16 %v172_v23, %v172_v23 }
  0x41   :  { %v1267_v58 = vld [vmem:[#allocation2 + $0x10] sm:$0xf]  ;;  %1052 = vst [vmem:[#allocation2 + $0x20] sm:$0x1] %v1051_v32  ;;  %v688_v30 = vor.u32 %v686_v60, %v685_v35  ;;  %v689_v57 = vrot.slane %v685_v35, 4  ;;  %v694_v60 = vshll.u32 %v9122_v49, 16 }
  0x42   :  { %v1266_v38 = vld [vmem:[#allocation2 + $0xc] sm:$0xf]  ;;  %v1409_v5 = vshll.u32 %v1267_v58, 16  ;;  %v1413_v6 = vshrl.u32 %v1267_v58, 16  ;;  %v698_v8 = vrot.slane %v693_v36, 4  ;;  %v428_v11 = vshrl.u32 %v9145_v7, 16 }
  0x43   :  { %v1400_v1 = vshrl.u32 %v1266_v38, 16  ;;  %v1403_v3 = vshll.u32 %v1266_v38, 16  ;;  %v696_v22 = vor.u32 %v694_v60, %v693_v36 }
  0x44   :  { %v1268_v10 = vld [vmem:[#allocation2 + $0x14] sm:$0x1]  ;;  %v1411_v19 = vrot.slane %v1409_v5, 5  ;;  %v1415_v20 = vrot.slane %v1413_v6, 4  ;;  %v1320_v34 = vld [vmem:[#allocation2 + $0xe4] sm:$0xf] }
  0x45   :  { %v1402_v48 = vrot.slane %v1400_v1, 4  ;;  %v1405_v18 = vrot.slane %v1403_v3, 5  ;;  %v1419_v24 = vshll.u32 %v1268_v10, 16  ;;  %v1321_v40 = vld [vmem:[#allocation2 + $0xe8] sm:$0xf]  ;;  %v1784_v25 = vshrl.u32 %v1320_v34, 16 }
  0x46   :  { %v1416_v33 = vor.u32 %v1415_v20, %v1411_v19  ;;  %v1322_v41 = vld [vmem:[#allocation2 + $0xec] sm:$0x1]  ;;  %v1787_v16 = vshll.u32 %v1320_v34, 16  ;;  %v1793_v26 = vshll.u32 %v1321_v40, 16  ;;  %v1797_v46 = vshrl.u32 %v1321_v40, 16 }
  0x47   :  { %v1406_v28 = vor.u32 %v1405_v18, %v1402_v48  ;;  %v1421_v39 = vrot.slane %v1419_v24, 5  ;;  %v1786_v45 = vrot.slane %v1784_v25, 4  ;;  %v1803_v17 = vshll.u32 %v1322_v41, 16  ;;  %v1269_v56 = vld [vmem:[#allocation2 + $0x18] sm:$0xf] }
  0x48   :  { %v1417_v44 = vrot.slane %v1416_v33, 4  ;;  %v1789_v50 = vrot.slane %v1787_v16, 5  ;;  %v1795_v51 = vrot.slane %v1793_v26, 5  ;;  %v1799_v54 = vrot.slane %v1797_v46, 4  ;;  %v1162_v1 = vld [vmem:[#allocation2 + $0xf8] sm:$0x1] }
  0x49   :  { %v1407_v29 = vrot.slane %v1406_v28, 4  ;;  %v1805_v55 = vrot.slane %v1803_v17, 5  ;;  %v1424_v58 = vshrl.u32 %v1269_v56, 16  ;;  %v1427_v61 = vshll.u32 %v1269_v56, 16  ;;  %v1270_v5 = vld [vmem:[#allocation2 + $0x1c] sm:$0xf] }
  0x4a   :  { %v1422_v47 = vsel %vm9141_vm12, %v1417_v44, %v1421_v39  ;;  %v1790_v38 = vor.u32 %v1789_v50, %v1786_v45  ;;  %v1800_v3 = vor.u32 %v1799_v54, %v1795_v51  ;;  %v1271_v6 = vld [vmem:[#allocation2 + $0x20] sm:$0x1]  ;;  %v1159_v10 = vsel %vm9135_vm11, %v688_v30, %v1158_v52  ;;  %v1053_v44 = vld [vmem:[#allocation2 + $0x24] sm:$0xf]  ;;  %v1057_v54 = vld [vmem:[#allocation2 + $0x2c] sm:$0x1] }
  0x4b   :  { %v1412_v37 = vsel %vm9141_vm12, %v1407_v29, %v1411_v19  ;;  %v1426_v14 = vrot.slane %v1424_v58, 4  ;;  %v1429_v48 = vrot.slane %v1427_v61, 5  ;;  %v1433_v18 = vshll.u32 %v1270_v5, 16  ;;  %1160 = vst [vmem:[#allocation2 + $0xf0] sm:$0xf] %v1159_v10 }
  0x4c   :  { %v9234_v53 = vcombine.low %v1412_v37, %v1422_v47  ;;  %v1791_v12 = vrot.slane %v1790_v38, 4  ;;  %v1801_v49 = vrot.slane %v1800_v3, 4  ;;  %v1437_v19 = vshrl.u32 %v1270_v5, 16  ;;  %v1165_v38 = vld [vmem:[#allocation2 + $0xfc] sm:$0xf] }
  0x4d   :  { %v1443_v20 = vshll.u32 %v1271_v6, 16  ;;  %v1430_v24 = vor.u32 %v1429_v48, %v1426_v14  ;;  %v1435_v31 = vrot.slane %v1433_v18, 5  ;;  %v1163_v32 = vsel %vm9149_vm13, %v698_v8, %v1162_v1  ;;  %v1169_v18 = vld [vmem:[#allocation2 + $0x104] sm:$0x1] }
  0x4e   :  { %8090 = vmatmul.mubr.msk.bf16.vlgmr.msra.gmra.mxu0 %vm2241_vm9, %v9234_v53  ;;  %v1796_v23 = vsel %vm9141_vm12, %v1791_v12, %v1795_v51  ;;  %v1806_v28 = vsel %vm9141_vm12, %v1801_v49, %v1805_v55  ;;  %v697_v34 = vsel %vm9129_vm10, %v689_v57, %v696_v22  ;;  %1164 = vst [vmem:[#allocation2 + $0xf8] sm:$0x1] %v1163_v32  ;;  %v430_v39 = vrot.slane %v428_v11, 7 }
  0x4f   :  { %8220 = vmatpush3.bf16.msra.mxu0 %v9091_v21  ;;  %v1439_v21 = vrot.slane %v1437_v19, 4  ;;  %v1445_v33 = vrot.slane %v1443_v20, 5  ;;  %v9251_v35 = vcombine.low %v1796_v23, %v1806_v28  ;;  %v1431_v36 = vrot.slane %v1430_v24, 4  ;;  %1161 = vst.msk [vmem:[#allocation2 + $0xf4] sm:$0xf] %vm24_vm2, %v697_v34  ;;  %v173_v23 = vld [vmem:[%s12219_s0 + $0x138] sm:$0xff] }
  0x50   :  { %v431_v40 = vshll.u32 %v9145_v7, 16  ;;  %v436_v25 = vshrl.u32 %v9205_v62, 16  ;;  %v439_v29 = vshll.u32 %v9205_v62, 16  ;;  %v700_v16 = vshrl.u32 %v9207_v63, 16 }
  0x51   :  { %12379 = vst [vmem:[#allocation7_spill] sm:$0xff] %v9251_v35  ;;  %v1440_v41 = vor.u32 %v1439_v21, %v1435_v31  ;;  %8122 = vmatmul.mubr.msk.bf16.vlgmr.msra.gmra.mxu1 %vm2241_vm9, %v9251_v35  ;;  %v1436_v26 = vsel %vm9141_vm12, %v1431_v36, %v1435_v31  ;;  %v434_v46 = vrot.slane %v430_v39, 4  ;;  %v703_v17 = vshll.u32 %v9207_v63, 16 }
  0x52   :  { %v433_v45 = vor.u32 %v431_v40, %v430_v39  ;;  %8154 = vmatpush3.bf16.msra.mxu1 %v9070_v9  ;;  %v1323_v30 = vld [vmem:[#allocation2 + $0xf0] sm:$0xf]  ;;  %v438_v37 = vrot.slane %v436_v25, 7  ;;  %v702_v47 = vrot.slane %v700_v16, 7  ;;  %v708_v62 = vshrl.u32 %v9211_v15, 16 }
  0x53   :  { %v1441_v7 = vrot.slane %v1440_v41, 4  ;;  %v1808_v50 = vshrl.u32 %v1323_v30, 16  ;;  %v1811_v51 = vshll.u32 %v1323_v30, 16  ;;  %v711_v55 = vshll.u32 %v9211_v15, 16 }
  0x54   :  { %v1054_v52 = vsel %vm9135_vm11, %v433_v45, %v1053_v44  ;;  %v441_v63 = vor.u32 %v439_v29, %v438_v37  ;;  %v443_v57 = vrot.slane %v438_v37, 4  ;;  %v705_v9 = vor.u32 %v703_v17, %v702_v47  ;;  %v142_v44 = vld [vmem:[%s12219_s0 + $0x40] sm:$0xff] }
  0x55   :  { %v1446_v56 = vsel %vm9141_vm12, %v1441_v7, %v1445_v33  ;;  %1055 = vst [vmem:[#allocation2 + $0x24] sm:$0xf] %v1054_v52  ;;  %v1325_v61 = vld [vmem:[#allocation2 + $0xf8] sm:$0x1]  ;;  %v1810_v60 = vrot.slane %v1808_v50, 4  ;;  %v1813_v1 = vrot.slane %v1811_v51, 5  ;;  %v9295_v29 = vpack.c.bf16 %v173_v23, %v173_v23 }
  0x56   :  { %v9270_v58 = vcombine.low %v1436_v26, %v1446_v56  ;;  %v706_v3 = vrot.slane %v702_v47, 4  ;;  %v1324_v5 = vld [vmem:[#allocation2 + $0xf4] sm:$0xf]  ;;  %v1827_v6 = vshll.u32 %v1325_v61, 16  ;;  %v442_v8 = vsel %vm9129_vm10, %v434_v46, %v441_v63 }
  0x57   :  { %v1058_v15 = vsel %vm9149_vm13, %v443_v57, %v1057_v54  ;;  %v710_v10 = vrot.slane %v708_v62, 7  ;;  %v1814_v11 = vor.u32 %v1813_v1, %v1810_v60  ;;  %v1817_v12 = vshll.u32 %v1324_v5, 16  ;;  %1056 = vst.msk [vmem:[#allocation2 + $0x28] sm:$0xf] %vm24_vm2, %v442_v8 }
  0x58   :  { %12380 = vst [vmem:[#allocation8_spill] sm:$0xff] %v9270_v58  ;;  %8093 = vmatprep.mubr.msk.bf16.mxu0 %vm2241_vm9, %v9270_v58  ;;  %v1821_v14 = vshrl.u32 %v1324_v5, 16  ;;  %1059 = vst [vmem:[#allocation2 + $0x2c] sm:$0x1] %v1058_v15  ;;  %v1166_v48 = vsel %vm9135_vm11, %v705_v9, %v1165_v38  ;;  %v1829_v49 = vrot.slane %v1827_v6, 5  ;;  %v445_v22 = vshrl.u32 %v9223_v27, 16 }
  0x59   :  { %v713_v19 = vor.u32 %v711_v55, %v710_v10  ;;  %v715_v20 = vrot.slane %v710_v10, 4  ;;  %1167 = vst [vmem:[#allocation2 + $0xfc] sm:$0xf] %v1166_v48  ;;  %v1815_v24 = vrot.slane %v1814_v11, 4  ;;  %v1819_v31 = vrot.slane %v1817_v12, 5 }
  0x5a   :  { %v1823_v32 = vrot.slane %v1821_v14, 4  ;;  %v448_v28 = vshll.u32 %v9223_v27, 16  ;;  %v447_v34 = vrot.slane %v445_v22, 7  ;;  %v453_v36 = vshrl.u32 %v9226_v42, 16  ;;  %v1060_v27 = vld [vmem:[#allocation2 + $0x30] sm:$0xf] }
  0x5b   :  { %v714_v21 = vsel %vm9129_vm10, %v706_v3, %v713_v19  ;;  %v1170_v33 = vsel %vm9149_vm13, %v715_v20, %v1169_v18  ;;  %v1820_v39 = vsel %vm9141_vm12, %v1815_v24, %v1819_v31  ;;  %v456_v25 = vshll.u32 %v9226_v42, 16  ;;  %v143_v42 = vld [vmem:[%s12219_s0 + $0x48] sm:$0xff] }
  0x5c   :  { %v1824_v40 = vor.u32 %v1823_v32, %v1819_v31  ;;  %v1272_v41 = vld [vmem:[#allocation2 + $0x24] sm:$0xf]  ;;  %1168 = vst.msk [vmem:[#allocation2 + $0x100] sm:$0xf] %vm24_vm2, %v714_v21  ;;  %1171 = vst [vmem:[#allocation2 + $0x104] sm:$0x1] %v1170_v33  ;;  %v450_v45 = vor.u32 %v448_v28, %v447_v34 }
  0x5d   :  { %v1448_v16 = vshrl.u32 %v1272_v41, 16  ;;  %v1451_v26 = vshll.u32 %v1272_v41, 16  ;;  %v451_v46 = vrot.slane %v447_v34, 4  ;;  %v455_v7 = vrot.slane %v453_v36, 7 }
  0x5e   :  { %v1825_v17 = vrot.slane %v1824_v40, 4  ;;  %v717_v30 = vshrl.u32 %v9228_v43, 16  ;;  %v720_v37 = vshll.u32 %v9228_v43, 16 }
  0x5f   :  { %12 = vsyncpa [#allocation4], 0  ;;  %v1273_v47 = vld [vmem:[#allocation2 + $0x28] sm:$0xf]  ;;  %v1274_v62 = vld [vmem:[#allocation2 + $0x2c] sm:$0x1]  ;;  %v1061_v52 = vsel %vm9135_vm11, %v450_v45, %v1060_v27  ;;  %v9307_v54 = vpack.c.bf16 %v142_v44, %v142_v44  ;;  %v458_v8 = vor.u32 %v456_v25, %v455_v7  ;;  %v9318_v14 = vpack.c.bf16 %v143_v42, %v143_v42 }
  0x60   :  { %v1450_v50 = vrot.slane %v1448_v16, 4  ;;  %v1453_v51 = vrot.slane %v1451_v26, 5  ;;  %v1830_v55 = vsel %vm9141_vm12, %v1825_v17, %v1829_v49  ;;  %v1457_v56 = vshll.u32 %v1273_v47, 16  ;;  %v1326_v57 = vld [vmem:[#allocation2 + $0xfc] sm:$0xf]  ;;  %v174_v9 = vld [vmem:[%s12219_s0 + $0x140] sm:$0xff] }
  0x61   :  { %v1461_v63 = vshrl.u32 %v1273_v47, 16  ;;  %v1467_v43 = vshll.u32 %v1274_v62, 16  ;;  %1062 = vst [vmem:[#allocation2 + $0x30] sm:$0xf] %v1061_v52  ;;  %v9314_v38 = vcombine.low %v1820_v39, %v1830_v55  ;;  %v1832_v60 = vshrl.u32 %v1326_v57, 16 }
  0x62   :  { %v1454_v61 = vor.u32 %v1453_v51, %v1450_v50  ;;  %v1835_v1 = vshll.u32 %v1326_v57, 16  ;;  %v1459_v3 = vrot.slane %v1457_v56, 5  ;;  %v9320_v48 = vpack.c.bf16 %v174_v9, %v174_v9  ;;  %v1064_v22 = vld [vmem:[#allocation2 + $0x38] sm:$0x1]  ;;  %v1172_v45 = vld [vmem:[#allocation2 + $0x108] sm:$0xf] }
  0x63   :  { %12381 = vst [vmem:[#allocation9_spill] sm:$0xff] %v9314_v38  ;;  %v1463_v5 = vrot.slane %v1461_v63, 4  ;;  %v1469_v6 = vrot.slane %v1467_v43, 5  ;;  %8125 = vmatprep.mubr.msk.bf16.mxu1 %vm2241_vm9, %v9314_v38  ;;  %v1327_v10 = vld [vmem:[#allocation2 + $0x100] sm:$0xf]  ;;  %v1834_v12 = vrot.slane %v1832_v60, 4  ;;  %v459_v31 = vsel %vm9129_vm10, %v451_v46, %v458_v8 }
  0x64   :  { %v1455_v15 = vrot.slane %v1454_v61, 4  ;;  %v1328_v11 = vld [vmem:[#allocation2 + $0x104] sm:$0x1]  ;;  %v1837_v49 = vrot.slane %v1835_v1, 5  ;;  %v1841_v19 = vshll.u32 %v1327_v10, 16  ;;  %v1845_v20 = vshrl.u32 %v1327_v10, 16 }
  0x65   :  { %v1464_v18 = vor.u32 %v1463_v5, %v1459_v3  ;;  %v1851_v24 = vshll.u32 %v1328_v11, 16  ;;  %v460_v32 = vrot.slane %v455_v7, 4  ;;  %1063 = vst.msk [vmem:[#allocation2 + $0x34] sm:$0xf] %vm24_vm2, %v459_v31  ;;  %v719_v41 = vrot.slane %v717_v30, 7  ;;  %v175_v11 = vld [vmem:[%s12219_s0 + $0x148] sm:$0xff] }
  0x66   :  { %v1460_v23 = vsel %vm9141_vm12, %v1455_v15, %v1459_v3  ;;  %v1838_v21 = vor.u32 %v1837_v49, %v1834_v12  ;;  %v1843_v33 = vrot.slane %v1841_v19, 5  ;;  %v1847_v34 = vrot.slane %v1845_v20, 4  ;;  %v1176_v56 = vld [vmem:[#allocation2 + $0x110] sm:$0x1]  ;;  %v1067_v10 = vld [vmem:[#allocation2 + $0x3c] sm:$0xf] }
  0x67   :  { %v1465_v28 = vrot.slane %v1464_v18, 4  ;;  %v1853_v36 = vrot.slane %v1851_v24, 5  ;;  %v1065_v39 = vsel %vm9149_vm13, %v460_v32, %v1064_v22  ;;  %v725_v25 = vshrl.u32 %v9295_v29, 16  ;;  %v1071_v31 = vld [vmem:[#allocation2 + $0x44] sm:$0x1] }
  0x68   :  { %v1275_v40 = vld [vmem:[#allocation2 + $0x30] sm:$0xf]  ;;  %v1839_v44 = vrot.slane %v1838_v21, 4  ;;  %v1848_v16 = vor.u32 %v1847_v34, %v1843_v33  ;;  %1066 = vst [vmem:[#allocation2 + $0x38] sm:$0x1] %v1065_v39  ;;  %v722_v7 = vor.u32 %v720_v37, %v719_v41  ;;  %v723_v42 = vrot.slane %v719_v41, 4 }
  0x69   :  { %v1470_v27 = vsel %vm9141_vm12, %v1465_v28, %v1469_v6  ;;  %v1472_v26 = vshrl.u32 %v1275_v40, 16  ;;  %v1475_v17 = vshll.u32 %v1275_v40, 16  ;;  %v727_v50 = vrot.slane %v725_v25, 7 }
  0x6a   :  { %v9332_v46 = vcombine.low %v1460_v23, %v1470_v27  ;;  %v1844_v47 = vsel %vm9141_vm12, %v1839_v44, %v1843_v33  ;;  %v1849_v62 = vrot.slane %v1848_v16, 4  ;;  %v728_v52 = vshll.u32 %v9295_v29, 16  ;;  %v144_v16 = vld [vmem:[%s12219_s0 + $0x50] sm:$0xff] }
  0x6b   :  { %v1474_v30 = vrot.slane %v1472_v26, 4  ;;  %v1477_v51 = vrot.slane %v1475_v17, 5  ;;  %v1173_v55 = vsel %vm9135_vm11, %v722_v7, %v1172_v45  ;;  %v462_v63 = vshrl.u32 %v9307_v54, 16 }
  0x6c   :  { %12382 = vst [vmem:[#allocation10_spill] sm:$0xff] %v9332_v46  ;;  %8094 = vmatmul.mubr.msk.bf16.gmra.mxu0 %vm2241_vm9, %v9332_v46  ;;  %v1854_v37 = vsel %vm9141_vm12, %v1849_v62, %v1853_v36  ;;  %v732_v43 = vrot.slane %v727_v50, 4  ;;  %1174 = vst [vmem:[#allocation2 + $0x108] sm:$0xf] %v1173_v55  ;;  %v465_v57 = vshll.u32 %v9307_v54, 16  ;;  %v470_v9 = vshrl.u32 %v9318_v14, 16 }
  0x6d   :  { %v9346_v61 = vcombine.low %v1844_v47, %v1854_v37  ;;  %v1276_v60 = vld [vmem:[#allocation2 + $0x34] sm:$0xf]  ;;  %v1478_v1 = vor.u32 %v1477_v51, %v1474_v30  ;;  %v730_v29 = vor.u32 %v728_v52, %v727_v50  ;;  %v464_v3 = vrot.slane %v462_v63, 7  ;;  %v145_v63 = vld [vmem:[%s12219_s0 + $0x58] sm:$0xff] }
  0x6e   :  { %v1481_v5 = vshll.u32 %v1276_v60, 16  ;;  %v1485_v6 = vshrl.u32 %v1276_v60, 16  ;;  %v1177_v8 = vsel %vm9149_vm13, %v732_v43, %v1176_v56  ;;  %v472_v15 = vrot.slane %v470_v9, 7 }
  0x6f   :  { %12383 = vst [vmem:[#allocation11_spill] sm:$0xff] %v9346_v61  ;;  %8126 = vmatmul.mubr.msk.bf16.gmra.mxu1 %vm2241_vm9, %v9346_v61  ;;  %v1277_v54 = vld [vmem:[#allocation2 + $0x38] sm:$0x1]  ;;  %v1479_v12 = vrot.slane %v1478_v1, 4  ;;  %v731_v18 = vsel %vm9129_vm10, %v723_v42, %v730_v29  ;;  %1178 = vst [vmem:[#allocation2 + $0x110] sm:$0x1] %v1177_v8  ;;  %v467_v49 = vor.u32 %v465_v57, %v464_v3 }
  0x70   :  { %v468_v19 = vrot.slane %v464_v3, 4  ;;  %v1483_v20 = vrot.slane %v1481_v5, 5  ;;  %v1487_v22 = vrot.slane %v1485_v6, 4  ;;  %v1491_v23 = vshll.u32 %v1277_v54, 16  ;;  %1175 = vst.msk [vmem:[#allocation2 + $0x10c] sm:$0xf] %vm24_vm2, %v731_v18 }
  0x71   :  { %v473_v24 = vshll.u32 %v9318_v14, 16  ;;  %v477_v32 = vrot.slane %v472_v15, 4  ;;  %v1068_v28 = vsel %vm9135_vm11, %v467_v49, %v1067_v10  ;;  %v7703_v21 = vpack.c.bf16 %v175_v11, %v175_v11  ;;  %v1179_v42 = vld [vmem:[#allocation2 + $0x114] sm:$0xf] }
  0x72   :  { %v734_v33 = vshrl.u32 %v9320_v48, 16  ;;  %v1484_v34 = vsel %vm9141_vm12, %v1479_v12, %v1483_v20  ;;  %v1488_v36 = vor.u32 %v1487_v22, %v1483_v20  ;;  %v1493_v39 = vrot.slane %v1491_v23, 5  ;;  %1069 = vst [vmem:[#allocation2 + $0x3c] sm:$0xf] %v1068_v28 }
  0x73   :  { %v475_v40 = vor.u32 %v473_v24, %v472_v15  ;;  %v1329_v41 = vld [vmem:[#allocation2 + $0x108] sm:$0xf]  ;;  %v1072_v25 = vsel %vm9149_vm13, %v477_v32, %v1071_v31  ;;  %v737_v27 = vshll.u32 %v9320_v48, 16  ;;  %v742_v44 = vshrl.u32 %v7703_v21, 16  ;;  %v1183_v48 = vld [vmem:[#allocation2 + $0x11c] sm:$0x1] }
  0x74   :  { %v736_v14 = vrot.slane %v734_v33, 7  ;;  %v1489_v26 = vrot.slane %v1488_v36, 4  ;;  %v1856_v45 = vshrl.u32 %v1329_v41, 16  ;;  %v1859_v17 = vshll.u32 %v1329_v41, 16  ;;  %1073 = vst [vmem:[#allocation2 + $0x44] sm:$0x1] %v1072_v25 }
  0x75   :  { %v476_v7 = vsel %vm9129_vm10, %v468_v19, %v475_v40  ;;  %v744_v30 = vrot.slane %v742_v44, 7  ;;  %v745_v50 = vshll.u32 %v7703_v21, 16  ;;  %v7672_v37 = vpack.c.bf16 %v144_v16, %v144_v16 }
  0x76   :  { %1070 = vst.msk [vmem:[#allocation2 + $0x40] sm:$0xf] %vm24_vm2, %v476_v7  ;;  %v739_v47 = vor.u32 %v737_v27, %v736_v14  ;;  %v740_v62 = vrot.slane %v736_v14, 4  ;;  %v1494_v51 = vsel %vm9141_vm12, %v1489_v26, %v1493_v39  ;;  %v1331_v52 = vld [vmem:[#allocation2 + $0x110] sm:$0x1]  ;;  %v1858_v55 = vrot.slane %v1856_v45, 4 }
  0x77   :  { %v1861_v56 = vrot.slane %v1859_v17, 5  ;;  %v9378_v43 = vcombine.low %v1484_v34, %v1494_v51  ;;  %v1330_v57 = vld [vmem:[#allocation2 + $0x10c] sm:$0xf]  ;;  %v1875_v9 = vshll.u32 %v1331_v52, 16  ;;  %v747_v60 = vor.u32 %v745_v50, %v744_v30  ;;  %v1074_v50 = vld [vmem:[#allocation2 + $0x48] sm:$0xf] }
  0x78   :  { %v749_v1 = vrot.slane %v744_v30, 4  ;;  %v1865_v3 = vshll.u32 %v1330_v57, 16  ;;  %v1869_v5 = vshrl.u32 %v1330_v57, 16  ;;  %v1180_v6 = vsel %vm9135_vm11, %v739_v47, %v1179_v42 }
  0x79   :  { %12384 = vst [vmem:[#allocation12_spill] sm:$0xff] %v9378_v43  ;;  %v1862_v29 = vor.u32 %v1861_v56, %v1858_v55  ;;  %8097 = vmatprep.mubr.msk.bf16.mxu0 %vm2241_vm9, %v9378_v43  ;;  %v1877_v8 = vrot.slane %v1875_v9, 5  ;;  %v1278_v15 = vld [vmem:[#allocation2 + $0x3c] sm:$0xf]  ;;  %v748_v10 = vsel %vm9129_vm10, %v740_v62, %v747_v60  ;;  %1181 = vst [vmem:[#allocation2 + $0x114] sm:$0xf] %v1180_v6 }
  0x7a   :  { %v1184_v11 = vsel %vm9149_vm13, %v749_v1, %v1183_v48  ;;  %v7673_v54 = vpack.c.bf16 %v145_v63, %v145_v63  ;;  %v1867_v18 = vrot.slane %v1865_v3, 5  ;;  %v1871_v49 = vrot.slane %v1869_v5, 4  ;;  %1182 = vst.msk [vmem:[#allocation2 + $0x118] sm:$0xf] %vm24_vm2, %v748_v10  ;;  %v1078_v48 = vld [vmem:[#allocation2 + $0x50] sm:$0x1] }
  0x7b   :  { %v1863_v12 = vrot.slane %v1862_v29, 4  ;;  %v1496_v19 = vshrl.u32 %v1278_v15, 16  ;;  %1185 = vst [vmem:[#allocation2 + $0x11c] sm:$0x1] %v1184_v11  ;;  %v1280_v20 = vld [vmem:[#allocation2 + $0x44] sm:$0x1] }
  0x7c   :  { %v1499_v22 = vshll.u32 %v1278_v15, 16  ;;  %v479_v23 = vshrl.u32 %v7672_v37, 16  ;;  %v482_v24 = vshll.u32 %v7672_v37, 16  ;;  %v487_v31 = vshrl.u32 %v7673_v54, 16  ;;  %v176_v29 = vld [vmem:[%s12219_s0 + $0x150] sm:$0xff]  ;;  %v177_v15 = vld [vmem:[%s12219_s0 + $0x158] sm:$0xff] }
  0x7d   :  { %v1868_v32 = vsel %vm9141_vm12, %v1863_v12, %v1867_v18  ;;  %v1872_v28 = vor.u32 %v1871_v49, %v1867_v18  ;;  %v1279_v21 = vld [vmem:[#allocation2 + $0x40] sm:$0xf]  ;;  %v1498_v33 = vrot.slane %v1496_v19, 4  ;;  %v1515_v34 = vshll.u32 %v1280_v20, 16  ;;  %v147_v49 = vld [vmem:[%s12219_s0 + $0x68] sm:$0xff] }
  0x7e   :  { %v1501_v36 = vrot.slane %v1499_v22, 5  ;;  %v1505_v39 = vshll.u32 %v1279_v21, 16  ;;  %v1509_v40 = vshrl.u32 %v1279_v21, 16  ;;  %v481_v41 = vrot.slane %v479_v23, 7  ;;  %v146_v18 = vld [vmem:[%s12219_s0 + $0x60] sm:$0xff] }
  0x7f   :  { %v1873_v25 = vrot.slane %v1872_v28, 4  ;;  %v1517_v14 = vrot.slane %v1515_v34, 5  ;;  %v489_v27 = vrot.slane %v487_v31, 7  ;;  %v490_v44 = vshll.u32 %v7673_v54, 16 }
  0x80   :  { %v1502_v16 = vor.u32 %v1501_v36, %v1498_v33  ;;  %v1507_v26 = vrot.slane %v1505_v39, 5  ;;  %v1511_v45 = vrot.slane %v1509_v40, 4  ;;  %v484_v17 = vor.u32 %v482_v24, %v481_v41  ;;  %v1332_v42 = vld [vmem:[#allocation2 + $0x114] sm:$0xf] }
  0x81   :  { %v1878_v7 = vsel %vm9141_vm12, %v1873_v25, %v1877_v8  ;;  %v485_v47 = vrot.slane %v481_v41, 4  ;;  %v492_v62 = vor.u32 %v490_v44, %v489_v27  ;;  %v494_v30 = vrot.slane %v489_v27, 4  ;;  %v1333_v56 = vld [vmem:[#allocation2 + $0x118] sm:$0xf] }
  0x82   :  { %v9393_v51 = vcombine.low %v1868_v32, %v1878_v7  ;;  %v1503_v52 = vrot.slane %v1502_v16, 4  ;;  %v1512_v55 = vor.u32 %v1511_v45, %v1507_v26  ;;  %v1334_v63 = vld [vmem:[#allocation2 + $0x11c] sm:$0x1]  ;;  %v1880_v37 = vshrl.u32 %v1332_v42, 16  ;;  %v1186_v7 = vld [vmem:[#allocation2 + $0x120] sm:$0xf] }
  0x83   :  { %v1883_v57 = vshll.u32 %v1332_v42, 16  ;;  %v1889_v9 = vshll.u32 %v1333_v56, 16  ;;  %v1893_v60 = vshrl.u32 %v1333_v56, 16  ;;  %v1899_v1 = vshll.u32 %v1334_v63, 16 }
  0x84   :  { %12385 = vst [vmem:[#allocation13_spill] sm:$0xff] %v9393_v51  ;;  %8129 = vmatprep.mubr.msk.bf16.mxu1 %vm2241_vm9, %v9393_v51  ;;  %v1508_v3 = vsel %vm9141_vm12, %v1503_v52, %v1507_v26  ;;  %v1513_v5 = vrot.slane %v1512_v55, 4  ;;  %v1882_v6 = vrot.slane %v1880_v37, 4  ;;  %v493_v8 = vsel %vm9129_vm10, %v485_v47, %v492_v62  ;;  %v1190_v37 = vld [vmem:[#allocation2 + $0x128] sm:$0x1] }
  0x85   :  { %v1885_v10 = vrot.slane %v1883_v57, 5  ;;  %v1891_v11 = vrot.slane %v1889_v9, 5  ;;  %v1895_v54 = vrot.slane %v1893_v60, 4  ;;  %v1901_v12 = vrot.slane %v1899_v1, 5  ;;  %1077 = vst.msk [vmem:[#allocation2 + $0x4c] sm:$0xf] %vm24_vm2, %v493_v8 }
  0x86   :  { %v1518_v19 = vsel %vm9141_vm12, %v1513_v5, %v1517_v14  ;;  %v1075_v20 = vsel %vm9135_vm11, %v484_v17, %v1074_v50  ;;  %v1079_v22 = vsel %vm9149_vm13, %v494_v30, %v1078_v48  ;;  %v7704_v23 = vpack.c.bf16 %v176_v29, %v176_v29  ;;  %v178_v57 = vld [vmem:[%s12219_s0 + $0x160] sm:$0xff] }
  0x87   :  { %v9420_v24 = vcombine.low %v1508_v3, %v1518_v19  ;;  %v1886_v31 = vor.u32 %v1885_v10, %v1882_v6  ;;  %v1896_v32 = vor.u32 %v1895_v54, %v1891_v11  ;;  %1076 = vst [vmem:[#allocation2 + $0x48] sm:$0xf] %v1075_v20  ;;  %1080 = vst [vmem:[#allocation2 + $0x50] sm:$0x1] %v1079_v22  ;;  %v1085_v19 = vld [vmem:[#allocation2 + $0x5c] sm:$0x1] }
  0x88   :  { %v7705_v28 = vpack.c.bf16 %v177_v15, %v177_v15  ;;  %v751_v21 = vshrl.u32 %v7704_v23, 16  ;;  %v754_v33 = vshll.u32 %v7704_v23, 16  ;;  %v7674_v34 = vpack.c.bf16 %v146_v18, %v146_v18  ;;  %v179_v20 = vld [vmem:[%s12219_s0 + $0x168] sm:$0xff] }
  0x89   :  { %12386 = vst [vmem:[#allocation14_spill] sm:$0xff] %v9420_v24  ;;  %v7675_v36 = vpack.c.bf16 %v147_v49, %v147_v49  ;;  %8098 = vmatmul.mubr.msk.bf16.gmra.mxu0 %vm2241_vm9, %v9420_v24  ;;  %v1887_v39 = vrot.slane %v1886_v31, 4  ;;  %v1897_v40 = vrot.slane %v1896_v32, 4  ;;  %vm3214_vm14 = vcmask 1042432  }
  0x8a   :  { %v759_v41 = vshrl.u32 %v7705_v28, 16  ;;  %v762_v25 = vshll.u32 %v7705_v28, 16  ;;  %v753_v14 = vrot.slane %v751_v21, 7  ;;  %v496_v27 = vshrl.u32 %v7674_v34, 16  ;;  %v148_v28 = vld [vmem:[%s12219_s0 + $0x70] sm:$0xff]  ;;  %v149_v21 = vld [vmem:[%s12219_s0 + $0x78] sm:$0xff] }
  0x8b   :  { %v499_v44 = vshll.u32 %v7674_v34, 16  ;;  %v504_v16 = vshrl.u32 %v7675_v36, 16  ;;  %v1892_v26 = vsel %vm9141_vm12, %v1887_v39, %v1891_v11  ;;  %v1902_v45 = vsel %vm9141_vm12, %v1897_v40, %v1901_v12  ;;  %v1081_v11 = vld [vmem:[#allocation2 + $0x54] sm:$0xf] }
  0x8c   :  { %v761_v17 = vrot.slane %v759_v41, 7  ;;  %v507_v42 = vshll.u32 %v7675_v36, 16  ;;  %v9428_v47 = vcombine.low %v1892_v26, %v1902_v45  ;;  %v1282_v62 = vld [vmem:[#allocation2 + $0x4c] sm:$0xf]  ;;  %v756_v30 = vor.u32 %v754_v33, %v753_v14 }
  0x8d   :  { %v757_v50 = vrot.slane %v753_v14, 4  ;;  %v498_v48 = vrot.slane %v496_v27, 7  ;;  %v1529_v52 = vshll.u32 %v1282_v62, 16  ;;  %v1533_v55 = vshrl.u32 %v1282_v62, 16 }
  0x8e   :  { %12387 = vst [vmem:[#allocation15_spill] sm:$0xff] %v9428_v47  ;;  %v764_v56 = vor.u32 %v762_v25, %v761_v17  ;;  %v766_v63 = vrot.slane %v761_v17, 4  ;;  %8130 = vmatmul.mubr.msk.bf16.gmra.mxu1 %vm2241_vm9, %v9428_v47  ;;  %v1281_v9 = vld [vmem:[#allocation2 + $0x48] sm:$0xf]  ;;  %v1283_v60 = vld [vmem:[#allocation2 + $0x50] sm:$0x1]  ;;  %v1187_v1 = vsel %vm9135_vm11, %v756_v30, %v1186_v7  ;;  %v7706_v39 = vpack.c.bf16 %v178_v57, %v178_v57 }
  0x8f   :  { %v501_v29 = vor.u32 %v499_v44, %v498_v48  ;;  %v502_v3 = vrot.slane %v498_v48, 4  ;;  %v506_v5 = vrot.slane %v504_v16, 7  ;;  %v1520_v6 = vshrl.u32 %v1281_v9, 16  ;;  %1188 = vst [vmem:[#allocation2 + $0x120] sm:$0xf] %v1187_v1 }
  0x90   :  { %v1523_v8 = vshll.u32 %v1281_v9, 16  ;;  %v1531_v15 = vrot.slane %v1529_v52, 5  ;;  %v1535_v10 = vrot.slane %v1533_v55, 4  ;;  %v1539_v54 = vshll.u32 %v1283_v60, 16  ;;  %v1193_v57 = vld [vmem:[#allocation2 + $0x12c] sm:$0xf] }
  0x91   :  { %v765_v12 = vsel %vm9129_vm10, %v757_v50, %v764_v56  ;;  %v1191_v18 = vsel %vm9149_vm13, %v766_v63, %v1190_v37  ;;  %v509_v49 = vor.u32 %v507_v42, %v506_v5  ;;  %v1522_v22 = vrot.slane %v1520_v6, 4 }
  0x92   :  { %v1525_v23 = vrot.slane %v1523_v8, 5  ;;  %v1536_v31 = vor.u32 %v1535_v10, %v1531_v15  ;;  %1189 = vst.msk [vmem:[#allocation2 + $0x124] sm:$0xf] %vm24_vm2, %v765_v12  ;;  %1192 = vst [vmem:[#allocation2 + $0x128] sm:$0x1] %v1191_v18  ;;  %v511_v32 = vrot.slane %v506_v5, 4  ;;  %v1082_v36 = vsel %vm9135_vm11, %v501_v29, %v1081_v11 }
  0x93   :  { %v1541_v33 = vrot.slane %v1539_v54, 5  ;;  %v510_v34 = vsel %vm9129_vm10, %v502_v3, %v509_v49  ;;  %1083 = vst [vmem:[#allocation2 + $0x54] sm:$0xf] %v1082_v36  ;;  %v7707_v14 = vpack.c.bf16 %v179_v20, %v179_v20  ;;  %v768_v27 = vshrl.u32 %v7706_v39, 16  ;;  %v1197_v36 = vld [vmem:[#allocation2 + $0x134] sm:$0x1] }
  0x94   :  { %v1526_v40 = vor.u32 %v1525_v23, %v1522_v22  ;;  %v1537_v41 = vrot.slane %v1536_v31, 4  ;;  %1084 = vst.msk [vmem:[#allocation2 + $0x58] sm:$0xf] %vm24_vm2, %v510_v34  ;;  %v1086_v25 = vsel %vm9149_vm13, %v511_v32, %v1085_v19  ;;  %v771_v44 = vshll.u32 %v7706_v39, 16 }
  0x95   :  { %1087 = vst [vmem:[#allocation2 + $0x5c] sm:$0x1] %v1086_v25  ;;  %v9458_v16 = vpack.c.bf16 %v148_v28, %v148_v28  ;;  %v9460_v26 = vpack.c.bf16 %v149_v21, %v149_v21  ;;  %v776_v7 = vshrl.u32 %v7707_v14, 16  ;;  %v779_v42 = vshll.u32 %v7707_v14, 16 }
  0x96   :  { %v1527_v45 = vrot.slane %v1526_v40, 4  ;;  %v1542_v17 = vsel %vm9141_vm12, %v1537_v41, %v1541_v33  ;;  %v1335_v62 = vld [vmem:[#allocation2 + $0x120] sm:$0xf]  ;;  %v770_v30 = vrot.slane %v768_v27, 7  ;;  %vm3215_vm15 = vcmask 1046532  }
  0x97   :  { %v513_v50 = vshrl.u32 %v9458_v16, 16  ;;  %v516_v48 = vshll.u32 %v9458_v16, 16  ;;  %v521_v52 = vshrl.u32 %v9460_v26, 16  ;;  %v1904_v56 = vshrl.u32 %v1335_v62, 16  ;;  %vm9939_vm1 = vmor %vm3214_vm14, %vm3215_vm15 }
  0x98   :  { %v1532_v55 = vsel %vm9141_vm12, %v1527_v45, %v1531_v15  ;;  %v1907_v63 = vshll.u32 %v1335_v62, 16  ;;  %v778_v37 = vrot.slane %v776_v7, 7  ;;  %v773_v29 = vor.u32 %v771_v44, %v770_v30  ;;  %v180_v45 = vld [vmem:[%s12219_s0 + $0x170] sm:$0xff] }
  0x99   :  { %v9469_v9 = vcombine.low %v1532_v55, %v1542_v17  ;;  %v1336_v60 = vld [vmem:[#allocation2 + $0x124] sm:$0xf]  ;;  %v1337_v1 = vld [vmem:[#allocation2 + $0x128] sm:$0x1]  ;;  %v774_v3 = vrot.slane %v770_v30, 4  ;;  %v9471_v5 = vrot.slane %v513_v50, 7 }
  0x9a   :  { %v1906_v6 = vrot.slane %v1904_v56, 4  ;;  %v1909_v8 = vrot.slane %v1907_v63, 5  ;;  %v1913_v10 = vshll.u32 %v1336_v60, 16  ;;  %v1917_v11 = vshrl.u32 %v1336_v60, 16  ;;  %v1284_v54 = vld [vmem:[#allocation2 + $0x54] sm:$0xf] }
  0x9b   :  { %12388 = vst [vmem:[#allocation16_spill] sm:$0xff] %v9469_v9  ;;  %8101 = vmatprep.mubr.msk.bf16.mxu0 %vm2241_vm9, %v9469_v9  ;;  %v1923_v15 = vshll.u32 %v1337_v1, 16  ;;  %v1285_v12 = vld [vmem:[#allocation2 + $0x58] sm:$0xf]  ;;  %v781_v18 = vor.u32 %v779_v42, %v778_v37  ;;  %v783_v49 = vrot.slane %v778_v37, 4  ;;  %v1194_v19 = vsel %vm9135_vm11, %v773_v29, %v1193_v57 }
  0x9c   :  { %v1910_v20 = vor.u32 %v1909_v8, %v1906_v6  ;;  %v1915_v22 = vrot.slane %v1913_v10, 5  ;;  %v1919_v23 = vrot.slane %v1917_v11, 4  ;;  %v1286_v31 = vld [vmem:[#allocation2 + $0x5c] sm:$0x1]  ;;  %v1544_v32 = vshrl.u32 %v1284_v54, 16 }
  0x9d   :  { %1195 = vst [vmem:[#allocation2 + $0x12c] sm:$0xf] %v1194_v19  ;;  %v1925_v28 = vrot.slane %v1923_v15, 5  ;;  %v1547_v21 = vshll.u32 %v1284_v54, 16  ;;  %v1553_v33 = vshll.u32 %v1285_v12, 16  ;;  %v1557_v34 = vshrl.u32 %v1285_v12, 16 }
  0x9e   :  { %v1911_v39 = vrot.slane %v1910_v20, 4  ;;  %v1920_v40 = vor.u32 %v1919_v23, %v1915_v22  ;;  %v1546_v41 = vrot.slane %v1544_v32, 4  ;;  %v1563_v25 = vshll.u32 %v1286_v31, 16  ;;  %v1088_v30 = vld [vmem:[#allocation2 + $0x60] sm:$0xf]  ;;  %v181_v1 = vld [vmem:[%s12219_s0 + $0x178] sm:$0xff] }
  0x9f   :  { %v1549_v14 = vrot.slane %v1547_v21, 5  ;;  %v1555_v27 = vrot.slane %v1553_v33, 5  ;;  %v1559_v44 = vrot.slane %v1557_v34, 4  ;;  %v782_v16 = vsel %vm9129_vm10, %v774_v3, %v781_v18  ;;  %v1200_v31 = vld [vmem:[#allocation2 + $0x138] sm:$0xf] }
  0xa0   :  { %v1916_v17 = vsel %vm9141_vm12, %v1911_v39, %v1915_v22  ;;  %v1921_v7 = vrot.slane %v1920_v40, 4  ;;  %v1565_v42 = vrot.slane %v1563_v25, 5  ;;  %1196 = vst.msk [vmem:[#allocation2 + $0x130] sm:$0xf] %vm24_vm2, %v782_v16  ;;  %v1198_v62 = vsel %vm9149_vm13, %v783_v49, %v1197_v36  ;;  %v150_v36 = vld [vmem:[%s12219_s0 + $0x80] sm:$0xff] }
  0xa1   :  { %v1550_v50 = vor.u32 %v1549_v14, %v1546_v41  ;;  %v1560_v55 = vor.u32 %v1559_v44, %v1555_v27  ;;  %1199 = vst [vmem:[#allocation2 + $0x134] sm:$0x1] %v1198_v62  ;;  %v518_v56 = vor.u32 %v516_v48, %v9471_v5  ;;  %v519_v63 = vrot.slane %v9471_v5, 4  ;;  %v1204_v62 = vld [vmem:[#allocation2 + $0x140] sm:$0x1] }
  0xa2   :  { %v1926_v37 = vsel %vm9141_vm12, %v1921_v7, %v1925_v28  ;;  %v523_v57 = vrot.slane %v521_v52, 7  ;;  %v524_v60 = vshll.u32 %v9460_v26, 16  ;;  %v7708_v29 = vpack.c.bf16 %v180_v45, %v180_v45  ;;  %v1092_v52 = vld [vmem:[#allocation2 + $0x68] sm:$0x1] }
  0xa3   :  { %v9495_v3 = vcombine.low %v1916_v17, %v1926_v37  ;;  %v1551_v6 = vrot.slane %v1550_v50, 4  ;;  %v1561_v8 = vrot.slane %v1560_v55, 4  ;;  %v1089_v48 = vsel %vm9135_vm11, %v518_v56, %v1088_v30  ;;  %v151_v30 = vld [vmem:[%s12219_s0 + $0x88] sm:$0xff] }
  0xa4   :  { %v1338_v10 = vld [vmem:[#allocation2 + $0x12c] sm:$0xf]  ;;  %v526_v15 = vor.u32 %v524_v60, %v523_v57  ;;  %v528_v54 = vrot.slane %v523_v57, 4  ;;  %1090 = vst [vmem:[#allocation2 + $0x60] sm:$0xf] %v1089_v48  ;;  %v7709_v18 = vpack.c.bf16 %v181_v1, %v181_v1  ;;  %v785_v49 = vshrl.u32 %v7708_v29, 16 }
  0xa5   :  { %12389 = vst [vmem:[#allocation17_spill] sm:$0xff] %v9495_v3  ;;  %v1928_v5 = vshrl.u32 %v1338_v10, 16  ;;  %v1931_v11 = vshll.u32 %v1338_v10, 16  ;;  %8133 = vmatprep.mubr.msk.bf16.mxu1 %vm2241_vm9, %v9495_v3  ;;  %v1556_v26 = vsel %vm9141_vm12, %v1551_v6, %v1555_v27  ;;  %v1566_v12 = vsel %vm9141_vm12, %v1561_v8, %v1565_v42 }
  0xa6   :  { %v9505_v19 = vcombine.low %v1556_v26, %v1566_v12  ;;  %v527_v23 = vsel %vm9129_vm10, %v519_v63, %v526_v15  ;;  %v1093_v28 = vsel %vm9149_vm13, %v528_v54, %v1092_v52  ;;  %v787_v21 = vrot.slane %v785_v49, 7 }
  0xa7   :  { %v1930_v20 = vrot.slane %v1928_v5, 4  ;;  %v1933_v22 = vrot.slane %v1931_v11, 5  ;;  %v1339_v32 = vld [vmem:[#allocation2 + $0x130] sm:$0xf]  ;;  %1091 = vst.msk [vmem:[#allocation2 + $0x64] sm:$0xf] %vm24_vm2, %v527_v23  ;;  %v7678_v50 = vpack.c.bf16 %v150_v36, %v150_v36  ;;  %v7679_v48 = vpack.c.bf16 %v151_v30, %v151_v30 }
  0xa8   :  { %12390 = vst [vmem:[#allocation18_spill] sm:$0xff] %v9505_v19  ;;  %v788_v33 = vshll.u32 %v7708_v29, 16  ;;  %v793_v34 = vshrl.u32 %v7709_v18, 16  ;;  %8102 = vmatmul.mubr.msk.bf16.gmra.mxu0 %vm2241_vm9, %v9505_v19  ;;  %v1340_v39 = vld [vmem:[#allocation2 + $0x134] sm:$0x1]  ;;  %v1937_v41 = vshll.u32 %v1339_v32, 16 }
  0xa9   :  { %v1934_v40 = vor.u32 %v1933_v22, %v1930_v20  ;;  %v1941_v25 = vshrl.u32 %v1339_v32, 16  ;;  %1094 = vst [vmem:[#allocation2 + $0x68] sm:$0x1] %v1093_v28  ;;  %v796_v14 = vshll.u32 %v7709_v18, 16  ;;  %v1947_v27 = vshll.u32 %v1340_v39, 16 }
  0xaa   :  { %v790_v44 = vor.u32 %v788_v33, %v787_v21  ;;  %v791_v16 = vrot.slane %v787_v21, 4  ;;  %v795_v45 = vrot.slane %v793_v34, 7  ;;  %v1939_v7 = vrot.slane %v1937_v41, 5  ;;  %v1095_v21 = vld [vmem:[#allocation2 + $0x6c] sm:$0xf]  ;;  %v182_v33 = vld [vmem:[%s12219_s0 + $0x180] sm:$0xff] }
  0xab   :  { %v1935_v17 = vrot.slane %v1934_v40, 4  ;;  %v1943_v42 = vrot.slane %v1941_v25, 4  ;;  %v1949_v55 = vrot.slane %v1947_v27, 5  ;;  %v1287_v56 = vld [vmem:[#allocation2 + $0x60] sm:$0xf]  ;;  %v530_v5 = vshrl.u32 %v7678_v50, 16 }
  0xac   :  { %v798_v63 = vor.u32 %v796_v14, %v795_v45  ;;  %v800_v37 = vrot.slane %v795_v45, 4  ;;  %v1201_v57 = vsel %vm9135_vm11, %v790_v44, %v1200_v31  ;;  %v1568_v29 = vshrl.u32 %v1287_v56, 16  ;;  %v183_v34 = vld [vmem:[%s12219_s0 + $0x188] sm:$0xff]  ;;  %v153_v45 = vld [vmem:[%s12219_s0 + $0x98] sm:$0xff] }
  0xad   :  { %v1940_v60 = vsel %vm9141_vm12, %v1935_v17, %v1939_v7  ;;  %v1944_v1 = vor.u32 %v1943_v42, %v1939_v7  ;;  %v1571_v6 = vshll.u32 %v1287_v56, 16  ;;  %1202 = vst [vmem:[#allocation2 + $0x138] sm:$0xf] %v1201_v57  ;;  %v533_v26 = vshll.u32 %v7678_v50, 16 }
  0xae   :  { %v799_v8 = vsel %vm9129_vm10, %v791_v16, %v798_v63  ;;  %v1205_v10 = vsel %vm9149_vm13, %v800_v37, %v1204_v62  ;;  %v1288_v15 = vld [vmem:[#allocation2 + $0x64] sm:$0xf]  ;;  %v1570_v54 = vrot.slane %v1568_v29, 4  ;;  %v532_v20 = vrot.slane %v530_v5, 7  ;;  %v152_v16 = vld [vmem:[%s12219_s0 + $0x90] sm:$0xff] }
  0xaf   :  { %v1945_v11 = vrot.slane %v1944_v1, 4  ;;  %v1573_v52 = vrot.slane %v1571_v6, 5  ;;  %1203 = vst.msk [vmem:[#allocation2 + $0x13c] sm:$0xf] %vm24_vm2, %v799_v8  ;;  %1206 = vst [vmem:[#allocation2 + $0x140] sm:$0x1] %v1205_v10  ;;  %v7710_v62 = vpack.c.bf16 %v182_v33, %v182_v33  ;;  %v7711_v30 = vpack.c.bf16 %v183_v34, %v183_v34 }
  0xb0   :  { %v1289_v12 = vld [vmem:[#allocation2 + $0x68] sm:$0x1]  ;;  %v1577_v18 = vshll.u32 %v1288_v15, 16  ;;  %v1581_v49 = vshrl.u32 %v1288_v15, 16  ;;  %v538_v22 = vshrl.u32 %v7679_v48, 16  ;;  %v541_v28 = vshll.u32 %v7679_v48, 16 }
  0xb1   :  { %v1950_v23 = vsel %vm9141_vm12, %v1945_v11, %v1949_v55  ;;  %v1574_v31 = vor.u32 %v1573_v52, %v1570_v54  ;;  %v1587_v32 = vshll.u32 %v1289_v12, 16  ;;  %v535_v41 = vor.u32 %v533_v26, %v532_v20  ;;  %v1099_v37 = vld [vmem:[#allocation2 + $0x74] sm:$0x1]  ;;  %v1207_v34 = vld [vmem:[#allocation2 + $0x144] sm:$0xf] }
  0xb2   :  { %v9537_v36 = vcombine.low %v1940_v60, %v1950_v23  ;;  %v1579_v39 = vrot.slane %v1577_v18, 5  ;;  %v1583_v40 = vrot.slane %v1581_v49, 4  ;;  %v536_v27 = vrot.slane %v532_v20, 4 }
  0xb3   :  { %v1575_v25 = vrot.slane %v1574_v31, 4  ;;  %v1589_v14 = vrot.slane %v1587_v32, 5  ;;  %v540_v44 = vrot.slane %v538_v22, 7  ;;  %v1096_v42 = vsel %vm9135_vm11, %v535_v41, %v1095_v21 }
  0xb4   :  { %12391 = vst [vmem:[#allocation19_spill] sm:$0xff] %v9537_v36  ;;  %8134 = vmatmul.mubr.msk.bf16.gmra.mxu1 %vm2241_vm9, %v9537_v36  ;;  %v1584_v17 = vor.u32 %v1583_v40, %v1579_v39  ;;  %v1341_v7 = vld [vmem:[#allocation2 + $0x138] sm:$0xf]  ;;  %1097 = vst [vmem:[#allocation2 + $0x6c] sm:$0xf] %v1096_v42  ;;  %v7680_v6 = vpack.c.bf16 %v152_v16, %v152_v16  ;;  %v9551_v8 = vpack.c.bf16 %v153_v45, %v153_v45  ;;  %vm6739_vm3 = vcmask 523264  }
  0xb5   :  { %v1580_v50 = vsel %vm9141_vm12, %v1575_v25, %v1579_v39  ;;  %v1952_v55 = vshrl.u32 %v1341_v7, 16  ;;  %v1955_v56 = vshll.u32 %v1341_v7, 16  ;;  %v543_v63 = vor.u32 %v541_v28, %v540_v44  ;;  %v1211_v7 = vld [vmem:[#allocation2 + $0x14c] sm:$0x1] }
  0xb6   :  { %v1585_v57 = vrot.slane %v1584_v17, 4  ;;  %v1342_v60 = vld [vmem:[#allocation2 + $0x13c] sm:$0xf]  ;;  %v1343_v1 = vld [vmem:[#allocation2 + $0x140] sm:$0x1]  ;;  %v545_v29 = vrot.slane %v540_v44, 4 }
  0xb7   :  { %v1954_v10 = vrot.slane %v1952_v55, 4  ;;  %v1957_v48 = vrot.slane %v1955_v56, 5  ;;  %v1961_v5 = vshll.u32 %v1342_v60, 16  ;;  %v1965_v11 = vshrl.u32 %v1342_v60, 16 }
  0xb8   :  { %v1590_v15 = vsel %vm9141_vm12, %v1585_v57, %v1589_v14  ;;  %v1971_v54 = vshll.u32 %v1343_v1, 16  ;;  %v544_v52 = vsel %vm9129_vm10, %v536_v27, %v543_v63  ;;  %v1100_v26 = vsel %vm9149_vm13, %v545_v29, %v1099_v37 }
  0xb9   :  { %v9559_v12 = vcombine.low %v1580_v50, %v1590_v15  ;;  %v1958_v18 = vor.u32 %v1957_v48, %v1954_v10  ;;  %v1963_v49 = vrot.slane %v1961_v5, 5  ;;  %v1967_v20 = vrot.slane %v1965_v11, 4  ;;  %1098 = vst.msk [vmem:[#allocation2 + $0x70] sm:$0xf] %vm24_vm2, %v544_v52  ;;  %1101 = vst [vmem:[#allocation2 + $0x74] sm:$0x1] %v1100_v26 }
  0xba   :  { %v1973_v22 = vrot.slane %v1971_v54, 5  ;;  %v802_v23 = vshrl.u32 %v7710_v62, 16  ;;  %v805_v31 = vshll.u32 %v7710_v62, 16  ;;  %v810_v32 = vshrl.u32 %v7711_v30, 16  ;;  %v1102_v54 = vld [vmem:[#allocation2 + $0x78] sm:$0xf] }
  0xbb   :  { %12392 = vst [vmem:[#allocation20_spill] sm:$0xff] %v9559_v12  ;;  %8105 = vmatprep.mubr.msk.bf16.mxu0 %vm2241_vm9, %v9559_v12  ;;  %v1959_v28 = vrot.slane %v1958_v18, 4  ;;  %v1968_v21 = vor.u32 %v1967_v20, %v1963_v49  ;;  %v813_v33 = vshll.u32 %v7711_v30, 16  ;;  %v547_v39 = vshrl.u32 %v7680_v6, 16  ;;  %v1290_v40 = vld [vmem:[#allocation2 + $0x6c] sm:$0xf] }
  0xbc   :  { %v804_v41 = vrot.slane %v802_v23, 7  ;;  %v812_v25 = vrot.slane %v810_v32, 7  ;;  %v550_v14 = vshll.u32 %v7680_v6, 16  ;;  %v555_v27 = vshrl.u32 %v9551_v8, 16  ;;  %v184_v52 = vld [vmem:[%s12219_s0 + $0x190] sm:$0xff]  ;;  %v154_v23 = vld [vmem:[%s12219_s0 + $0xa0] sm:$0xff] }
  0xbd   :  { %v1964_v44 = vsel %vm9141_vm12, %v1959_v28, %v1963_v49  ;;  %v1969_v16 = vrot.slane %v1968_v21, 4  ;;  %v1592_v45 = vshrl.u32 %v1290_v40, 16  ;;  %v1595_v17 = vshll.u32 %v1290_v40, 16  ;;  %v8700_v12 = vld [vmem:[#allocation2 + $0x18] sm:$0xf] }
  0xbe   :  { %v807_v42 = vor.u32 %v805_v31, %v804_v41  ;;  %v808_v62 = vrot.slane %v804_v41, 4  ;;  %v815_v50 = vor.u32 %v813_v33, %v812_v25  ;;  %v817_v55 = vrot.slane %v812_v25, 4  ;;  %v1106_v33 = vld [vmem:[#allocation2 + $0x80] sm:$0x1] }
  0xbf   :  { %v1974_v30 = vsel %vm9141_vm12, %v1969_v16, %v1973_v22  ;;  %v1594_v56 = vrot.slane %v1592_v45, 4  ;;  %v1597_v63 = vrot.slane %v1595_v17, 5  ;;  %v549_v37 = vrot.slane %v547_v39, 7  ;;  %v185_v22 = vld [vmem:[%s12219_s0 + $0x198] sm:$0xff]  ;;  %v186_v25 = vld [vmem:[%s12219_s0 + $0x1a0] sm:$0xff]  ;;  %v187_v45 = vld [vmem:[%s12219_s0 + $0x1a8] sm:$0xff] }
  0xc0   :  { %v9569_v57 = vcombine.low %v1964_v44, %v1974_v30  ;;  %v1291_v60 = vld [vmem:[#allocation2 + $0x70] sm:$0xf]  ;;  %v1292_v1 = vld [vmem:[#allocation2 + $0x74] sm:$0x1]  ;;  %v816_v29 = vsel %vm9129_vm10, %v808_v62, %v815_v50  ;;  %v1208_v6 = vsel %vm9135_vm11, %v807_v42, %v1207_v34  ;;  %v1212_v10 = vsel %vm9149_vm13, %v817_v55, %v1211_v7  ;;  %v157_v7 = vld [vmem:[%s12219_s0 + $0xb8] sm:$0xff] }
  0xc1   :  { %v1598_v48 = vor.u32 %v1597_v63, %v1594_v56  ;;  %v1601_v5 = vshll.u32 %v1291_v60, 16  ;;  %v1605_v11 = vshrl.u32 %v1291_v60, 16  ;;  %v1611_v15 = vshll.u32 %v1292_v1, 16  ;;  %1209 = vst [vmem:[#allocation2 + $0x144] sm:$0xf] %v1208_v6  ;;  %v156_v17 = vld [vmem:[%s12219_s0 + $0xb0] sm:$0xff] }
  0xc2   :  { %12393 = vst [vmem:[#allocation21_spill] sm:$0xff] %v9569_v57  ;;  %1210 = vst.msk [vmem:[#allocation2 + $0x148] sm:$0xf] %vm24_vm2, %v816_v29  ;;  %8137 = vmatprep.mubr.msk.bf16.mxu1 %vm2241_vm9, %v9569_v57  ;;  %v552_v26 = vor.u32 %v550_v14, %v549_v37  ;;  %v553_v18 = vrot.slane %v549_v37, 4  ;;  %v557_v49 = vrot.slane %v555_v27, 7  ;;  %v558_v20 = vshll.u32 %v9551_v8, 16 }
  0xc3   :  { %1213 = vst [vmem:[#allocation2 + $0x14c] sm:$0x1] %v1212_v10  ;;  %v1599_v31 = vrot.slane %v1598_v48, 4  ;;  %v1603_v32 = vrot.slane %v1601_v5, 5  ;;  %v1607_v28 = vrot.slane %v1605_v11, 4  ;;  %v1613_v21 = vrot.slane %v1611_v15, 5 }
  0xc4   :  { %v560_v34 = vor.u32 %v558_v20, %v557_v49  ;;  %v562_v39 = vrot.slane %v557_v49, 4  ;;  %v1103_v40 = vsel %vm9135_vm11, %v552_v26, %v1102_v54  ;;  %v7712_v41 = vpack.c.bf16 %v184_v52, %v184_v52  ;;  %v155_v8 = vld [vmem:[%s12219_s0 + $0xa8] sm:$0xff] }
  0xc5   :  { %v1604_v14 = vsel %vm9141_vm12, %v1599_v31, %v1603_v32  ;;  %v1608_v27 = vor.u32 %v1607_v28, %v1603_v32  ;;  %1104 = vst [vmem:[#allocation2 + $0x78] sm:$0xf] %v1103_v40  ;;  %v7713_v44 = vpack.c.bf16 %v185_v22, %v185_v22  ;;  %v9600_v16 = vpack.c.bf16 %v154_v23, %v154_v23  ;;  %v1214_v28 = vld [vmem:[#allocation2 + $0x150] sm:$0xf] }
  0xc6   :  { %v561_v42 = vsel %vm9129_vm10, %v553_v18, %v560_v34  ;;  %v1107_v62 = vsel %vm9149_vm13, %v562_v39, %v1106_v33  ;;  %v819_v50 = vshrl.u32 %v7712_v41, 16  ;;  %v822_v55 = vshll.u32 %v7712_v41, 16 }
  0xc7   :  { %v1609_v30 = vrot.slane %v1608_v27, 4  ;;  %1105 = vst.msk [vmem:[#allocation2 + $0x7c] sm:$0xf] %vm24_vm2, %v561_v42  ;;  %1108 = vst [vmem:[#allocation2 + $0x80] sm:$0x1] %v1107_v62  ;;  %v827_v56 = vshrl.u32 %v7713_v44, 16  ;;  %v9616_v37 = vpack.c.bf16 %v155_v8, %v155_v8  ;;  %v9618_v6 = vpack.c.bf16 %v186_v25, %v186_v25 }
  0xc8   :  { %v830_v63 = vshll.u32 %v7713_v44, 16  ;;  %v1344_v60 = vld [vmem:[#allocation2 + $0x144] sm:$0xf]  ;;  %v9620_v10 = vpack.c.bf16 %v187_v45, %v187_v45  ;;  %v9622_v48 = vpack.c.bf16 %v156_v17, %v156_v17  ;;  %v9624_v5 = vpack.c.bf16 %v157_v7, %v157_v7  ;;  %v1218_v27 = vld [vmem:[#allocation2 + $0x158] sm:$0x1] }
  0xc9   :  { %v1345_v1 = vld [vmem:[#allocation2 + $0x148] sm:$0xf]  ;;  %v1614_v11 = vsel %vm9141_vm12, %v1609_v30, %v1613_v21  ;;  %v1976_v15 = vshrl.u32 %v1344_v60, 16  ;;  %v1979_v54 = vshll.u32 %v1344_v60, 16  ;;  %v821_v20 = vrot.slane %v819_v50, 7 }
  0xca   :  { %v1346_v29 = vld [vmem:[#allocation2 + $0x14c] sm:$0x1]  ;;  %v1985_v52 = vshll.u32 %v1345_v1, 16  ;;  %v9628_v26 = vcombine.low %v1604_v14, %v1614_v11  ;;  %v1989_v18 = vshrl.u32 %v1345_v1, 16  ;;  %v829_v32 = vrot.slane %v827_v56, 7 }
  0xcb   :  { %v1995_v49 = vshll.u32 %v1346_v29, 16  ;;  %v1978_v22 = vrot.slane %v1976_v15, 4  ;;  %v1981_v23 = vrot.slane %v1979_v54, 5  ;;  %v824_v21 = vor.u32 %v822_v55, %v821_v20 }
  0xcc   :  { %12394 = vst [vmem:[#allocation22_spill] sm:$0xff] %v9628_v26  ;;  %v1987_v31 = vrot.slane %v1985_v52, 5  ;;  %8106 = vmatmul.mubr.msk.bf16.gmra.mxu0 %vm2241_vm9, %v9628_v26  ;;  %v1991_v33 = vrot.slane %v1989_v18, 4  ;;  %v1293_v39 = vld [vmem:[#allocation2 + $0x78] sm:$0xf]  ;;  %v825_v40 = vrot.slane %v821_v20, 4  ;;  %v832_v14 = vor.u32 %v830_v63, %v829_v32 }
  0xcd   :  { %v1997_v34 = vrot.slane %v1995_v49, 5  ;;  %v1982_v41 = vor.u32 %v1981_v23, %v1978_v22  ;;  %v1616_v8 = vshrl.u32 %v1293_v39, 16  ;;  %v1619_v25 = vshll.u32 %v1293_v39, 16 }
  0xce   :  { %v1992_v44 = vor.u32 %v1991_v33, %v1987_v31  ;;  %v1294_v45 = vld [vmem:[#allocation2 + $0x7c] sm:$0xf]  ;;  %v1295_v17 = vld [vmem:[#allocation2 + $0x80] sm:$0x1]  ;;  %v834_v7 = vrot.slane %v829_v32, 4  ;;  %v1215_v42 = vsel %vm9135_vm11, %v824_v21, %v1214_v28  ;;  %v564_v62 = vshrl.u32 %v9600_v16, 16 }
  0xcf   :  { %v1983_v50 = vrot.slane %v1982_v41, 4  ;;  %v1618_v30 = vrot.slane %v1616_v8, 4  ;;  %v1621_v56 = vrot.slane %v1619_v25, 5  ;;  %v1625_v60 = vshll.u32 %v1294_v45, 16  ;;  %1216 = vst [vmem:[#allocation2 + $0x150] sm:$0xf] %v1215_v42 }
  0xd0   :  { %v1993_v55 = vrot.slane %v1992_v44, 4  ;;  %v1629_v1 = vshrl.u32 %v1294_v45, 16  ;;  %v1635_v29 = vshll.u32 %v1295_v17, 16  ;;  %v833_v63 = vsel %vm9129_vm10, %v825_v40, %v832_v14  ;;  %v1109_v25 = vld [vmem:[#allocation2 + $0x84] sm:$0xf] }
  0xd1   :  { %v1988_v11 = vsel %vm9141_vm12, %v1983_v50, %v1987_v31  ;;  %v1622_v15 = vor.u32 %v1621_v56, %v1618_v30  ;;  %v1627_v54 = vrot.slane %v1625_v60, 5  ;;  %1217 = vst.msk [vmem:[#allocation2 + $0x154] sm:$0xf] %vm24_vm2, %v833_v63  ;;  %v1219_v52 = vsel %vm9149_vm13, %v834_v7, %v1218_v27  ;;  %v1113_v50 = vld [vmem:[#allocation2 + $0x8c] sm:$0x1] }
  0xd2   :  { %v1998_v18 = vsel %vm9141_vm12, %v1993_v55, %v1997_v34  ;;  %v1631_v49 = vrot.slane %v1629_v1, 4  ;;  %v1637_v20 = vrot.slane %v1635_v29, 5  ;;  %1220 = vst [vmem:[#allocation2 + $0x158] sm:$0x1] %v1219_v52  ;;  %v566_v22 = vrot.slane %v564_v62, 7 }
  0xd3   :  { %v9644_v23 = vcombine.low %v1988_v11, %v1998_v18  ;;  %v1623_v32 = vrot.slane %v1622_v15, 4  ;;  %v567_v28 = vshll.u32 %v9600_v16, 16  ;;  %v572_v31 = vshrl.u32 %v9616_v37, 16  ;;  %v1221_v1 = vld [vmem:[#allocation2 + $0x15c] sm:$0xf] }
  0xd4   :  { %v1632_v33 = vor.u32 %v1631_v49, %v1627_v54  ;;  %v570_v39 = vrot.slane %v566_v22, 4  ;;  %v575_v21 = vshll.u32 %v9616_v37, 16  ;;  %v836_v40 = vshrl.u32 %v9618_v6, 16 }
  0xd5   :  { %12395 = vst [vmem:[#allocation23_spill] sm:$0xff] %v9644_v23  ;;  %8138 = vmatmul.mubr.msk.bf16.gmra.mxu1 %vm2241_vm9, %v9644_v23  ;;  %v1628_v34 = vsel %vm9141_vm12, %v1623_v32, %v1627_v54  ;;  %v569_v41 = vor.u32 %v567_v28, %v566_v22  ;;  %v574_v8 = vrot.slane %v572_v31, 7  ;;  %v839_v14 = vshll.u32 %v9618_v6, 16  ;;  %v188_v31 = vld [vmem:[%s12219_s0 + $0x1b0] sm:$0xff] }
  0xd6   :  { %v1633_v16 = vrot.slane %v1632_v33, 4  ;;  %v1347_v27 = vld [vmem:[#allocation2 + $0x150] sm:$0xf]  ;;  %v838_v44 = vrot.slane %v836_v40, 7  ;;  %v844_v45 = vshrl.u32 %v9620_v10, 16  ;;  %v847_v37 = vshll.u32 %v9620_v10, 16 }
  0xd7   :  { %v2000_v17 = vshrl.u32 %v1347_v27, 16  ;;  %v2003_v7 = vshll.u32 %v1347_v27, 16  ;;  %v577_v42 = vor.u32 %v575_v21, %v574_v8  ;;  %v579_v62 = vrot.slane %v574_v8, 4  ;;  %v1225_v21 = vld [vmem:[#allocation2 + $0x164] sm:$0x1] }
  0xd8   :  { %v1638_v30 = vsel %vm9141_vm12, %v1633_v16, %v1637_v20  ;;  %v1348_v56 = vld [vmem:[#allocation2 + $0x154] sm:$0xf]  ;;  %v1110_v60 = vsel %vm9135_vm11, %v569_v41, %v1109_v25  ;;  %v841_v6 = vor.u32 %v839_v14, %v838_v44  ;;  %v842_v55 = vrot.slane %v838_v44, 4  ;;  %v189_v16 = vld [vmem:[%s12219_s0 + $0x1b8] sm:$0xff] }
  0xd9   :  { %v9661_v29 = vcombine.low %v1628_v34, %v1638_v30  ;;  %v1349_v63 = vld [vmem:[#allocation2 + $0x158] sm:$0x1]  ;;  %v2002_v11 = vrot.slane %v2000_v17, 4  ;;  %v2005_v10 = vrot.slane %v2003_v7, 5  ;;  %v2009_v15 = vshll.u32 %v1348_v56, 16 }
  0xda   :  { %1111 = vst [vmem:[#allocation2 + $0x84] sm:$0xf] %v1110_v60  ;;  %v2013_v54 = vshrl.u32 %v1348_v56, 16  ;;  %v2019_v52 = vshll.u32 %v1349_v63, 16  ;;  %v578_v18 = vsel %vm9129_vm10, %v570_v39, %v577_v42  ;;  %v1114_v49 = vsel %vm9149_vm13, %v579_v62, %v1113_v50  ;;  %v1116_v62 = vld [vmem:[#allocation2 + $0x90] sm:$0xf] }
  0xdb   :  { %12396 = vst [vmem:[#allocation24_spill] sm:$0xff] %v9661_v29  ;;  %8109 = vmatprep.mubr.msk.bf16.mxu0 %vm2241_vm9, %v9661_v29  ;;  %v2006_v20 = vor.u32 %v2005_v10, %v2002_v11  ;;  %v2011_v22 = vrot.slane %v2009_v15, 5  ;;  %1112 = vst.msk [vmem:[#allocation2 + $0x88] sm:$0xf] %vm24_vm2, %v578_v18  ;;  %v846_v32 = vrot.slane %v844_v45, 7  ;;  %v1222_v28 = vsel %vm9135_vm11, %v841_v6, %v1221_v1 }
  0xdc   :  { %1115 = vst [vmem:[#allocation2 + $0x8c] sm:$0x1] %v1114_v49  ;;  %v2015_v33 = vrot.slane %v2013_v54, 4  ;;  %v2021_v39 = vrot.slane %v2019_v52, 5  ;;  %1223 = vst [vmem:[#allocation2 + $0x15c] sm:$0xf] %v1222_v28  ;;  %v7716_v17 = vpack.c.bf16 %v188_v31, %v188_v31 }
  0xdd   :  { %v581_v40 = vshrl.u32 %v9622_v48, 16  ;;  %v584_v34 = vshll.u32 %v9622_v48, 16  ;;  %v2007_v41 = vrot.slane %v2006_v20, 4  ;;  %v849_v8 = vor.u32 %v847_v37, %v846_v32  ;;  %v1120_v10 = vld [vmem:[#allocation2 + $0x98] sm:$0x1] }
  0xde   :  { %v851_v25 = vrot.slane %v846_v32, 4  ;;  %v589_v14 = vshrl.u32 %v9624_v5, 16  ;;  %v2016_v27 = vor.u32 %v2015_v33, %v2011_v22  ;;  %v592_v45 = vshll.u32 %v9624_v5, 16 }
  0xdf   :  { %v583_v44 = vrot.slane %v581_v40, 7  ;;  %v2012_v7 = vsel %vm9141_vm12, %v2007_v41, %v2011_v22  ;;  %v850_v48 = vsel %vm9129_vm10, %v842_v55, %v849_v8  ;;  %v9689_v5 = vpack.c.bf16 %v189_v16, %v189_v16  ;;  %v159_v41 = vld [vmem:[%s12219_s0 + $0xc8] sm:$0xff] }
  0xe0   :  { %v1226_v37 = vsel %vm9149_vm13, %v851_v25, %v1225_v21  ;;  %v591_v42 = vrot.slane %v589_v14, 7  ;;  %v2017_v50 = vrot.slane %v2016_v27, 4  ;;  %1224 = vst.msk [vmem:[#allocation2 + $0x160] sm:$0xf] %vm24_vm2, %v850_v48  ;;  %v853_v18 = vshrl.u32 %v7716_v17, 16 }
  0xe1   :  { %v1296_v30 = vld [vmem:[#allocation2 + $0x84] sm:$0xf]  ;;  %1227 = vst [vmem:[#allocation2 + $0x164] sm:$0x1] %v1226_v37  ;;  %v586_v56 = vor.u32 %v584_v34, %v583_v44  ;;  %v587_v60 = vrot.slane %v583_v44, 4  ;;  %v856_v49 = vshll.u32 %v7716_v17, 16 }
  0xe2   :  { %v1640_v6 = vshrl.u32 %v1296_v30, 16  ;;  %v1643_v1 = vshll.u32 %v1296_v30, 16  ;;  %v594_v63 = vor.u32 %v592_v45, %v591_v42  ;;  %v596_v11 = vrot.slane %v591_v42, 4  ;;  %v9693_v15 = vld [vmem:[#allocation2 + $0x88] sm:$0xf]  ;;  %v158_v34 = vld [vmem:[%s12219_s0 + $0xc0] sm:$0xff] }
  0xe3   :  { %v2022_v55 = vsel %vm9141_vm12, %v2017_v50, %v2021_v39  ;;  %v9695_v54 = vld [vmem:[#allocation2 + $0x8c] sm:$0x1]  ;;  %v1117_v52 = vsel %vm9135_vm11, %v586_v56, %v1116_v62  ;;  %v1649_v28 = vshll.u32 %v9693_v15, 16  ;;  %v1350_v31 = vld [vmem:[#allocation2 + $0x15c] sm:$0xf]  ;;  %v1653_v33 = vshrl.u32 %v9693_v15, 16 }
  0xe4   :  { %v9699_v20 = vcombine.low %v2012_v7, %v2022_v55  ;;  %v1642_v22 = vrot.slane %v1640_v6, 4  ;;  %v1645_v32 = vrot.slane %v1643_v1, 5  ;;  %1118 = vst [vmem:[#allocation2 + $0x90] sm:$0xf] %v1117_v52  ;;  %v1659_v39 = vshll.u32 %v9695_v54, 16 }
  0xe5   :  { %v2024_v21 = vshrl.u32 %v1350_v31, 16  ;;  %v2027_v40 = vshll.u32 %v1350_v31, 16  ;;  %v1651_v25 = vrot.slane %v1649_v28, 5  ;;  %v595_v14 = vsel %vm9129_vm10, %v587_v60, %v594_v63  ;;  %v1228_v55 = vld [vmem:[#allocation2 + $0x168] sm:$0xf] }
  0xe6   :  { %12397 = vst [vmem:[#allocation25_spill] sm:$0xff] %v9699_v20  ;;  %8141 = vmatprep.mubr.msk.bf16.mxu1 %vm2241_vm9, %v9699_v20  ;;  %v1646_v8 = vor.u32 %v1645_v32, %v1642_v22  ;;  %v1121_v16 = vsel %vm9149_vm13, %v596_v11, %v1120_v10  ;;  %v1655_v27 = vrot.slane %v1653_v33, 4  ;;  %v1661_v44 = vrot.slane %v1659_v39, 5  ;;  %1119 = vst.msk [vmem:[#allocation2 + $0x94] sm:$0xf] %vm24_vm2, %v595_v14 }
  0xe7   :  { %v2026_v45 = vrot.slane %v2024_v21, 4  ;;  %v2029_v17 = vrot.slane %v2027_v40, 5  ;;  %1122 = vst [vmem:[#allocation2 + $0x98] sm:$0x1] %v1121_v16  ;;  %v1351_v48 = vld [vmem:[#allocation2 + $0x160] sm:$0xf]  ;;  %v9717_v62 = vpack.c.bf16 %v158_v34, %v158_v34  ;;  %v9719_v50 = vpack.c.bf16 %v159_v41, %v159_v41 }
  0xe8   :  { %v1647_v7 = vrot.slane %v1646_v8, 4  ;;  %v1352_v37 = vld [vmem:[#allocation2 + $0x164] sm:$0x1]  ;;  %v855_v42 = vrot.slane %v853_v18, 7  ;;  %v1656_v30 = vor.u32 %v1655_v27, %v1651_v25  ;;  %v2033_v60 = vshll.u32 %v1351_v48, 16 }
  0xe9   :  { %v2030_v56 = vor.u32 %v2029_v17, %v2026_v45  ;;  %v2037_v6 = vshrl.u32 %v1351_v48, 16  ;;  %v2043_v63 = vshll.u32 %v1352_v37, 16  ;;  %v861_v21 = vshrl.u32 %v9689_v5, 16 }
  0xea   :  { %v1652_v1 = vsel %vm9141_vm12, %v1647_v7, %v1651_v25  ;;  %v858_v11 = vor.u32 %v856_v49, %v855_v42  ;;  %v859_v10 = vrot.slane %v855_v42, 4  ;;  %v1657_v52 = vrot.slane %v1656_v30, 4 }
  0xeb   :  { %v2031_v22 = vrot.slane %v2030_v56, 4  ;;  %v2035_v32 = vrot.slane %v2033_v60, 5  ;;  %v2039_v28 = vrot.slane %v2037_v6, 4  ;;  %v9723_v18 = vld [vmem:[#allocation2 + $0x90] sm:$0xf]  ;;  %v2045_v31 = vrot.slane %v2043_v63, 5 }
  0xec   :  { %v1664_v33 = vshrl.u32 %v9723_v18, 16  ;;  %v1667_v39 = vshll.u32 %v9723_v18, 16  ;;  %v1662_v40 = vsel %vm9141_vm12, %v1657_v52, %v1661_v44  ;;  %v864_v41 = vshll.u32 %v9689_v5, 16  ;;  %v1232_v63 = vld [vmem:[#allocation2 + $0x170] sm:$0x1] }
  0xed   :  { %v2036_v49 = vsel %vm9141_vm12, %v2031_v22, %v2035_v32  ;;  %v2040_v34 = vor.u32 %v2039_v28, %v2035_v32  ;;  %v9733_v8 = vcombine.low %v1652_v1, %v1662_v40  ;;  %v9735_v25 = vld [vmem:[#allocation2 + $0x94] sm:$0xf]  ;;  %v1229_v45 = vsel %vm9135_vm11, %v858_v11, %v1228_v55  ;;  %v190_v11 = vld [vmem:[%s12219_s0 + $0x1c0] sm:$0xff] }
  0xee   :  { %v9737_v14 = vld [vmem:[#allocation2 + $0x98] sm:$0x1]  ;;  %v1666_v16 = vrot.slane %v1664_v33, 4  ;;  %v1669_v27 = vrot.slane %v1667_v39, 5  ;;  %v1673_v44 = vshll.u32 %v9735_v25, 16  ;;  %v1677_v7 = vshrl.u32 %v9735_v25, 16 }
  0xef   :  { %12398 = vst [vmem:[#allocation26_spill] sm:$0xff] %v9733_v8  ;;  %v2041_v17 = vrot.slane %v2040_v34, 4  ;;  %v1683_v48 = vshll.u32 %v9737_v14, 16  ;;  %1230 = vst [vmem:[#allocation2 + $0x168] sm:$0xf] %v1229_v45  ;;  %8110 = vmatmul.mubr.msk.bf16.gmra.mxu0 %vm2241_vm9, %v9733_v8  ;;  %v863_v37 = vrot.slane %v861_v21, 7  ;;  %v7718_v34 = vpack.c.bf16 %v190_v11, %v190_v11 }
  0xf0   :  { %v1670_v5 = vor.u32 %v1669_v27, %v1666_v16  ;;  %v598_v42 = vshrl.u32 %v9717_v62, 16  ;;  %v601_v30 = vshll.u32 %v9717_v62, 16  ;;  %v1675_v60 = vrot.slane %v1673_v44, 5  ;;  %v160_v21 = vld [vmem:[%s12219_s0 + $0xd0] sm:$0xff] }
  0xf1   :  { %v2046_v56 = vsel %vm9141_vm12, %v2041_v17, %v2045_v31  ;;  %v1679_v6 = vrot.slane %v1677_v7, 4  ;;  %v1685_v1 = vrot.slane %v1683_v48, 5  ;;  %v866_v22 = vor.u32 %v864_v41, %v863_v37  ;;  %v191_v31 = vld [vmem:[%s12219_s0 + $0x1c8] sm:$0xff]  ;;  %v1123_v17 = vld [vmem:[#allocation2 + $0x9c] sm:$0xf] }
  0xf2   :  { %v9753_v55 = vcombine.low %v2036_v49, %v2046_v56  ;;  %v1671_v52 = vrot.slane %v1670_v5, 4  ;;  %v868_v32 = vrot.slane %v863_v37, 4  ;;  %v600_v33 = vrot.slane %v598_v42, 7 }
  0xf3   :  { %v1680_v28 = vor.u32 %v1679_v6, %v1675_v60  ;;  %v606_v62 = vshrl.u32 %v9719_v50, 16  ;;  %v609_v39 = vshll.u32 %v9719_v50, 16  ;;  %v867_v49 = vsel %vm9129_vm10, %v859_v10, %v866_v22  ;;  %v1127_v6 = vld [vmem:[#allocation2 + $0xa4] sm:$0x1]  ;;  %v1235_v22 = vld [vmem:[#allocation2 + $0x174] sm:$0xf] }
  0xf4   :  { %12399 = vst [vmem:[#allocation27_spill] sm:$0xff] %v9753_v55  ;;  %8142 = vmatmul.mubr.msk.bf16.gmra.mxu1 %vm2241_vm9, %v9753_v55  ;;  %v1676_v40 = vsel %vm9141_vm12, %v1671_v52, %v1675_v60  ;;  %v1233_v50 = vsel %vm9149_vm13, %v868_v32, %v1232_v63  ;;  %1231 = vst.msk [vmem:[#allocation2 + $0x16c] sm:$0xf] %vm24_vm2, %v867_v49  ;;  %v603_v16 = vor.u32 %v601_v30, %v600_v33  ;;  %v161_v32 = vld [vmem:[%s12219_s0 + $0xd8] sm:$0xff] }
  0xf5   :  { %v1681_v41 = vrot.slane %v1680_v28, 4  ;;  %1234 = vst [vmem:[#allocation2 + $0x170] sm:$0x1] %v1233_v50  ;;  %v604_v27 = vrot.slane %v600_v33, 4  ;;  %v608_v45 = vrot.slane %v606_v62, 7  ;;  %v7719_v7 = vpack.c.bf16 %v191_v31, %v191_v31  ;;  %v193_v31 = vld [vmem:[%s12219_s0 + $0x1d8] sm:$0xff] }
  0xf6   :  { %v1353_v44 = vld [vmem:[#allocation2 + $0x168] sm:$0xf]  ;;  %v870_v48 = vshrl.u32 %v7718_v34, 16  ;;  %v873_v5 = vshll.u32 %v7718_v34, 16  ;;  %v7688_v37 = vpack.c.bf16 %v160_v21, %v160_v21  ;;  %v1124_v30 = vsel %vm9135_vm11, %v603_v16, %v1123_v17 }
  0xf7   :  { %v1686_v10 = vsel %vm9141_vm12, %v1681_v41, %v1685_v1  ;;  %v2048_v42 = vshrl.u32 %v1353_v44, 16  ;;  %v2051_v56 = vshll.u32 %v1353_v44, 16  ;;  %v611_v60 = vor.u32 %v609_v39, %v608_v45  ;;  %1125 = vst [vmem:[#allocation2 + $0x9c] sm:$0xf] %v1124_v30  ;;  %v192_v39 = vld [vmem:[%s12219_s0 + $0x1d0] sm:$0xff] }
  0xf8   :  { %v9774_v63 = vcombine.low %v1676_v40, %v1686_v10  ;;  %v613_v11 = vrot.slane %v608_v45, 4  ;;  %v872_v52 = vrot.slane %v870_v48, 7  ;;  %v878_v62 = vshrl.u32 %v7719_v7, 16 }
  0xf9   :  { %v2050_v28 = vrot.slane %v2048_v42, 4  ;;  %v2053_v33 = vrot.slane %v2051_v56, 5  ;;  %v612_v1 = vsel %vm9129_vm10, %v604_v27, %v611_v60  ;;  %v881_v50 = vshll.u32 %v7719_v7, 16  ;;  %v1239_v7 = vld [vmem:[#allocation2 + $0x17c] sm:$0x1] }
  0xfa   :  { %12400 = vst [vmem:[#allocation28_spill] sm:$0xff] %v9774_v63  ;;  %8113 = vmatprep.mubr.msk.bf16.mxu0 %vm2241_vm9, %v9774_v63  ;;  %1126 = vst.msk [vmem:[#allocation2 + $0xa0] sm:$0xf] %vm24_vm2, %v612_v1  ;;  %v1128_v21 = vsel %vm9149_vm13, %v613_v11, %v1127_v6  ;;  %v875_v40 = vor.u32 %v873_v5, %v872_v52  ;;  %v876_v49 = vrot.slane %v872_v52, 4  ;;  %v880_v41 = vrot.slane %v878_v62, 7 }
  0xfb   :  { %v2054_v34 = vor.u32 %v2053_v33, %v2050_v28  ;;  %1129 = vst [vmem:[#allocation2 + $0xa4] sm:$0x1] %v1128_v21  ;;  %v7689_v16 = vpack.c.bf16 %v161_v32, %v161_v32  ;;  %v615_v27 = vshrl.u32 %v7688_v37, 16  ;;  %v1354_v45 = vld [vmem:[#allocation2 + $0x16c] sm:$0xf]  ;;  %v618_v48 = vshll.u32 %v7688_v37, 16 }
  0xfc   :  { %v1355_v17 = vld [vmem:[#allocation2 + $0x170] sm:$0x1]  ;;  %v1236_v44 = vsel %vm9135_vm11, %v875_v40, %v1235_v22  ;;  %v9796_v10 = vpack.c.bf16 %v192_v39, %v192_v39  ;;  %v9798_v42 = vpack.c.bf16 %v193_v31, %v193_v31  ;;  %v2057_v60 = vshll.u32 %v1354_v45, 16  ;;  %v1130_v22 = vld [vmem:[#allocation2 + $0xa8] sm:$0xf] }
  0xfd   :  { %v2055_v56 = vrot.slane %v2054_v34, 4  ;;  %v2061_v5 = vshrl.u32 %v1354_v45, 16  ;;  %v2067_v6 = vshll.u32 %v1355_v17, 16  ;;  %1237 = vst [vmem:[#allocation2 + $0x174] sm:$0xf] %v1236_v44  ;;  %v883_v11 = vor.u32 %v881_v50, %v880_v41 }
  0xfe   :  { %v885_v30 = vrot.slane %v880_v41, 4  ;;  %v617_v52 = vrot.slane %v615_v27, 7  ;;  %v623_v32 = vshrl.u32 %v7689_v16, 16  ;;  %v2059_v28 = vrot.slane %v2057_v60, 5  ;;  %v9800_v37 = vld [vmem:[#allocation2 + $0x9c] sm:$0xf] }
  0xff   :  { %v2063_v33 = vrot.slane %v2061_v5, 4  ;;  %v2069_v1 = vrot.slane %v2067_v6, 5  ;;  %v626_v62 = vshll.u32 %v7689_v16, 16  ;;  %v884_v39 = vsel %vm9129_vm10, %v876_v49, %v883_v11 }
 0x100   :  { %v1240_v31 = vsel %vm9149_vm13, %v885_v30, %v1239_v7  ;;  %v620_v21 = vor.u32 %v618_v48, %v617_v52  ;;  %v621_v40 = vrot.slane %v617_v52, 4  ;;  %v2060_v50 = vsel %vm9141_vm12, %v2055_v56, %v2059_v28  ;;  %1238 = vst.msk [vmem:[#allocation2 + $0x178] sm:$0xf] %vm24_vm2, %v884_v39  ;;  %v1134_v7 = vld [vmem:[#allocation2 + $0xb0] sm:$0x1] }
 0x101   :  { %v2064_v34 = vor.u32 %v2063_v33, %v2059_v28  ;;  %v9808_v41 = vld [vmem:[#allocation2 + $0xa0] sm:$0xf]  ;;  %v1688_v27 = vshrl.u32 %v9800_v37, 16  ;;  %v1691_v16 = vshll.u32 %v9800_v37, 16  ;;  %1241 = vst [vmem:[#allocation2 + $0x17c] sm:$0x1] %v1240_v31 }
 0x102   :  { %v9813_v45 = vld [vmem:[#allocation2 + $0xa4] sm:$0x1]  ;;  %v1697_v49 = vshll.u32 %v9808_v41, 16  ;;  %v1701_v17 = vshrl.u32 %v9808_v41, 16  ;;  %v625_v44 = vrot.slane %v623_v32, 7  ;;  %v1131_v48 = vsel %vm9135_vm11, %v620_v21, %v1130_v22  ;;  %v163_v21 = vld [vmem:[%s12219_s0 + $0xe8] sm:$0xff] }
 0x103   :  { %v2065_v56 = vrot.slane %v2064_v34, 4  ;;  %v1690_v60 = vrot.slane %v1688_v27, 4  ;;  %v1693_v5 = vrot.slane %v1691_v16, 5  ;;  %v1707_v6 = vshll.u32 %v9813_v45, 16  ;;  %1132 = vst [vmem:[#allocation2 + $0xa8] sm:$0xf] %v1131_v48 }
 0x104   :  { %v1699_v11 = vrot.slane %v1697_v49, 5  ;;  %v1703_v30 = vrot.slane %v1701_v17, 4  ;;  %v1356_v52 = vld [vmem:[#allocation2 + $0x174] sm:$0xf]  ;;  %v628_v28 = vor.u32 %v626_v62, %v625_v44  ;;  %v630_v33 = vrot.slane %v625_v44, 4  ;;  %v162_v22 = vld [vmem:[%s12219_s0 + $0xe0] sm:$0xff] }
 0x105   :  { %v2070_v39 = vsel %vm9141_vm12, %v2065_v56, %v2069_v1  ;;  %v1694_v31 = vor.u32 %v1693_v5, %v1690_v60  ;;  %v1709_v32 = vrot.slane %v1707_v6, 5  ;;  %v2072_v55 = vshrl.u32 %v1356_v52, 16 }
 0x106   :  { %v9828_v34 = vcombine.low %v2060_v50, %v2070_v39  ;;  %v1704_v27 = vor.u32 %v1703_v30, %v1699_v11  ;;  %v2075_v16 = vshll.u32 %v1356_v52, 16  ;;  %v629_v62 = vsel %vm9129_vm10, %v621_v40, %v628_v28 }
 0x107   :  { %v1695_v49 = vrot.slane %v1694_v31, 4  ;;  %v2074_v1 = vrot.slane %v2072_v55, 4  ;;  %1133 = vst.msk [vmem:[#allocation2 + $0xac] sm:$0xf] %vm24_vm2, %v629_v62  ;;  %v1135_v17 = vsel %vm9149_vm13, %v630_v33, %v1134_v7  ;;  %v887_v44 = vshrl.u32 %v9796_v10, 16 }
 0x108   :  { %12401 = vst [vmem:[#allocation29_spill] sm:$0xff] %v9828_v34  ;;  %8145 = vmatprep.mubr.msk.bf16.mxu1 %vm2241_vm9, %v9828_v34  ;;  %v1705_v48 = vrot.slane %v1704_v27, 4  ;;  %v9838_v50 = vld [vmem:[#allocation2 + $0x178] sm:$0xf]  ;;  %v1358_v56 = vld [vmem:[#allocation2 + $0x17c] sm:$0x1]  ;;  %v9840_v5 = vpack.c.bf16 %v162_v22, %v162_v22  ;;  %v9842_v40 = vpack.c.bf16 %v163_v21, %v163_v21 }
 0x109   :  { %v2077_v60 = vrot.slane %v2075_v16, 5  ;;  %1136 = vst [vmem:[#allocation2 + $0xb0] sm:$0x1] %v1135_v17  ;;  %v1700_v55 = vsel %vm9141_vm12, %v1695_v49, %v1699_v11  ;;  %v2081_v6 = vshll.u32 %v9838_v50, 16  ;;  %v2085_v7 = vshrl.u32 %v9838_v50, 16  ;;  %v194_v34 = vld [vmem:[%s12219_s0 + $0x1e0] sm:$0xff] }
 0x10a   :  { %v2091_v30 = vshll.u32 %v1358_v56, 16  ;;  %v1710_v52 = vsel %vm9141_vm12, %v1705_v48, %v1709_v32  ;;  %v9850_v33 = vld [vmem:[#allocation2 + $0xa8] sm:$0xf]  ;;  %v889_v39 = vrot.slane %v887_v44, 7  ;;  %v890_v31 = vshll.u32 %v9796_v10, 16 }
 0x10b   :  { %v2078_v28 = vor.u32 %v2077_v60, %v2074_v1  ;;  %v9853_v22 = vcombine.low %v1700_v55, %v1710_v52  ;;  %v2083_v21 = vrot.slane %v2081_v6, 5  ;;  %v2087_v27 = vrot.slane %v2085_v7, 4  ;;  %v1242_v11 = vld [vmem:[#allocation2 + $0x180] sm:$0xf] }
 0x10c   :  { %v2093_v16 = vrot.slane %v2091_v30, 5  ;;  %v1712_v49 = vshrl.u32 %v9850_v33, 16  ;;  %v1715_v17 = vshll.u32 %v9850_v33, 16  ;;  %v892_v56 = vor.u32 %v890_v31, %v889_v39 }
 0x10d   :  { %12402 = vst [vmem:[#allocation30_spill] sm:$0xff] %v9853_v22  ;;  %v2079_v62 = vrot.slane %v2078_v28, 4  ;;  %8114 = vmatmul.mubr.msk.bf16.gmra.mxu0 %vm2241_vm9, %v9853_v22  ;;  %v2088_v32 = vor.u32 %v2087_v27, %v2083_v21  ;;  %v893_v1 = vrot.slane %v889_v39, 4  ;;  %v895_v44 = vshrl.u32 %v9798_v42, 16 }
 0x10e   :  { %v898_v10 = vshll.u32 %v9798_v42, 16  ;;  %v9863_v60 = vld [vmem:[#allocation2 + $0xac] sm:$0xf]  ;;  %v1714_v55 = vrot.slane %v1712_v49, 4  ;;  %v1717_v6 = vrot.slane %v1715_v17, 5  ;;  %v1243_v7 = vsel %vm9135_vm11, %v892_v56, %v1242_v11 }
 0x10f   :  { %v2084_v48 = vsel %vm9141_vm12, %v2079_v62, %v2083_v21  ;;  %v2089_v30 = vrot.slane %v2088_v32, 4  ;;  %v1721_v28 = vshll.u32 %v9863_v60, 16  ;;  %v1725_v39 = vshrl.u32 %v9863_v60, 16  ;;  %1244 = vst [vmem:[#allocation2 + $0x180] sm:$0xf] %v1243_v7 }
 0x110   :  { %v9867_v52 = vld [vmem:[#allocation2 + $0xb0] sm:$0x1]  ;;  %v897_v31 = vrot.slane %v895_v44, 7  ;;  %v1718_v42 = vor.u32 %v1717_v6, %v1714_v55  ;;  %v632_v21 = vshrl.u32 %v9840_v5, 16  ;;  %v635_v62 = vshll.u32 %v9840_v5, 16 }
 0x111   :  { %v1731_v27 = vshll.u32 %v9867_v52, 16  ;;  %v2094_v49 = vsel %vm9141_vm12, %v2089_v30, %v2093_v16  ;;  %v1723_v11 = vrot.slane %v1721_v28, 5  ;;  %v1727_v17 = vrot.slane %v1725_v39, 4  ;;  %v1246_v32 = vld [vmem:[#allocation2 + $0x188] sm:$0x1] }
 0x112   :  { %v900_v56 = vor.u32 %v898_v10, %v897_v31  ;;  %v9879_v44 = vcombine.low %v2084_v48, %v2094_v49  ;;  %v1719_v55 = vrot.slane %v1718_v42, 4  ;;  %v902_v7 = vrot.slane %v897_v31, 4  ;;  %v195_v10 = vld [vmem:[%s12219_s0 + $0x1e8] sm:$0xff] }
 0x113   :  { %v1733_v6 = vrot.slane %v1731_v27, 5  ;;  %v1728_v20 = vor.u32 %v1727_v17, %v1723_v11  ;;  %v634_v23 = vrot.slane %v632_v21, 7  ;;  %v640_v16 = vshrl.u32 %v9842_v40, 16  ;;  %v1137_v21 = vld [vmem:[#allocation2 + $0xb4] sm:$0xf] }
 0x114   :  { %12403 = vst [vmem:[#allocation31_spill] sm:$0xff] %v9879_v44  ;;  %v901_v5 = vsel %vm9129_vm10, %v893_v1, %v900_v56  ;;  %8146 = vmatmul.mubr.msk.bf16.gmra.mxu1 %vm2241_vm9, %v9879_v44  ;;  %v1724_v48 = vsel %vm9141_vm12, %v1719_v55, %v1723_v11  ;;  %v1247_v30 = vsel %vm9149_vm13, %v902_v7, %v1246_v32  ;;  %v643_v1 = vshll.u32 %v9842_v40, 16 }
 0x115   :  { %1245 = vst.msk [vmem:[#allocation2 + $0x184] sm:$0xf] %vm24_vm2, %v901_v5  ;;  %v7722_v28 = vpack.c.bf16 %v194_v34, %v194_v34  ;;  %v1729_v39 = vrot.slane %v1728_v20, 4  ;;  %1248 = vst [vmem:[#allocation2 + $0x188] sm:$0x1] %v1247_v30  ;;  %v637_v31 = vor.u32 %v635_v62, %v634_v23  ;;  %v638_v42 = vrot.slane %v634_v23, 4 }
 0x116   :  { %v642_v27 = vrot.slane %v640_v16, 7  ;;  %v9895_v49 = vld [vmem:[#allocation2 + $0x180] sm:$0xf]  ;;  %v7723_v17 = vpack.c.bf16 %v195_v10, %v195_v10  ;;  %v1141_v34 = vld [vmem:[#allocation2 + $0xbc] sm:$0x1]  ;;  %v7288_v19 = vrot.slane %v8700_v12, 9 }
 0x117   :  { %v904_v56 = vshrl.u32 %v7722_v28, 16  ;;  %v907_v44 = vshll.u32 %v7722_v28, 16  ;;  %v1734_v11 = vsel %vm9141_vm12, %v1729_v39, %v1733_v6  ;;  %v2096_v55 = vshrl.u32 %v9895_v49, 16  ;;  %v1249_v30 = vld [vmem:[#allocation2 + $0x18c] sm:$0xf] }
 0x118   :  { %v2099_v32 = vshll.u32 %v9895_v49, 16  ;;  %v645_v40 = vor.u32 %v643_v1, %v642_v27  ;;  %v9901_v20 = vcombine.low %v1724_v48, %v1734_v11  ;;  %v647_v62 = vrot.slane %v642_v27, 4  ;;  %v7383_v27 = vld [vmem:[%s12222_s3 + $0x6] sm:$0x3] }
 0x119   :  { %v1138_v23 = vsel %vm9135_vm11, %v637_v31, %v1137_v21  ;;  %v906_v7 = vrot.slane %v904_v56, 7  ;;  %v2098_v5 = vrot.slane %v2096_v55, 4  ;;  %v912_v6 = vshrl.u32 %v7723_v17, 16  ;;  %v1253_v31 = vld [vmem:[#allocation2 + $0x194] sm:$0x1] }
 0x11a   :  { %12404 = vst [vmem:[#allocation32_spill] sm:$0xff] %v9901_v20  ;;  %v2101_v16 = vrot.slane %v2099_v32, 5  ;;  %v646_v10 = vsel %vm9129_vm10, %v638_v42, %v645_v40  ;;  %1139 = vst [vmem:[#allocation2 + $0xb4] sm:$0xf] %v1138_v23  ;;  %8117 = vmatprep.mubr.msk.bf16.mxu0 %vm2241_vm9, %v9901_v20  ;;  %v1142_v48 = vsel %vm9149_vm13, %v647_v62, %v1141_v34  ;;  %v915_v39 = vshll.u32 %v7723_v17, 16 }
 0x11b   :  { %1140 = vst.msk [vmem:[#allocation2 + $0xb8] sm:$0xf] %vm24_vm2, %v646_v10  ;;  %v909_v1 = vor.u32 %v907_v44, %v906_v7  ;;  %v910_v28 = vrot.slane %v906_v7, 4  ;;  %1143 = vst [vmem:[#allocation2 + $0xbc] sm:$0x1] %v1142_v48  ;;  %v914_v56 = vrot.slane %v912_v6, 7  ;;  %v9931_v48 = vand.u32 %v7383_v27, %v8844_v4 }
 0x11c   :  { %v9915_v42 = vld [vmem:[#allocation2 + $0x184] sm:$0xf]  ;;  %v2102_v21 = vor.u32 %v2101_v16, %v2098_v5  ;;  %v9917_v11 = vld [vmem:[#allocation2 + $0x188] sm:$0x1]  ;;  %v9923_v32 = vld [vmem:[#allocation2] sm:$0xf] }
 0x11d   :  { %v2105_v55 = vshll.u32 %v9915_v42, 16  ;;  %v2109_v44 = vshrl.u32 %v9915_v42, 16  ;;  %v1250_v17 = vsel %vm9135_vm11, %v909_v1, %v1249_v30  ;;  %v7286_v40 = vrot.slane %v9923_v32, 9  ;;  %v9927_v10 = vld [vmem:[#allocation2 + $0x4] sm:$0xf]  ;;  %8285 = vmatprep.subr.bf16.mxu1 %v9931_v48 }
 0x11e   :  { %v2103_v34 = vrot.slane %v2102_v21, 4  ;;  %v2115_v62 = vshll.u32 %v9917_v11, 16  ;;  %v917_v23 = vor.u32 %v915_v39, %v914_v56  ;;  %v919_v7 = vrot.slane %v914_v56, 4  ;;  %1251 = vst [vmem:[#allocation2 + $0x18c] sm:$0xf] %v1250_v17 }
 0x11f   :  { %v2107_v5 = vrot.slane %v2105_v55, 5  ;;  %v2111_v16 = vrot.slane %v2109_v44, 4  ;;  %v3219_v6 = vrot.slane %v9927_v10, 5  ;;  %v8695_v30 = vld [vmem:[#allocation2 + $0x8] sm:$0x1]  ;;  %v12405_v39 = vmov 0 }
 0x120   :  { %v3222_v1 = vrot.slane %v8695_v30, 5  ;;  %v918_v57 = vsel %vm9129_vm10, %v910_v28, %v917_v23  ;;  %v1254_v21 = vsel %vm9149_vm13, %v919_v7, %v1253_v31  ;;  %v12406_v39 = vsel %vm9939_vm1, 4294967295, %v12405_v39  ;;  %v9943_v56 = vld [vmem:[#allocation2 + $0x10] sm:$0xf]  ;;  %v9946_v27 = vld [vmem:[#allocation2 + $0x14] sm:$0x1] }
 0x121   :  { %12407 = vst [vmem:[#allocation33_spill] sm:$0xff] %v12406_v39  ;;  %v2112_v17 = vor.u32 %v2111_v16, %v2107_v5  ;;  %v2117_v30 = vrot.slane %v2115_v62, 5  ;;  %v9949_v28 = vld [vmem:[#allocation2 + $0xb4] sm:$0xf]  ;;  %1252 = vst.msk [vmem:[#allocation2 + $0x190] sm:$0xf] %vm24_vm2, %v918_v57  ;;  %v2108_v31 = vsel %vm9141_vm12, %v2103_v34, %v2107_v5  ;;  %v10552_v13 = vcombine.low %v9895_v49, %v9915_v42 }
 0x122   :  { %1255 = vst [vmem:[#allocation2 + $0x194] sm:$0x1] %v1254_v21  ;;  %v9955_v23 = vld [vmem:[#allocation2 + $0xb8] sm:$0xf]  ;;  %v1736_v7 = vshrl.u32 %v9949_v28, 16  ;;  %v1739_v55 = vshll.u32 %v9949_v28, 16  ;;  %v3220_v21 = vsel %vm9939_vm1, %v7286_v40, %v3219_v6 }
 0x123   :  { %v3221_v36 = vrot.slane %v3219_v6, 4  ;;  %v2113_v44 = vrot.slane %v2112_v17, 4  ;;  %v9959_v16 = vld [vmem:[#allocation2 + $0xbc] sm:$0x1]  ;;  %v1745_v62 = vshll.u32 %v9955_v23, 16  ;;  %v1749_v57 = vshrl.u32 %v9955_v23, 16 }
 0x124   :  { %v1738_v3 = vrot.slane %v1736_v7, 4  ;;  %v1741_v47 = vrot.slane %v1739_v55, 5  ;;  %v1755_v34 = vshll.u32 %v9959_v16, 16  ;;  %v9966_v5 = vld [vmem:[#allocation2 + $0xc] sm:$0xf]  ;;  %v12408_v40 = vrot.slane %v9943_v56, 5 }
 0x125   :  { %v7287_v51 = vrot.slane %v9966_v5, 9  ;;  %v7418_v17 = vld [vmem:[%s12222_s3 + $0x8] sm:$0x3]  ;;  %v2118_v61 = vsel %vm9141_vm12, %v2113_v44, %v2117_v30  ;;  %v1747_v38 = vrot.slane %v1745_v62, 5  ;;  %v1751_v35 = vrot.slane %v1749_v57, 4 }
 0x126   :  { %v9974_v20 = vld [vmem:[#allocation2 + $0x18c] sm:$0xf]  ;;  %v3228_v6 = vrot.slane %v12408_v40, 4  ;;  %v9978_v55 = vcombine.low %v2108_v31, %v2118_v61  ;;  %v1742_v7 = vor.u32 %v1741_v47, %v1738_v3  ;;  %v3223_v63 = vsel %vm9939_vm1, %v3221_v36, %v3222_v1 }
 0x127   :  { %v2120_v22 = vshrl.u32 %v9974_v20, 16  ;;  %v1752_v8 = vor.u32 %v1751_v35, %v1747_v38  ;;  %v1757_v29 = vrot.slane %v1755_v34, 5  ;;  %v2123_v26 = vshll.u32 %v9974_v20, 16 }
 0x128   :  { %12409 = vst [vmem:[#allocation34_spill] sm:$0xff] %v9978_v55  ;;  %v4428_v44 = vand.u32 %v7418_v17, %v8844_v4  ;;  %8149 = vmatprep.mubr.msk.bf16.mxu1 %vm2241_vm9, %v9978_v55  ;;  %v1743_v30 = vrot.slane %v1742_v7, 4  ;;  %v9987_v62 = vld [vmem:[#allocation2 + $0x190] sm:$0xf]  ;;  %v7319_v34 = vcombine.low %v3220_v21, %v3223_v63  ;;  %v8699_v17 = vld [vmem:[#allocation2 + $0x1c] sm:$0xf] }
 0x129   :  { %v9989_v61 = vld [vmem:[#allocation2 + $0x194] sm:$0x1]  ;;  %v2122_v47 = vrot.slane %v2120_v22, 4  ;;  %v1753_v3 = vrot.slane %v1752_v8, 4  ;;  %v2125_v31 = vrot.slane %v2123_v26, 5  ;;  %v2129_v57 = vshll.u32 %v9987_v62, 16 }
 0x12a   :  { %v2133_v35 = vshrl.u32 %v9987_v62, 16  ;;  %8351 = vmatprep.subr.bf16.mxu0 %v4428_v44  ;;  %v1748_v36 = vsel %vm9141_vm12, %v1743_v30, %v1747_v38  ;;  %v2139_v1 = vshll.u32 %v9989_v61, 16  ;;  %v3233_v40 = vrot.slane %v8699_v17, 5  ;;  %v8701_v38 = vld [vmem:[#allocation2 + $0x20] sm:$0x1] }
 0x12b   :  { %v1758_v7 = vsel %vm9141_vm12, %v1753_v3, %v1757_v29  ;;  %v2126_v55 = vor.u32 %v2125_v31, %v2122_v47  ;;  %v2131_v22 = vrot.slane %v2129_v57, 5  ;;  %v3236_v30 = vrot.slane %v8701_v38, 5  ;;  %v8702_v31 = vld [vmem:[#allocation2 + $0x28] sm:$0xf] }
 0x12c   :  { %v2135_v8 = vrot.slane %v2133_v35, 4  ;;  %v9998_v26 = vcombine.low %v1748_v36, %v1758_v7  ;;  %v3235_v9 = vrot.slane %v3233_v40, 4  ;;  %v2141_v46 = vrot.slane %v2139_v1, 5  ;;  %v8704_v7 = vld [vmem:[#allocation2 + $0x24] sm:$0xf] }
 0x12d   :  { %v2127_v24 = vrot.slane %v2126_v55, 4  ;;  %v12411_v63 = vrot.slane %v9943_v56, 5  ;;  %v12412_v55 = vrot.slane %v9946_v27, 5  ;;  %v3240_v57 = vrot.slane %v8702_v31, 5 }
 0x12e   :  { %12410 = vst [vmem:[#allocation35_spill] sm:$0xff] %v9998_v26  ;;  %v2136_v43 = vor.u32 %v2135_v8, %v2131_v22  ;;  %8118 = vmatmul.mubr.msk.bf16.gmra.mxu0 %vm2241_vm9, %v9998_v26  ;;  %v3234_v35 = vsel %vm9939_vm1, %v7288_v19, %v3233_v40  ;;  %v3237_v36 = vsel %vm9939_vm1, %v3235_v9, %v3236_v30  ;;  %v8705_v40 = vld [vmem:[#allocation2 + $0x2c] sm:$0x1]  ;;  %v8706_v9 = vld [vmem:[#allocation2 + $0x30] sm:$0xf] }
 0x12f   :  { %v3227_v29 = vsel %vm9939_vm1, %v7287_v51, %v12411_v63  ;;  %v2132_v21 = vsel %vm9141_vm12, %v2127_v24, %v2131_v22  ;;  %8221 = vmatprep.mubr.msk.bf16.mxu0 %vm2241_vm9, %v7319_v34  ;;  %v3230_v3 = vsel %vm9939_vm1, %v3228_v6, %v12412_v55  ;;  %v8703_v51 = vld [vmem:[#allocation2 + $0x34] sm:$0xf]  ;;  %v7222_v24 = vcombine.low %v9923_v32, %v9927_v10  ;;  %v8707_v30 = vld [vmem:[#allocation2 + $0x38] sm:$0x1]  ;;  %v8708_v32 = vld [vmem:[#allocation2 + $0x40] sm:$0xf] }
 0x130   :  { %v2137_v47 = vrot.slane %v2136_v43, 4  ;;  %v3247_v1 = vrot.slane %v8703_v51, 5  ;;  %v10023_v34 = vcombine.low %v3227_v29, %v3230_v3  ;;  %v10025_v6 = vcombine.low %v3234_v35, %v3237_v36 }
 0x131   :  { %v7289_v22 = vrot.slane %v8704_v7, 9  ;;  %v3242_v19 = vrot.slane %v3240_v57, 4  ;;  %v3243_v8 = vrot.slane %v8705_v40, 5  ;;  %v7290_v38 = vrot.slane %v8706_v9, 9 }
 0x132   :  { %v2142_v43 = vsel %vm9141_vm12, %v2137_v47, %v2141_v46  ;;  %12414 = vst [vmem:[#allocation37_spill] sm:$0xff] %v10023_v34  ;;  %12415 = vst [vmem:[#allocation38_spill] sm:$0xff] %v10025_v6  ;;  %v3249_v46 = vrot.slane %v3247_v1, 4  ;;  %v3250_v63 = vrot.slane %v8707_v30, 5  ;;  %v3254_v10 = vrot.slane %v8708_v32, 5 }
 0x133   :  { %v10021_v27 = vcombine.low %v2132_v21, %v2142_v43  ;;  %v3241_v29 = vsel %vm9939_vm1, %v7289_v22, %v3240_v57  ;;  %v3244_v21 = vsel %vm9939_vm1, %v3242_v19, %v3243_v8  ;;  %v10038_v47 = vld [vmem:[#allocation2 + $0x4c] sm:$0xf]  ;;  %v10043_v3 = vcombine.low %v9966_v5, %v9943_v56  ;;  %v8710_v43 = vld [vmem:[#allocation2 + $0x3c] sm:$0xf]  ;;  %v8711_v19 = vld [vmem:[#allocation2 + $0x44] sm:$0x1] }
 0x134   :  { %v3261_v55 = vrot.slane %v10038_v47, 5  ;;  %v3251_v35 = vsel %vm9939_vm1, %v3249_v46, %v3250_v63  ;;  %v10049_v36 = vcombine.low %v8700_v12, %v8699_v17  ;;  %v10051_v57 = vcombine.low %v3241_v29, %v3244_v21  ;;  %v10055_v30 = vld [vmem:[#allocation2 + $0x48] sm:$0xf]  ;;  %v10060_v12 = vld [vmem:[#allocation2 + $0x58] sm:$0xf] }
 0x135   :  { %12413 = vst [vmem:[#allocation36_spill] sm:$0xff] %v10021_v27  ;;  %8150 = vmatmul.mubr.msk.bf16.gmra.mxu1 %vm2241_vm9, %v10021_v27  ;;  %v3256_v22 = vrot.slane %v3254_v10, 4  ;;  %v3257_v40 = vrot.slane %v8711_v19, 5  ;;  %v7292_v56 = vrot.slane %v10055_v30, 9  ;;  %v3268_v17 = vrot.slane %v10060_v12, 5 }
 0x136   :  { %8155 = vmatprep.mubr.msk.bf16.mxu1 %vm2241_vm9, %v7222_v24  ;;  %8222 = vmatmul.mubr.msk.bf16.vlgmr.msra.gmra.mxu0 %vm2241_vm9, %v10023_v34  ;;  %12416 = vst [vmem:[#allocation39_spill] sm:$0xff] %v10051_v57  ;;  %v7291_v24 = vrot.slane %v8710_v43, 9  ;;  %v3263_v5 = vrot.slane %v3261_v55, 4  ;;  %v10072_v29 = vld [vmem:[#allocation2 + $0x54] sm:$0xf]  ;;  %v10083_v19 = vcombine.low %v8706_v9, %v8703_v51 }
 0x137   :  { %8352 = vmatpush3.bf16.msra.mxu0 %v4428_v44  ;;  %8225 = vmatprep.mubr.msk.bf16.mxu0 %vm2241_vm9, %v10025_v6  ;;  %v3248_v44 = vsel %vm9939_vm1, %v7290_v38, %v3247_v1  ;;  %v8713_v1 = vld [vmem:[#allocation2 + $0x50] sm:$0x1]  ;;  %v3258_v63 = vsel %vm9939_vm1, %v3256_v22, %v3257_v40  ;;  %v7293_v21 = vrot.slane %v10072_v29, 9  ;;  %v10085_v40 = vld [vmem:[#allocation2 + $0x64] sm:$0xf] }
 0x138   :  { %v10053_v8 = vcombine.low %v3248_v44, %v3251_v35  ;;  %v3264_v38 = vrot.slane %v8713_v1, 5  ;;  %v3255_v46 = vsel %vm9939_vm1, %v7291_v24, %v3254_v10  ;;  %v10075_v44 = vcombine.low %v8704_v7, %v8702_v31  ;;  %v8716_v24 = vld [vmem:[#allocation2 + $0x5c] sm:$0x1]  ;;  %v10399_v27 = vld [vmem:[#allocation2 + $0x154] sm:$0xf] }
 0x139   :  { %v3270_v10 = vrot.slane %v3268_v17, 4  ;;  %v3271_v22 = vrot.slane %v8716_v24, 5  ;;  %v3275_v1 = vrot.slane %v10085_v40, 5  ;;  %v10088_v31 = vcombine.low %v8710_v43, %v8708_v32  ;;  %v8719_v43 = vld [vmem:[#allocation2 + $0x68] sm:$0x1] }
 0x13a   :  { %12417 = vst [vmem:[#allocation40_spill] sm:$0xff] %v10053_v8  ;;  %v3265_v35 = vsel %vm9939_vm1, %v3263_v5, %v3264_v38  ;;  %v10090_v7 = vcombine.low %v3255_v46, %v3258_v63  ;;  %v3269_v9 = vsel %vm9939_vm1, %v7293_v21, %v3268_v17  ;;  %v7299_v5 = vrot.slane %v9800_v37, 9 }
 0x13b   :  { %v3310_v32 = vrot.slane %v9808_v41, 5  ;;  %v3278_v38 = vrot.slane %v8719_v43, 5  ;;  %v3313_v46 = vrot.slane %v9813_v45, 5  ;;  %v10108_v63 = vcombine.low %v9850_v33, %v9863_v60  ;;  %v10119_v45 = vld [vmem:[#allocation2 + $0x70] sm:$0xf] }
 0x13c   :  { %12418 = vst [vmem:[#allocation41_spill] sm:$0xff] %v10090_v7  ;;  %v7300_v24 = vrot.slane %v9850_v33, 9  ;;  %v3272_v17 = vsel %vm9939_vm1, %v3270_v10, %v3271_v22  ;;  %v3277_v21 = vrot.slane %v3275_v1, 4  ;;  %v3317_v33 = vrot.slane %v9863_v60, 5 }
 0x13d   :  { %8156 = vmatmul.mubr.msk.bf16.vlgmr.msra.gmra.mxu1 %vm2241_vm9, %v10043_v3  ;;  %12421 = vst [vmem:[#allocation44_spill] sm:$0xff] %v10108_v63  ;;  %v10126_v43 = vcombine.low %v9949_v28, %v9955_v23  ;;  %v7301_v22 = vrot.slane %v9949_v28, 9  ;;  %v8721_v28 = vld [vmem:[#allocation2 + $0x7c] sm:$0xf] }
 0x13e   :  { %8286 = vmatpush3.bf16.msra.mxu1 %v9931_v48  ;;  %8159 = vmatprep.mubr.msk.bf16.mxu1 %vm2241_vm9, %v10049_v36  ;;  %v3262_v48 = vsel %vm9939_vm1, %v7292_v56, %v3261_v55  ;;  %v10097_v56 = vcombine.low %v9800_v37, %v9808_v41  ;;  %v3311_v37 = vsel %vm9939_vm1, %v7299_v5, %v3310_v32  ;;  %v3312_v41 = vrot.slane %v3310_v32, 4 }
 0x13f   :  { %8226 = vmatmul.mubr.msk.bf16.gmra.mxu0 %vm2241_vm9, %v10051_v57  ;;  %v10099_v51 = vcombine.low %v3262_v48, %v3265_v35  ;;  %v3282_v48 = vrot.slane %v10119_v45, 5  ;;  %v3320_v35 = vrot.slane %v9867_v52, 5  ;;  %12422 = vst [vmem:[#allocation45_spill] sm:$0xff] %v10126_v43  ;;  %v3324_v5 = vrot.slane %v9955_v23, 5 }
 0x140   :  { %8229 = vmatprep.mubr.msk.bf16.mxu0 %vm2241_vm9, %v10053_v8  ;;  %v10092_v8 = vld [vmem:[#allocation2 + $0x60] sm:$0xf]  ;;  %12419 = vst [vmem:[#allocation42_spill] sm:$0xff] %v10097_v56  ;;  %v3314_v10 = vsel %vm9939_vm1, %v3312_v41, %v3313_v46  ;;  %v3327_v32 = vrot.slane %v9959_v16, 5  ;;  %v3319_v57 = vrot.slane %v3317_v33, 4  ;;  %v3279_v46 = vsel %vm9939_vm1, %v3277_v21, %v3278_v38 }
 0x141   :  { %v7294_v55 = vrot.slane %v10092_v8, 9  ;;  %12420 = vst [vmem:[#allocation43_spill] sm:$0xff] %v10099_v51  ;;  %v10139_v52 = vcombine.low %v3311_v37, %v3314_v10  ;;  %v3289_v41 = vrot.slane %v8721_v28, 5  ;;  %v3325_v23 = vsel %vm9939_vm1, %v7301_v22, %v3324_v5  ;;  %v8723_v22 = vld [vmem:[#allocation2 + $0x74] sm:$0x1] }
 0x142   :  { %v3326_v16 = vrot.slane %v3324_v5, 4  ;;  %v3284_v10 = vrot.slane %v3282_v48, 4  ;;  %v3285_v5 = vrot.slane %v8723_v22, 5  ;;  %v3306_v22 = vrot.slane %v9737_v14, 5 }
 0x143   :  { %v3276_v60 = vsel %vm9939_vm1, %v7294_v55, %v3275_v1  ;;  %12423 = vst [vmem:[#allocation46_spill] sm:$0xff] %v10139_v52  ;;  %v3321_v1 = vsel %vm9939_vm1, %v3319_v57, %v3320_v35  ;;  %v10153_v55 = vcombine.low %v3269_v9, %v3272_v17  ;;  %v8725_v9 = vld [vmem:[#allocation2 + $0x80] sm:$0x1] }
 0x144   :  { %v3328_v38 = vsel %vm9939_vm1, %v3326_v16, %v3327_v32  ;;  %v10159_v21 = vcombine.low %v3276_v60, %v3279_v46  ;;  %v3292_v17 = vrot.slane %v8725_v9, 5  ;;  %v3286_v35 = vsel %vm9939_vm1, %v3284_v10, %v3285_v5 }
 0x145   :  { %8160 = vmatmul.mubr.msk.bf16.gmra.mxu1 %vm2241_vm9, %v10075_v44  ;;  %12424 = vst [vmem:[#allocation47_spill] sm:$0xff] %v10153_v55  ;;  %v10161_v6 = vcombine.low %v3325_v23, %v3328_v38  ;;  %v3296_v32 = vrot.slane %v9693_v15, 5  ;;  %v10178_v60 = vcombine.low %v10072_v29, %v10060_v12  ;;  %v3303_v16 = vrot.slane %v9735_v25, 5  ;;  %v8726_v15 = vld [vmem:[#allocation2 + $0x84] sm:$0xf] }
 0x146   :  { %8163 = vmatprep.mubr.msk.bf16.mxu1 %vm2241_vm9, %v10083_v19  ;;  %12426 = vst [vmem:[#allocation49_spill] sm:$0xff] %v10159_v21  ;;  %v7297_v38 = vrot.slane %v8726_v15, 9  ;;  %v3299_v29 = vrot.slane %v9695_v54, 5 }
 0x147   :  { %8230 = vmatmul.mubr.msk.bf16.gmra.mxu0 %vm2241_vm9, %v10090_v7  ;;  %v3318_v7 = vsel %vm9939_vm1, %v7300_v24, %v3317_v33  ;;  %v8722_v24 = vld [vmem:[#allocation2 + $0x6c] sm:$0xf]  ;;  %12427 = vst [vmem:[#allocation50_spill] sm:$0xff] %v10161_v6  ;;  %v3298_v12 = vrot.slane %v3296_v32, 4  ;;  %v3305_v10 = vrot.slane %v3303_v16, 4 }
 0x148   :  { %8233 = vmatprep.mubr.msk.bf16.mxu0 %vm2241_vm9, %v10099_v51  ;;  %v10149_v51 = vcombine.low %v10055_v30, %v10038_v47  ;;  %v7295_v37 = vrot.slane %v8722_v24, 9  ;;  %v10155_v33 = vcombine.low %v3318_v7, %v3321_v1  ;;  %v8724_v47 = vld [vmem:[#allocation2 + $0x78] sm:$0xf]  ;;  %v3291_v30 = vrot.slane %v3289_v41, 4 }
 0x149   :  { %v7296_v57 = vrot.slane %v8724_v47, 9  ;;  %v3297_v54 = vsel %vm9939_vm1, %v7297_v38, %v3296_v32  ;;  %v3307_v5 = vsel %vm9939_vm1, %v3305_v10, %v3306_v22  ;;  %v8730_v32 = vld [vmem:[#allocation2 + $0xe0] sm:$0x1]  ;;  %v7317_v38 = vrot.slane %v9974_v20, 9 }
 0x14a   :  { %12425 = vst [vmem:[#allocation48_spill] sm:$0xff] %v10155_v33  ;;  %v3283_v7 = vsel %vm9939_vm1, %v7295_v37, %v3282_v48  ;;  %v3293_v23 = vsel %vm9939_vm1, %v3291_v30, %v3292_v17  ;;  %v10187_v48 = vcombine.low %v10092_v8, %v10085_v40  ;;  %v3300_v8 = vsel %vm9939_vm1, %v3298_v12, %v3299_v29  ;;  %v10263_v29 = vld [vmem:[#allocation2 + $0xe8] sm:$0xf] }
 0x14b   :  { %v3290_v46 = vsel %vm9939_vm1, %v7296_v57, %v3289_v41  ;;  %v10189_v1 = vcombine.low %v3283_v7, %v3286_v35  ;;  %v7298_v41 = vrot.slane %v9723_v18, 9  ;;  %v10209_v40 = vcombine.low %v8722_v24, %v10119_v45  ;;  %v10229_v45 = vld [vmem:[#allocation2 + $0xdc] sm:$0xf]  ;;  %v8728_v24 = vld [vmem:[#allocation2 + $0x88] sm:$0xf] }
 0x14c   :  { %v10191_v37 = vcombine.low %v3290_v46, %v3293_v23  ;;  %v10215_v57 = vcombine.low %v8724_v47, %v8721_v28  ;;  %v10217_v30 = vcombine.low %v3297_v54, %v3300_v8  ;;  %v3331_v28 = vrot.slane %v10229_v45, 5  ;;  %v10238_v7 = vld [vmem:[#allocation2 + $0xd8] sm:$0xf] }
 0x14d   :  { %8164 = vmatmul.mubr.msk.bf16.gmra.mxu1 %vm2241_vm9, %v10088_v31  ;;  %12428 = vst [vmem:[#allocation51_spill] sm:$0xff] %v10189_v1  ;;  %12430 = vst [vmem:[#allocation53_spill] sm:$0xff] %v10209_v40  ;;  %v3304_v14 = vsel %vm9939_vm1, %v7298_v41, %v3303_v16  ;;  %v10232_v47 = vcombine.low %v8726_v15, %v8728_v24  ;;  %v10236_v17 = vcombine.low %v9723_v18, %v9735_v25  ;;  %v7455_v15 = vld [vmem:[%s12222_s3 + $0xa] sm:$0x3]  ;;  %v7490_v18 = vld [vmem:[%s12222_s3 + $0xc] sm:$0x3] }
 0x14e   :  { %8167 = vmatprep.mubr.msk.bf16.mxu1 %vm2241_vm9, %v10149_v51  ;;  %12429 = vst [vmem:[#allocation52_spill] sm:$0xff] %v10191_v37  ;;  %12431 = vst [vmem:[#allocation54_spill] sm:$0xff] %v10215_v57  ;;  %v10219_v9 = vcombine.low %v3304_v14, %v3307_v5  ;;  %v7302_v35 = vrot.slane %v10238_v7, 9  ;;  %v3334_v46 = vrot.slane %v8730_v32, 5  ;;  %v3333_v23 = vrot.slane %v3331_v28, 4  ;;  %v164_v25 = vld [vmem:[%s12219_s0 + $0xf0] sm:$0xff] }
 0x14f   :  { %8234 = vmatmul.mubr.msk.bf16.gmra.mxu0 %vm2241_vm9, %v10153_v55  ;;  %12432 = vst [vmem:[#allocation55_spill] sm:$0xff] %v10217_v30  ;;  %12434 = vst [vmem:[#allocation57_spill] sm:$0xff] %v10232_v47  ;;  %v10245_v16 = vcombine.low %v9974_v20, %v9987_v62  ;;  %v3338_v41 = vrot.slane %v10263_v29, 5  ;;  %v3436_v10 = vrot.slane %v9987_v62, 5  ;;  %v3439_v22 = vrot.slane %v9989_v61, 5  ;;  %v165_v54 = vld [vmem:[%s12219_s0 + $0xf8] sm:$0xff] }
 0x150   :  { %8237 = vmatprep.mubr.msk.bf16.mxu0 %vm2241_vm9, %v10159_v21  ;;  %12433 = vst [vmem:[#allocation56_spill] sm:$0xff] %v10219_v9  ;;  %12435 = vst [vmem:[#allocation58_spill] sm:$0xff] %v10236_v17  ;;  %v3332_v12 = vsel %vm9939_vm1, %v7302_v35, %v3331_v28  ;;  %v3335_v20 = vsel %vm9939_vm1, %v3333_v23, %v3334_v46  ;;  %v10276_v8 = vand.u32 %v7455_v15, %v8844_v4  ;;  %v10281_v62 = vld [vmem:[#allocation2 + $0xf4] sm:$0xf]  ;;  %v10286_v35 = vld [vmem:[#allocation2 + $0xe4] sm:$0xf] }
 0x151   :  { %v10279_v14 = vand.u32 %v7490_v18, %v8844_v4  ;;  %v7692_v5 = vpack.c.bf16 %v164_v25, %v164_v25  ;;  %v3345_v61 = vrot.slane %v10281_v62, 5  ;;  %v3437_v28 = vsel %vm9939_vm1, %v7317_v38, %v3436_v10  ;;  %v8736_v55 = vld [vmem:[#allocation2 + $0xf8] sm:$0x1] }
 0x152   :  { %v3438_v24 = vrot.slane %v3436_v10, 4  ;;  %v7303_v32 = vrot.slane %v10286_v35, 9  ;;  %8417 = vmatprep.subr.bf16.mxu1 %v10276_v8  ;;  %v7693_v46 = vpack.c.bf16 %v165_v54, %v165_v54  ;;  %v7335_v18 = vcombine.low %v3332_v12, %v3335_v20  ;;  %v1144_v12 = vld [vmem:[#allocation2 + $0xc0] sm:$0xf] }
 0x153   :  { %8483 = vmatprep.subr.bf16.mxu0 %v10279_v14  ;;  %v649_v23 = vshrl.u32 %v7692_v5, 16  ;;  %v652_v15 = vshll.u32 %v7692_v5, 16  ;;  %v3340_v25 = vrot.slane %v3338_v41, 4  ;;  %v3347_v54 = vrot.slane %v3345_v61, 4 }
 0x154   :  { %v3348_v5 = vrot.slane %v8736_v55, 5  ;;  %v8737_v55 = vld [vmem:[#allocation2 + $0x100] sm:$0xf] }
 0x155   :  { %8168 = vmatmul.mubr.msk.bf16.gmra.mxu1 %vm2241_vm9, %v10178_v60  ;;  %v651_v10 = vrot.slane %v649_v23, 7 }
 0x156   :  { %8171 = vmatprep.mubr.msk.bf16.mxu1 %vm2241_vm9, %v10187_v48 }
 0x157   :  { %8238 = vmatmul.mubr.msk.bf16.gmra.mxu0 %vm2241_vm9, %v10189_v1  ;;  %v8735_v1 = vld [vmem:[#allocation2 + $0xf0] sm:$0xf]  ;;  %v655_v20 = vrot.slane %v651_v10, 4 }
 0x158   :  { %8241 = vmatprep.mubr.msk.bf16.mxu0 %vm2241_vm9, %v10191_v37  ;;  %v660_v37 = vshll.u32 %v7693_v46, 16  ;;  %v7304_v21 = vrot.slane %v8735_v1, 9 }
 0x15d   :  { %8172 = vmatmul.mubr.msk.bf16.gmra.mxu1 %vm2241_vm9, %v10209_v40 }
 0x15e   :  { %8175 = vmatprep.mubr.msk.bf16.mxu1 %vm2241_vm9, %v10215_v57 }
 0x15f   :  { %8242 = vmatmul.mubr.msk.bf16.gmra.mxu0 %vm2241_vm9, %v10217_v30  ;;  %v657_v30 = vshrl.u32 %v7693_v46, 16  ;;  %v3352_v46 = vrot.slane %v8737_v55, 5 }
 0x160   :  { %8245 = vmatprep.mubr.msk.bf16.mxu0 %vm2241_vm9, %v10219_v9  ;;  %v3440_v9 = vsel %vm9939_vm1, %v3438_v24, %v3439_v22  ;;  %v1148_v24 = vld [vmem:[#allocation2 + $0xc8] sm:$0x1] }
 0x161   :  { %v10293_v38 = vcombine.low %v3437_v28, %v3440_v9  ;;  %v659_v22 = vrot.slane %v657_v30, 7  ;;  %v3339_v9 = vsel %vm9939_vm1, %v7303_v32, %v3338_v41  ;;  %v3346_v30 = vsel %vm9939_vm1, %v7304_v21, %v3345_v61  ;;  %v8738_v41 = vld [vmem:[#allocation2 + $0x10c] sm:$0xf]  ;;  %v8739_v61 = vld [vmem:[#allocation2 + $0xfc] sm:$0xf] }
 0x162   :  { %v3359_v32 = vrot.slane %v8738_v41, 5 }
 0x163   :  { %12436 = vst [vmem:[#allocation59_spill] sm:$0xff] %v10293_v38  ;;  %v662_v23 = vor.u32 %v660_v37, %v659_v22 }
 0x165   :  { %8176 = vmatmul.mubr.msk.bf16.gmra.mxu1 %vm2241_vm9, %v10232_v47 }
 0x166   :  { %8179 = vmatprep.mubr.msk.bf16.mxu1 %vm2241_vm9, %v10236_v17 }
 0x167   :  { %8246 = vmatmul.mubr.msk.bf16.gmra.mxu0 %vm2241_vm9, %v10139_v52 }
 0x168   :  { %8249 = vmatprep.mubr.msk.bf16.mxu0 %vm2241_vm9, %v10155_v33  ;;  %v8734_v33 = vld [vmem:[#allocation2 + $0xec] sm:$0x1] }
 0x169   :  { %v3341_v52 = vrot.slane %v8734_v33, 5  ;;  %v654_v33 = vor.u32 %v652_v15, %v651_v10  ;;  %v664_v10 = vrot.slane %v659_v22, 4  ;;  %v8742_v22 = vld [vmem:[#allocation2 + $0x110] sm:$0x1] }
 0x16b   :  { %v3342_v28 = vsel %vm9939_vm1, %v3340_v25, %v3341_v52  ;;  %v1145_v15 = vsel %vm9135_vm11, %v654_v33, %v1144_v12  ;;  %v7238_v52 = vcombine.low %v10238_v7, %v10229_v45  ;;  %v1149_v37 = vsel %vm9149_vm13, %v664_v10, %v1148_v24  ;;  %v8740_v12 = vld [vmem:[#allocation2 + $0x104] sm:$0x1]  ;;  %v8741_v45 = vld [vmem:[#allocation2 + $0x108] sm:$0xf] }
 0x16c   :  { %1146 = vst [vmem:[#allocation2 + $0xc0] sm:$0xf] %v1145_v15  ;;  %v10318_v25 = vcombine.low %v3339_v9, %v3342_v28  ;;  %1150 = vst [vmem:[#allocation2 + $0xc8] sm:$0x1] %v1149_v37  ;;  %v3355_v33 = vrot.slane %v8740_v12, 5  ;;  %v7306_v7 = vrot.slane %v8741_v45, 9  ;;  %v10336_v15 = vcombine.low %v10286_v35, %v10263_v29 }
 0x16d   :  { %8180 = vmatmul.mubr.msk.bf16.gmra.mxu1 %vm2241_vm9, %v10097_v56  ;;  %v3362_v24 = vrot.slane %v8742_v22, 5  ;;  %v8743_v28 = vld [vmem:[#allocation2 + $0x118] sm:$0xf]  ;;  %v10343_v37 = vcombine.low %v8735_v1, %v10281_v62  ;;  %v8746_v29 = vld [vmem:[#allocation2 + $0x11c] sm:$0x1]  ;;  %v10355_v1 = vpop.f32.mrf.mxu0 }
 0x16e   :  { %8183 = vmatprep.mubr.msk.bf16.mxu1 %vm2241_vm9, %v10108_v63  ;;  %12437 = vst [vmem:[#allocation60_spill] sm:$0xff] %v10318_v25  ;;  %v3360_v10 = vsel %vm9939_vm1, %v7306_v7, %v3359_v32  ;;  %v3369_v35 = vrot.slane %v8746_v29, 5  ;;  %v8748_v22 = vld [vmem:[#allocation2 + $0x128] sm:$0x1] }
 0x16f   :  { %8250 = vmatmul.mubr.msk.bf16.gmra.mxu0 %vm2241_vm9, %v10161_v6  ;;  %v3349_v6 = vsel %vm9939_vm1, %v3347_v54, %v3348_v5  ;;  %v7305_v54 = vrot.slane %v8739_v61, 9  ;;  %v3354_v5 = vrot.slane %v3352_v46, 4  ;;  %12439 = vst [vmem:[#allocation62_spill] sm:$0xff] %v10343_v37 }
 0x170   :  { %8253 = vmatprep.mubr.msk.bf16.mxu0 %vm2241_vm9, %v7335_v18  ;;  %v663_v18 = vsel %vm9129_vm10, %v655_v20, %v662_v23  ;;  %v10321_v21 = vcombine.low %v3346_v30, %v3349_v6  ;;  %v3361_v20 = vrot.slane %v3359_v32, 4  ;;  %v3366_v23 = vrot.slane %v8743_v28, 5  ;;  %v8747_v32 = vld [vmem:[#allocation2 + $0x120] sm:$0xf] }
 0x171   :  { %1147 = vst.msk [vmem:[#allocation2 + $0xc4] sm:$0xf] %vm24_vm2, %v663_v18  ;;  %v3353_v6 = vsel %vm9939_vm1, %v7305_v54, %v3352_v46  ;;  %v3356_v9 = vsel %vm9939_vm1, %v3354_v5, %v3355_v33  ;;  %v8745_v5 = vld [vmem:[#allocation2 + $0x114] sm:$0xf]  ;;  %v7308_v7 = vrot.slane %v8747_v32, 9 }
 0x172   :  { %12438 = vst [vmem:[#allocation61_spill] sm:$0xff] %v10321_v21  ;;  %v3363_v30 = vsel %vm9939_vm1, %v3361_v20, %v3362_v24  ;;  %v10345_v46 = vcombine.low %v3353_v6, %v3356_v9  ;;  %v7307_v12 = vrot.slane %v8745_v5, 9  ;;  %v3368_v33 = vrot.slane %v3366_v23, 4  ;;  %v8749_v9 = vld [vmem:[#allocation2 + $0x130] sm:$0xf] }
 0x173   :  { %v10347_v54 = vcombine.low %v3360_v10, %v3363_v30  ;;  %v3376_v24 = vrot.slane %v8748_v22, 5  ;;  %v3380_v10 = vrot.slane %v8749_v9, 5  ;;  %v10363_v30 = vcombine.low %v8739_v61, %v8737_v55  ;;  %v8752_v61 = vld [vmem:[#allocation2 + $0x134] sm:$0x1] }
 0x174   :  { %12440 = vst [vmem:[#allocation63_spill] sm:$0xff] %v10345_v46  ;;  %v3367_v62 = vsel %vm9939_vm1, %v7307_v12, %v3366_v23  ;;  %v3370_v6 = vsel %vm9939_vm1, %v3368_v33, %v3369_v35  ;;  %v10373_v23 = vpop.f32.mrf.mxu0  ;;  %v8751_v33 = vld [vmem:[#allocation2 + $0x12c] sm:$0xf]  ;;  %v3383_v34 = vrot.slane %v8752_v61, 5 }
 0x175   :  { %8184 = vmatmul.mubr.msk.bf16.gmra.mxu1 %vm2241_vm9, %v10126_v43  ;;  %12441 = vst [vmem:[#allocation64_spill] sm:$0xff] %v10347_v54  ;;  %12442 = vst [vmem:[#allocation65_spill] sm:$0xff] %v10363_v30  ;;  %v7309_v35 = vrot.slane %v8751_v33, 9  ;;  %v3382_v55 = vrot.slane %v3380_v10, 4 }
 0x176   :  { %8187 = vmatprep.mubr.msk.bf16.mxu1 %vm2241_vm9, %v7238_v52  ;;  %v8744_v52 = vld [vmem:[#allocation2 + $0x124] sm:$0xf]  ;;  %12445 = vst [vmem:[#allocation68_spill] sm:$0xff] %v10373_v23 }
 0x177   :  { %8254 = vmatmul.mubr.msk.bf16.gmra.mxu0 %vm2241_vm9, %v10318_v25  ;;  %v3373_v18 = vrot.slane %v8744_v52, 5  ;;  %v10369_v25 = vcombine.low %v8741_v45, %v8738_v41  ;;  %v10379_v45 = vpop.f32.mrf.mxu1 }
 0x178   :  { %8257 = vmatprep.mubr.msk.bf16.mxu0 %vm2241_vm9, %v10321_v21  ;;  %12447 = vst [vmem:[#allocation70_spill] sm:$0xff] %v10379_v45 }
 0x179   :  { %v3375_v20 = vrot.slane %v3373_v18, 4  ;;  %v3374_v29 = vsel %vm9939_vm1, %v7308_v7, %v3373_v18  ;;  %12443 = vst [vmem:[#allocation66_spill] sm:$0xff] %v10369_v25  ;;  %v8753_v18 = vld [vmem:[#allocation2 + $0x138] sm:$0xf] }
 0x17a   :  { %v7310_v7 = vrot.slane %v8753_v18, 9 }
 0x17b   :  { %v3377_v22 = vsel %vm9939_vm1, %v3375_v20, %v3376_v24  ;;  %v8754_v24 = vld [vmem:[#allocation2 + $0x140] sm:$0x1] }
 0x17c   :  { %v10375_v12 = vcombine.low %v3374_v29, %v3377_v22  ;;  %v3390_v41 = vrot.slane %v8754_v24, 5  ;;  %v3384_v29 = vsel %vm9939_vm1, %v3382_v55, %v3383_v34  ;;  %v8755_v22 = vld [vmem:[#allocation2 + $0x148] sm:$0xf]  ;;  %v10393_v24 = vcombine.low %v8745_v5, %v8743_v28  ;;  %v8757_v5 = vld [vmem:[#allocation2 + $0x144] sm:$0xf] }
 0x17d   :  { %8188 = vmatmul.mubr.msk.bf16.gmra.mxu1 %vm2241_vm9, %v10336_v15  ;;  %v3394_v61 = vrot.slane %v8755_v22, 5  ;;  %v7311_v55 = vrot.slane %v8757_v5, 9 }
 0x17e   :  { %8191 = vmatprep.mubr.msk.bf16.mxu1 %vm2241_vm9, %v10343_v37  ;;  %12446 = vst [vmem:[#allocation69_spill] sm:$0xff] %v10375_v12  ;;  %12449 = vst [vmem:[#allocation72_spill] sm:$0xff] %v10393_v24 }
 0x17f   :  { %8258 = vmatmul.mubr.msk.bf16.gmra.mxu0 %vm2241_vm9, %v10345_v46  ;;  %v8750_v46 = vld [vmem:[#allocation2 + $0x13c] sm:$0xf] }
 0x180   :  { %8261 = vmatprep.mubr.msk.bf16.mxu0 %vm2241_vm9, %v10347_v54  ;;  %v3387_v21 = vrot.slane %v8750_v46, 5  ;;  %v10371_v54 = vcombine.low %v3367_v62, %v3370_v6  ;;  %v10385_v62 = vpop.f32.mrf.mxu0  ;;  %v3381_v6 = vsel %vm9939_vm1, %v7309_v35, %v3380_v10  ;;  %v10404_v10 = vcombine.low %v8747_v32, %v8744_v52 }
 0x181   :  { %12448 = vst [vmem:[#allocation71_spill] sm:$0xff] %v10385_v62  ;;  %v10406_v35 = vcombine.low %v3381_v6, %v3384_v29 }
 0x182   :  { %12444 = vst [vmem:[#allocation67_spill] sm:$0xff] %v10371_v54  ;;  %v3389_v20 = vrot.slane %v3387_v21, 4  ;;  %v3388_v45 = vsel %vm9939_vm1, %v7310_v7, %v3387_v21  ;;  %12451 = vst [vmem:[#allocation74_spill] sm:$0xff] %v10404_v10  ;;  %v10408_v34 = vpop.f32.mrf.mxu0  ;;  %v3396_v21 = vrot.slane %v3394_v61, 4  ;;  %v8758_v7 = vld [vmem:[#allocation2 + $0x14c] sm:$0x1] }
 0x183   :  { %12452 = vst [vmem:[#allocation75_spill] sm:$0xff] %v10406_v35  ;;  %12453 = vst [vmem:[#allocation76_spill] sm:$0xff] %v10408_v34  ;;  %v3397_v62 = vrot.slane %v8758_v7, 5  ;;  %v10431_v7 = vcombine.low %v8751_v33, %v8749_v9  ;;  %v8764_v33 = vld [vmem:[#allocation2 + $0x164] sm:$0x1] }
 0x184   :  { %v10423_v6 = vpop.f32.mrf.mxu0 }
 0x185   :  { %8192 = vmatmul.mubr.msk.bf16.gmra.mxu1 %vm2241_vm9, %v10363_v30  ;;  %12456 = vst [vmem:[#allocation79_spill] sm:$0xff] %v10423_v6  ;;  %v3398_v29 = vsel %vm9939_vm1, %v3396_v21, %v3397_v62  ;;  %12457 = vst [vmem:[#allocation80_spill] sm:$0xff] %v10431_v7  ;;  %v3411_v21 = vrot.slane %v8764_v33, 5  ;;  %v3429_v33 = vrot.slane %v9915_v42, 5 }
 0x186   :  { %8195 = vmatprep.mubr.msk.bf16.mxu1 %vm2241_vm9, %v10369_v25  ;;  %v10402_v25 = vpop.f32.mrf.mxu1  ;;  %v10446_v34 = vpop.f32.mrf.mxu0 }
 0x187   :  { %8262 = vmatmul.mubr.msk.bf16.gmra.mxu0 %vm2241_vm9, %v10371_v54  ;;  %v3391_v54 = vsel %vm9939_vm1, %v3389_v20, %v3390_v41  ;;  %12450 = vst [vmem:[#allocation73_spill] sm:$0xff] %v10402_v25  ;;  %v8759_v20 = vld [vmem:[#allocation2 + $0x150] sm:$0xf]  ;;  %v8760_v25 = vld [vmem:[#allocation2 + $0x158] sm:$0x1]  ;;  %12461 = vst [vmem:[#allocation84_spill] sm:$0xff] %v10446_v34 }
 0x188   :  { %8265 = vmatprep.mubr.msk.bf16.mxu0 %vm2241_vm9, %v10375_v12  ;;  %v3401_v12 = vrot.slane %v10399_v27, 5  ;;  %v10410_v28 = vcombine.low %v3388_v45, %v3391_v54  ;;  %v7312_v41 = vrot.slane %v8759_v20, 9  ;;  %v3404_v52 = vrot.slane %v8760_v25, 5  ;;  %v10414_v32 = vpop.f32.mrf.mxu1  ;;  %v10420_v54 = vld [vmem:[#allocation2 + $0x160] sm:$0xf] }
 0x189   :  { %12455 = vst [vmem:[#allocation78_spill] sm:$0xff] %v10414_v32  ;;  %v3408_v45 = vrot.slane %v10420_v54, 5  ;;  %v3395_v25 = vsel %vm9939_vm1, %v7311_v55, %v3394_v61  ;;  %v8763_v55 = vld [vmem:[#allocation2 + $0x15c] sm:$0xf]  ;;  %v7316_v34 = vrot.slane %v9895_v49, 9 }
 0x18a   :  { %12454 = vst [vmem:[#allocation77_spill] sm:$0xff] %v10410_v28  ;;  %v3403_v23 = vrot.slane %v3401_v12, 4  ;;  %v10440_v6 = vpop.f32.mrf.mxu1  ;;  %v10444_v61 = vcombine.low %v3395_v25, %v3398_v29  ;;  %v7313_v62 = vrot.slane %v8763_v55, 9  ;;  %v10462_v25 = vpop.f32.mrf.mxu0  ;;  %v10464_v29 = vcombine.low %v8757_v5, %v8755_v22 }
 0x18b   :  { %12458 = vst [vmem:[#allocation81_spill] sm:$0xff] %v10440_v6  ;;  %v3410_v9 = vrot.slane %v3408_v45, 4  ;;  %v8766_v6 = vld [vmem:[#allocation2 + $0x170] sm:$0x1]  ;;  %12464 = vst [vmem:[#allocation87_spill] sm:$0xff] %v10462_v25 }
 0x18c   :  { %v3405_v32 = vsel %vm9939_vm1, %v3403_v23, %v3404_v52  ;;  %12460 = vst [vmem:[#allocation83_spill] sm:$0xff] %v10444_v61  ;;  %v8765_v23 = vld [vmem:[#allocation2 + $0x168] sm:$0xf]  ;;  %12465 = vst [vmem:[#allocation88_spill] sm:$0xff] %v10464_v29  ;;  %v10488_v30 = vpop.f32.mrf.mxu0 }
 0x18d   :  { %8196 = vmatmul.mubr.msk.bf16.gmra.mxu1 %vm2241_vm9, %v10393_v24  ;;  %12468 = vst [vmem:[#allocation91_spill] sm:$0xff] %v10488_v30  ;;  %v10504_v30 = vcombine.low %v8763_v55, %v10420_v54 }
 0x18e   :  { %8199 = vmatprep.mubr.msk.bf16.mxu1 %vm2241_vm9, %v10404_v10  ;;  %v10437_v10 = vld [vmem:[#allocation2 + $0x16c] sm:$0xf] }
 0x18f   :  { %8266 = vmatmul.mubr.msk.bf16.gmra.mxu0 %vm2241_vm9, %v10406_v35  ;;  %v3402_v35 = vsel %vm9939_vm1, %v7312_v41, %v3401_v12  ;;  %v3415_v24 = vrot.slane %v10437_v10, 5  ;;  %v7314_v41 = vrot.slane %v8765_v23, 9 }
 0x190   :  { %8269 = vmatprep.mubr.msk.bf16.mxu0 %vm2241_vm9, %v10410_v28  ;;  %v10442_v28 = vcombine.low %v8753_v18, %v8750_v46  ;;  %v10448_v12 = vcombine.low %v3402_v35, %v3405_v32  ;;  %v3418_v46 = vrot.slane %v8766_v6, 5  ;;  %v10452_v18 = vpop.f32.mrf.mxu1  ;;  %v3409_v35 = vsel %vm9939_vm1, %v7313_v62, %v3408_v45  ;;  %v197_v45 = vld [vmem:[%s12219_s0 + $0x1f8] sm:$0xff] }
 0x191   :  { %v3417_v52 = vrot.slane %v3415_v24, 4  ;;  %12463 = vst [vmem:[#allocation86_spill] sm:$0xff] %v10452_v18  ;;  %v3412_v32 = vsel %vm9939_vm1, %v3410_v9, %v3411_v21  ;;  %v3422_v6 = vrot.slane %v9838_v50, 5  ;;  %v3416_v62 = vsel %vm9939_vm1, %v7314_v41, %v3415_v24  ;;  %v8767_v18 = vld [vmem:[#allocation2 + $0x174] sm:$0xf] }
 0x192   :  { %12459 = vst [vmem:[#allocation82_spill] sm:$0xff] %v10442_v28  ;;  %12462 = vst [vmem:[#allocation85_spill] sm:$0xff] %v10448_v12  ;;  %v10480_v5 = vpop.f32.mrf.mxu1  ;;  %v7725_v50 = vpack.c.bf16 %v197_v45, %v197_v45  ;;  %v10483_v21 = vcombine.low %v8759_v20, %v10399_v27  ;;  %v3432_v45 = vrot.slane %v9917_v11, 5 }
 0x193   :  { %v3419_v22 = vsel %vm9939_vm1, %v3417_v52, %v3418_v46  ;;  %12466 = vst [vmem:[#allocation89_spill] sm:$0xff] %v10480_v5  ;;  %v3424_v46 = vrot.slane %v3422_v6, 4 }
 0x194   :  { %v929_v41 = vshrl.u32 %v7725_v50, 16  ;;  %v10490_v52 = vcombine.low %v3416_v62, %v3419_v22  ;;  %v10495_v27 = vpop.f32.mrf.mxu1  ;;  %v10501_v62 = vpop.f32.mrf.mxu0 }
 0x195   :  { %8200 = vmatmul.mubr.msk.bf16.gmra.mxu1 %vm2241_vm9, %v10431_v7  ;;  %v8768_v7 = vld [vmem:[#allocation2 + $0x17c] sm:$0x1] }
 0x196   :  { %8203 = vmatprep.mubr.msk.bf16.mxu1 %vm2241_vm9, %v10442_v28  ;;  %v7315_v28 = vrot.slane %v8767_v18, 9  ;;  %v3425_v25 = vrot.slane %v8768_v7, 5  ;;  %12469 = vst [vmem:[#allocation92_spill] sm:$0xff] %v10490_v52  ;;  %v931_v7 = vrot.slane %v929_v41, 7  ;;  %v3430_v41 = vsel %vm9939_vm1, %v7316_v34, %v3429_v33  ;;  %v10528_v34 = vpop.f32.mrf.mxu0 }
 0x197   :  { %8270 = vmatmul.mubr.msk.bf16.gmra.mxu0 %vm2241_vm9, %v10444_v61  ;;  %v196_v61 = vld [vmem:[%s12219_s0 + $0x1f0] sm:$0xff] }
 0x198   :  { %8273 = vmatprep.mubr.msk.bf16.mxu0 %vm2241_vm9, %v10448_v12  ;;  %v7724_v9 = vpack.c.bf16 %v196_v61, %v196_v61  ;;  %v10485_v12 = vcombine.low %v3409_v35, %v3412_v32  ;;  %v3431_v61 = vrot.slane %v3429_v33, 4  ;;  %v932_v32 = vshll.u32 %v7725_v50, 16 }
 0x199   :  { %v3426_v50 = vsel %vm9939_vm1, %v3424_v46, %v3425_v25  ;;  %v1260_v46 = vld [vmem:[#allocation2 + $0x1a0] sm:$0x1] }
 0x19a   :  { %12467 = vst [vmem:[#allocation90_spill] sm:$0xff] %v10485_v12  ;;  %v921_v24 = vshrl.u32 %v7724_v9, 16  ;;  %v924_v35 = vshll.u32 %v7724_v9, 16  ;;  %v934_v11 = vor.u32 %v932_v32, %v931_v7  ;;  %v3423_v9 = vsel %vm9939_vm1, %v7315_v28, %v3422_v6 }
 0x19b   :  { %v10523_v28 = vcombine.low %v8765_v23, %v10437_v10  ;;  %v10526_v25 = vcombine.low %v3423_v9, %v3426_v50  ;;  %v936_v6 = vrot.slane %v931_v7, 4  ;;  %v10542_v10 = vpop.f32.mrf.mxu0  ;;  %v8769_v23 = vld [vmem:[#allocation2 + $0x178] sm:$0xf] }
 0x19c   :  { %v923_v20 = vrot.slane %v921_v24, 7  ;;  %v1256_v24 = vld [vmem:[#allocation2 + $0x198] sm:$0xf] }
 0x19d   :  { %8204 = vmatmul.mubr.msk.bf16.gmra.mxu1 %vm2241_vm9, %v10464_v29  ;;  %12471 = vst [vmem:[#allocation94_spill] sm:$0xff] %v10526_v25  ;;  %v1261_v0 = vsel %vm9149_vm13, %v936_v6, %v1260_v46 }
 0x19e   :  { %8207 = vmatprep.mubr.msk.bf16.mxu1 %vm2241_vm9, %v10483_v21  ;;  %v926_v22 = vor.u32 %v924_v35, %v923_v20  ;;  %v927_v5 = vrot.slane %v923_v20, 4  ;;  %v3433_v20 = vsel %vm9939_vm1, %v3431_v61, %v3432_v45  ;;  %v10516_v35 = vpop.f32.mrf.mxu1  ;;  %1262 = vst [vmem:[#allocation2 + $0x1a0] sm:$0x1] %v1261_v0  ;;  %v10554_v45 = vpop.f32.mrf.mxu0  ;;  %v12485_v0 = vld [vmem:[#allocation16_spill] sm:$0xff] }
 0x19f   :  { %8274 = vmatmul.mubr.msk.bf16.gmra.mxu0 %vm2241_vm9, %v10485_v12  ;;  %12470 = vst [vmem:[#allocation93_spill] sm:$0xff] %v10516_v35  ;;  %v10530_v33 = vcombine.low %v3430_v41, %v3433_v20  ;;  %v12482_v20 = vld [vmem:[#allocation14_spill] sm:$0xff] }
 0x1a0   :  { %8277 = vmatprep.mubr.msk.bf16.mxu0 %vm2241_vm9, %v10490_v52  ;;  %v935_v54 = vsel %vm9129_vm10, %v927_v5, %v934_v11  ;;  %v1257_v55 = vsel %vm9135_vm11, %v926_v22, %v1256_v24  ;;  %v10534_v59 = vpop.f32.mrf.mxu1  ;;  %v10546_v5 = vcombine.low %v8767_v18, %v8769_v23  ;;  %v10564_v18 = vpop.f32.mrf.mxu0  ;;  %v12496_v52 = vld [vmem:[#allocation26_spill] sm:$0xff] }
 0x1a1   :  { %1258 = vst [vmem:[#allocation2 + $0x198] sm:$0xf] %v1257_v55  ;;  %1259 = vst.msk [vmem:[#allocation2 + $0x19c] sm:$0xf] %vm24_vm2, %v935_v54  ;;  %vm6674_vm2 = vcmask 519168  }
 0x1a2   :  { %12472 = vst [vmem:[#allocation95_spill] sm:$0xff] %v10530_v33  ;;  %12473 = vst [vmem:[#allocation96_spill] sm:$0xff] %v10534_v59  ;;  %v10548_v61 = vpop.f32.mrf.mxu1  ;;  %v10570_v42 = vpop.f32.mrf.mxu0  ;;  %v12525_v59 = vld [vmem:[#allocation76_spill] sm:$0xff] }
 0x1a3   :  { %12474 = vst [vmem:[#allocation97_spill] sm:$0xff] %v10548_v61 }
 0x1a4   :  { %v10558_v7 = vpop.f32.mrf.mxu1  ;;  %v10580_v22 = vpop.f32.mrf.mxu0 }
 0x1a5   :  { %8208 = vmatmul.mubr.msk.bf16.gmra.mxu1 %vm2241_vm9, %v10504_v30  ;;  %12475 = vst [vmem:[#allocation98_spill] sm:$0xff] %v10558_v7 }
 0x1a6   :  { %8211 = vmatprep.mubr.msk.bf16.mxu1 %vm2241_vm9, %v10523_v28  ;;  %v10568_v49 = vpop.f32.mrf.mxu1  ;;  %v10587_v9 = vpop.f32.mrf.mxu0 }
 0x1a7   :  { %8278 = vmatmul.mubr.msk.bf16.gmra.mxu0 %vm2241_vm9, %v10526_v25  ;;  %12476 = vst [vmem:[#allocation99_spill] sm:$0xff] %v10568_v49  ;;  %v10658_v25 = vld [vmem:[#allocation2 + $0xc4] sm:$0xf]  ;;  %v12501_v49 = vld [vmem:[#allocation30_spill] sm:$0xff] }
 0x1a8   :  { %8281 = vmatprep.mubr.msk.bf16.mxu0 %vm2241_vm9, %v10530_v33  ;;  %v10574_v32 = vpop.f32.mrf.mxu1  ;;  %v10601_v24 = vpop.f32.mrf.mxu0  ;;  %v10656_v33 = vld [vmem:[#allocation2 + $0xc0] sm:$0xf]  ;;  %12494 = vst [vmem:[#allocation110_spill] sm:$0xff] %v10658_v25 }
 0x1a9   :  { %12477 = vst [vmem:[#allocation100_spill] sm:$0xff] %v10574_v32  ;;  %12493 = vst [vmem:[#allocation109_spill] sm:$0xff] %v10656_v33  ;;  %v4366_v12 = vshrl.u32 %v10656_v33, 16  ;;  %v4369_v39 = vshll.u32 %v10656_v33, 16  ;;  %v12500_v32 = vld [vmem:[#allocation28_spill] sm:$0xff] }
 0x1aa   :  { %v10585_v11 = vpop.f32.mrf.mxu1  ;;  %v10617_v6 = vpop.f32.mrf.mxu0 }
 0x1ab   :  { %12479 = vst [vmem:[#allocation101_spill] sm:$0xff] %v10585_v11  ;;  %v10680_v11 = vld [vmem:[#allocation2 + $0xc8] sm:$0x1] }
 0x1ac   :  { %v10591_v50 = vpop.f32.mrf.mxu1  ;;  %v10628_v23 = vpop.f32.mrf.mxu0  ;;  %12499 = vst [vmem:[#allocation113_spill] sm:$0xff] %v10680_v11 }
 0x1ad   :  { %8212 = vmatmul.mubr.msk.bf16.gmra.mxu1 %vm2241_vm9, %v10546_v5  ;;  %12480 = vst [vmem:[#allocation102_spill] sm:$0xff] %v10591_v50 }
 0x1ae   :  { %8215 = vmatprep.mubr.msk.bf16.mxu1 %vm2241_vm9, %v10552_v13  ;;  %v10611_v54 = vpop.f32.mrf.mxu1 }
 0x1af   :  { %8282 = vmatmul.mubr.msk.bf16.gmra.mxu0 %vm2241_vm9, %v10293_v38  ;;  %12483 = vst [vmem:[#allocation103_spill] sm:$0xff] %v10611_v54  ;;  %v4371_v54 = vrot.slane %v4369_v39, 5 }
 0x1b0   :  { %8353 = vmatprep.mubr.msk.bf16.mxu0 %vm2241_vm9, %v9234_v53  ;;  %v12478_v53 = vld [vmem:[#allocation10_spill] sm:$0xff]  ;;  %v10622_v46 = vpop.f32.mrf.mxu1 }
 0x1b1   :  { %12484 = vst [vmem:[#allocation104_spill] sm:$0xff] %v10622_v46  ;;  %v4368_v46 = vrot.slane %v4366_v12, 4  ;;  %v4385_v12 = vshll.u32 %v10680_v11, 16 }
 0x1b3   :  { %v4372_v39 = vor.u32 %v4371_v54, %v4368_v46  ;;  %v4387_v61 = vrot.slane %v4385_v12, 5 }
 0x1b5   :  { %8216 = vmatmul.mubr.msk.bf16.gmra.mxu1 %vm2241_vm9, %v10245_v16  ;;  %v4373_v7 = vrot.slane %v4372_v39, 4 }
 0x1b6   :  { %8287 = vmatprep.mubr.msk.bf16.mxu1 %vm2241_vm9, %v10043_v3  ;;  %v7525_v3 = vld [vmem:[%s12222_s3 + $0xe] sm:$0x3] }
 0x1b7   :  { %8354 = vmatmul.mubr.msk.bf16.vlgmr.msra.gmra.mxu0 %vm2241_vm9, %v9270_v58  ;;  %v10604_v41 = vand.u32 %v7525_v3, %v8844_v4  ;;  %v12486_v3 = vld [vmem:[#allocation18_spill] sm:$0xff] }
 0x1b8   :  { %8484 = vmatpush3.bf16.msra.mxu0 %v10279_v14  ;;  %8357 = vmatprep.mubr.msk.bf16.mxu0 %vm2241_vm9, %v12478_v53  ;;  %v12481_v14 = vld [vmem:[#allocation12_spill] sm:$0xff]  ;;  %v12490_v53 = vld [vmem:[#allocation22_spill] sm:$0xff] }
 0x1bd   :  { %8288 = vmatmul.mubr.msk.bf16.vlgmr.msra.gmra.mxu1 %vm2241_vm9, %v10049_v36 }
 0x1be   :  { %8418 = vmatpush3.bf16.msra.mxu1 %v10276_v8  ;;  %8291 = vmatprep.mubr.msk.bf16.mxu1 %vm2241_vm9, %v10075_v44  ;;  %v7562_v8 = vld [vmem:[%s12222_s3 + $0x10] sm:$0x3] }
 0x1bf   :  { %8358 = vmatmul.mubr.msk.bf16.gmra.mxu0 %vm2241_vm9, %v12481_v14  ;;  %8549 = vmatprep.subr.bf16.mxu1 %v10604_v41  ;;  %v10615_v55 = vand.u32 %v7562_v8, %v8844_v4  ;;  %v10632_v4 = vpop.f32.mrf.mxu1  ;;  %v10634_v8 = vpop.f32.mrf.mxu0  ;;  %v12489_v14 = vld [vmem:[#allocation20_spill] sm:$0xff] }
 0x1c0   :  { %8361 = vmatprep.mubr.msk.bf16.mxu0 %vm2241_vm9, %v12482_v20  ;;  %12487 = vst [vmem:[#allocation105_spill] sm:$0xff] %v10632_v4 }
 0x1c1   :  { %8615 = vmatprep.subr.bf16.mxu0 %v10615_v55  ;;  %v10638_v20 = vpop.f32.mrf.mxu1 }
 0x1c2   :  { %12488 = vst [vmem:[#allocation106_spill] sm:$0xff] %v10638_v20 }
 0x1c5   :  { %8292 = vmatmul.mubr.msk.bf16.gmra.mxu1 %vm2241_vm9, %v10083_v19 }
 0x1c6   :  { %8295 = vmatprep.mubr.msk.bf16.mxu1 %vm2241_vm9, %v10088_v31 }
 0x1c7   :  { %8362 = vmatmul.mubr.msk.bf16.gmra.mxu0 %vm2241_vm9, %v12485_v0  ;;  %v10644_v0 = vpop.f32.mrf.mxu0 }
 0x1c8   :  { %8365 = vmatprep.mubr.msk.bf16.mxu0 %vm2241_vm9, %v12486_v3  ;;  %v10648_v3 = vpop.f32.mrf.mxu1 }
 0x1c9   :  { %12491 = vst [vmem:[#allocation107_spill] sm:$0xff] %v10648_v3  ;;  %v10650_v58 = vpop.f32.mrf.mxu0  ;;  %v4375_v3 = vshll.u32 %v10658_v25, 16 }
 0x1ca   :  { %v10654_v38 = vpop.f32.mrf.mxu1 }
 0x1cb   :  { %12492 = vst [vmem:[#allocation108_spill] sm:$0xff] %v10654_v38  ;;  %v4379_v38 = vshrl.u32 %v10658_v25, 16 }
 0x1cc   :  { %v10672_v20 = vpop.f32.mrf.mxu1 }
 0x1cd   :  { %8296 = vmatmul.mubr.msk.bf16.gmra.mxu1 %vm2241_vm9, %v10149_v51  ;;  %12497 = vst [vmem:[#allocation111_spill] sm:$0xff] %v10672_v20  ;;  %v4381_v50 = vrot.slane %v4379_v38, 4 }
 0x1ce   :  { %8299 = vmatprep.mubr.msk.bf16.mxu1 %vm2241_vm9, %v10178_v60 }
 0x1cf   :  { %8366 = vmatmul.mubr.msk.bf16.gmra.mxu0 %vm2241_vm9, %v12489_v14  ;;  %v12495_v14 = vld [vmem:[#allocation24_spill] sm:$0xff] }
 0x1d0   :  { %8369 = vmatprep.mubr.msk.bf16.mxu0 %vm2241_vm9, %v12490_v53  ;;  %v10664_v53 = vpop.f32.mrf.mxu0 }
 0x1d2   :  { %v10674_v4 = vpop.f32.mrf.mxu0 }
 0x1d4   :  { %v10686_v20 = vpop.f32.mrf.mxu0 }
 0x1d5   :  { %8300 = vmatmul.mubr.msk.bf16.gmra.mxu1 %vm2241_vm9, %v10187_v48 }
 0x1d6   :  { %8303 = vmatprep.mubr.msk.bf16.mxu1 %vm2241_vm9, %v10209_v40 }
 0x1d7   :  { %8370 = vmatmul.mubr.msk.bf16.gmra.mxu0 %vm2241_vm9, %v12495_v14  ;;  %v4377_v14 = vrot.slane %v4375_v3, 5 }
 0x1d8   :  { %8373 = vmatprep.mubr.msk.bf16.mxu0 %vm2241_vm9, %v12496_v52  ;;  %v10678_v52 = vpop.f32.mrf.mxu1 }
 0x1d9   :  { %12498 = vst [vmem:[#allocation112_spill] sm:$0xff] %v10678_v52  ;;  %v4382_v38 = vor.u32 %v4381_v50, %v4377_v14  ;;  %v10693_v52 = vpop.f32.mrf.mxu0  ;;  %v4378_v54 = vsel %vm9141_vm12, %v4373_v7, %v4377_v14  ;;  %v10733_v7 = vcombine.low %v10656_v33, %v10658_v25  ;;  %v12518_v25 = vld [vmem:[#allocation13_spill] sm:$0xff] }
 0x1da   :  { %v10691_v3 = vpop.f32.mrf.mxu1 }
 0x1db   :  { %12502 = vst [vmem:[#allocation114_spill] sm:$0xff] %v10691_v3  ;;  %v10703_v50 = vpop.f32.mrf.mxu0  ;;  %12510 = vst [vmem:[#allocation119_spill] sm:$0xff] %v10733_v7 }
 0x1dd   :  { %8304 = vmatmul.mubr.msk.bf16.gmra.mxu1 %vm2241_vm9, %v10215_v57  ;;  %v4383_v57 = vrot.slane %v4382_v38, 4  ;;  %v10713_v38 = vpop.f32.mrf.mxu0 }
 0x1de   :  { %8307 = vmatprep.mubr.msk.bf16.mxu1 %vm2241_vm9, %v10232_v47 }
 0x1df   :  { %8374 = vmatmul.mubr.msk.bf16.gmra.mxu0 %vm2241_vm9, %v12500_v32  ;;  %v10697_v32 = vpop.f32.mrf.mxu1  ;;  %v4388_v46 = vsel %vm9141_vm12, %v4383_v57, %v4387_v61  ;;  %v12508_v57 = vld [vmem:[#allocation7_spill] sm:$0xff] }
 0x1e0   :  { %8377 = vmatprep.mubr.msk.bf16.mxu0 %vm2241_vm9, %v12501_v49  ;;  %12503 = vst [vmem:[#allocation115_spill] sm:$0xff] %v10697_v32  ;;  %v12504_v49 = vld [vmem:[#allocation32_spill] sm:$0xff]  ;;  %v10715_v12 = vcombine.low %v4378_v54, %v4388_v46 }
 0x1e1   :  { %v10711_v39 = vpop.f32.mrf.mxu1 }
 0x1e2   :  { %12505 = vst [vmem:[#allocation116_spill] sm:$0xff] %v10711_v39  ;;  %12506 = vst [vmem:[#allocation117_spill] sm:$0xff] %v10715_v12  ;;  %v12514_v39 = vld [vmem:[#allocation11_spill] sm:$0xff] }
 0x1e5   :  { %8308 = vmatmul.mubr.msk.bf16.gmra.mxu1 %vm2241_vm9, %v10236_v17 }
 0x1e6   :  { %8311 = vmatprep.mubr.msk.bf16.mxu1 %vm2241_vm9, %v10097_v56 }
 0x1e7   :  { %8378 = vmatmul.mubr.msk.bf16.gmra.mxu0 %vm2241_vm9, %v12504_v49  ;;  %v10719_v49 = vpop.f32.mrf.mxu1 }
 0x1e8   :  { %8381 = vmatprep.mubr.msk.bf16.mxu0 %vm2241_vm9, %v9998_v26  ;;  %12507 = vst [vmem:[#allocation118_spill] sm:$0xff] %v10719_v49 }
 0x1e9   :  { %v10729_v61 = vpop.f32.mrf.mxu1 }
 0x1ea   :  { %12509 = vst [vmem:[#allocation7_spill] sm:$0xff] %v10729_v61  ;;  %v12513_v61 = vld [vmem:[#allocation9_spill] sm:$0xff] }
 0x1ed   :  { %8312 = vmatmul.mubr.msk.bf16.gmra.mxu1 %vm2241_vm9, %v10108_v63  ;;  %v12521_v63 = vld [vmem:[#allocation15_spill] sm:$0xff] }
 0x1ee   :  { %8315 = vmatprep.mubr.msk.bf16.mxu1 %vm2241_vm9, %v10126_v43  ;;  %v10723_v26 = vpop.f32.mrf.mxu0 }
 0x1ef   :  { %8382 = vmatmul.mubr.msk.bf16.gmra.mxu0 %vm2241_vm9, %v10715_v12 }
 0x1f0   :  { %8385 = vmatprep.mubr.msk.bf16.mxu0 %vm2241_vm9, %v12508_v57  ;;  %v10735_v14 = vpop.f32.mrf.mxu0 }
 0x1f2   :  { %v10737_v54 = vpop.f32.mrf.mxu0 }
 0x1f4   :  { %v10743_v49 = vpop.f32.mrf.mxu0 }
 0x1f5   :  { %v10739_v46 = vpop.f32.mrf.mxu1  ;;  %8316 = vmatmul.mubr.msk.bf16.gmra.mxu1 %vm2241_vm9, %v10733_v7  ;;  %v12517_v7 = vld [vmem:[#allocation65_spill] sm:$0xff] }
 0x1f6   :  { %12511 = vst [vmem:[#allocation120_spill] sm:$0xff] %v10739_v46  ;;  %8319 = vmatprep.mubr.msk.bf16.mxu1 %vm2241_vm9, %v10336_v15  ;;  %v8223_v12 = vpop.f32.mrf.mxu0 }
 0x1f7   :  { %v10747_v57 = vpop.f32.mrf.mxu1  ;;  %8386 = vmatmul.mubr.msk.bf16.gmra.mxu0 %vm2241_vm9, %v12513_v61 }
 0x1f8   :  { %12512 = vst [vmem:[#allocation121_spill] sm:$0xff] %v10747_v57  ;;  %8389 = vmatprep.mubr.msk.bf16.mxu0 %vm2241_vm9, %v12514_v39  ;;  %v3672_v46 = vpop.f32.mrf.mxu0 }
 0x1f9   :  { %v10753_v32 = vpop.f32.mrf.mxu1 }
 0x1fa   :  { %12515 = vst [vmem:[#allocation122_spill] sm:$0xff] %v10753_v32  ;;  %v8224_v11 = vpop.f32.mrf.mxu0  ;;  %v12520_v32 = vld [vmem:[#allocation68_spill] sm:$0xff] }
 0x1fb   :  { %v10755_v3 = vpop.f32.mrf.mxu1 }
 0x1fc   :  { %12516 = vst [vmem:[#allocation123_spill] sm:$0xff] %v10755_v3  ;;  %v3675_v15 = vpop.f32.mrf.mxu0 }
 0x1fd   :  { %v8157_v33 = vpop.f32.mrf.mxu1  ;;  %8320 = vmatmul.mubr.msk.bf16.gmra.mxu1 %vm2241_vm9, %v10343_v37 }
 0x1fe   :  { %v2936_v57 = vadd.f32 %v8157_v33, %v10355_v1  ;;  %8323 = vmatprep.mubr.msk.bf16.mxu1 %vm2241_vm9, %v12517_v7  ;;  %v12523_v1 = vld [vmem:[#allocation71_spill] sm:$0xff] }
 0x1ff   :  { %v2927_v61 = vpop.f32.mrf.mxu1  ;;  %v8227_v43 = vpop.f32.mrf.mxu0  ;;  %8390 = vmatmul.mubr.msk.bf16.gmra.mxu0 %vm2241_vm9, %v12518_v25 }
 0x200   :  { %v10764_v39 = vadd.f32 %v8223_v12, %v2936_v57  ;;  %v2928_v3 = vadd.f32 %v2927_v61, %v12520_v32  ;;  %8393 = vmatprep.mubr.msk.bf16.mxu0 %vm2241_vm9, %v12521_v63  ;;  %v12526_v12 = vld [vmem:[#allocation66_spill] sm:$0xff]  ;;  %v12528_v57 = vld [vmem:[#allocation79_spill] sm:$0xff] }
 0x201   :  { %v8158_v56 = vpop.f32.mrf.mxu1  ;;  %v3688_v37 = vpop.f32.mrf.mxu0 }
 0x202   :  { %12519 = vst [vmem:[#allocation124_spill] sm:$0xff] %v10764_v39  ;;  %v10769_v17 = vadd.f32 %v3672_v46, %v2928_v3  ;;  %v2939_v33 = vadd.f32 %v8158_v56, %v12523_v1  ;;  %v12529_v39 = vld [vmem:[#allocation72_spill] sm:$0xff]  ;;  %v12530_v46 = vld [vmem:[#allocation17_spill] sm:$0xff]  ;;  %v12532_v1 = vld [vmem:[#allocation19_spill] sm:$0xff] }
 0x203   :  { %v2930_v47 = vpop.f32.mrf.mxu1  ;;  %v8228_v7 = vpop.f32.mrf.mxu0 }
 0x204   :  { %12522 = vst [vmem:[#allocation68_spill] sm:$0xff] %v10769_v17  ;;  %v10772_v40 = vadd.f32 %v8224_v11, %v2939_v33  ;;  %v2931_v35 = vadd.f32 %v2930_v47, %v12525_v59  ;;  %v12531_v47 = vld [vmem:[#allocation84_spill] sm:$0xff] }
 0x205   :  { %v8161_v25 = vpop.f32.mrf.mxu1  ;;  %8324 = vmatmul.mubr.msk.bf16.gmra.mxu1 %vm2241_vm9, %v12526_v12  ;;  %v3691_v32 = vpop.f32.mrf.mxu0 }
 0x206   :  { %12524 = vst [vmem:[#allocation71_spill] sm:$0xff] %v10772_v40  ;;  %v10777_v61 = vadd.f32 %v3675_v15, %v2931_v35  ;;  %v2952_v63 = vadd.f32 %v8161_v25, %v12528_v57  ;;  %8327 = vmatprep.mubr.msk.bf16.mxu1 %vm2241_vm9, %v12529_v39  ;;  %v12534_v25 = vld [vmem:[#allocation87_spill] sm:$0xff] }
 0x207   :  { %v2943_v3 = vpop.f32.mrf.mxu1  ;;  %v8231_v56 = vpop.f32.mrf.mxu0  ;;  %8394 = vmatmul.mubr.msk.bf16.gmra.mxu0 %vm2241_vm9, %v12530_v46  ;;  %v12536_v39 = vld [vmem:[#allocation91_spill] sm:$0xff] }
 0x208   :  { %12527 = vst [vmem:[#allocation76_spill] sm:$0xff] %v10777_v61  ;;  %v10784_v11 = vadd.f32 %v8227_v43, %v2952_v63  ;;  %v2944_v59 = vadd.f32 %v2943_v3, %v12531_v47  ;;  %8397 = vmatprep.mubr.msk.bf16.mxu0 %vm2241_vm9, %v12532_v1  ;;  %v12537_v63 = vld [vmem:[#allocation74_spill] sm:$0xff]  ;;  %v12539_v1 = vld [vmem:[#allocation80_spill] sm:$0xff] }
 0x209   :  { %v8162_v33 = vpop.f32.mrf.mxu1  ;;  %v3704_v35 = vpop.f32.mrf.mxu0 }
 0x20a   :  { %v10789_v15 = vadd.f32 %v3688_v37, %v2944_v59  ;;  %v2955_v57 = vadd.f32 %v8162_v33, %v12534_v25  ;;  %v12540_v33 = vld [vmem:[#allocation21_spill] sm:$0xff] }
 0x20b   :  { %v2946_v61 = vpop.f32.mrf.mxu1  ;;  %v8232_v40 = vpop.f32.mrf.mxu0 }
 0x20c   :  { %12533 = vst [vmem:[#allocation79_spill] sm:$0xff] %v10789_v15  ;;  %v10792_v17 = vadd.f32 %v8228_v7, %v2955_v57  ;;  %v2947_v12 = vadd.f32 %v2946_v61, %v12536_v39  ;;  %v12542_v61 = vld [vmem:[#allocation23_spill] sm:$0xff]  ;;  %v10845_v15 = vld [vmem:[#allocation2 + $0x1a0] sm:$0x1] }
 0x20d   :  { %v8165_v46 = vpop.f32.mrf.mxu1  ;;  %8328 = vmatmul.mubr.msk.bf16.gmra.mxu1 %vm2241_vm9, %v12537_v63  ;;  %v3707_v43 = vpop.f32.mrf.mxu0 }
 0x20e   :  { %12535 = vst [vmem:[#allocation84_spill] sm:$0xff] %v10792_v17  ;;  %v10797_v3 = vadd.f32 %v3691_v32, %v2947_v12  ;;  %v2968_v47 = vadd.f32 %v8165_v46, %v10501_v62  ;;  %8331 = vmatprep.mubr.msk.bf16.mxu1 %vm2241_vm9, %v12539_v1 }
 0x20f   :  { %v2959_v37 = vpop.f32.mrf.mxu1  ;;  %v8235_v59 = vpop.f32.mrf.mxu0  ;;  %8398 = vmatmul.mubr.msk.bf16.gmra.mxu0 %vm2241_vm9, %v12540_v33  ;;  %v10815_v33 = vld [vmem:[#allocation2 + $0x198] sm:$0xf] }
 0x210   :  { %12538 = vst [vmem:[#allocation87_spill] sm:$0xff] %v10797_v3  ;;  %v10804_v7 = vadd.f32 %v8231_v56, %v2968_v47  ;;  %v2960_v39 = vadd.f32 %v2959_v37, %v10528_v34  ;;  %8401 = vmatprep.mubr.msk.bf16.mxu0 %vm2241_vm9, %v12542_v61  ;;  %v12545_v47 = vld [vmem:[#allocation82_spill] sm:$0xff]  ;;  %v10819_v37 = vld [vmem:[#allocation2 + $0x19c] sm:$0xf] }
 0x211   :  { %v8166_v25 = vpop.f32.mrf.mxu1  ;;  %v3720_v12 = vpop.f32.mrf.mxu0 }
 0x212   :  { %12541 = vst [vmem:[#allocation91_spill] sm:$0xff] %v10804_v7  ;;  %v10809_v32 = vadd.f32 %v3704_v35, %v2960_v39  ;;  %v2971_v62 = vadd.f32 %v8166_v25, %v10542_v10  ;;  %v12547_v39 = vld [vmem:[#allocation25_spill] sm:$0xff]  ;;  %v4393_v25 = vshll.u32 %v10815_v33, 16 }
 0x213   :  { %v2962_v46 = vpop.f32.mrf.mxu1  ;;  %v8236_v57 = vpop.f32.mrf.mxu0 }
 0x214   :  { %12543 = vst [vmem:[#allocation74_spill] sm:$0xff] %v10809_v32  ;;  %v10812_v3 = vadd.f32 %v8232_v40, %v2971_v62  ;;  %v2963_v17 = vadd.f32 %v2962_v46, %v10554_v45  ;;  %v4390_v45 = vshrl.u32 %v10815_v33, 16 }
 0x215   :  { %v8169_v56 = vpop.f32.mrf.mxu1  ;;  %8332 = vmatmul.mubr.msk.bf16.gmra.mxu1 %vm2241_vm9, %v12545_v47  ;;  %v3723_v34 = vpop.f32.mrf.mxu0 }
 0x216   :  { %12544 = vst [vmem:[#allocation80_spill] sm:$0xff] %v10812_v3  ;;  %v10821_v61 = vadd.f32 %v3707_v43, %v2963_v17  ;;  %v2984_v35 = vadd.f32 %v8169_v56, %v10564_v18  ;;  %8335 = vmatprep.mubr.msk.bf16.mxu1 %vm2241_vm9, %v10464_v29  ;;  %v12549_v17 = vld [vmem:[#allocation27_spill] sm:$0xff]  ;;  %v4403_v18 = vshrl.u32 %v10819_v37, 16  ;;  %v4399_v43 = vshll.u32 %v10819_v37, 16 }
 0x217   :  { %v2975_v40 = vpop.f32.mrf.mxu1  ;;  %v8239_v10 = vpop.f32.mrf.mxu0  ;;  %8402 = vmatmul.mubr.msk.bf16.gmra.mxu0 %vm2241_vm9, %v12547_v39  ;;  %v4392_v7 = vrot.slane %v4390_v45, 4  ;;  %v12551_v45 = vld [vmem:[#allocation29_spill] sm:$0xff] }
 0x218   :  { %12546 = vst [vmem:[#allocation125_spill] sm:$0xff] %v10821_v61  ;;  %v10830_v62 = vadd.f32 %v8235_v59, %v2984_v35  ;;  %v2976_v46 = vadd.f32 %v2975_v40, %v10570_v42  ;;  %8405 = vmatprep.mubr.msk.bf16.mxu0 %vm2241_vm9, %v12549_v17  ;;  %v4395_v59 = vrot.slane %v4393_v25, 5  ;;  %v4401_v40 = vrot.slane %v4399_v43, 5 }
 0x219   :  { %v8170_v56 = vpop.f32.mrf.mxu1  ;;  %v3736_v61 = vpop.f32.mrf.mxu0  ;;  %v4405_v17 = vrot.slane %v4403_v18, 4  ;;  %v4409_v18 = vshll.u32 %v10845_v15, 16 }
 0x21a   :  { %12548 = vst [vmem:[#allocation126_spill] sm:$0xff] %v10830_v62  ;;  %v10837_v3 = vadd.f32 %v3720_v12, %v2976_v46  ;;  %v2987_v39 = vadd.f32 %v8170_v56, %v10580_v22  ;;  %v12552_v46 = vld [vmem:[#allocation31_spill] sm:$0xff] }
 0x21b   :  { %v2978_v32 = vpop.f32.mrf.mxu1  ;;  %v8240_v29 = vpop.f32.mrf.mxu0 }
 0x21c   :  { %v10840_v35 = vadd.f32 %v8236_v57, %v2987_v39  ;;  %v2979_v42 = vadd.f32 %v2978_v32, %v10587_v9  ;;  %v4396_v9 = vor.u32 %v4395_v59, %v4392_v7  ;;  %v4411_v59 = vrot.slane %v4409_v18, 5 }
 0x21d   :  { %v8173_v62 = vpop.f32.mrf.mxu1  ;;  %8336 = vmatmul.mubr.msk.bf16.gmra.mxu1 %vm2241_vm9, %v10483_v21  ;;  %v3739_v47 = vpop.f32.mrf.mxu0 }
 0x21e   :  { %v10847_v12 = vadd.f32 %v3723_v34, %v2979_v42  ;;  %v3000_v22 = vadd.f32 %v8173_v62, %v10601_v24  ;;  %8339 = vmatprep.mubr.msk.bf16.mxu1 %vm2241_vm9, %v10504_v30  ;;  %v4406_v34 = vor.u32 %v4405_v17, %v4401_v40 }
 0x21f   :  { %v2991_v57 = vpop.f32.mrf.mxu1  ;;  %v8243_v39 = vpop.f32.mrf.mxu0  ;;  %8406 = vmatmul.mubr.msk.bf16.gmra.mxu0 %vm2241_vm9, %v12551_v45  ;;  %v4397_v45 = vrot.slane %v4396_v9, 4 }
 0x220   :  { %12550 = vst [vmem:[#allocation127_spill] sm:$0xff] %v10847_v12  ;;  %v10854_v32 = vadd.f32 %v8239_v10, %v3000_v22  ;;  %v2992_v25 = vadd.f32 %v2991_v57, %v10617_v6  ;;  %8409 = vmatprep.mubr.msk.bf16.mxu0 %vm2241_vm9, %v12552_v46  ;;  %v4407_v6 = vrot.slane %v4406_v34, 4  ;;  %v12554_v34 = vld [vmem:[#allocation36_spill] sm:$0xff] }
 0x221   :  { %v8174_v24 = vpop.f32.mrf.mxu1  ;;  %v3752_v62 = vpop.f32.mrf.mxu0 }
 0x222   :  { %v10860_v43 = vadd.f32 %v3736_v61, %v2992_v25  ;;  %v3003_v56 = vadd.f32 %v8174_v24, %v10628_v23 }
 0x223   :  { %v2994_v42 = vpop.f32.mrf.mxu1  ;;  %v8244_v12 = vpop.f32.mrf.mxu0 }
 0x224   :  { %v10863_v7 = vadd.f32 %v8240_v29, %v3003_v56  ;;  %v2995_v10 = vadd.f32 %v2994_v42, %v10634_v8  ;;  %v12553_v29 = vld [vmem:[#allocation34_spill] sm:$0xff] }
 0x225   :  { %v8177_v22 = vpop.f32.mrf.mxu1  ;;  %8340 = vmatmul.mubr.msk.bf16.gmra.mxu1 %vm2241_vm9, %v10523_v28  ;;  %v3755_v17 = vpop.f32.mrf.mxu0 }
 0x226   :  { %v10868_v57 = vadd.f32 %v3739_v47, %v2995_v10  ;;  %v3016_v61 = vadd.f32 %v8177_v22, %v10644_v0  ;;  %8343 = vmatprep.mubr.msk.bf16.mxu1 %vm2241_vm9, %v10546_v5  ;;  %v4402_v47 = vsel %vm9141_vm12, %v4397_v45, %v4401_v40  ;;  %v4412_v0 = vsel %vm9141_vm12, %v4407_v6, %v4411_v59 }
 0x227   :  { %v3007_v23 = vpop.f32.mrf.mxu1  ;;  %v8247_v9 = vpop.f32.mrf.mxu0  ;;  %8410 = vmatmul.mubr.msk.bf16.gmra.mxu0 %vm2241_vm9, %v12553_v29  ;;  %v10887_v22 = vcombine.low %v4402_v47, %v4412_v0  ;;  %v12576_v29 = vld [vmem:[#allocation47_spill] sm:$0xff] }
 0x228   :  { %v10875_v8 = vadd.f32 %v8243_v39, %v3016_v61  ;;  %v3008_v25 = vadd.f32 %v3007_v23, %v10650_v58  ;;  %8413 = vmatprep.mubr.msk.bf16.mxu0 %vm2241_vm9, %v12554_v34 }
 0x229   :  { %v8178_v18 = vpop.f32.mrf.mxu1  ;;  %v3768_v24 = vpop.f32.mrf.mxu0  ;;  %12555 = vst [vmem:[#allocation128_spill] sm:$0xff] %v10887_v22 }
 0x22a   :  { %v10884_v56 = vadd.f32 %v3752_v62, %v3008_v25  ;;  %v3019_v42 = vadd.f32 %v8178_v18, %v10664_v53 }
 0x22b   :  { %v3010_v10 = vpop.f32.mrf.mxu1  ;;  %v8248_v39 = vpop.f32.mrf.mxu0 }
 0x22c   :  { %v10889_v58 = vadd.f32 %v8244_v12, %v3019_v42  ;;  %v3011_v61 = vadd.f32 %v3010_v10, %v10674_v4 }
 0x22d   :  { %v8181_v23 = vpop.f32.mrf.mxu1  ;;  %8344 = vmatmul.mubr.msk.bf16.gmra.mxu1 %vm2241_vm9, %v10552_v13  ;;  %v3771_v40 = vpop.f32.mrf.mxu0 }
 0x22e   :  { %v10894_v45 = vadd.f32 %v3755_v17, %v3011_v61  ;;  %v3032_v62 = vadd.f32 %v8181_v23, %v10686_v20  ;;  %8347 = vmatprep.mubr.msk.bf16.mxu1 %vm2241_vm9, %v10245_v16  ;;  %v10908_v17 = vcombine.low %v10815_v33, %v10819_v37  ;;  %v12556_v23 = vld [vmem:[#allocation37_spill] sm:$0xff] }
 0x22f   :  { %v3023_v53 = vpop.f32.mrf.mxu1  ;;  %v8251_v6 = vpop.f32.mrf.mxu0  ;;  %8414 = vmatmul.mubr.msk.bf16.gmra.mxu0 %vm2241_vm9, %v10887_v22  ;;  %v12572_v22 = vld [vmem:[#allocation93_spill] sm:$0xff] }
 0x230   :  { %v10901_v12 = vadd.f32 %v8247_v9, %v3032_v62  ;;  %v3024_v4 = vadd.f32 %v3023_v53, %v10693_v52  ;;  %8485 = vmatprep.mubr.msk.bf16.mxu0 %vm2241_vm9, %v10049_v36 }
 0x231   :  { %v8182_v59 = vpop.f32.mrf.mxu1  ;;  %v3784_v20 = vpop.f32.mrf.mxu0 }
 0x232   :  { %v10910_v25 = vadd.f32 %v3768_v24, %v3024_v4  ;;  %v3035_v47 = vadd.f32 %v8182_v59, %v10703_v50 }
 0x233   :  { %v3026_v0 = vpop.f32.mrf.mxu1  ;;  %v8252_v18 = vpop.f32.mrf.mxu0 }
 0x234   :  { %v10913_v42 = vadd.f32 %v8248_v39, %v3035_v47  ;;  %v3027_v9 = vadd.f32 %v3026_v0, %v10713_v38  ;;  %v12557_v0 = vld [vmem:[#allocation38_spill] sm:$0xff] }
 0x235   :  { %v8185_v52 = vpop.f32.mrf.mxu1  ;;  %8348 = vmatmul.mubr.msk.bf16.gmra.mxu1 %vm2241_vm9, %v10908_v17  ;;  %v3787_v36 = vpop.f32.mrf.mxu0 }
 0x236   :  { %v10918_v10 = vadd.f32 %v3771_v40, %v3027_v9  ;;  %v3048_v61 = vadd.f32 %v8185_v52, %v10723_v26  ;;  %8419 = vmatprep.mubr.msk.bf16.mxu1 %vm2241_vm9, %v12556_v23 }
 0x237   :  { %v3039_v24 = vpop.f32.mrf.mxu1  ;;  %v8255_v50 = vpop.f32.mrf.mxu0  ;;  %8486 = vmatmul.mubr.msk.bf16.vlgmr.msra.gmra.mxu0 %vm2241_vm9, %v10075_v44 }
 0x238   :  { %v10925_v39 = vadd.f32 %v8251_v6, %v3048_v61  ;;  %v3040_v38 = vadd.f32 %v3039_v24, %v10735_v14  ;;  %8616 = vmatpush3.bf16.msra.mxu0 %v10615_v55  ;;  %8489 = vmatprep.mubr.msk.bf16.mxu0 %vm2241_vm9, %v10083_v19  ;;  %v12558_v19 = vld [vmem:[#allocation70_spill] sm:$0xff] }
 0x239   :  { %v8186_v40 = vpop.f32.mrf.mxu1  ;;  %v3800_v62 = vpop.f32.mrf.mxu0 }
 0x23a   :  { %v10931_v26 = vadd.f32 %v3784_v20, %v3040_v38  ;;  %v3051_v53 = vadd.f32 %v8186_v40, %v10737_v54  ;;  %v12559_v20 = vld [vmem:[#allocation39_spill] sm:$0xff] }
 0x23b   :  { %v3042_v4 = vpop.f32.mrf.mxu1  ;;  %v8256_v59 = vpop.f32.mrf.mxu0 }
 0x23c   :  { %v10934_v47 = vadd.f32 %v8252_v18, %v3051_v53  ;;  %v3043_v44 = vadd.f32 %v3042_v4, %v10743_v49  ;;  %v12560_v18 = vld [vmem:[#allocation73_spill] sm:$0xff] }
 0x23d   :  { %v8189_v6 = vpop.f32.mrf.mxu1  ;;  %8420 = vmatmul.mubr.msk.bf16.vlgmr.msra.gmra.mxu1 %vm2241_vm9, %v12557_v0  ;;  %v3803_v55 = vpop.f32.mrf.mxu0 }
 0x23e   :  { %v10939_v14 = vadd.f32 %v3787_v36, %v3043_v44  ;;  %v3064_v9 = vadd.f32 %v8189_v6, %v12558_v19  ;;  %8550 = vmatpush3.bf16.msra.mxu1 %v10604_v41  ;;  %8423 = vmatprep.mubr.msk.bf16.mxu1 %vm2241_vm9, %v12559_v20  ;;  %v12561_v41 = vld [vmem:[#allocation78_spill] sm:$0xff]  ;;  %v12563_v44 = vld [vmem:[#allocation81_spill] sm:$0xff] }
 0x23f   :  { %v3055_v54 = vpop.f32.mrf.mxu1  ;;  %v8259_v52 = vpop.f32.mrf.mxu0  ;;  %8490 = vmatmul.mubr.msk.bf16.gmra.mxu0 %vm2241_vm9, %v10088_v31 }
 0x240   :  { %v10947_v49 = vadd.f32 %v8255_v50, %v3064_v9  ;;  %v3056_v61 = vadd.f32 %v3055_v54, %v12560_v18  ;;  %8493 = vmatprep.mubr.msk.bf16.mxu0 %vm2241_vm9, %v10149_v51  ;;  %v12564_v50 = vld [vmem:[#allocation40_spill] sm:$0xff]  ;;  %v12566_v51 = vld [vmem:[#allocation86_spill] sm:$0xff]  ;;  %v12567_v18 = vld [vmem:[#allocation41_spill] sm:$0xff] }
 0x241   :  { %v8190_v36 = vpop.f32.mrf.mxu1  ;;  %v3816_v23 = vpop.f32.mrf.mxu0 }
 0x242   :  { %v10952_v24 = vadd.f32 %v3800_v62, %v3056_v61  ;;  %v3067_v38 = vadd.f32 %v8190_v36, %v12561_v41  ;;  %v12569_v36 = vld [vmem:[#allocation89_spill] sm:$0xff] }
 0x243   :  { %v3058_v40 = vpop.f32.mrf.mxu1  ;;  %v8260_v53 = vpop.f32.mrf.mxu0 }
 0x244   :  { %v10955_v4 = vadd.f32 %v8256_v59, %v3067_v38  ;;  %v3059_v6 = vadd.f32 %v3058_v40, %v12563_v44 }
 0x245   :  { %v8193_v31 = vpop.f32.mrf.mxu1  ;;  %8424 = vmatmul.mubr.msk.bf16.gmra.mxu1 %vm2241_vm9, %v12564_v50  ;;  %v3819_v19 = vpop.f32.mrf.mxu0 }
 0x246   :  { %12562 = vst [vmem:[#allocation37_spill] sm:$0xff] %v10955_v4  ;;  %v10960_v9 = vadd.f32 %v3803_v55, %v3059_v6  ;;  %v3080_v54 = vadd.f32 %v8193_v31, %v12566_v51  ;;  %8427 = vmatprep.mubr.msk.bf16.mxu1 %vm2241_vm9, %v12567_v18  ;;  %v12624_v4 = vld [vmem:[#allocation48_spill] sm:$0xff] }
 0x247   :  { %v3071_v62 = vpop.f32.mrf.mxu1  ;;  %v8263_v61 = vpop.f32.mrf.mxu0  ;;  %8494 = vmatmul.mubr.msk.bf16.gmra.mxu0 %vm2241_vm9, %v10178_v60 }
 0x248   :  { %12565 = vst [vmem:[#allocation38_spill] sm:$0xff] %v10960_v9  ;;  %v10967_v59 = vadd.f32 %v8259_v52, %v3080_v54  ;;  %v3072_v41 = vadd.f32 %v3071_v62, %v12569_v36  ;;  %8497 = vmatprep.mubr.msk.bf16.mxu0 %vm2241_vm9, %v10187_v48  ;;  %v12573_v52 = vld [vmem:[#allocation43_spill] sm:$0xff]  ;;  %v12575_v48 = vld [vmem:[#allocation96_spill] sm:$0xff] }
 0x249   :  { %v8194_v38 = vpop.f32.mrf.mxu1  ;;  %v3832_v55 = vpop.f32.mrf.mxu0 }
 0x24a   :  { %12568 = vst [vmem:[#allocation70_spill] sm:$0xff] %v10967_v59  ;;  %v10972_v40 = vadd.f32 %v3816_v23, %v3072_v41  ;;  %v3083_v44 = vadd.f32 %v8194_v38, %v10495_v27  ;;  %v12577_v41 = vld [vmem:[#allocation53_spill] sm:$0xff] }
 0x24b   :  { %v3074_v6 = vpop.f32.mrf.mxu1  ;;  %v8264_v31 = vpop.f32.mrf.mxu0 }
 0x24c   :  { %12570 = vst [vmem:[#allocation39_spill] sm:$0xff] %v10972_v40  ;;  %v10975_v51 = vadd.f32 %v8260_v53, %v3083_v44  ;;  %v3075_v34 = vadd.f32 %v3074_v6, %v12572_v22  ;;  %v12579_v22 = vld [vmem:[#allocation97_spill] sm:$0xff]  ;;  %v12580_v44 = vld [vmem:[#allocation54_spill] sm:$0xff] }
 0x24d   :  { %v8197_v60 = vpop.f32.mrf.mxu1  ;;  %8428 = vmatmul.mubr.msk.bf16.gmra.mxu1 %vm2241_vm9, %v12573_v52  ;;  %v3835_v54 = vpop.f32.mrf.mxu0 }
 0x24e   :  { %12571 = vst [vmem:[#allocation73_spill] sm:$0xff] %v10975_v51  ;;  %v10980_v62 = vadd.f32 %v3819_v19, %v3075_v34  ;;  %v3096_v36 = vadd.f32 %v8197_v60, %v12575_v48  ;;  %8431 = vmatprep.mubr.msk.bf16.mxu1 %vm2241_vm9, %v12576_v29  ;;  %v12582_v60 = vld [vmem:[#allocation98_spill] sm:$0xff]  ;;  %v12584_v51 = vld [vmem:[#allocation99_spill] sm:$0xff] }
 0x24f   :  { %v3087_v23 = vpop.f32.mrf.mxu1  ;;  %v8267_v27 = vpop.f32.mrf.mxu0  ;;  %8498 = vmatmul.mubr.msk.bf16.gmra.mxu0 %vm2241_vm9, %v12577_v41  ;;  %v12623_v29 = vld [vmem:[#allocation114_spill] sm:$0xff] }
 0x250   :  { %12574 = vst [vmem:[#allocation78_spill] sm:$0xff] %v10980_v62  ;;  %v10987_v53 = vadd.f32 %v8263_v61, %v3096_v36  ;;  %v3088_v38 = vadd.f32 %v3087_v23, %v12579_v22  ;;  %8501 = vmatprep.mubr.msk.bf16.mxu0 %vm2241_vm9, %v12580_v44  ;;  %v12585_v61 = vld [vmem:[#allocation49_spill] sm:$0xff]  ;;  %v12587_v22 = vld [vmem:[#allocation100_spill] sm:$0xff] }
 0x251   :  { %v8198_v6 = vpop.f32.mrf.mxu1  ;;  %v3848_v34 = vpop.f32.mrf.mxu0 }
 0x252   :  { %12578 = vst [vmem:[#allocation81_spill] sm:$0xff] %v10987_v53  ;;  %v10992_v19 = vadd.f32 %v3832_v55, %v3088_v38  ;;  %v3099_v48 = vadd.f32 %v8198_v6, %v12582_v60  ;;  %v12588_v53 = vld [vmem:[#allocation51_spill] sm:$0xff]  ;;  %v12589_v6 = vld [vmem:[#allocation57_spill] sm:$0xff]  ;;  %v12592_v60 = vld [vmem:[#allocation58_spill] sm:$0xff] }
 0x253   :  { %v3090_v46 = vpop.f32.mrf.mxu1  ;;  %v8268_v2 = vpop.f32.mrf.mxu0 }
 0x254   :  { %12581 = vst [vmem:[#allocation40_spill] sm:$0xff] %v10992_v19  ;;  %v10995_v62 = vadd.f32 %v8264_v31, %v3099_v48  ;;  %v3091_v40 = vadd.f32 %v3090_v46, %v12584_v51  ;;  %v12591_v46 = vld [vmem:[#allocation101_spill] sm:$0xff] }
 0x255   :  { %v8201_v41 = vpop.f32.mrf.mxu1  ;;  %8432 = vmatmul.mubr.msk.bf16.gmra.mxu1 %vm2241_vm9, %v12585_v61  ;;  %v3851_v36 = vpop.f32.mrf.mxu0 }
 0x256   :  { %12583 = vst [vmem:[#allocation86_spill] sm:$0xff] %v10995_v62  ;;  %v11000_v23 = vadd.f32 %v3835_v54, %v3091_v40  ;;  %v3112_v44 = vadd.f32 %v8201_v41, %v12587_v22  ;;  %8435 = vmatprep.mubr.msk.bf16.mxu1 %vm2241_vm9, %v12588_v53  ;;  %v12594_v41 = vld [vmem:[#allocation102_spill] sm:$0xff]  ;;  %v12596_v53 = vld [vmem:[#allocation103_spill] sm:$0xff] }
 0x257   :  { %v3103_v55 = vpop.f32.mrf.mxu1  ;;  %v8271_v38 = vpop.f32.mrf.mxu0  ;;  %8502 = vmatmul.mubr.msk.bf16.gmra.mxu0 %vm2241_vm9, %v12589_v6 }
 0x258   :  { %12586 = vst [vmem:[#allocation41_spill] sm:$0xff] %v11000_v23  ;;  %v11007_v31 = vadd.f32 %v8267_v27, %v3112_v44  ;;  %v3104_v51 = vadd.f32 %v3103_v55, %v12591_v46  ;;  %8505 = vmatprep.mubr.msk.bf16.mxu0 %vm2241_vm9, %v12592_v60  ;;  %v12597_v27 = vld [vmem:[#allocation52_spill] sm:$0xff] }
 0x259   :  { %v8202_v48 = vpop.f32.mrf.mxu1  ;;  %v3864_v40 = vpop.f32.mrf.mxu0  ;;  %v12599_v46 = vld [vmem:[#allocation104_spill] sm:$0xff] }
 0x25a   :  { %12590 = vst [vmem:[#allocation89_spill] sm:$0xff] %v11007_v31  ;;  %v11012_v54 = vadd.f32 %v3848_v34, %v3104_v51  ;;  %v3115_v22 = vadd.f32 %v8202_v48, %v12594_v41  ;;  %v12600_v31 = vld [vmem:[#allocation55_spill] sm:$0xff]  ;;  %v12601_v48 = vld [vmem:[#allocation42_spill] sm:$0xff]  ;;  %v12604_v41 = vld [vmem:[#allocation44_spill] sm:$0xff] }
 0x25b   :  { %v3106_v23 = vpop.f32.mrf.mxu1  ;;  %v8272_v62 = vpop.f32.mrf.mxu0 }
 0x25c   :  { %12593 = vst [vmem:[#allocation93_spill] sm:$0xff] %v11012_v54  ;;  %v11015_v19 = vadd.f32 %v8268_v2, %v3115_v22  ;;  %v3107_v61 = vadd.f32 %v3106_v23, %v12596_v53  ;;  %v12603_v53 = vld [vmem:[#allocation105_spill] sm:$0xff] }
 0x25d   :  { %v8205_v6 = vpop.f32.mrf.mxu1  ;;  %8436 = vmatmul.mubr.msk.bf16.gmra.mxu1 %vm2241_vm9, %v12597_v27  ;;  %v3867_v44 = vpop.f32.mrf.mxu0 }
 0x25e   :  { %12595 = vst [vmem:[#allocation43_spill] sm:$0xff] %v11015_v19  ;;  %v11020_v55 = vadd.f32 %v3851_v36, %v3107_v61  ;;  %v3128_v60 = vadd.f32 %v8205_v6, %v12599_v46  ;;  %8439 = vmatprep.mubr.msk.bf16.mxu1 %vm2241_vm9, %v12600_v31  ;;  %v12606_v6 = vld [vmem:[#allocation106_spill] sm:$0xff]  ;;  %v12608_v31 = vld [vmem:[#allocation107_spill] sm:$0xff] }
 0x25f   :  { %v3119_v34 = vpop.f32.mrf.mxu1  ;;  %v8275_v51 = vpop.f32.mrf.mxu0  ;;  %8506 = vmatmul.mubr.msk.bf16.gmra.mxu0 %vm2241_vm9, %v12601_v48 }
 0x260   :  { %12598 = vst [vmem:[#allocation96_spill] sm:$0xff] %v11020_v55  ;;  %v11027_v2 = vadd.f32 %v8271_v38, %v3128_v60  ;;  %v3120_v23 = vadd.f32 %v3119_v34, %v12603_v53  ;;  %8509 = vmatprep.mubr.msk.bf16.mxu0 %vm2241_vm9, %v12604_v41  ;;  %v12609_v38 = vld [vmem:[#allocation56_spill] sm:$0xff] }
 0x261   :  { %v8206_v22 = vpop.f32.mrf.mxu1  ;;  %v3880_v61 = vpop.f32.mrf.mxu0  ;;  %v12611_v53 = vld [vmem:[#allocation108_spill] sm:$0xff] }
 0x262   :  { %12602 = vst [vmem:[#allocation53_spill] sm:$0xff] %v11027_v2  ;;  %v11032_v36 = vadd.f32 %v3864_v40, %v3120_v23  ;;  %v3131_v46 = vadd.f32 %v8206_v22, %v12606_v6  ;;  %v12612_v2 = vld [vmem:[#allocation46_spill] sm:$0xff] }
 0x263   :  { %v3122_v55 = vpop.f32.mrf.mxu1  ;;  %v8276_v19 = vpop.f32.mrf.mxu0  ;;  %v12613_v40 = vld [vmem:[#allocation110_spill] sm:$0xff] }
 0x264   :  { %12605 = vst [vmem:[#allocation97_spill] sm:$0xff] %v11032_v36  ;;  %v11035_v54 = vadd.f32 %v8272_v62, %v3131_v46  ;;  %v3123_v27 = vadd.f32 %v3122_v55, %v12608_v31  ;;  %v4787_v23 = vrot.slane %v12613_v40, 5  ;;  %v12614_v62 = vld [vmem:[#allocation45_spill] sm:$0xff]  ;;  %v12616_v55 = vld [vmem:[#allocation111_spill] sm:$0xff] }
 0x265   :  { %v8209_v48 = vpop.f32.mrf.mxu1  ;;  %8440 = vmatmul.mubr.msk.bf16.gmra.mxu1 %vm2241_vm9, %v12609_v38  ;;  %v3883_v60 = vpop.f32.mrf.mxu0 }
 0x266   :  { %12607 = vst [vmem:[#allocation54_spill] sm:$0xff] %v11035_v54  ;;  %v11040_v34 = vadd.f32 %v3867_v44, %v3123_v27  ;;  %v3144_v41 = vadd.f32 %v8209_v48, %v12611_v53  ;;  %8443 = vmatprep.mubr.msk.bf16.mxu1 %vm2241_vm9, %v12612_v2  ;;  %v12617_v54 = vld [vmem:[#allocation119_spill] sm:$0xff]  ;;  %v11053_v27 = vld [vmem:[#allocation2 + $0xcc] sm:$0xf]  ;;  %v11055_v44 = vld [vmem:[#allocation2 + $0xd0] sm:$0xf] }
 0x267   :  { %v3135_v22 = vpop.f32.mrf.mxu1  ;;  %v8279_v6 = vpop.f32.mrf.mxu0  ;;  %8510 = vmatmul.mubr.msk.bf16.gmra.mxu0 %vm2241_vm9, %v12614_v62  ;;  %v12620_v2 = vld [vmem:[#allocation112_spill] sm:$0xff]  ;;  %v4789_v62 = vrot.slane %v4787_v23, 4 }
 0x268   :  { %12610 = vst [vmem:[#allocation98_spill] sm:$0xff] %v11040_v34  ;;  %v11048_v31 = vadd.f32 %v8275_v51, %v3144_v41  ;;  %v3136_v46 = vadd.f32 %v3135_v22, %v12616_v55  ;;  %8513 = vmatprep.mubr.msk.bf16.mxu0 %vm2241_vm9, %v12617_v54  ;;  %v12618_v34 = vld [vmem:[#allocation109_spill] sm:$0xff]  ;;  %v7491_v54 = vcombine.low %v11053_v27, %v11055_v44 }
 0x269   :  { %v8210_v48 = vpop.f32.mrf.mxu1  ;;  %v3896_v53 = vpop.f32.mrf.mxu0  ;;  %v7453_v40 = vrot.slane %v12618_v34, 9  ;;  %v12621_v51 = vld [vmem:[#allocation113_spill] sm:$0xff] }
 0x26a   :  { %12615 = vst [vmem:[#allocation99_spill] sm:$0xff] %v11048_v31  ;;  %v11058_v36 = vadd.f32 %v3880_v61, %v3136_v46  ;;  %v3147_v38 = vadd.f32 %v8210_v48, %v12620_v2  ;;  %v4790_v41 = vrot.slane %v12621_v51, 5  ;;  %v12626_v2 = vld [vmem:[#allocation115_spill] sm:$0xff]  ;;  %v12627_v48 = vld [vmem:[#allocation50_spill] sm:$0xff] }
 0x26b   :  { %v3138_v31 = vpop.f32.mrf.mxu1  ;;  %v8280_v22 = vpop.f32.mrf.mxu0 }
 0x26c   :  { %12619 = vst [vmem:[#allocation100_spill] sm:$0xff] %v11058_v36  ;;  %v11064_v55 = vadd.f32 %v8276_v19, %v3147_v38  ;;  %v3139_v59 = vadd.f32 %v3138_v31, %v12623_v29  ;;  %v4788_v36 = vsel %vm9939_vm1, %v7453_v40, %v4787_v23  ;;  %v4791_v19 = vsel %vm9939_vm1, %v4789_v62, %v4790_v41  ;;  %v12633_v23 = vld [vmem:[#allocation118_spill] sm:$0xff] }
 0x26d   :  { %v8213_v9 = vpop.f32.mrf.mxu1  ;;  %8444 = vmatmul.mubr.msk.bf16.gmra.mxu1 %vm2241_vm9, %v12624_v4  ;;  %v3899_v61 = vpop.f32.mrf.mxu0 }
 0x26e   :  { %12622 = vst [vmem:[#allocation57_spill] sm:$0xff] %v11064_v55  ;;  %v11069_v34 = vadd.f32 %v3883_v60, %v3139_v59  ;;  %v3160_v46 = vadd.f32 %v8213_v9, %v12626_v2  ;;  %8447 = vmatprep.mubr.msk.bf16.mxu1 %vm2241_vm9, %v12627_v48  ;;  %v12630_v55 = vld [vmem:[#allocation116_spill] sm:$0xff]  ;;  %v12631_v60 = vld [vmem:[#allocation62_spill] sm:$0xff]  ;;  %v11084_v2 = vcombine.low %v4788_v36, %v4791_v19 }
 0x26f   :  { %v3151_v38 = vpop.f32.mrf.mxu1  ;;  %v8283_v29 = vpop.f32.mrf.mxu0  ;;  %8514 = vmatmul.mubr.msk.bf16.gmra.mxu0 %vm2241_vm9, %v7491_v54  ;;  %v12635_v54 = vld [vmem:[#allocation7_spill] sm:$0xff]  ;;  %v12637_v36 = vld [vmem:[#allocation120_spill] sm:$0xff] }
 0x270   :  { %12625 = vst [vmem:[#allocation101_spill] sm:$0xff] %v11069_v34  ;;  %v11079_v31 = vadd.f32 %v8279_v6, %v3160_v46  ;;  %v3152_v59 = vadd.f32 %v3151_v38, %v12630_v55  ;;  %8517 = vmatprep.mubr.msk.bf16.mxu0 %vm2241_vm9, %v12631_v60  ;;  %v12638_v60 = vld [vmem:[#allocation60_spill] sm:$0xff] }
 0x271   :  { %v8214_v9 = vpop.f32.mrf.mxu1  ;;  %v3912_v34 = vpop.f32.mrf.mxu0 }
 0x272   :  { %12629 = vst [vmem:[#allocation58_spill] sm:$0xff] %v11079_v31  ;;  %v11086_v48 = vadd.f32 %v3896_v53, %v3152_v59  ;;  %v3163_v40 = vadd.f32 %v8214_v9, %v12633_v23  ;;  %v12639_v9 = vld [vmem:[#allocation65_spill] sm:$0xff] }
 0x273   :  { %v3154_v62 = vpop.f32.mrf.mxu1  ;;  %v8284_v41 = vpop.f32.mrf.mxu0  ;;  %v12641_v23 = vld [vmem:[#allocation121_spill] sm:$0xff] }
 0x274   :  { %12632 = vst [vmem:[#allocation102_spill] sm:$0xff] %v11086_v48  ;;  %v11089_v4 = vadd.f32 %v8280_v22, %v3163_v40  ;;  %v3155_v6 = vadd.f32 %v3154_v62, %v12635_v54  ;;  %v12642_v62 = vld [vmem:[#allocation66_spill] sm:$0xff]  ;;  %v12646_v48 = vld [vmem:[#allocation123_spill] sm:$0xff] }
 0x275   :  { %v8217_v46 = vpop.f32.mrf.mxu1  ;;  %8448 = vmatmul.mubr.msk.bf16.gmra.mxu1 %vm2241_vm9, %v11084_v2  ;;  %v3915_v55 = vpop.f32.mrf.mxu0 }
 0x276   :  { %12634 = vst [vmem:[#allocation103_spill] sm:$0xff] %v11089_v4  ;;  %v11094_v38 = vadd.f32 %v3899_v61, %v3155_v6  ;;  %v3176_v19 = vadd.f32 %v8217_v46, %v12637_v36  ;;  %8451 = vmatprep.mubr.msk.bf16.mxu1 %vm2241_vm9, %v12638_v60  ;;  %v12644_v46 = vld [vmem:[#allocation122_spill] sm:$0xff] }
 0x277   :  { %v3167_v53 = vpop.f32.mrf.mxu1  ;;  %v8355_v59 = vpop.f32.mrf.mxu0  ;;  %8518 = vmatmul.mubr.msk.bf16.gmra.mxu0 %vm2241_vm9, %v12639_v9 }
 0x278   :  { %12636 = vst [vmem:[#allocation104_spill] sm:$0xff] %v11094_v38  ;;  %v11101_v22 = vadd.f32 %v8283_v29, %v3176_v19  ;;  %v3168_v40 = vadd.f32 %v3167_v53, %v12641_v23  ;;  %8521 = vmatprep.mubr.msk.bf16.mxu0 %vm2241_vm9, %v12642_v62  ;;  %v12647_v29 = vld [vmem:[#allocation61_spill] sm:$0xff]  ;;  %v12649_v23 = vld [vmem:[#allocation124_spill] sm:$0xff] }
 0x279   :  { %v8218_v54 = vpop.f32.mrf.mxu1  ;;  %v4464_v61 = vpop.f32.mrf.mxu0 }
 0x27a   :  { %12640 = vst [vmem:[#allocation42_spill] sm:$0xff] %v11101_v22  ;;  %v11106_v6 = vadd.f32 %v3912_v34, %v3168_v40  ;;  %v3179_v36 = vadd.f32 %v8218_v54, %v12644_v46  ;;  %v12650_v22 = vld [vmem:[#allocation63_spill] sm:$0xff]  ;;  %v12651_v54 = vld [vmem:[#allocation72_spill] sm:$0xff] }
 0x27b   :  { %v3170_v38 = vpop.f32.mrf.mxu1  ;;  %v8356_v60 = vpop.f32.mrf.mxu0 }
 0x27c   :  { %12643 = vst [vmem:[#allocation105_spill] sm:$0xff] %v11106_v6  ;;  %v11109_v4 = vadd.f32 %v8284_v41, %v3179_v36  ;;  %v3171_v31 = vadd.f32 %v3170_v38, %v12646_v48  ;;  %v12652_v48 = vld [vmem:[#allocation68_spill] sm:$0xff]  ;;  %v12654_v36 = vld [vmem:[#allocation71_spill] sm:$0xff] }
 0x27d   :  { %v8289_v9 = vpop.f32.mrf.mxu1  ;;  %8452 = vmatmul.mubr.msk.bf16.gmra.mxu1 %vm2241_vm9, %v12647_v29  ;;  %v4467_v19 = vpop.f32.mrf.mxu0  ;;  %v12656_v6 = vld [vmem:[#allocation76_spill] sm:$0xff] }
 0x27e   :  { %12645 = vst [vmem:[#allocation44_spill] sm:$0xff] %v11109_v4  ;;  %v11114_v53 = vadd.f32 %v3915_v55, %v3171_v31  ;;  %v4303_v62 = vadd.f32 %v8289_v9, %v12649_v23  ;;  %8455 = vmatprep.mubr.msk.bf16.mxu1 %vm2241_vm9, %v12650_v22 }
 0x27f   :  { %v4046_v34 = vpop.f32.mrf.mxu1  ;;  %v8359_v40 = vpop.f32.mrf.mxu0  ;;  %8522 = vmatmul.mubr.msk.bf16.gmra.mxu0 %vm2241_vm9, %v12651_v54 }
 0x280   :  { %12648 = vst [vmem:[#allocation106_spill] sm:$0xff] %v11114_v53  ;;  %v11121_v41 = vadd.f32 %v8355_v59, %v4303_v62  ;;  %v4301_v38 = vadd.f32 %v4046_v34, %v12652_v48  ;;  %8525 = vmatprep.mubr.msk.bf16.mxu0 %vm2241_vm9, %v12537_v63  ;;  %v12657_v59 = vld [vmem:[#allocation64_spill] sm:$0xff]  ;;  %v12659_v48 = vld [vmem:[#allocation67_spill] sm:$0xff] }
 0x281   :  { %v8290_v46 = vpop.f32.mrf.mxu1  ;;  %v4480_v31 = vpop.f32.mrf.mxu0 }
 0x282   :  { %v11126_v55 = vadd.f32 %v4464_v61, %v4301_v38  ;;  %v4304_v9 = vadd.f32 %v8290_v46, %v12654_v36  ;;  %v12662_v36 = vld [vmem:[#allocation82_spill] sm:$0xff] }
 0x283   :  { %v4049_v23 = vpop.f32.mrf.mxu1  ;;  %v8360_v53 = vpop.f32.mrf.mxu0 }
 0x284   :  { %12653 = vst [vmem:[#allocation107_spill] sm:$0xff] %v11126_v55  ;;  %v11129_v4 = vadd.f32 %v8356_v60, %v4304_v9  ;;  %v4302_v22 = vadd.f32 %v4049_v23, %v12656_v6  ;;  %v12661_v6 = vld [vmem:[#allocation79_spill] sm:$0xff] }
 0x285   :  { %v8293_v54 = vpop.f32.mrf.mxu1  ;;  %8456 = vmatmul.mubr.msk.bf16.gmra.mxu1 %vm2241_vm9, %v12657_v59  ;;  %v4483_v62 = vpop.f32.mrf.mxu0  ;;  %v12666_v55 = vld [vmem:[#allocation87_spill] sm:$0xff] }
 0x286   :  { %12655 = vst [vmem:[#allocation108_spill] sm:$0xff] %v11129_v4  ;;  %v11134_v34 = vadd.f32 %v4467_v19, %v4302_v22  ;;  %v4307_v63 = vadd.f32 %v8293_v54, %v10784_v11  ;;  %8459 = vmatprep.mubr.msk.bf16.mxu1 %vm2241_vm9, %v12659_v48  ;;  %v12664_v11 = vld [vmem:[#allocation84_spill] sm:$0xff] }
 0x287   :  { %v4062_v61 = vpop.f32.mrf.mxu1  ;;  %v8363_v38 = vpop.f32.mrf.mxu0  ;;  %8526 = vmatmul.mubr.msk.bf16.gmra.mxu0 %vm2241_vm9, %v12539_v1 }
 0x288   :  { %12658 = vst [vmem:[#allocation110_spill] sm:$0xff] %v11134_v34  ;;  %v11141_v60 = vadd.f32 %v8359_v40, %v4307_v63  ;;  %v4305_v46 = vadd.f32 %v4062_v61, %v12661_v6  ;;  %8529 = vmatprep.mubr.msk.bf16.mxu0 %vm2241_vm9, %v12662_v36  ;;  %v12667_v40 = vld [vmem:[#allocation69_spill] sm:$0xff]  ;;  %v12669_v6 = vld [vmem:[#allocation91_spill] sm:$0xff] }
 0x289   :  { %v8294_v9 = vpop.f32.mrf.mxu1  ;;  %v4496_v22 = vpop.f32.mrf.mxu0 }
 0x28a   :  { %12660 = vst [vmem:[#allocation45_spill] sm:$0xff] %v11141_v60  ;;  %v11146_v19 = vadd.f32 %v4480_v31, %v4305_v46  ;;  %v4308_v23 = vadd.f32 %v8294_v9, %v12664_v11  ;;  %v12670_v60 = vld [vmem:[#allocation75_spill] sm:$0xff]  ;;  %v12671_v9 = vld [vmem:[#allocation88_spill] sm:$0xff] }
 0x28b   :  { %v4065_v54 = vpop.f32.mrf.mxu1  ;;  %v8364_v34 = vpop.f32.mrf.mxu0 }
 0x28c   :  { %12663 = vst [vmem:[#allocation111_spill] sm:$0xff] %v11146_v19  ;;  %v11149_v4 = vadd.f32 %v8360_v53, %v4308_v23  ;;  %v4306_v48 = vadd.f32 %v4065_v54, %v12666_v55  ;;  %v12673_v55 = vld [vmem:[#allocation74_spill] sm:$0xff]  ;;  %v12674_v54 = vld [vmem:[#allocation80_spill] sm:$0xff]  ;;  %v12675_v19 = vld [vmem:[#allocation125_spill] sm:$0xff] }
 0x28d   :  { %v8297_v1 = vpop.f32.mrf.mxu1  ;;  %8460 = vmatmul.mubr.msk.bf16.gmra.mxu1 %vm2241_vm9, %v12667_v40  ;;  %v4499_v63 = vpop.f32.mrf.mxu0 }
 0x28e   :  { %12665 = vst [vmem:[#allocation119_spill] sm:$0xff] %v11149_v4  ;;  %v11154_v61 = vadd.f32 %v4483_v62, %v4306_v48  ;;  %v4311_v36 = vadd.f32 %v8297_v1, %v12669_v6  ;;  %8463 = vmatprep.mubr.msk.bf16.mxu1 %vm2241_vm9, %v12670_v60 }
 0x28f   :  { %v4078_v31 = vpop.f32.mrf.mxu1  ;;  %v8367_v46 = vpop.f32.mrf.mxu0  ;;  %8530 = vmatmul.mubr.msk.bf16.gmra.mxu0 %vm2241_vm9, %v12671_v9 }
 0x290   :  { %12668 = vst [vmem:[#allocation109_spill] sm:$0xff] %v11154_v61  ;;  %v11161_v53 = vadd.f32 %v8363_v38, %v4311_v36  ;;  %v4309_v11 = vadd.f32 %v4078_v31, %v12673_v55  ;;  %8533 = vmatprep.mubr.msk.bf16.mxu0 %vm2241_vm9, %v10483_v21  ;;  %v12676_v38 = vld [vmem:[#allocation77_spill] sm:$0xff]  ;;  %v12678_v21 = vld [vmem:[#allocation126_spill] sm:$0xff] }
 0x291   :  { %v8298_v23 = vpop.f32.mrf.mxu1  ;;  %v4512_v62 = vpop.f32.mrf.mxu0 }
 0x292   :  { %12672 = vst [vmem:[#allocation112_spill] sm:$0xff] %v11161_v53  ;;  %v11166_v48 = vadd.f32 %v4496_v22, %v4309_v11  ;;  %v4312_v1 = vadd.f32 %v8298_v23, %v12674_v54  ;;  %v12679_v53 = vld [vmem:[#allocation83_spill] sm:$0xff] }
 0x293   :  { %v4081_v6 = vpop.f32.mrf.mxu1  ;;  %v8368_v61 = vpop.f32.mrf.mxu0 }
 0x294   :  { %v11169_v4 = vadd.f32 %v8364_v34, %v4312_v1  ;;  %v4310_v60 = vadd.f32 %v4081_v6, %v12675_v19 }
 0x295   :  { %v8301_v9 = vpop.f32.mrf.mxu1  ;;  %8464 = vmatmul.mubr.msk.bf16.gmra.mxu1 %vm2241_vm9, %v12676_v38  ;;  %v4515_v36 = vpop.f32.mrf.mxu0 }
 0x296   :  { %v11174_v31 = vadd.f32 %v4499_v63, %v4310_v60  ;;  %v4315_v55 = vadd.f32 %v8301_v9, %v12678_v21  ;;  %8467 = vmatprep.mubr.msk.bf16.mxu1 %vm2241_vm9, %v12679_v53  ;;  %v12680_v21 = vld [vmem:[#allocation127_spill] sm:$0xff] }
 0x297   :  { %v4094_v22 = vpop.f32.mrf.mxu1  ;;  %v8371_v11 = vpop.f32.mrf.mxu0  ;;  %8534 = vmatmul.mubr.msk.bf16.gmra.mxu0 %vm2241_vm9, %v10504_v30 }
 0x298   :  { %12677 = vst [vmem:[#allocation113_spill] sm:$0xff] %v11174_v31  ;;  %v11181_v34 = vadd.f32 %v8367_v46, %v4315_v55  ;;  %v4313_v19 = vadd.f32 %v4094_v22, %v10837_v3  ;;  %8537 = vmatprep.mubr.msk.bf16.mxu0 %vm2241_vm9, %v10523_v28  ;;  %v12681_v46 = vld [vmem:[#allocation85_spill] sm:$0xff]  ;;  %v12682_v22 = vld [vmem:[#allocation90_spill] sm:$0xff] }
 0x299   :  { %v8302_v23 = vpop.f32.mrf.mxu1  ;;  %v4528_v60 = vpop.f32.mrf.mxu0 }
 0x29a   :  { %v11186_v63 = vadd.f32 %v4512_v62, %v4313_v19  ;;  %v4316_v54 = vadd.f32 %v8302_v23, %v10840_v35 }
 0x29b   :  { %v4097_v1 = vpop.f32.mrf.mxu1  ;;  %v8372_v6 = vpop.f32.mrf.mxu0 }
 0x29c   :  { %v11189_v9 = vadd.f32 %v8368_v61, %v4316_v54  ;;  %v4314_v31 = vadd.f32 %v4097_v1, %v12680_v21 }
 0x29d   :  { %v8305_v30 = vpop.f32.mrf.mxu1  ;;  %8468 = vmatmul.mubr.msk.bf16.gmra.mxu1 %vm2241_vm9, %v12681_v46  ;;  %v4531_v3 = vpop.f32.mrf.mxu0 }
 0x29e   :  { %v11194_v55 = vadd.f32 %v4515_v36, %v4314_v31  ;;  %v4319_v28 = vadd.f32 %v8305_v30, %v10854_v32  ;;  %8471 = vmatprep.mubr.msk.bf16.mxu1 %vm2241_vm9, %v12682_v22 }
 0x29f   :  { %v4110_v62 = vpop.f32.mrf.mxu1  ;;  %v8375_v35 = vpop.f32.mrf.mxu0  ;;  %8538 = vmatmul.mubr.msk.bf16.gmra.mxu0 %vm2241_vm9, %v10546_v5 }
 0x2a0   :  { %v11201_v61 = vadd.f32 %v8371_v11, %v4319_v28  ;;  %v4317_v19 = vadd.f32 %v4110_v62, %v10860_v43  ;;  %8541 = vmatprep.mubr.msk.bf16.mxu0 %vm2241_vm9, %v10552_v13  ;;  %v12683_v11 = vld [vmem:[#allocation92_spill] sm:$0xff]  ;;  %v12685_v62 = vld [vmem:[#allocation94_spill] sm:$0xff] }
 0x2a1   :  { %v8306_v23 = vpop.f32.mrf.mxu1  ;;  %v4544_v36 = vpop.f32.mrf.mxu0 }
 0x2a2   :  { %v11206_v31 = vadd.f32 %v4528_v60, %v4317_v19  ;;  %v4320_v32 = vadd.f32 %v8306_v23, %v10863_v7  ;;  %v4794_v7 = vrot.slane %v10819_v37, 5  ;;  %v7454_v37 = vrot.slane %v10815_v33, 9 }
 0x2a3   :  { %v4113_v54 = vpop.f32.mrf.mxu1  ;;  %v8376_v1 = vpop.f32.mrf.mxu0 }
 0x2a4   :  { %v11209_v21 = vadd.f32 %v8372_v6, %v4320_v32  ;;  %v4318_v30 = vadd.f32 %v4113_v54, %v10868_v57 }
 0x2a5   :  { %v8309_v5 = vpop.f32.mrf.mxu1  ;;  %8472 = vmatmul.mubr.msk.bf16.gmra.mxu1 %vm2241_vm9, %v12683_v11  ;;  %v4547_v43 = vpop.f32.mrf.mxu0 }
 0x2a6   :  { %v11214_v28 = vadd.f32 %v4531_v3, %v4318_v30  ;;  %v4323_v13 = vadd.f32 %v8309_v5, %v10875_v8  ;;  %8475 = vmatprep.mubr.msk.bf16.mxu1 %vm2241_vm9, %v12685_v62  ;;  %v11227_v3 = vld [vmem:[#allocation2 + $0x1a4] sm:$0xf]  ;;  %v11229_v8 = vld [vmem:[#allocation2 + $0x1a8] sm:$0xf] }
 0x2a7   :  { %v4126_v60 = vpop.f32.mrf.mxu1  ;;  %v8379_v19 = vpop.f32.mrf.mxu0  ;;  %8542 = vmatmul.mubr.msk.bf16.gmra.mxu0 %vm2241_vm9, %v10245_v16  ;;  %v4796_v16 = vrot.slane %v4794_v7, 4 }
 0x2a8   :  { %12684 = vst [vmem:[#allocation114_spill] sm:$0xff] %v11214_v28  ;;  %v11222_v57 = vadd.f32 %v8375_v35, %v4323_v13  ;;  %v4321_v6 = vadd.f32 %v4126_v60, %v10884_v56  ;;  %8545 = vmatprep.mubr.msk.bf16.mxu0 %vm2241_vm9, %v10908_v17  ;;  %v4797_v35 = vrot.slane %v10845_v15, 5  ;;  %v7492_v17 = vcombine.low %v11227_v3, %v11229_v8  ;;  %v12687_v28 = vld [vmem:[#allocation95_spill] sm:$0xff] }
 0x2a9   :  { %v8310_v23 = vpop.f32.mrf.mxu1  ;;  %v4560_v32 = vpop.f32.mrf.mxu0  ;;  %v4795_v15 = vsel %vm9939_vm1, %v7454_v37, %v4794_v7 }
 0x2aa   :  { %12686 = vst [vmem:[#allocation115_spill] sm:$0xff] %v11222_v57  ;;  %v11232_v54 = vadd.f32 %v4544_v36, %v4321_v6  ;;  %v4324_v30 = vadd.f32 %v8310_v23, %v10889_v58  ;;  %v12688_v6 = vld [vmem:[#allocation59_spill] sm:$0xff] }
 0x2ab   :  { %v4129_v5 = vpop.f32.mrf.mxu1  ;;  %v8380_v56 = vpop.f32.mrf.mxu0 }
 0x2ac   :  { %v11238_v13 = vadd.f32 %v8376_v1, %v4324_v30  ;;  %v4322_v60 = vadd.f32 %v4129_v5, %v10894_v45  ;;  %v4798_v1 = vsel %vm9939_vm1, %v4796_v16, %v4797_v35 }
 0x2ad   :  { %v8313_v57 = vpop.f32.mrf.mxu1  ;;  %8476 = vmatmul.mubr.msk.bf16.gmra.mxu1 %vm2241_vm9, %v12687_v28  ;;  %v4563_v33 = vpop.f32.mrf.mxu0 }
 0x2ae   :  { %v11243_v36 = vadd.f32 %v4547_v43, %v4322_v60  ;;  %v4327_v58 = vadd.f32 %v8313_v57, %v10901_v12  ;;  %8479 = vmatprep.mubr.msk.bf16.mxu1 %vm2241_vm9, %v12688_v6  ;;  %v11258_v57 = vcombine.low %v4795_v15, %v4798_v1  ;;  %v12689_v15 = vld [vmem:[#allocation8_spill] sm:$0xff] }
 0x2af   :  { %v4142_v23 = vpop.f32.mrf.mxu1  ;;  %v8383_v45 = vpop.f32.mrf.mxu0  ;;  %8546 = vmatmul.mubr.msk.bf16.gmra.mxu0 %vm2241_vm9, %v7492_v17 }
 0x2b0   :  { %v11253_v30 = vadd.f32 %v8379_v19, %v4327_v58  ;;  %v4325_v43 = vadd.f32 %v4142_v23, %v10910_v25  ;;  %8617 = vmatprep.mubr.msk.bf16.mxu0 %vm2241_vm9, %v12557_v0 }
 0x2b1   :  { %v8314_v12 = vpop.f32.mrf.mxu1  ;;  %v4576_v5 = vpop.f32.mrf.mxu0 }
 0x2b2   :  { %v11260_v60 = vadd.f32 %v4560_v32, %v4325_v43  ;;  %v4328_v7 = vadd.f32 %v8314_v12, %v10913_v42 }
 0x2b3   :  { %v4145_v37 = vpop.f32.mrf.mxu1  ;;  %v8384_v16 = vpop.f32.mrf.mxu0 }
 0x2b4   :  { %v11263_v35 = vadd.f32 %v8380_v56, %v4328_v7  ;;  %v4326_v19 = vadd.f32 %v4145_v37, %v10918_v10 }
 0x2b5   :  { %v8317_v17 = vpop.f32.mrf.mxu1  ;;  %8480 = vmatmul.mubr.msk.bf16.gmra.mxu1 %vm2241_vm9, %v11258_v57  ;;  %v4579_v25 = vpop.f32.mrf.mxu0 }
 0x2b6   :  { %v11268_v0 = vadd.f32 %v4563_v33, %v4326_v19  ;;  %v4331_v58 = vadd.f32 %v8317_v17, %v10925_v39  ;;  %8551 = vmatprep.mubr.msk.bf16.mxu1 %vm2241_vm9, %v12689_v15  ;;  %v12694_v17 = vld [vmem:[#allocation12_spill] sm:$0xff] }
 0x2b7   :  { %v4158_v32 = vpop.f32.mrf.mxu1  ;;  %v8387_v42 = vpop.f32.mrf.mxu0  ;;  %8618 = vmatmul.mubr.msk.bf16.vlgmr.msra.gmra.mxu0 %vm2241_vm9, %v12559_v20 }
 0x2b8   :  { %v11275_v56 = vadd.f32 %v8383_v45, %v4331_v58  ;;  %v4329_v10 = vadd.f32 %v4158_v32, %v10931_v26  ;;  %8621 = vmatprep.mubr.msk.bf16.mxu0 %vm2241_vm9, %v12564_v50  ;;  %v12692_v45 = vld [vmem:[#allocation10_spill] sm:$0xff] }
 0x2b9   :  { %v8318_v1 = vpop.f32.mrf.mxu1  ;;  %v4592_v33 = vpop.f32.mrf.mxu0 }
 0x2ba   :  { %v11280_v23 = vadd.f32 %v4576_v5, %v4329_v10  ;;  %v4332_v39 = vadd.f32 %v8318_v1, %v10934_v47 }
 0x2bb   :  { %v4161_v43 = vpop.f32.mrf.mxu1  ;;  %v8388_v12 = vpop.f32.mrf.mxu0 }
 0x2bc   :  { %12690 = vst [vmem:[#allocation33_spill] sm:$0xff] %v11280_v23  ;;  %v11283_v7 = vadd.f32 %v8384_v16, %v4332_v39  ;;  %v4330_v37 = vadd.f32 %v4161_v43, %v10939_v14  ;;  %v12699_v43 = vld [vmem:[#allocation38_spill] sm:$0xff] }
 0x2bd   :  { %v8321_v20 = vpop.f32.mrf.mxu1  ;;  %8552 = vmatmul.mubr.msk.bf16.vlgmr.msra.gmra.mxu1 %vm2241_vm9, %v12692_v45  ;;  %v4595_v26 = vpop.f32.mrf.mxu0 }
 0x2be   :  { %12691 = vst [vmem:[#allocation116_spill] sm:$0xff] %v11283_v7  ;;  %v11288_v19 = vadd.f32 %v4579_v25, %v4330_v37  ;;  %v4335_v50 = vadd.f32 %v8321_v20, %v10947_v49  ;;  %8555 = vmatprep.mubr.msk.bf16.mxu1 %vm2241_vm9, %v12694_v17  ;;  %v12697_v49 = vld [vmem:[#allocation37_spill] sm:$0xff] }
 0x2bf   :  { %v4174_v5 = vpop.f32.mrf.mxu1  ;;  %v8391_v47 = vpop.f32.mrf.mxu0  ;;  %8622 = vmatmul.mubr.msk.bf16.gmra.mxu0 %vm2241_vm9, %v12567_v18 }
 0x2c0   :  { %12693 = vst [vmem:[#allocation62_spill] sm:$0xff] %v11288_v19  ;;  %v11295_v16 = vadd.f32 %v8387_v42, %v4335_v50  ;;  %v4333_v14 = vadd.f32 %v4174_v5, %v10952_v24  ;;  %8625 = vmatprep.mubr.msk.bf16.mxu0 %vm2241_vm9, %v12573_v52  ;;  %v12700_v42 = vld [vmem:[#allocation14_spill] sm:$0xff]  ;;  %v12703_v50 = vld [vmem:[#allocation16_spill] sm:$0xff]  ;;  %v12704_v5 = vld [vmem:[#allocation47_spill] sm:$0xff] }
 0x2c1   :  { %v8322_v58 = vpop.f32.mrf.mxu1  ;;  %v4608_v25 = vpop.f32.mrf.mxu0  ;;  %v12702_v52 = vld [vmem:[#allocation70_spill] sm:$0xff] }
 0x2c2   :  { %12695 = vst [vmem:[#allocation118_spill] sm:$0xff] %v11295_v16  ;;  %v11300_v15 = vadd.f32 %v4592_v33, %v4333_v14  ;;  %v4336_v32 = vadd.f32 %v8322_v58, %v12697_v49  ;;  %v12706_v14 = vld [vmem:[#allocation39_spill] sm:$0xff]  ;;  %v12707_v49 = vld [vmem:[#allocation49_spill] sm:$0xff] }
 0x2c3   :  { %v4177_v10 = vpop.f32.mrf.mxu1  ;;  %v8392_v1 = vpop.f32.mrf.mxu0 }
 0x2c4   :  { %12696 = vst [vmem:[#allocation7_spill] sm:$0xff] %v11300_v15  ;;  %v11303_v39 = vadd.f32 %v8388_v12, %v4336_v32  ;;  %v4334_v37 = vadd.f32 %v4177_v10, %v12699_v43  ;;  %v12709_v43 = vld [vmem:[#allocation73_spill] sm:$0xff] }
 0x2c5   :  { %v8325_v18 = vpop.f32.mrf.mxu1  ;;  %8556 = vmatmul.mubr.msk.bf16.gmra.mxu1 %vm2241_vm9, %v12700_v42  ;;  %v4611_v24 = vpop.f32.mrf.mxu0 }
 0x2c6   :  { %12698 = vst [vmem:[#allocation120_spill] sm:$0xff] %v11303_v39  ;;  %v11308_v20 = vadd.f32 %v4595_v26, %v4334_v37  ;;  %v4339_v45 = vadd.f32 %v8325_v18, %v12702_v52  ;;  %8559 = vmatprep.mubr.msk.bf16.mxu1 %vm2241_vm9, %v12703_v50  ;;  %v12711_v50 = vld [vmem:[#allocation78_spill] sm:$0xff] }
 0x2c7   :  { %v4190_v33 = vpop.f32.mrf.mxu1  ;;  %v8395_v17 = vpop.f32.mrf.mxu0  ;;  %8626 = vmatmul.mubr.msk.bf16.gmra.mxu0 %vm2241_vm9, %v12704_v5  ;;  %v12744_v39 = vld [vmem:[#allocation54_spill] sm:$0xff] }
 0x2c8   :  { %12701 = vst [vmem:[#allocation60_spill] sm:$0xff] %v11308_v20  ;;  %v11315_v12 = vadd.f32 %v8391_v47, %v4339_v45  ;;  %v4337_v58 = vadd.f32 %v4190_v33, %v12706_v14  ;;  %8629 = vmatprep.mubr.msk.bf16.mxu0 %vm2241_vm9, %v12707_v49  ;;  %v12712_v47 = vld [vmem:[#allocation18_spill] sm:$0xff]  ;;  %v12714_v14 = vld [vmem:[#allocation81_spill] sm:$0xff] }
 0x2c9   :  { %v8326_v32 = vpop.f32.mrf.mxu1  ;;  %v4624_v26 = vpop.f32.mrf.mxu0 }
 0x2ca   :  { %12705 = vst [vmem:[#allocation65_spill] sm:$0xff] %v11315_v12  ;;  %v11320_v10 = vadd.f32 %v4608_v25, %v4337_v58  ;;  %v4340_v37 = vadd.f32 %v8326_v32, %v12709_v43  ;;  %v12715_v12 = vld [vmem:[#allocation20_spill] sm:$0xff]  ;;  %v12716_v32 = vld [vmem:[#allocation51_spill] sm:$0xff] }
 0x2cb   :  { %v4193_v18 = vpop.f32.mrf.mxu1  ;;  %v8396_v42 = vpop.f32.mrf.mxu0  ;;  %v12718_v43 = vld [vmem:[#allocation40_spill] sm:$0xff] }
 0x2cc   :  { %12708 = vst [vmem:[#allocation121_spill] sm:$0xff] %v11320_v10  ;;  %v11323_v52 = vadd.f32 %v8392_v1, %v4340_v37  ;;  %v4338_v20 = vadd.f32 %v4193_v18, %v12711_v50  ;;  %v12719_v18 = vld [vmem:[#allocation52_spill] sm:$0xff] }
 0x2cd   :  { %v8329_v5 = vpop.f32.mrf.mxu1  ;;  %8560 = vmatmul.mubr.msk.bf16.gmra.mxu1 %vm2241_vm9, %v12712_v47  ;;  %v4627_v45 = vpop.f32.mrf.mxu0 }
 0x2ce   :  { %12710 = vst [vmem:[#allocation66_spill] sm:$0xff] %v11323_v52  ;;  %v11328_v33 = vadd.f32 %v4611_v24, %v4338_v20  ;;  %v4343_v49 = vadd.f32 %v8329_v5, %v12714_v14  ;;  %8563 = vmatprep.mubr.msk.bf16.mxu1 %vm2241_vm9, %v12715_v12  ;;  %v12721_v5 = vld [vmem:[#allocation86_spill] sm:$0xff]  ;;  %v12723_v52 = vld [vmem:[#allocation41_spill] sm:$0xff] }
 0x2cf   :  { %v4206_v25 = vpop.f32.mrf.mxu1  ;;  %v8399_v58 = vpop.f32.mrf.mxu0  ;;  %8630 = vmatmul.mubr.msk.bf16.gmra.mxu0 %vm2241_vm9, %v12716_v32 }
 0x2d0   :  { %12713 = vst [vmem:[#allocation122_spill] sm:$0xff] %v11328_v33  ;;  %v11335_v1 = vadd.f32 %v8395_v17, %v4343_v49  ;;  %v4341_v37 = vadd.f32 %v4206_v25, %v12718_v43  ;;  %8633 = vmatprep.mubr.msk.bf16.mxu0 %vm2241_vm9, %v12719_v18  ;;  %v12724_v17 = vld [vmem:[#allocation22_spill] sm:$0xff]  ;;  %v12726_v43 = vld [vmem:[#allocation89_spill] sm:$0xff] }
 0x2d1   :  { %v8330_v50 = vpop.f32.mrf.mxu1  ;;  %v4640_v24 = vpop.f32.mrf.mxu0 }
 0x2d2   :  { %12717 = vst [vmem:[#allocation123_spill] sm:$0xff] %v11335_v1  ;;  %v11340_v20 = vadd.f32 %v4624_v26, %v4341_v37  ;;  %v4344_v47 = vadd.f32 %v8330_v50, %v12721_v5  ;;  %v12727_v1 = vld [vmem:[#allocation24_spill] sm:$0xff]  ;;  %v12728_v50 = vld [vmem:[#allocation55_spill] sm:$0xff] }
 0x2d3   :  { %v4209_v14 = vpop.f32.mrf.mxu1  ;;  %v8400_v12 = vpop.f32.mrf.mxu0 }
 0x2d4   :  { %12720 = vst [vmem:[#allocation61_spill] sm:$0xff] %v11340_v20  ;;  %v11343_v33 = vadd.f32 %v8396_v42, %v4344_v47  ;;  %v4342_v10 = vadd.f32 %v4209_v14, %v12723_v52  ;;  %v12730_v52 = vld [vmem:[#allocation93_spill] sm:$0xff]  ;;  %v12731_v47 = vld [vmem:[#allocation56_spill] sm:$0xff] }
 0x2d5   :  { %v8333_v32 = vpop.f32.mrf.mxu1  ;;  %8564 = vmatmul.mubr.msk.bf16.gmra.mxu1 %vm2241_vm9, %v12724_v17  ;;  %v4643_v49 = vpop.f32.mrf.mxu0 }
 0x2d6   :  { %12722 = vst [vmem:[#allocation124_spill] sm:$0xff] %v11343_v33  ;;  %v11348_v25 = vadd.f32 %v4627_v45, %v4342_v10  ;;  %v4347_v18 = vadd.f32 %v8333_v32, %v12726_v43  ;;  %8567 = vmatprep.mubr.msk.bf16.mxu1 %vm2241_vm9, %v12727_v1  ;;  %v12733_v32 = vld [vmem:[#allocation43_spill] sm:$0xff]  ;;  %v12735_v33 = vld [vmem:[#allocation96_spill] sm:$0xff] }
 0x2d7   :  { %v4222_v26 = vpop.f32.mrf.mxu1  ;;  %v8403_v37 = vpop.f32.mrf.mxu0  ;;  %8634 = vmatmul.mubr.msk.bf16.gmra.mxu0 %vm2241_vm9, %v12728_v50  ;;  %v12736_v50 = vld [vmem:[#allocation26_spill] sm:$0xff] }
 0x2d8   :  { %12725 = vst [vmem:[#allocation72_spill] sm:$0xff] %v11348_v25  ;;  %v11355_v42 = vadd.f32 %v8399_v58, %v4347_v18  ;;  %v4345_v5 = vadd.f32 %v4222_v26, %v12730_v52  ;;  %8637 = vmatprep.mubr.msk.bf16.mxu0 %vm2241_vm9, %v12731_v47  ;;  %v5544_v58 = vshrl.u32 %v11053_v27, 16  ;;  %v5547_v18 = vshll.u32 %v11053_v27, 16  ;;  %v12738_v47 = vld [vmem:[#allocation53_spill] sm:$0xff] }
 0x2d9   :  { %v8334_v14 = vpop.f32.mrf.mxu1  ;;  %v4656_v10 = vpop.f32.mrf.mxu0 }
 0x2da   :  { %12729 = vst [vmem:[#allocation68_spill] sm:$0xff] %v11355_v42  ;;  %v11360_v45 = vadd.f32 %v4640_v24, %v4345_v5  ;;  %v4348_v17 = vadd.f32 %v8334_v14, %v12733_v32  ;;  %v5557_v24 = vshrl.u32 %v11055_v44, 16  ;;  %v12739_v32 = vld [vmem:[#allocation28_spill] sm:$0xff] }
 0x2db   :  { %v4225_v43 = vpop.f32.mrf.mxu1  ;;  %v8404_v1 = vpop.f32.mrf.mxu0  ;;  %v12743_v42 = vld [vmem:[#allocation48_spill] sm:$0xff] }
 0x2dc   :  { %12732 = vst [vmem:[#allocation71_spill] sm:$0xff] %v11360_v45  ;;  %v11363_v25 = vadd.f32 %v8400_v12, %v4348_v17  ;;  %v4346_v20 = vadd.f32 %v4225_v43, %v12735_v33  ;;  %v5553_v33 = vshll.u32 %v11055_v44, 16  ;;  %v12740_v43 = vld [vmem:[#allocation46_spill] sm:$0xff]  ;;  %v5559_v19 = vrot.slane %v5557_v24, 4 }
 0x2dd   :  { %v8337_v26 = vpop.f32.mrf.mxu1  ;;  %8568 = vmatmul.mubr.msk.bf16.gmra.mxu1 %vm2241_vm9, %v12736_v50  ;;  %v4659_v52 = vpop.f32.mrf.mxu0  ;;  %v12742_v50 = vld [vmem:[#allocation97_spill] sm:$0xff] }
 0x2de   :  { %12734 = vst [vmem:[#allocation76_spill] sm:$0xff] %v11363_v25  ;;  %v11371_v5 = vadd.f32 %v4643_v49, %v4346_v20  ;;  %v4351_v14 = vadd.f32 %v8337_v26, %v12738_v47  ;;  %8571 = vmatprep.mubr.msk.bf16.mxu1 %vm2241_vm9, %v12739_v32  ;;  %v5965_v20 = vrot.slane %v11055_v44, 5  ;;  %v5546_v47 = vrot.slane %v5544_v58, 4  ;;  %v12747_v58 = vld [vmem:[#allocation30_spill] sm:$0xff] }
 0x2df   :  { %v4238_v12 = vpop.f32.mrf.mxu1  ;;  %v8407_v17 = vpop.f32.mrf.mxu0  ;;  %8638 = vmatmul.mubr.msk.bf16.gmra.mxu0 %vm2241_vm9, %v12740_v43  ;;  %v5549_v32 = vrot.slane %v5547_v18, 5  ;;  %v5555_v16 = vrot.slane %v5553_v33, 5  ;;  %v12748_v18 = vld [vmem:[#allocation99_spill] sm:$0xff]  ;;  %v12749_v33 = vld [vmem:[#allocation32_spill] sm:$0xff] }
 0x2e0   :  { %12737 = vst [vmem:[#allocation64_spill] sm:$0xff] %v11371_v5  ;;  %v11379_v25 = vadd.f32 %v8403_v37, %v4351_v14  ;;  %v4349_v45 = vadd.f32 %v4238_v12, %v12742_v50  ;;  %8641 = vmatprep.mubr.msk.bf16.mxu0 %vm2241_vm9, %v12743_v42  ;;  %v1316_v14 = vld [vmem:[#allocation2 + $0xd4] sm:$0x1]  ;;  %v7560_v12 = vrot.slane %v11053_v27, 9  ;;  %v5967_v44 = vrot.slane %v5965_v20, 4 }
 0x2e1   :  { %v8338_v49 = vpop.f32.mrf.mxu1  ;;  %v4672_v26 = vpop.f32.mrf.mxu0  ;;  %v12746_v42 = vld [vmem:[#allocation98_spill] sm:$0xff]  ;;  %v5968_v7 = vrot.slane %v1316_v14, 5  ;;  %v5560_v27 = vor.u32 %v5559_v19, %v5555_v16 }
 0x2e2   :  { %12741 = vst [vmem:[#allocation79_spill] sm:$0xff] %v11379_v25  ;;  %v11385_v5 = vadd.f32 %v4656_v10, %v4349_v45  ;;  %v4352_v15 = vadd.f32 %v8338_v49, %v12744_v39  ;;  %v5550_v45 = vor.u32 %v5549_v32, %v5546_v47 }
 0x2e3   :  { %v4241_v43 = vpop.f32.mrf.mxu1  ;;  %v8408_v37 = vpop.f32.mrf.mxu0 }
 0x2e4   :  { %v11389_v50 = vadd.f32 %v8404_v1, %v4352_v15  ;;  %v4350_v25 = vadd.f32 %v4241_v43, %v12746_v42  ;;  %v5563_v15 = vshll.u32 %v1316_v14, 16  ;;  %v12750_v43 = vld [vmem:[#allocation50_spill] sm:$0xff]  ;;  %v5551_v47 = vrot.slane %v5550_v45, 4  ;;  %v12753_v14 = vld [vmem:[#allocation57_spill] sm:$0xff] }
 0x2e5   :  { %v8341_v23 = vpop.f32.mrf.mxu1  ;;  %8572 = vmatmul.mubr.msk.bf16.gmra.mxu1 %vm2241_vm9, %v12747_v58  ;;  %v4675_v10 = vpop.f32.mrf.mxu0 }
 0x2e6   :  { %12745 = vst [vmem:[#allocation82_spill] sm:$0xff] %v11389_v50  ;;  %v11394_v39 = vadd.f32 %v4659_v52, %v4350_v25  ;;  %v4355_v24 = vadd.f32 %v8341_v23, %v12748_v18  ;;  %8575 = vmatprep.mubr.msk.bf16.mxu1 %vm2241_vm9, %v12749_v33  ;;  %v12752_v50 = vld [vmem:[#allocation100_spill] sm:$0xff]  ;;  %v5966_v23 = vsel %vm9939_vm1, %v7560_v12, %v5965_v20  ;;  %v12755_v12 = vld [vmem:[#allocation35_spill] sm:$0xff] }
 0x2e7   :  { %v4254_v1 = vpop.f32.mrf.mxu1  ;;  %v8411_v49 = vpop.f32.mrf.mxu0  ;;  %8642 = vmatmul.mubr.msk.bf16.gmra.mxu0 %vm2241_vm9, %v12750_v43  ;;  %v5969_v25 = vsel %vm9939_vm1, %v5967_v44, %v5968_v7 }
 0x2e8   :  { %v11401_v42 = vadd.f32 %v8407_v17, %v4355_v24  ;;  %v4353_v58 = vadd.f32 %v4254_v1, %v12752_v50  ;;  %8645 = vmatprep.mubr.msk.bf16.mxu0 %vm2241_vm9, %v11084_v2  ;;  %v5561_v17 = vrot.slane %v5560_v27, 4  ;;  %v5565_v24 = vrot.slane %v5563_v15, 5  ;;  %v12754_v2 = vld [vmem:[#allocation101_spill] sm:$0xff] }
 0x2e9   :  { %v8342_v19 = vpop.f32.mrf.mxu1  ;;  %v4688_v52 = vpop.f32.mrf.mxu0  ;;  %v7563_v1 = vcombine.low %v5966_v23, %v5969_v25  ;;  %v5556_v15 = vsel %vm9141_vm12, %v5551_v47, %v5555_v16  ;;  %v12760_v16 = vld [vmem:[#allocation103_spill] sm:$0xff] }
 0x2ea   :  { %12751 = vst [vmem:[#allocation84_spill] sm:$0xff] %v11401_v42  ;;  %v11410_v32 = vadd.f32 %v4672_v26, %v4353_v58  ;;  %v4356_v18 = vadd.f32 %v8342_v19, %v12753_v14  ;;  %v12756_v26 = vld [vmem:[#allocation58_spill] sm:$0xff]  ;;  %v12757_v58 = vld [vmem:[#allocation117_spill] sm:$0xff] }
 0x2eb   :  { %v4257_v33 = vpop.f32.mrf.mxu1  ;;  %v8412_v50 = vpop.f32.mrf.mxu0  ;;  %v12759_v14 = vld [vmem:[#allocation102_spill] sm:$0xff] }
 0x2ec   :  { %v11413_v43 = vadd.f32 %v8408_v37, %v4356_v18  ;;  %v4354_v42 = vadd.f32 %v4257_v33, %v12754_v2  ;;  %v5566_v37 = vsel %vm9141_vm12, %v5561_v17, %v5565_v24 }
 0x2ed   :  { %v8345_v20 = vpop.f32.mrf.mxu1  ;;  %8576 = vmatmul.mubr.msk.bf16.gmra.mxu1 %vm2241_vm9, %v12755_v12  ;;  %v4691_v7 = vpop.f32.mrf.mxu0  ;;  %v7526_v18 = vcombine.low %v5556_v15, %v5566_v37  ;;  %v12761_v12 = vld [vmem:[#allocation104_spill] sm:$0xff]  ;;  %v12763_v15 = vld [vmem:[#allocation9_spill] sm:$0xff] }
 0x2ee   :  { %v11418_v44 = vadd.f32 %v4675_v10, %v4354_v42  ;;  %v4359_v45 = vadd.f32 %v8345_v20, %v12756_v26  ;;  %8579 = vmatprep.mubr.msk.bf16.mxu1 %vm2241_vm9, %v12757_v58 }
 0x2ef   :  { %v4270_v23 = vpop.f32.mrf.mxu1  ;;  %v8415_v25 = vpop.f32.mrf.mxu0  ;;  %8646 = vmatmul.mubr.msk.bf16.gmra.mxu0 %vm2241_vm9, %v7563_v1 }
 0x2f0   :  { %v11428_v19 = vadd.f32 %v8411_v49, %v4359_v45  ;;  %v4357_v10 = vadd.f32 %v4270_v23, %v12759_v14  ;;  %8649 = vmatprep.mubr.msk.bf16.mxu0 %vm2241_vm9, %v12647_v29  ;;  %v12762_v29 = vld [vmem:[#allocation42_spill] sm:$0xff]  ;;  %v12764_v23 = vld [vmem:[#allocation63_spill] sm:$0xff]  ;;  %v12765_v14 = vld [vmem:[#allocation105_spill] sm:$0xff] }
 0x2f1   :  { %v8346_v42 = vpop.f32.mrf.mxu1  ;;  %v4704_v33 = vpop.f32.mrf.mxu0 }
 0x2f2   :  { %v11433_v2 = vadd.f32 %v4688_v52, %v4357_v10  ;;  %v4360_v47 = vadd.f32 %v8346_v42, %v12760_v16  ;;  %v12766_v16 = vld [vmem:[#allocation44_spill] sm:$0xff] }
 0x2f3   :  { %v4273_v20 = vpop.f32.mrf.mxu1  ;;  %v8416_v17 = vpop.f32.mrf.mxu0 }
 0x2f4   :  { %v11436_v24 = vadd.f32 %v8412_v50, %v4360_v47  ;;  %v4358_v1 = vadd.f32 %v4273_v20, %v12761_v12 }
 0x2f5   :  { %v8349_v49 = vpop.f32.mrf.mxu1  ;;  %8580 = vmatmul.mubr.msk.bf16.gmra.mxu1 %vm2241_vm9, %v7526_v18  ;;  %v4707_v26 = vpop.f32.mrf.mxu0 }
 0x2f6   :  { %v11440_v45 = vadd.f32 %v4691_v7, %v4358_v1  ;;  %v4363_v58 = vadd.f32 %v8349_v49, %v12762_v29  ;;  %8583 = vmatprep.mubr.msk.bf16.mxu1 %vm2241_vm9, %v12763_v15  ;;  %v12767_v49 = vld [vmem:[#allocation106_spill] sm:$0xff] }
 0x2f7   :  { %v4286_v52 = vpop.f32.mrf.mxu1  ;;  %v8487_v37 = vpop.f32.mrf.mxu0  ;;  %8650 = vmatmul.mubr.msk.bf16.gmra.mxu0 %vm2241_vm9, %v12764_v23  ;;  %v12770_v23 = vld [vmem:[#allocation13_spill] sm:$0xff] }
 0x2f8   :  { %v11447_v50 = vadd.f32 %v8415_v25, %v4363_v58  ;;  %v4361_v10 = vadd.f32 %v4286_v52, %v12765_v14  ;;  %8653 = vmatprep.mubr.msk.bf16.mxu0 %vm2241_vm9, %v12657_v59  ;;  %v12768_v25 = vld [vmem:[#allocation11_spill] sm:$0xff] }
 0x2f9   :  { %v8350_v42 = vpop.f32.mrf.mxu1  ;;  %v5224_v7 = vpop.f32.mrf.mxu0 }
 0x2fa   :  { %v11452_v18 = vadd.f32 %v4704_v33, %v4361_v10  ;;  %v4364_v47 = vadd.f32 %v8350_v42, %v12766_v16  ;;  %v12771_v10 = vld [vmem:[#allocation67_spill] sm:$0xff] }
 0x2fb   :  { %v4289_v20 = vpop.f32.mrf.mxu1  ;;  %v8488_v12 = vpop.f32.mrf.mxu0  ;;  %v12773_v42 = vld [vmem:[#allocation107_spill] sm:$0xff] }
 0x2fc   :  { %v11455_v1 = vadd.f32 %v8416_v17, %v4364_v47  ;;  %v4362_v29 = vadd.f32 %v4289_v20, %v12767_v49 }
 0x2fd   :  { %v8421_v15 = vpop.f32.mrf.mxu1  ;;  %8584 = vmatmul.mubr.msk.bf16.gmra.mxu1 %vm2241_vm9, %v12768_v25  ;;  %v5227_v58 = vpop.f32.mrf.mxu0 }
 0x2fe   :  { %v11460_v52 = vadd.f32 %v4707_v26, %v4362_v29  ;;  %v5107_v59 = vadd.f32 %v8421_v15, %v11121_v41  ;;  %8587 = vmatprep.mubr.msk.bf16.mxu1 %vm2241_vm9, %v12770_v23  ;;  %v12774_v41 = vld [vmem:[#allocation108_spill] sm:$0xff]  ;;  %v12776_v23 = vld [vmem:[#allocation110_spill] sm:$0xff] }
 0x2ff   :  { %v4850_v33 = vpop.f32.mrf.mxu1  ;;  %v8491_v14 = vpop.f32.mrf.mxu0  ;;  %8654 = vmatmul.mubr.msk.bf16.gmra.mxu0 %vm2241_vm9, %v12771_v10 }
 0x300   :  { %12769 = vst [vmem:[#allocation87_spill] sm:$0xff] %v11460_v52  ;;  %v11467_v17 = vadd.f32 %v8487_v37, %v5107_v59  ;;  %v5105_v16 = vadd.f32 %v4850_v33, %v12773_v42  ;;  %8657 = vmatprep.mubr.msk.bf16.mxu0 %vm2241_vm9, %v12667_v40  ;;  %v12777_v37 = vld [vmem:[#allocation15_spill] sm:$0xff]  ;;  %v12779_v40 = vld [vmem:[#allocation45_spill] sm:$0xff] }
 0x301   :  { %v8422_v47 = vpop.f32.mrf.mxu1  ;;  %v5240_v26 = vpop.f32.mrf.mxu0 }
 0x302   :  { %12772 = vst [vmem:[#allocation69_spill] sm:$0xff] %v11467_v17  ;;  %v11472_v20 = vadd.f32 %v5224_v7, %v5105_v16  ;;  %v5108_v49 = vadd.f32 %v8422_v47, %v12774_v41  ;;  %v12780_v17 = vld [vmem:[#allocation17_spill] sm:$0xff]  ;;  %v12781_v47 = vld [vmem:[#allocation75_spill] sm:$0xff] }
 0x303   :  { %v4853_v29 = vpop.f32.mrf.mxu1  ;;  %v8492_v15 = vpop.f32.mrf.mxu0  ;;  %v12783_v41 = vld [vmem:[#allocation111_spill] sm:$0xff] }
 0x304   :  { %v11475_v25 = vadd.f32 %v8488_v12, %v5108_v49  ;;  %v5106_v52 = vadd.f32 %v4853_v29, %v12776_v23  ;;  %v12784_v23 = vld [vmem:[#allocation119_spill] sm:$0xff] }
 0x305   :  { %v8425_v10 = vpop.f32.mrf.mxu1  ;;  %8588 = vmatmul.mubr.msk.bf16.gmra.mxu1 %vm2241_vm9, %v12777_v37  ;;  %v5243_v59 = vpop.f32.mrf.mxu0 }
 0x306   :  { %12775 = vst [vmem:[#allocation91_spill] sm:$0xff] %v11475_v25  ;;  %v11480_v33 = vadd.f32 %v5227_v58, %v5106_v52  ;;  %v5111_v42 = vadd.f32 %v8425_v10, %v12779_v40  ;;  %8591 = vmatprep.mubr.msk.bf16.mxu1 %vm2241_vm9, %v12780_v17 }
 0x307   :  { %v4866_v7 = vpop.f32.mrf.mxu1  ;;  %v8495_v16 = vpop.f32.mrf.mxu0  ;;  %8658 = vmatmul.mubr.msk.bf16.gmra.mxu0 %vm2241_vm9, %v12781_v47 }
 0x308   :  { %12778 = vst [vmem:[#allocation88_spill] sm:$0xff] %v11480_v33  ;;  %v11487_v12 = vadd.f32 %v8491_v14, %v5111_v42  ;;  %v5109_v49 = vadd.f32 %v4866_v7, %v12783_v41  ;;  %8661 = vmatprep.mubr.msk.bf16.mxu0 %vm2241_vm9, %v12676_v38  ;;  %v12785_v33 = vld [vmem:[#allocation109_spill] sm:$0xff]  ;;  %v12786_v14 = vld [vmem:[#allocation19_spill] sm:$0xff]  ;;  %v12787_v38 = vld [vmem:[#allocation112_spill] sm:$0xff] }
 0x309   :  { %v8426_v29 = vpop.f32.mrf.mxu1  ;;  %v5256_v58 = vpop.f32.mrf.mxu0 }
 0x30a   :  { %12782 = vst [vmem:[#allocation74_spill] sm:$0xff] %v11487_v12  ;;  %v11492_v52 = vadd.f32 %v5240_v26, %v5109_v49  ;;  %v5112_v10 = vadd.f32 %v8426_v29, %v12784_v23  ;;  %v12788_v12 = vld [vmem:[#allocation21_spill] sm:$0xff] }
 0x30b   :  { %v4869_v37 = vpop.f32.mrf.mxu1  ;;  %v8496_v17 = vpop.f32.mrf.mxu0 }
 0x30c   :  { %v11495_v40 = vadd.f32 %v8492_v15, %v5112_v10  ;;  %v5110_v25 = vadd.f32 %v4869_v37, %v12785_v33 }
 0x30d   :  { %v8429_v47 = vpop.f32.mrf.mxu1  ;;  %8592 = vmatmul.mubr.msk.bf16.gmra.mxu1 %vm2241_vm9, %v12786_v14  ;;  %v5259_v42 = vpop.f32.mrf.mxu0 }
 0x30e   :  { %v11500_v7 = vadd.f32 %v5243_v59, %v5110_v25  ;;  %v5115_v41 = vadd.f32 %v8429_v47, %v12787_v38  ;;  %8595 = vmatprep.mubr.msk.bf16.mxu1 %vm2241_vm9, %v12788_v12  ;;  %v12789_v47 = vld [vmem:[#allocation113_spill] sm:$0xff] }
 0x30f   :  { %v4882_v26 = vpop.f32.mrf.mxu1  ;;  %v8499_v49 = vpop.f32.mrf.mxu0  ;;  %8662 = vmatmul.mubr.msk.bf16.gmra.mxu0 %vm2241_vm9, %v12679_v53 }
 0x310   :  { %v11507_v15 = vadd.f32 %v8495_v16, %v5115_v41  ;;  %v5113_v33 = vadd.f32 %v4882_v26, %v11166_v48  ;;  %8665 = vmatprep.mubr.msk.bf16.mxu0 %vm2241_vm9, %v12681_v46  ;;  %v12790_v16 = vld [vmem:[#allocation23_spill] sm:$0xff]  ;;  %v12791_v41 = vld [vmem:[#allocation25_spill] sm:$0xff] }
 0x311   :  { %v8430_v29 = vpop.f32.mrf.mxu1  ;;  %v5272_v25 = vpop.f32.mrf.mxu0 }
 0x312   :  { %v11512_v59 = vadd.f32 %v5256_v58, %v5113_v33  ;;  %v5116_v23 = vadd.f32 %v8430_v29, %v11169_v4 }
 0x313   :  { %v4885_v10 = vpop.f32.mrf.mxu1  ;;  %v8500_v12 = vpop.f32.mrf.mxu0 }
 0x314   :  { %v11515_v37 = vadd.f32 %v8496_v17, %v5116_v23  ;;  %v5114_v14 = vadd.f32 %v4885_v10, %v12789_v47 }
 0x315   :  { %v8433_v53 = vpop.f32.mrf.mxu1  ;;  %8596 = vmatmul.mubr.msk.bf16.gmra.mxu1 %vm2241_vm9, %v12790_v16  ;;  %v5275_v48 = vpop.f32.mrf.mxu0 }
 0x316   :  { %v11520_v38 = vadd.f32 %v5259_v42, %v5114_v14  ;;  %v5119_v46 = vadd.f32 %v8433_v53, %v11181_v34  ;;  %8599 = vmatprep.mubr.msk.bf16.mxu1 %vm2241_vm9, %v12791_v41  ;;  %v12793_v53 = vld [vmem:[#allocation27_spill] sm:$0xff] }
 0x317   :  { %v4898_v58 = vpop.f32.mrf.mxu1  ;;  %v8503_v4 = vpop.f32.mrf.mxu0  ;;  %8666 = vmatmul.mubr.msk.bf16.gmra.mxu0 %vm2241_vm9, %v12682_v22  ;;  %v5568_v22 = vshrl.u32 %v11227_v3, 16 }
 0x318   :  { %v11527_v17 = vadd.f32 %v8499_v49, %v5119_v46  ;;  %v5117_v26 = vadd.f32 %v4898_v58, %v11186_v63  ;;  %8669 = vmatprep.mubr.msk.bf16.mxu0 %vm2241_vm9, %v12683_v11  ;;  %v5571_v49 = vshll.u32 %v11227_v3, 16  ;;  %v12795_v46 = vld [vmem:[#allocation29_spill] sm:$0xff] }
 0x319   :  { %v8434_v33 = vpop.f32.mrf.mxu1  ;;  %v5288_v42 = vpop.f32.mrf.mxu0 }
 0x31a   :  { %v11532_v29 = vadd.f32 %v5272_v25, %v5117_v26  ;;  %v5120_v34 = vadd.f32 %v8434_v33, %v11189_v9  ;;  %v5581_v25 = vshrl.u32 %v11229_v8, 16 }
 0x31b   :  { %v4901_v23 = vpop.f32.mrf.mxu1  ;;  %v8504_v10 = vpop.f32.mrf.mxu0 }
 0x31c   :  { %v11535_v47 = vadd.f32 %v8500_v12, %v5120_v34  ;;  %v5118_v14 = vadd.f32 %v4901_v23, %v11194_v55  ;;  %v5577_v55 = vshll.u32 %v11229_v8, 16  ;;  %v5570_v34 = vrot.slane %v5568_v22, 4  ;;  %v12798_v22 = vld [vmem:[#allocation31_spill] sm:$0xff] }
 0x31d   :  { %v8437_v63 = vpop.f32.mrf.mxu1  ;;  %8600 = vmatmul.mubr.msk.bf16.gmra.mxu1 %vm2241_vm9, %v12793_v53  ;;  %v5291_v11 = vpop.f32.mrf.mxu0  ;;  %v5573_v23 = vrot.slane %v5571_v49, 5 }
 0x31e   :  { %12792 = vst [vmem:[#allocation80_spill] sm:$0xff] %v11535_v47  ;;  %v11543_v16 = vadd.f32 %v5275_v48, %v5118_v14  ;;  %v5123_v9 = vadd.f32 %v8437_v63, %v11201_v61  ;;  %8603 = vmatprep.mubr.msk.bf16.mxu1 %vm2241_vm9, %v12795_v46  ;;  %v5972_v48 = vrot.slane %v11229_v8, 5  ;;  %v5579_v53 = vrot.slane %v5577_v55, 5 }
 0x31f   :  { %v4914_v12 = vpop.f32.mrf.mxu1  ;;  %v8507_v41 = vpop.f32.mrf.mxu0  ;;  %8670 = vmatmul.mubr.msk.bf16.gmra.mxu0 %vm2241_vm9, %v12685_v62  ;;  %v5583_v46 = vrot.slane %v5581_v25, 4  ;;  %v5574_v49 = vor.u32 %v5573_v23, %v5570_v34  ;;  %v12799_v25 = vld [vmem:[#allocation115_spill] sm:$0xff] }
 0x320   :  { %12794 = vst [vmem:[#allocation125_spill] sm:$0xff] %v11543_v16  ;;  %v11551_v58 = vadd.f32 %v8503_v4, %v5123_v9  ;;  %v5121_v26 = vadd.f32 %v4914_v12, %v11206_v31  ;;  %8673 = vmatprep.mubr.msk.bf16.mxu0 %vm2241_vm9, %v12687_v28  ;;  %v1370_v9 = vld [vmem:[#allocation2 + $0x1ac] sm:$0x1]  ;;  %v7561_v31 = vrot.slane %v11227_v3, 9  ;;  %v12797_v28 = vld [vmem:[#allocation114_spill] sm:$0xff]  ;;  %v5974_v8 = vrot.slane %v5972_v48, 4 }
 0x321   :  { %v8438_v61 = vpop.f32.mrf.mxu1  ;;  %v5304_v33 = vpop.f32.mrf.mxu0  ;;  %v5975_v16 = vrot.slane %v1370_v9, 5  ;;  %v5584_v3 = vor.u32 %v5583_v46, %v5579_v53  ;;  %v5575_v23 = vrot.slane %v5574_v49, 4 }
 0x322   :  { %12796 = vst [vmem:[#allocation77_spill] sm:$0xff] %v11551_v58  ;;  %v11557_v14 = vadd.f32 %v5288_v42, %v5121_v26  ;;  %v5124_v63 = vadd.f32 %v8438_v61, %v11209_v21  ;;  %v12800_v26 = vld [vmem:[#allocation34_spill] sm:$0xff] }
 0x323   :  { %v4917_v62 = vpop.f32.mrf.mxu1  ;;  %v8508_v4 = vpop.f32.mrf.mxu0 }
 0x324   :  { %v11561_v12 = vadd.f32 %v8504_v10, %v5124_v63  ;;  %v5122_v58 = vadd.f32 %v4917_v62, %v12797_v28  ;;  %v5587_v10 = vshll.u32 %v1370_v9, 16 }
 0x325   :  { %v8441_v47 = vpop.f32.mrf.mxu1  ;;  %8604 = vmatmul.mubr.msk.bf16.gmra.mxu1 %vm2241_vm9, %v12798_v22  ;;  %v5307_v42 = vpop.f32.mrf.mxu0 }
 0x326   :  { %v11566_v21 = vadd.f32 %v5291_v11, %v5122_v58  ;;  %v5127_v55 = vadd.f32 %v8441_v47, %v12799_v25  ;;  %8607 = vmatprep.mubr.msk.bf16.mxu1 %vm2241_vm9, %v12800_v26  ;;  %v5973_v47 = vsel %vm9939_vm1, %v7561_v31, %v5972_v48  ;;  %v5976_v11 = vsel %vm9939_vm1, %v5974_v8, %v5975_v16  ;;  %v12801_v31 = vld [vmem:[#allocation36_spill] sm:$0xff] }
 0x327   :  { %v4930_v61 = vpop.f32.mrf.mxu1  ;;  %v8511_v63 = vpop.f32.mrf.mxu0  ;;  %8674 = vmatmul.mubr.msk.bf16.gmra.mxu0 %vm2241_vm9, %v12688_v6  ;;  %v5589_v9 = vrot.slane %v5587_v10, 5  ;;  %v7564_v25 = vcombine.low %v5973_v47, %v5976_v11  ;;  %v12802_v8 = vld [vmem:[#allocation128_spill] sm:$0xff] }
 0x328   :  { %v11573_v62 = vadd.f32 %v8507_v41, %v5127_v55  ;;  %v5125_v28 = vadd.f32 %v4930_v61, %v11232_v54  ;;  %8677 = vmatprep.mubr.msk.bf16.mxu0 %vm2241_vm9, %v11258_v57  ;;  %v5585_v41 = vrot.slane %v5584_v3, 4 }
 0x329   :  { %v8442_v58 = vpop.f32.mrf.mxu1  ;;  %v5320_v34 = vpop.f32.mrf.mxu0 }
 0x32a   :  { %v11582_v46 = vadd.f32 %v5304_v33, %v5125_v28  ;;  %v5128_v6 = vadd.f32 %v8442_v58, %v11238_v13  ;;  %v5580_v13 = vsel %vm9141_vm12, %v5575_v23, %v5579_v53 }
 0x32b   :  { %v4933_v22 = vpop.f32.mrf.mxu1  ;;  %v8512_v54 = vpop.f32.mrf.mxu0 }
 0x32c   :  { %v11585_v55 = vadd.f32 %v8508_v4, %v5128_v6  ;;  %v5126_v57 = vadd.f32 %v4933_v22, %v11243_v36  ;;  %v5590_v4 = vsel %vm9141_vm12, %v5585_v41, %v5589_v9  ;;  %v12803_v9 = vld [vmem:[#allocation33_spill] sm:$0xff] }
 0x32d   :  { %v8445_v48 = vpop.f32.mrf.mxu1  ;;  %8608 = vmatmul.mubr.msk.bf16.gmra.mxu1 %vm2241_vm9, %v12801_v31  ;;  %v5323_v51 = vpop.f32.mrf.mxu0  ;;  %v7527_v10 = vcombine.low %v5580_v13, %v5590_v4 }
 0x32e   :  { %v11590_v16 = vadd.f32 %v5307_v42, %v5126_v57  ;;  %v5131_v33 = vadd.f32 %v8445_v48, %v11253_v30  ;;  %8611 = vmatprep.mubr.msk.bf16.mxu1 %vm2241_vm9, %v12802_v8  ;;  %v12804_v57 = vld [vmem:[#allocation116_spill] sm:$0xff] }
 0x32f   :  { %v4946_v49 = vpop.f32.mrf.mxu1  ;;  %v8515_v36 = vpop.f32.mrf.mxu0  ;;  %8678 = vmatmul.mubr.msk.bf16.gmra.mxu0 %vm2241_vm9, %v7564_v25 }
 0x330   :  { %v11600_v26 = vadd.f32 %v8511_v63, %v5131_v33  ;;  %v5129_v42 = vadd.f32 %v4946_v49, %v11260_v60  ;;  %v12806_v49 = vld [vmem:[#allocation118_spill] sm:$0xff] }
 0x331   :  { %v8446_v3 = vpop.f32.mrf.mxu1  ;;  %v5336_v30 = vpop.f32.mrf.mxu0 }
 0x332   :  { %v11603_v61 = vadd.f32 %v5320_v34, %v5129_v42  ;;  %v5132_v28 = vadd.f32 %v8446_v3, %v11263_v35 }
 0x333   :  { %v4949_v47 = vpop.f32.mrf.mxu1  ;;  %v8516_v53 = vpop.f32.mrf.mxu0 }
 0x334   :  { %v11606_v11 = vadd.f32 %v8512_v54, %v5132_v28  ;;  %v5130_v27 = vadd.f32 %v4949_v47, %v11268_v0 }
 0x335   :  { %v8449_v58 = vpop.f32.mrf.mxu1  ;;  %8612 = vmatmul.mubr.msk.bf16.gmra.mxu1 %vm2241_vm9, %v7527_v10  ;;  %v5339_v63 = vpop.f32.mrf.mxu0 }
 0x336   :  { %v11610_v23 = vadd.f32 %v5323_v51, %v5130_v27  ;;  %v5135_v60 = vadd.f32 %v8449_v58, %v11275_v56  ;;  %v12805_v51 = vld [vmem:[#allocation62_spill] sm:$0xff] }
 0x337   :  { %v4962_v6 = vpop.f32.mrf.mxu1  ;;  %v8519_v41 = vpop.f32.mrf.mxu0 }
 0x338   :  { %v11613_v34 = vadd.f32 %v8515_v36, %v5135_v60  ;;  %v5133_v35 = vadd.f32 %v4962_v6, %v12803_v9 }
 0x339   :  { %v8450_v22 = vpop.f32.mrf.mxu1  ;;  %v5352_v25 = vpop.f32.mrf.mxu0 }
 0x33a   :  { %v11616_v54 = vadd.f32 %v5336_v30, %v5133_v35  ;;  %v5136_v0 = vadd.f32 %v8450_v22, %v12804_v57  ;;  %v12807_v30 = vld [vmem:[#allocation7_spill] sm:$0xff] }
 0x33b   :  { %v4965_v48 = vpop.f32.mrf.mxu1  ;;  %v8520_v31 = vpop.f32.mrf.mxu0 }
 0x33c   :  { %v11619_v33 = vadd.f32 %v8516_v53, %v5136_v0  ;;  %v5134_v8 = vadd.f32 %v4965_v48, %v12805_v51  ;;  %v12808_v53 = vld [vmem:[#allocation120_spill] sm:$0xff] }
 0x33d   :  { %v8453_v13 = vpop.f32.mrf.mxu1  ;;  %v5355_v56 = vpop.f32.mrf.mxu0 }
 0x33e   :  { %v11622_v4 = vadd.f32 %v5339_v63, %v5134_v8  ;;  %v5139_v36 = vadd.f32 %v8453_v13, %v12806_v49  ;;  %v12809_v63 = vld [vmem:[#allocation60_spill] sm:$0xff] }
 0x33f   :  { %v4978_v42 = vpop.f32.mrf.mxu1  ;;  %v8523_v3 = vpop.f32.mrf.mxu0 }
 0x340   :  { %v11625_v10 = vadd.f32 %v8519_v41, %v5139_v36  ;;  %v5137_v28 = vadd.f32 %v4978_v42, %v12807_v30  ;;  %v12810_v41 = vld [vmem:[#allocation65_spill] sm:$0xff] }
 0x341   :  { %v8454_v47 = vpop.f32.mrf.mxu1  ;;  %v5368_v27 = vpop.f32.mrf.mxu0 }
 0x342   :  { %v11628_v58 = vadd.f32 %v5352_v25, %v5137_v28  ;;  %v5140_v60 = vadd.f32 %v8454_v47, %v12808_v53  ;;  %v12812_v25 = vld [vmem:[#allocation121_spill] sm:$0xff] }
 0x343   :  { %v4981_v6 = vpop.f32.mrf.mxu1  ;;  %v8524_v9 = vpop.f32.mrf.mxu0 }
 0x344   :  { %v11631_v35 = vadd.f32 %v8520_v31, %v5140_v60  ;;  %v5138_v22 = vadd.f32 %v4981_v6, %v12809_v63  ;;  %v12814_v31 = vld [vmem:[#allocation66_spill] sm:$0xff] }
 0x345   :  { %v8457_v57 = vpop.f32.mrf.mxu1  ;;  %v5371_v0 = vpop.f32.mrf.mxu0 }
 0x346   :  { %v11634_v48 = vadd.f32 %v5355_v56, %v5138_v22  ;;  %v5143_v51 = vadd.f32 %v8457_v57, %v12810_v41  ;;  %v12816_v56 = vld [vmem:[#allocation122_spill] sm:$0xff] }
 0x347   :  { %v4994_v8 = vpop.f32.mrf.mxu1  ;;  %v8527_v13 = vpop.f32.mrf.mxu0 }
 0x348   :  { %v11637_v49 = vadd.f32 %v8523_v3, %v5143_v51  ;;  %v5141_v36 = vadd.f32 %v4994_v8, %v12812_v25  ;;  %v12818_v3 = vld [vmem:[#allocation123_spill] sm:$0xff] }
 0x349   :  { %v8458_v42 = vpop.f32.mrf.mxu1  ;;  %v5384_v30 = vpop.f32.mrf.mxu0 }
 0x34a   :  { %12811 = vst [vmem:[#allocation126_spill] sm:$0xff] %v11637_v49  ;;  %v11640_v28 = vadd.f32 %v5368_v27, %v5141_v36  ;;  %v5144_v47 = vadd.f32 %v8458_v42, %v12814_v31  ;;  %v12820_v27 = vld [vmem:[#allocation61_spill] sm:$0xff] }
 0x34b   :  { %v4997_v53 = vpop.f32.mrf.mxu1  ;;  %v8528_v60 = vpop.f32.mrf.mxu0 }
 0x34c   :  { %12813 = vst [vmem:[#allocation83_spill] sm:$0xff] %v11640_v28  ;;  %v11643_v6 = vadd.f32 %v8524_v9, %v5144_v47  ;;  %v5142_v63 = vadd.f32 %v4997_v53, %v12816_v56  ;;  %v12822_v9 = vld [vmem:[#allocation124_spill] sm:$0xff] }
 0x34d   :  { %v8461_v22 = vpop.f32.mrf.mxu1  ;;  %v5387_v57 = vpop.f32.mrf.mxu0 }
 0x34e   :  { %12815 = vst [vmem:[#allocation127_spill] sm:$0xff] %v11643_v6  ;;  %v11646_v41 = vadd.f32 %v5371_v0, %v5142_v63  ;;  %v5147_v51 = vadd.f32 %v8461_v22, %v12818_v3  ;;  %v12824_v0 = vld [vmem:[#allocation72_spill] sm:$0xff] }
 0x34f   :  { %v5010_v49 = vpop.f32.mrf.mxu1  ;;  %v8531_v8 = vpop.f32.mrf.mxu0 }
 0x350   :  { %12817 = vst [vmem:[#allocation85_spill] sm:$0xff] %v11646_v41  ;;  %v11649_v25 = vadd.f32 %v8527_v13, %v5147_v51  ;;  %v5145_v36 = vadd.f32 %v5010_v49, %v12820_v27  ;;  %v12826_v13 = vld [vmem:[#allocation68_spill] sm:$0xff] }
 0x351   :  { %v8462_v28 = vpop.f32.mrf.mxu1  ;;  %v5400_v42 = vpop.f32.mrf.mxu0 }
 0x352   :  { %12819 = vst [vmem:[#allocation90_spill] sm:$0xff] %v11649_v25  ;;  %v11652_v31 = vadd.f32 %v5384_v30, %v5145_v36  ;;  %v5148_v47 = vadd.f32 %v8462_v28, %v12822_v9  ;;  %v12828_v30 = vld [vmem:[#allocation71_spill] sm:$0xff] }
 0x353   :  { %v5013_v6 = vpop.f32.mrf.mxu1  ;;  %v8532_v53 = vpop.f32.mrf.mxu0 }
 0x354   :  { %12821 = vst [vmem:[#allocation92_spill] sm:$0xff] %v11652_v31  ;;  %v11655_v56 = vadd.f32 %v8528_v60, %v5148_v47  ;;  %v5146_v63 = vadd.f32 %v5013_v6, %v12824_v0  ;;  %v12829_v60 = vld [vmem:[#allocation76_spill] sm:$0xff] }
 0x355   :  { %v8465_v41 = vpop.f32.mrf.mxu1  ;;  %v5403_v22 = vpop.f32.mrf.mxu0 }
 0x356   :  { %12823 = vst [vmem:[#allocation94_spill] sm:$0xff] %v11655_v56  ;;  %v11658_v3 = vadd.f32 %v5387_v57, %v5146_v63  ;;  %v5151_v51 = vadd.f32 %v8465_v41, %v12826_v13  ;;  %v12831_v57 = vld [vmem:[#allocation64_spill] sm:$0xff] }
 0x357   :  { %v5026_v25 = vpop.f32.mrf.mxu1  ;;  %v8535_v49 = vpop.f32.mrf.mxu0 }
 0x358   :  { %12825 = vst [vmem:[#allocation95_spill] sm:$0xff] %v11658_v3  ;;  %v11661_v27 = vadd.f32 %v8531_v8, %v5151_v51  ;;  %v5149_v36 = vadd.f32 %v5026_v25, %v12828_v30  ;;  %v12832_v8 = vld [vmem:[#allocation79_spill] sm:$0xff] }
 0x359   :  { %v8466_v31 = vpop.f32.mrf.mxu1  ;;  %v5416_v28 = vpop.f32.mrf.mxu0 }
 0x35a   :  { %12827 = vst [vmem:[#allocation59_spill] sm:$0xff] %v11661_v27  ;;  %v11664_v9 = vadd.f32 %v5400_v42, %v5149_v36  ;;  %v5152_v47 = vadd.f32 %v8466_v31, %v12829_v60 }
 0x35b   :  { %v5029_v56 = vpop.f32.mrf.mxu1  ;;  %v8536_v6 = vpop.f32.mrf.mxu0 }
 0x35c   :  { %v11667_v0 = vadd.f32 %v8532_v53, %v5152_v47  ;;  %v5150_v63 = vadd.f32 %v5029_v56, %v12831_v57  ;;  %v12834_v53 = vld [vmem:[#allocation82_spill] sm:$0xff] }
 0x35d   :  { %v8469_v3 = vpop.f32.mrf.mxu1  ;;  %v5419_v41 = vpop.f32.mrf.mxu0 }
 0x35e   :  { %12830 = vst [vmem:[#allocation8_spill] sm:$0xff] %v11667_v0  ;;  %v11670_v13 = vadd.f32 %v5403_v22, %v5150_v63  ;;  %v5155_v51 = vadd.f32 %v8469_v3, %v12832_v8 }
 0x35f   :  { %v5042_v27 = vpop.f32.mrf.mxu1  ;;  %v8539_v25 = vpop.f32.mrf.mxu0 }
 0x360   :  { %v11673_v30 = vadd.f32 %v8535_v49, %v5155_v51  ;;  %v5153_v42 = vadd.f32 %v5042_v27, %v11385_v5  ;;  %v12835_v49 = vld [vmem:[#allocation84_spill] sm:$0xff] }
 0x361   :  { %v8470_v36 = vpop.f32.mrf.mxu1  ;;  %v5432_v31 = vpop.f32.mrf.mxu0 }
 0x362   :  { %12833 = vst [vmem:[#allocation10_spill] sm:$0xff] %v11673_v30  ;;  %v11676_v60 = vadd.f32 %v5416_v28, %v5153_v42  ;;  %v5156_v47 = vadd.f32 %v8470_v36, %v12834_v53 }
 0x363   :  { %v5045_v0 = vpop.f32.mrf.mxu1  ;;  %v8540_v56 = vpop.f32.mrf.mxu0 }
 0x364   :  { %v11679_v57 = vadd.f32 %v8536_v6, %v5156_v47  ;;  %v5154_v22 = vadd.f32 %v5045_v0, %v11394_v39 }
 0x365   :  { %v8473_v63 = vpop.f32.mrf.mxu1  ;;  %v5435_v3 = vpop.f32.mrf.mxu0 }
 0x366   :  { %v11682_v8 = vadd.f32 %v5419_v41, %v5154_v22  ;;  %v5159_v51 = vadd.f32 %v8473_v63, %v12835_v49 }
 0x367   :  { %v5058_v30 = vpop.f32.mrf.mxu1  ;;  %v8543_v5 = vpop.f32.mrf.mxu0 }
 0x368   :  { %v11685_v27 = vadd.f32 %v8539_v25, %v5159_v51  ;;  %v5157_v28 = vadd.f32 %v5058_v30, %v11410_v32 }
 0x369   :  { %v8474_v42 = vpop.f32.mrf.mxu1  ;;  %v5448_v36 = vpop.f32.mrf.mxu0 }
 0x36a   :  { %v11688_v53 = vadd.f32 %v5432_v31, %v5157_v28  ;;  %v5160_v6 = vadd.f32 %v8474_v42, %v11413_v43 }
 0x36b   :  { %v5061_v47 = vpop.f32.mrf.mxu1  ;;  %v8544_v39 = vpop.f32.mrf.mxu0 }
 0x36c   :  { %v11691_v0 = vadd.f32 %v8540_v56, %v5160_v6  ;;  %v5158_v41 = vadd.f32 %v5061_v47, %v11418_v44 }
 0x36d   :  { %v8477_v22 = vpop.f32.mrf.mxu1  ;;  %v5451_v63 = vpop.f32.mrf.mxu0 }
 0x36e   :  { %12836 = vst [vmem:[#allocation12_spill] sm:$0xff] %v11691_v0  ;;  %v11694_v49 = vadd.f32 %v5435_v3, %v5158_v41  ;;  %v5163_v25 = vadd.f32 %v8477_v22, %v11428_v19 }
 0x36f   :  { %v5074_v51 = vpop.f32.mrf.mxu1  ;;  %v8547_v32 = vpop.f32.mrf.mxu0 }
 0x370   :  { %12837 = vst [vmem:[#allocation37_spill] sm:$0xff] %v11694_v49  ;;  %v11697_v30 = vadd.f32 %v8543_v5, %v5163_v25  ;;  %v5161_v31 = vadd.f32 %v5074_v51, %v11433_v2 }
 0x371   :  { %v8478_v28 = vpop.f32.mrf.mxu1  ;;  %v5464_v43 = vpop.f32.mrf.mxu0 }
 0x372   :  { %12838 = vst [vmem:[#allocation38_spill] sm:$0xff] %v11697_v30  ;;  %v11700_v42 = vadd.f32 %v5448_v36, %v5161_v31  ;;  %v5164_v56 = vadd.f32 %v8478_v28, %v11436_v24 }
 0x373   :  { %v5077_v6 = vpop.f32.mrf.mxu1  ;;  %v8548_v44 = vpop.f32.mrf.mxu0 }
 0x374   :  { %12839 = vst [vmem:[#allocation14_spill] sm:$0xff] %v11700_v42  ;;  %v11703_v47 = vadd.f32 %v8544_v39, %v5164_v56  ;;  %v5162_v3 = vadd.f32 %v5077_v6, %v11440_v45 }
 0x375   :  { %v8481_v41 = vpop.f32.mrf.mxu1  ;;  %v5467_v19 = vpop.f32.mrf.mxu0 }
 0x376   :  { %12840 = vst [vmem:[#allocation70_spill] sm:$0xff] %v11703_v47  ;;  %v11706_v22 = vadd.f32 %v5451_v63, %v5162_v3  ;;  %v5167_v5 = vadd.f32 %v8481_v41, %v11447_v50  ;;  %v12845_v63 = vld [vmem:[#allocation87_spill] sm:$0xff] }
 0x377   :  { %v5090_v25 = vpop.f32.mrf.mxu1  ;;  %v8619_v2 = vpop.f32.mrf.mxu0 }
 0x378   :  { %12841 = vst [vmem:[#allocation16_spill] sm:$0xff] %v11706_v22  ;;  %v11709_v51 = vadd.f32 %v8547_v32, %v5167_v5  ;;  %v5165_v36 = vadd.f32 %v5090_v25, %v11452_v18  ;;  %v12847_v32 = vld [vmem:[#allocation69_spill] sm:$0xff]  ;;  %v11724_v18 = vld [vmem:[%s12223_s4] ss:$0 sm:$0xff] }
 0x379   :  { %v8482_v31 = vpop.f32.mrf.mxu1  ;;  %v6028_v24 = vpop.f32.mrf.mxu0 }
 0x37a   :  { %12842 = vst [vmem:[#allocation47_spill] sm:$0xff] %v11709_v51  ;;  %v11712_v28 = vadd.f32 %v5464_v43, %v5165_v36  ;;  %v5168_v39 = vadd.f32 %v8482_v31, %v11455_v1 }
 0x37b   :  { %v5093_v56 = vpop.f32.mrf.mxu1  ;;  %v8620_v45 = vpop.f32.mrf.mxu0 }
 0x37c   :  { %12843 = vst [vmem:[#allocation39_spill] sm:$0xff] %v11712_v28  ;;  %v11715_v6 = vadd.f32 %v8548_v44, %v5168_v39  ;;  %v5166_v3 = vadd.f32 %v5093_v56, %v12845_v63  ;;  %v12848_v63 = vld [vmem:[#allocation91_spill] sm:$0xff]  ;;  %v12849_v28 = vld [vmem:[#allocation88_spill] sm:$0xff] }
 0x37d   :  { %v8553_v22 = vpop.f32.mrf.mxu1  ;;  %v6031_v50 = vpop.f32.mrf.mxu0 }
 0x37e   :  { %12844 = vst [vmem:[#allocation49_spill] sm:$0xff] %v11715_v6  ;;  %v11718_v41 = vadd.f32 %v5467_v19, %v5166_v3  ;;  %v5899_v5 = vadd.f32 %v8553_v22, %v12847_v32 }
 0x37f   :  { %v5642_v43 = vpop.f32.mrf.mxu1  ;;  %v8623_v25 = vpop.f32.mrf.mxu0 }
 0x380   :  { %12846 = vst [vmem:[#allocation73_spill] sm:$0xff] %v11718_v41  ;;  %v6285_v1 = vadd.f32 %v8619_v2, %v5899_v5  ;;  %v5897_v36 = vadd.f32 %v5642_v43, %v11472_v20  ;;  %v12850_v43 = vld [vmem:[#allocation74_spill] sm:$0xff] }
 0x381   :  { %v8554_v44 = vpop.f32.mrf.mxu1  ;;  %v6044_v31 = vpop.f32.mrf.mxu0 }
 0x382   :  { %v6356_v39 = vadd.f32 %v11724_v18, %v6285_v1  ;;  %v6283_v56 = vadd.f32 %v6028_v24, %v5897_v36  ;;  %v5900_v19 = vadd.f32 %v8554_v44, %v12848_v63 }
 0x383   :  { %v5645_v3 = vpop.f32.mrf.mxu1  ;;  %v8624_v22 = vpop.f32.mrf.mxu0 }
 0x384   :  { %v7728_v32 = vpack.c.bf16 %v6356_v39, %v6356_v39  ;;  %v6354_v41 = vadd.f32 %v11724_v18, %v6283_v56  ;;  %v6286_v6 = vadd.f32 %v8620_v45, %v5900_v19  ;;  %v5898_v51 = vadd.f32 %v5645_v3, %v12849_v28 }
 0x385   :  { %v8557_v47 = vpop.f32.mrf.mxu1  ;;  %v6047_v2 = vpop.f32.mrf.mxu0  ;;  %v6743_v45 = vsel %vm6739_vm3, %v6356_v39, 0.0  ;;  %v6875_v42 = vmul.f32 %v6356_v39, %v6356_v39 }
 0x386   :  { %6677 = vst.msk [vmem:[#allocation3 + $0x8] sm:$0xf] %vm6674_vm2, %v7728_v32  ;;  %v7726_v20 = vpack.c.bf16 %v6354_v41, %v6354_v41  ;;  %v6357_v5 = vadd.f32 %v11724_v18, %v6286_v6  ;;  %v6284_v24 = vadd.f32 %v6031_v50, %v5898_v51  ;;  %v5903_v1 = vadd.f32 %v8557_v47, %v12850_v43 }
 0x387   :  { %v5658_v36 = vpop.f32.mrf.mxu1  ;;  %v8627_v44 = vpop.f32.mrf.mxu0  ;;  %v6873_v28 = vmul.f32 %v6354_v41, %v6354_v41  ;;  %v6740_v47 = vsel %vm6739_vm3, %v6354_v41, 0.0 }
 0x388   :  { %6675 = vst.msk [vmem:[#allocation3] sm:$0xf] %vm6674_vm2, %v7726_v20  ;;  %v5901_v56 = vadd.f32 %v5658_v36, %v11492_v52  ;;  %v7729_v63 = vpack.c.bf16 %v6357_v5, %v6357_v5  ;;  %v6355_v19 = vadd.f32 %v11724_v18, %v6284_v24  ;;  %v6289_v30 = vadd.f32 %v8623_v25, %v5903_v1 }
 0x389   :  { %v8558_v3 = vpop.f32.mrf.mxu1  ;;  %v6060_v32 = vpop.f32.mrf.mxu0  ;;  %v6937_v25 = vsel %vm6739_vm3, %v6873_v28, 0.0 }
 0x38a   :  { %v6287_v6 = vadd.f32 %v6044_v31, %v5901_v56  ;;  %v5904_v51 = vadd.f32 %v8558_v3, %v11495_v40  ;;  %6678 = vst.msk [vmem:[#allocation3 + $0xc] sm:$0xf] %vm6674_vm2, %v7729_v63  ;;  %v7727_v50 = vpack.c.bf16 %v6355_v19, %v6355_v19  ;;  %v6741_v52 = vsel %vm6739_vm3, %v6355_v19, 0.0 }
 0x38b   :  { %v6874_v20 = vmul.f32 %v6355_v19, %v6355_v19  ;;  %v5661_v43 = vpop.f32.mrf.mxu1  ;;  %v8628_v36 = vpop.f32.mrf.mxu0  ;;  %v6742_v49 = vadd.f32 %v6741_v52, %v6740_v47  ;;  %v6360_v24 = vadd.f32 %v11724_v18, %v6289_v30  ;;  %v6876_v31 = vmul.f32 %v6357_v5, %v6357_v5 }
 0x38c   :  { %v6358_v0 = vadd.f32 %v11724_v18, %v6287_v6  ;;  %v6290_v39 = vadd.f32 %v8624_v22, %v5904_v51  ;;  %6676 = vst.msk [vmem:[#allocation3 + $0x4] sm:$0xf] %vm6674_vm2, %v7727_v50  ;;  %v5902_v41 = vadd.f32 %v5661_v43, %v11500_v7  ;;  %v6940_v47 = vsel %vm6739_vm3, %v6875_v42, 0.0 }
 0x38d   :  { %v6938_v40 = vsel %vm6739_vm3, %v6874_v20, 0.0  ;;  %v8561_v1 = vpop.f32.mrf.mxu1  ;;  %v6063_v56 = vpop.f32.mrf.mxu0  ;;  %v6744_v63 = vadd.f32 %v6743_v45, %v6742_v49  ;;  %v7732_v3 = vpack.c.bf16 %v6360_v24, %v6360_v24  ;;  %v6745_v30 = vsel %vm6739_vm3, %v6357_v5, 0.0 }
 0x38e   :  { %v6939_v19 = vadd.f32 %v6938_v40, %v6937_v25  ;;  %v7730_v6 = vpack.c.bf16 %v6358_v0, %v6358_v0  ;;  %v6877_v22 = vmul.f32 %v6358_v0, %v6358_v0  ;;  %v6361_v7 = vadd.f32 %v11724_v18, %v6290_v39 }
 0x38f   :  { %v5674_v51 = vpop.f32.mrf.mxu1  ;;  %v11750_v28 = vpop.f32.mrf.mxu0  ;;  %6681 = vst.msk [vmem:[#allocation3 + $0x18] sm:$0xf] %vm6674_vm2, %v7732_v3  ;;  %v6746_v50 = vadd.f32 %v6745_v30, %v6744_v63  ;;  %v6288_v20 = vadd.f32 %v6047_v2, %v5902_v41  ;;  %v6942_v49 = vsel %vm6739_vm3, %v6876_v31, 0.0  ;;  %v6747_v42 = vsel %vm6739_vm3, %v6358_v0, 0.0 }
 0x390   :  { %v6941_v52 = vadd.f32 %v6940_v47, %v6939_v19  ;;  %6679 = vst.msk [vmem:[#allocation3 + $0x10] sm:$0xf] %vm6674_vm2, %v7730_v6  ;;  %v5907_v5 = vadd.f32 %v8561_v1, %v11507_v15  ;;  %v5905_v45 = vadd.f32 %v5674_v51, %v11512_v59  ;;  %v6879_v40 = vmul.f32 %v6360_v24, %v6360_v24 }
 0x391   :  { %v8562_v43 = vpop.f32.mrf.mxu1  ;;  %v11759_v25 = vpop.f32.mrf.mxu0  ;;  %v6748_v19 = vadd.f32 %v6747_v42, %v6746_v50  ;;  %v7733_v63 = vpack.c.bf16 %v6361_v7, %v6361_v7  ;;  %v6944_v39 = vsel %vm6739_vm3, %v6877_v22, 0.0  ;;  %v6359_v2 = vadd.f32 %v11724_v18, %v6288_v20 }
 0x392   :  { %v6943_v3 = vadd.f32 %v6942_v49, %v6941_v52  ;;  %v6293_v31 = vadd.f32 %v8627_v44, %v5907_v5  ;;  %v6291_v41 = vadd.f32 %v6060_v32, %v5905_v45  ;;  %v6751_v15 = vsel %vm6739_vm3, %v6360_v24, 0.0 }
 0x393   :  { %v5677_v47 = vpop.f32.mrf.mxu1  ;;  %v11763_v30 = vpop.f32.mrf.mxu0  ;;  %6682 = vst.msk [vmem:[#allocation3 + $0x1c] sm:$0xf] %vm6674_vm2, %v7733_v63  ;;  %v5908_v59 = vadd.f32 %v8562_v43, %v11515_v37  ;;  %v6880_v6 = vmul.f32 %v6361_v7, %v6361_v7  ;;  %v7731_v51 = vpack.c.bf16 %v6359_v2, %v6359_v2  ;;  %v6749_v22 = vsel %vm6739_vm3, %v6359_v2, 0.0 }
 0x394   :  { %v6945_v0 = vadd.f32 %v6944_v39, %v6943_v3  ;;  %v5906_v1 = vadd.f32 %v5677_v47, %v11520_v38  ;;  %v6878_v52 = vmul.f32 %v6359_v2, %v6359_v2  ;;  %v6750_v32 = vadd.f32 %v6749_v22, %v6748_v19 }
 0x395   :  { %v8565_v50 = vpop.f32.mrf.mxu1  ;;  %v11770_v44 = vpop.f32.mrf.mxu0  ;;  %v6364_v20 = vadd.f32 %v11724_v18, %v6293_v31  ;;  %v6362_v24 = vadd.f32 %v11724_v18, %v6291_v41  ;;  %v6294_v49 = vadd.f32 %v8628_v36, %v5908_v59  ;;  %v6948_v42 = vsel %vm6739_vm3, %v6879_v40, 0.0  ;;  %6680 = vst.msk [vmem:[#allocation3 + $0x14] sm:$0xf] %vm6674_vm2, %v7731_v51 }
 0x396   :  { %v6946_v37 = vsel %vm6739_vm3, %v6878_v52, 0.0  ;;  %v6292_v38 = vadd.f32 %v6063_v56, %v5906_v1  ;;  %v5911_v5 = vadd.f32 %v8565_v50, %v11527_v17  ;;  %v6753_v3 = vsel %vm6739_vm3, %v6361_v7, 0.0 }
 0x397   :  { %v5690_v45 = vpop.f32.mrf.mxu1  ;;  %v11778_v43 = vpop.f32.mrf.mxu0  ;;  %v6752_v19 = vadd.f32 %v6751_v15, %v6750_v32  ;;  %v6947_v63 = vadd.f32 %v6946_v37, %v6945_v0  ;;  %v7736_v39 = vpack.c.bf16 %v6364_v20, %v6364_v20  ;;  %v6950_v2 = vsel %vm6739_vm3, %v6880_v6, 0.0 }
 0x398   :  { %v6759_v36 = vsel %vm6739_vm3, %v6364_v20, 0.0  ;;  %v7734_v40 = vpack.c.bf16 %v6362_v24, %v6362_v24  ;;  %v6881_v31 = vmul.f32 %v6362_v24, %v6362_v24  ;;  %v6365_v59 = vadd.f32 %v11724_v18, %v6294_v49 }
 0x399   :  { %v8566_v41 = vpop.f32.mrf.mxu1  ;;  %v11783_v47 = vpop.f32.mrf.mxu0  ;;  %v6949_v56 = vadd.f32 %v6948_v42, %v6947_v63  ;;  %6685 = vst.msk [vmem:[#allocation3 + $0x28] sm:$0xf] %vm6674_vm2, %v7736_v39  ;;  %v6754_v17 = vadd.f32 %v6753_v3, %v6752_v19  ;;  %v6363_v7 = vadd.f32 %v11724_v18, %v6292_v38  ;;  %v6883_v15 = vmul.f32 %v6364_v20, %v6364_v20  ;;  %v12851_v39 = vld [vmem:[#allocation80_spill] sm:$0xff] }
 0x39a   :  { %6683 = vst.msk [vmem:[#allocation3 + $0x20] sm:$0xf] %vm6674_vm2, %v7734_v40  ;;  %v6755_v0 = vsel %vm6739_vm3, %v6362_v24, 0.0  ;;  %v6297_v1 = vadd.f32 %v11750_v28, %v5911_v5  ;;  %v5909_v6 = vadd.f32 %v5690_v45, %v11532_v29  ;;  %v6952_v32 = vsel %vm6739_vm3, %v6881_v31, 0.0  ;;  %v12852_v40 = vld [vmem:[#allocation125_spill] sm:$0xff] }
 0x39b   :  { %v5693_v51 = vpop.f32.mrf.mxu1  ;;  %v11792_v22 = vpop.f32.mrf.mxu0  ;;  %v6756_v52 = vadd.f32 %v6755_v0, %v6754_v17  ;;  %v6951_v50 = vadd.f32 %v6950_v2, %v6949_v56  ;;  %v7737_v42 = vpack.c.bf16 %v6365_v59, %v6365_v59  ;;  %v6884_v49 = vmul.f32 %v6365_v59, %v6365_v59 }
 0x39c   :  { %v7735_v37 = vpack.c.bf16 %v6363_v7, %v6363_v7  ;;  %v6757_v20 = vsel %vm6739_vm3, %v6363_v7, 0.0  ;;  %v6882_v38 = vmul.f32 %v6363_v7, %v6363_v7  ;;  %v6368_v28 = vadd.f32 %v11724_v18, %v6297_v1 }
 0x39d   :  { %v8569_v3 = vpop.f32.mrf.mxu1  ;;  %v11796_v19 = vpop.f32.mrf.mxu0  ;;  %v6953_v24 = vadd.f32 %v6952_v32, %v6951_v50  ;;  %6686 = vst.msk [vmem:[#allocation3 + $0x2c] sm:$0xf] %vm6674_vm2, %v7737_v42  ;;  %v6758_v29 = vadd.f32 %v6757_v20, %v6756_v52  ;;  %v6295_v5 = vadd.f32 %v11759_v25, %v5909_v6  ;;  %v6956_v45 = vsel %vm6739_vm3, %v6883_v15, 0.0 }
 0x39e   :  { %6684 = vst.msk [vmem:[#allocation3 + $0x24] sm:$0xf] %vm6674_vm2, %v7735_v37  ;;  %v6954_v63 = vsel %vm6739_vm3, %v6882_v38, 0.0  ;;  %v5912_v2 = vadd.f32 %v8566_v41, %v12851_v39  ;;  %v5910_v31 = vadd.f32 %v5693_v51, %v12852_v40  ;;  %v6761_v7 = vsel %vm6739_vm3, %v6365_v59, 0.0  ;;  %v12853_v37 = vld [vmem:[#allocation77_spill] sm:$0xff] }
 0x39f   :  { %v5706_v56 = vpop.f32.mrf.mxu1  ;;  %v11806_v17 = vpop.f32.mrf.mxu0  ;;  %v6760_v0 = vadd.f32 %v6759_v36, %v6758_v29  ;;  %v6955_v52 = vadd.f32 %v6954_v63, %v6953_v24  ;;  %v7740_v1 = vpack.c.bf16 %v6368_v28, %v6368_v28  ;;  %v6958_v25 = vsel %vm6739_vm3, %v6884_v49, 0.0 }
 0x3a0   :  { %v6366_v15 = vadd.f32 %v11724_v18, %v6295_v5  ;;  %v6298_v6 = vadd.f32 %v11763_v30, %v5912_v2  ;;  %v6296_v50 = vadd.f32 %v11770_v44, %v5910_v31  ;;  %v5915_v59 = vadd.f32 %v8569_v3, %v12853_v37 }
 0x3a1   :  { %v8570_v32 = vpop.f32.mrf.mxu1  ;;  %v11813_v41 = vpop.f32.mrf.mxu0  ;;  %v6957_v51 = vadd.f32 %v6956_v45, %v6955_v52  ;;  %6689 = vst.msk [vmem:[#allocation3 + $0x38] sm:$0xf] %vm6674_vm2, %v7740_v1  ;;  %v6762_v42 = vadd.f32 %v6761_v7, %v6760_v0  ;;  %v5913_v36 = vadd.f32 %v5706_v56, %v11557_v14  ;;  %v6887_v20 = vmul.f32 %v6368_v28, %v6368_v28 }
 0x3a2   :  { %v7738_v38 = vpack.c.bf16 %v6366_v15, %v6366_v15  ;;  %v6763_v49 = vsel %vm6739_vm3, %v6366_v15, 0.0  ;;  %v6885_v24 = vmul.f32 %v6366_v15, %v6366_v15  ;;  %v6369_v63 = vadd.f32 %v11724_v18, %v6298_v6 }
 0x3a3   :  { %v5709_v29 = vpop.f32.mrf.mxu1  ;;  %v11819_v30 = vpop.f32.mrf.mxu0  ;;  %v6764_v44 = vadd.f32 %v6763_v49, %v6762_v42  ;;  %v6959_v5 = vadd.f32 %v6958_v25, %v6957_v51  ;;  %v6367_v45 = vadd.f32 %v11724_v18, %v6296_v50  ;;  %v6301_v14 = vadd.f32 %v11778_v43, %v5915_v59 }
 0x3a4   :  { %6687 = vst.msk [vmem:[#allocation3 + $0x30] sm:$0xf] %vm6674_vm2, %v7738_v38  ;;  %v6960_v3 = vsel %vm6739_vm3, %v6885_v24, 0.0  ;;  %v6299_v39 = vadd.f32 %v11783_v47, %v5913_v36  ;;  %v5916_v2 = vadd.f32 %v8570_v32, %v11561_v12  ;;  %v7741_v7 = vpack.c.bf16 %v6369_v63, %v6369_v63 }
 0x3a5   :  { %v8573_v40 = vpop.f32.mrf.mxu1  ;;  %v6111_v31 = vpop.f32.mrf.mxu0  ;;  %v6961_v56 = vadd.f32 %v6960_v3, %v6959_v5  ;;  %v6888_v0 = vmul.f32 %v6369_v63, %v6369_v63  ;;  %v7739_v52 = vpack.c.bf16 %v6367_v45, %v6367_v45  ;;  %v6765_v1 = vsel %vm6739_vm3, %v6367_v45, 0.0 }
 0x3a6   :  { %v6886_v25 = vmul.f32 %v6367_v45, %v6367_v45  ;;  %v6372_v15 = vadd.f32 %v11724_v18, %v6301_v14  ;;  %v6767_v43 = vsel %vm6739_vm3, %v6368_v28, 0.0  ;;  %6690 = vst.msk [vmem:[#allocation3 + $0x3c] sm:$0xf] %vm6674_vm2, %v7741_v7  ;;  %v6766_v47 = vadd.f32 %v6765_v1, %v6764_v44 }
 0x3a7   :  { %v5722_v6 = vpop.f32.mrf.mxu1  ;;  %v11830_v50 = vpop.f32.mrf.mxu0  ;;  %v6370_v12 = vadd.f32 %v11724_v18, %v6299_v39  ;;  %v6302_v32 = vadd.f32 %v11792_v22, %v5916_v2  ;;  %v6964_v51 = vsel %vm6739_vm3, %v6887_v20, 0.0  ;;  %v6769_v42 = vsel %vm6739_vm3, %v6369_v63, 0.0  ;;  %6688 = vst.msk [vmem:[#allocation3 + $0x34] sm:$0xf] %vm6674_vm2, %v7739_v52 }
 0x3a8   :  { %v6962_v37 = vsel %vm6739_vm3, %v6886_v25, 0.0  ;;  %v7744_v59 = vpack.c.bf16 %v6372_v15, %v6372_v15  ;;  %v6966_v28 = vsel %vm6739_vm3, %v6888_v0, 0.0  ;;  %v6768_v49 = vadd.f32 %v6767_v43, %v6766_v47 }
 0x3a9   :  { %v8574_v36 = vpop.f32.mrf.mxu1  ;;  %v11840_v38 = vpop.f32.mrf.mxu0  ;;  %v6963_v24 = vadd.f32 %v6962_v37, %v6961_v56  ;;  %v7742_v44 = vpack.c.bf16 %v6370_v12, %v6370_v12  ;;  %v6891_v22 = vmul.f32 %v6372_v15, %v6372_v15  ;;  %v6889_v5 = vmul.f32 %v6370_v12, %v6370_v12 }
 0x3aa   :  { %6693 = vst.msk [vmem:[#allocation3 + $0x48] sm:$0xf] %vm6674_vm2, %v7744_v59  ;;  %v6373_v20 = vadd.f32 %v11724_v18, %v6302_v32  ;;  %v5914_v63 = vadd.f32 %v5709_v29, %v11566_v21  ;;  %v6770_v39 = vadd.f32 %v6769_v42, %v6768_v49  ;;  %v5919_v2 = vadd.f32 %v8573_v40, %v11573_v62 }
 0x3ab   :  { %v5725_v45 = vpop.f32.mrf.mxu1  ;;  %v11846_v3 = vpop.f32.mrf.mxu0  ;;  %v6965_v14 = vadd.f32 %v6964_v51, %v6963_v24  ;;  %6691 = vst.msk [vmem:[#allocation3 + $0x40] sm:$0xf] %vm6674_vm2, %v7742_v44  ;;  %v5917_v56 = vadd.f32 %v5722_v6, %v11582_v46  ;;  %v6775_v7 = vsel %vm6739_vm3, %v6372_v15, 0.0  ;;  %v6771_v0 = vsel %vm6739_vm3, %v6370_v12, 0.0 }
 0x3ac   :  { %v6968_v52 = vsel %vm6739_vm3, %v6889_v5, 0.0  ;;  %v7745_v1 = vpack.c.bf16 %v6373_v20, %v6373_v20  ;;  %v6772_v29 = vadd.f32 %v6771_v0, %v6770_v39  ;;  %v6300_v47 = vadd.f32 %v11796_v19, %v5914_v63 }
 0x3ad   :  { %v8577_v25 = vpop.f32.mrf.mxu1  ;;  %v11854_v21 = vpop.f32.mrf.mxu0  ;;  %v6967_v43 = vadd.f32 %v6966_v28, %v6965_v14  ;;  %v6305_v32 = vadd.f32 %v11806_v17, %v5919_v2  ;;  %v6892_v62 = vmul.f32 %v6373_v20, %v6373_v20  ;;  %v6303_v46 = vadd.f32 %v11813_v41, %v5917_v56 }
 0x3ae   :  { %6694 = vst.msk [vmem:[#allocation3 + $0x4c] sm:$0xf] %vm6674_vm2, %v7745_v1  ;;  %v5920_v40 = vadd.f32 %v8574_v36, %v11585_v55  ;;  %v5918_v15 = vadd.f32 %v5725_v45, %v11590_v16  ;;  %v6972_v51 = vsel %vm6739_vm3, %v6891_v22, 0.0  ;;  %v6371_v37 = vadd.f32 %v11724_v18, %v6300_v47 }
 0x3af   :  { %v5738_v6 = vpop.f32.mrf.mxu1  ;;  %v11862_v12 = vpop.f32.mrf.mxu0  ;;  %v6969_v42 = vadd.f32 %v6968_v52, %v6967_v43  ;;  %v6376_v19 = vadd.f32 %v11724_v18, %v6305_v32  ;;  %v6777_v17 = vsel %vm6739_vm3, %v6373_v20, 0.0  ;;  %v6374_v59 = vadd.f32 %v11724_v18, %v6303_v46 }
 0x3b0   :  { %v6306_v41 = vadd.f32 %v11819_v30, %v5920_v40  ;;  %v6304_v28 = vadd.f32 %v6111_v31, %v5918_v15  ;;  %v7743_v16 = vpack.c.bf16 %v6371_v37, %v6371_v37  ;;  %v6773_v49 = vsel %vm6739_vm3, %v6371_v37, 0.0 }
 0x3b1   :  { %v8578_v55 = vpop.f32.mrf.mxu1  ;;  %v11870_v36 = vpop.f32.mrf.mxu0  ;;  %v6890_v24 = vmul.f32 %v6371_v37, %v6371_v37  ;;  %v7748_v44 = vpack.c.bf16 %v6376_v19, %v6376_v19  ;;  %v6974_v22 = vsel %vm6739_vm3, %v6892_v62, 0.0  ;;  %v6774_v5 = vadd.f32 %v6773_v49, %v6772_v29 }
 0x3b2   :  { %v7746_v63 = vpack.c.bf16 %v6374_v59, %v6374_v59  ;;  %v5923_v45 = vadd.f32 %v8577_v25, %v11600_v26  ;;  %6692 = vst.msk [vmem:[#allocation3 + $0x44] sm:$0xf] %vm6674_vm2, %v7743_v16  ;;  %v6893_v31 = vmul.f32 %v6374_v59, %v6374_v59  ;;  %v6377_v39 = vadd.f32 %v11724_v18, %v6306_v41 }
 0x3b3   :  { %v5741_v20 = vpop.f32.mrf.mxu1  ;;  %v11875_v14 = vpop.f32.mrf.mxu0  ;;  %v6970_v30 = vsel %vm6739_vm3, %v6890_v24, 0.0  ;;  %6697 = vst.msk [vmem:[#allocation3 + $0x58] sm:$0xf] %vm6674_vm2, %v7748_v44  ;;  %v5921_v2 = vadd.f32 %v5738_v6, %v11603_v61  ;;  %v6776_v56 = vadd.f32 %v6775_v7, %v6774_v5  ;;  %v6783_v52 = vsel %vm6739_vm3, %v6376_v19, 0.0 }
 0x3b4   :  { %v6971_v0 = vadd.f32 %v6970_v30, %v6969_v42  ;;  %6695 = vst.msk [vmem:[#allocation3 + $0x50] sm:$0xf] %vm6674_vm2, %v7746_v63  ;;  %v6375_v26 = vadd.f32 %v11724_v18, %v6304_v28  ;;  %v6895_v29 = vmul.f32 %v6376_v19, %v6376_v19  ;;  %v6779_v43 = vsel %vm6739_vm3, %v6374_v59, 0.0 }
 0x3b5   :  { %v8581_v1 = vpop.f32.mrf.mxu1  ;;  %v11885_v25 = vpop.f32.mrf.mxu0  ;;  %v6976_v47 = vsel %vm6739_vm3, %v6893_v31, 0.0  ;;  %v7749_v32 = vpack.c.bf16 %v6377_v39, %v6377_v39  ;;  %v6778_v46 = vadd.f32 %v6777_v17, %v6776_v56  ;;  %v6896_v61 = vmul.f32 %v6377_v39, %v6377_v39 }
 0x3b6   :  { %v6973_v62 = vadd.f32 %v6972_v51, %v6971_v0  ;;  %v7747_v7 = vpack.c.bf16 %v6375_v26, %v6375_v26  ;;  %v6781_v6 = vsel %vm6739_vm3, %v6375_v26, 0.0  ;;  %v6894_v42 = vmul.f32 %v6375_v26, %v6375_v26 }
 0x3b7   :  { %v5754_v40 = vpop.f32.mrf.mxu1  ;;  %v11889_v15 = vpop.f32.mrf.mxu0  ;;  %6698 = vst.msk [vmem:[#allocation3 + $0x5c] sm:$0xf] %vm6674_vm2, %v7749_v32  ;;  %v6309_v37 = vadd.f32 %v11830_v50, %v5923_v45  ;;  %v6307_v19 = vadd.f32 %v11840_v38, %v5921_v2  ;;  %v6780_v59 = vadd.f32 %v6779_v43, %v6778_v46  ;;  %v5924_v51 = vadd.f32 %v8578_v55, %v11606_v11 }
 0x3b8   :  { %v6975_v41 = vadd.f32 %v6974_v22, %v6973_v62  ;;  %6696 = vst.msk [vmem:[#allocation3 + $0x54] sm:$0xf] %vm6674_vm2, %v7747_v7  ;;  %v5922_v17 = vadd.f32 %v5741_v20, %v11610_v23  ;;  %v6978_v49 = vsel %vm6739_vm3, %v6894_v42, 0.0  ;;  %v5927_v50 = vadd.f32 %v8581_v1, %v11613_v34 }
 0x3b9   :  { %v8582_v28 = vpop.f32.mrf.mxu1  ;;  %v11898_v16 = vpop.f32.mrf.mxu0  ;;  %v6380_v24 = vadd.f32 %v11724_v18, %v6309_v37  ;;  %v6378_v44 = vadd.f32 %v11724_v18, %v6307_v19  ;;  %v6782_v5 = vadd.f32 %v6781_v6, %v6780_v59  ;;  %v6310_v22 = vadd.f32 %v11846_v3, %v5924_v51 }
 0x3ba   :  { %v6977_v38 = vadd.f32 %v6976_v47, %v6975_v41  ;;  %v6308_v63 = vadd.f32 %v11854_v21, %v5922_v17  ;;  %v6980_v23 = vsel %vm6739_vm3, %v6895_v29, 0.0  ;;  %v6785_v45 = vsel %vm6739_vm3, %v6377_v39, 0.0 }
 0x3bb   :  { %v5757_v11 = vpop.f32.mrf.mxu1  ;;  %v11906_v55 = vpop.f32.mrf.mxu0  ;;  %v7752_v20 = vpack.c.bf16 %v6380_v24, %v6380_v24  ;;  %v7750_v30 = vpack.c.bf16 %v6378_v44, %v6378_v44  ;;  %v6982_v31 = vsel %vm6739_vm3, %v6896_v61, 0.0  ;;  %v6784_v2 = vadd.f32 %v6783_v52, %v6782_v5 }
 0x3bc   :  { %v6979_v56 = vadd.f32 %v6978_v49, %v6977_v38  ;;  %v6897_v34 = vmul.f32 %v6378_v44, %v6378_v44  ;;  %v6791_v3 = vsel %vm6739_vm3, %v6380_v24, 0.0  ;;  %v6381_v21 = vadd.f32 %v11724_v18, %v6310_v22 }
 0x3bd   :  { %v8585_v0 = vpop.f32.mrf.mxu1  ;;  %v11911_v26 = vpop.f32.mrf.mxu0  ;;  %6701 = vst.msk [vmem:[#allocation3 + $0x68] sm:$0xf] %vm6674_vm2, %v7752_v20  ;;  %6699 = vst.msk [vmem:[#allocation3 + $0x60] sm:$0xf] %vm6674_vm2, %v7750_v30  ;;  %v6379_v39 = vadd.f32 %v11724_v18, %v6308_v63  ;;  %v6313_v1 = vadd.f32 %v11862_v12, %v5927_v50  ;;  %v6899_v43 = vmul.f32 %v6380_v24, %v6380_v24  ;;  %v6787_v46 = vsel %vm6739_vm3, %v6378_v44, 0.0 }
 0x3be   :  { %v6981_v29 = vadd.f32 %v6980_v23, %v6979_v56  ;;  %v6786_v52 = vadd.f32 %v6785_v45, %v6784_v2  ;;  %v5925_v47 = vadd.f32 %v5754_v40, %v11616_v54  ;;  %v6984_v61 = vsel %vm6739_vm3, %v6897_v34, 0.0 }
 0x3bf   :  { %v5770_v32 = vpop.f32.mrf.mxu1  ;;  %v11920_v62 = vpop.f32.mrf.mxu0  ;;  %v7753_v7 = vpack.c.bf16 %v6381_v21, %v6381_v21  ;;  %v7751_v6 = vpack.c.bf16 %v6379_v39, %v6379_v39  ;;  %v6789_v19 = vsel %vm6739_vm3, %v6379_v39, 0.0  ;;  %v6898_v59 = vmul.f32 %v6379_v39, %v6379_v39 }
 0x3c0   :  { %v6788_v42 = vadd.f32 %v6787_v46, %v6786_v52  ;;  %v6983_v37 = vadd.f32 %v6982_v31, %v6981_v29  ;;  %v6900_v54 = vmul.f32 %v6381_v21, %v6381_v21  ;;  %v6384_v40 = vadd.f32 %v11724_v18, %v6313_v1 }
 0x3c1   :  { %v8586_v12 = vpop.f32.mrf.mxu1  ;;  %v11925_v41 = vpop.f32.mrf.mxu0  ;;  %6702 = vst.msk [vmem:[#allocation3 + $0x6c] sm:$0xf] %vm6674_vm2, %v7753_v7  ;;  %6700 = vst.msk [vmem:[#allocation3 + $0x64] sm:$0xf] %vm6674_vm2, %v7751_v6  ;;  %v6311_v51 = vadd.f32 %v11870_v36, %v5925_v47  ;;  %v5928_v17 = vadd.f32 %v8582_v28, %v11619_v33  ;;  %v6986_v44 = vsel %vm6739_vm3, %v6898_v59, 0.0  ;;  %v5926_v50 = vadd.f32 %v5757_v11, %v11622_v4 }
 0x3c2   :  { %v6985_v49 = vadd.f32 %v6984_v61, %v6983_v37  ;;  %v6790_v24 = vadd.f32 %v6789_v19, %v6788_v42  ;;  %v6988_v22 = vsel %vm6739_vm3, %v6899_v43, 0.0  ;;  %v6793_v63 = vsel %vm6739_vm3, %v6381_v21, 0.0 }
 0x3c3   :  { %v5773_v38 = vpop.f32.mrf.mxu1  ;;  %v11934_v5 = vpop.f32.mrf.mxu0  ;;  %v7756_v23 = vpack.c.bf16 %v6384_v40, %v6384_v40  ;;  %v6382_v45 = vadd.f32 %v11724_v18, %v6311_v51  ;;  %v6314_v33 = vadd.f32 %v11875_v14, %v5928_v17  ;;  %v6312_v28 = vadd.f32 %v11885_v25, %v5926_v50 }
 0x3c4   :  { %v6792_v20 = vadd.f32 %v6791_v3, %v6790_v24  ;;  %v6987_v36 = vadd.f32 %v6986_v44, %v6985_v49  ;;  %v6990_v4 = vsel %vm6739_vm3, %v6900_v54, 0.0  ;;  %v6799_v11 = vsel %vm6739_vm3, %v6384_v40, 0.0 }
 0x3c5   :  { %v8589_v30 = vpop.f32.mrf.mxu1  ;;  %v11941_v31 = vpop.f32.mrf.mxu0  ;;  %6705 = vst.msk [vmem:[#allocation3 + $0x78] sm:$0xf] %vm6674_vm2, %v7756_v23  ;;  %v7754_v2 = vpack.c.bf16 %v6382_v45, %v6382_v45  ;;  %v6901_v56 = vmul.f32 %v6382_v45, %v6382_v45  ;;  %v6385_v3 = vadd.f32 %v11724_v18, %v6314_v33  ;;  %v6383_v39 = vadd.f32 %v11724_v18, %v6312_v28  ;;  %v12855_v33 = vld [vmem:[#allocation83_spill] sm:$0xff] }
 0x3c6   :  { %v6989_v34 = vadd.f32 %v6988_v22, %v6987_v36  ;;  %v6794_v21 = vadd.f32 %v6793_v63, %v6792_v20  ;;  %v6795_v25 = vsel %vm6739_vm3, %v6382_v45, 0.0  ;;  %v5931_v29 = vadd.f32 %v8585_v0, %v11625_v10 }
 0x3c7   :  { %v5786_v14 = vpop.f32.mrf.mxu1  ;;  %v11948_v1 = vpop.f32.mrf.mxu0  ;;  %6703 = vst.msk [vmem:[#allocation3 + $0x70] sm:$0xf] %vm6674_vm2, %v7754_v2  ;;  %v5929_v43 = vadd.f32 %v5770_v32, %v11628_v58  ;;  %v5932_v52 = vadd.f32 %v8586_v12, %v11631_v35  ;;  %v6903_v47 = vmul.f32 %v6384_v40, %v6384_v40  ;;  %v7757_v7 = vpack.c.bf16 %v6385_v3, %v6385_v3 }
 0x3c8   :  { %v6796_v46 = vadd.f32 %v6795_v25, %v6794_v21  ;;  %v6991_v61 = vadd.f32 %v6990_v4, %v6989_v34  ;;  %v6992_v37 = vsel %vm6739_vm3, %v6901_v56, 0.0  ;;  %v7755_v19 = vpack.c.bf16 %v6383_v39, %v6383_v39 }
 0x3c9   :  { %v8590_v6 = vpop.f32.mrf.mxu1  ;;  %v11955_v42 = vpop.f32.mrf.mxu0  ;;  %v6797_v59 = vsel %vm6739_vm3, %v6383_v39, 0.0  ;;  %v6902_v54 = vmul.f32 %v6383_v39, %v6383_v39  ;;  %6706 = vst.msk [vmem:[#allocation3 + $0x7c] sm:$0xf] %vm6674_vm2, %v7757_v7  ;;  %v6317_v58 = vadd.f32 %v11889_v15, %v5931_v29  ;;  %v6315_v35 = vadd.f32 %v11898_v16, %v5929_v43 }
 0x3ca   :  { %v6993_v51 = vadd.f32 %v6992_v37, %v6991_v61  ;;  %v6798_v10 = vadd.f32 %v6797_v59, %v6796_v46  ;;  %v6904_v12 = vmul.f32 %v6385_v3, %v6385_v3  ;;  %6704 = vst.msk [vmem:[#allocation3 + $0x74] sm:$0xf] %vm6674_vm2, %v7755_v19  ;;  %v6318_v17 = vadd.f32 %v11906_v55, %v5932_v52  ;;  %v12856_v37 = vld [vmem:[#allocation127_spill] sm:$0xff] }
 0x3cb   :  { %v5789_v0 = vpop.f32.mrf.mxu1  ;;  %v11962_v32 = vpop.f32.mrf.mxu0  ;;  %v6994_v40 = vsel %vm6739_vm3, %v6902_v54, 0.0  ;;  %v5930_v49 = vadd.f32 %v5773_v38, %v11634_v48  ;;  %v6388_v50 = vadd.f32 %v11724_v18, %v6317_v58  ;;  %v6386_v15 = vadd.f32 %v11724_v18, %v6315_v35  ;;  %v12854_v48 = vld [vmem:[#allocation126_spill] sm:$0xff] }
 0x3cc   :  { %v6800_v24 = vadd.f32 %v6799_v11, %v6798_v10  ;;  %v6995_v44 = vadd.f32 %v6994_v40, %v6993_v51  ;;  %v6996_v63 = vsel %vm6739_vm3, %v6903_v47, 0.0  ;;  %v6801_v23 = vsel %vm6739_vm3, %v6385_v3, 0.0 }
 0x3cd   :  { %v8593_v22 = vpop.f32.mrf.mxu1  ;;  %v11970_v16 = vpop.f32.mrf.mxu0  ;;  %v6389_v45 = vadd.f32 %v11724_v18, %v6318_v17  ;;  %v6316_v20 = vadd.f32 %v11911_v26, %v5930_v49  ;;  %v7760_v36 = vpack.c.bf16 %v6388_v50, %v6388_v50  ;;  %v5935_v38 = vadd.f32 %v8589_v30, %v12854_v48 }
 0x3ce   :  { %v6997_v55 = vadd.f32 %v6996_v63, %v6995_v44  ;;  %v5933_v28 = vadd.f32 %v5786_v14, %v12855_v33  ;;  %v6998_v2 = vsel %vm6739_vm3, %v6904_v12, 0.0  ;;  %v7758_v56 = vpack.c.bf16 %v6386_v15, %v6386_v15  ;;  %v12859_v63 = vld [vmem:[#allocation92_spill] sm:$0xff] }
 0x3cf   :  { %v5802_v4 = vpop.f32.mrf.mxu1  ;;  %v11978_v11 = vpop.f32.mrf.mxu0  ;;  %v6802_v34 = vadd.f32 %v6801_v23, %v6800_v24  ;;  %v6905_v21 = vmul.f32 %v6386_v15, %v6386_v15  ;;  %6709 = vst.msk [vmem:[#allocation3 + $0x88] sm:$0xf] %vm6674_vm2, %v7760_v36  ;;  %v6807_v3 = vsel %vm6739_vm3, %v6388_v50, 0.0  ;;  %v6803_v26 = vsel %vm6739_vm3, %v6386_v15, 0.0 }
 0x3d0   :  { %v6999_v39 = vadd.f32 %v6998_v2, %v6997_v55  ;;  %v7761_v25 = vpack.c.bf16 %v6389_v45, %v6389_v45  ;;  %v6907_v14 = vmul.f32 %v6388_v50, %v6388_v50  ;;  %6707 = vst.msk [vmem:[#allocation3 + $0x80] sm:$0xf] %vm6674_vm2, %v7758_v56  ;;  %v6387_v47 = vadd.f32 %v11724_v18, %v6316_v20  ;;  %v12858_v50 = vld [vmem:[#allocation90_spill] sm:$0xff] }
 0x3d1   :  { %v11984_v29 = vpop.f32.mrf.mxu1  ;;  %v11986_v30 = vpop.f32.mrf.mxu0  ;;  %v6804_v43 = vadd.f32 %v6803_v26, %v6802_v34  ;;  %v7000_v52 = vsel %vm6739_vm3, %v6905_v21, 0.0  ;;  %v6321_v61 = vadd.f32 %v11920_v62, %v5935_v38  ;;  %v6319_v7 = vadd.f32 %v11925_v41, %v5933_v28 }
 0x3d2   :  { %v7001_v46 = vadd.f32 %v7000_v52, %v6999_v39  ;;  %6710 = vst.msk [vmem:[#allocation3 + $0x8c] sm:$0xf] %vm6674_vm2, %v7761_v25  ;;  %v5936_v19 = vadd.f32 %v8590_v6, %v12856_v37  ;;  %v6908_v51 = vmul.f32 %v6389_v45, %v6389_v45  ;;  %v7759_v10 = vpack.c.bf16 %v6387_v47, %v6387_v47  ;;  %v12857_v6 = vld [vmem:[#allocation85_spill] sm:$0xff] }
 0x3d3   :  { %v5805_v59 = vpop.f32.mrf.mxu1  ;;  %v11995_v54 = vpop.f32.mrf.mxu0  ;;  %v6805_v58 = vsel %vm6739_vm3, %v6387_v47, 0.0  ;;  %v6906_v35 = vmul.f32 %v6387_v47, %v6387_v47  ;;  %v6392_v40 = vadd.f32 %v11724_v18, %v6321_v61  ;;  %v6390_v17 = vadd.f32 %v11724_v18, %v6319_v7 }
 0x3d4   :  { %v6806_v12 = vadd.f32 %v6805_v58, %v6804_v43  ;;  %v6322_v49 = vadd.f32 %v11934_v5, %v5936_v19  ;;  %6708 = vst.msk [vmem:[#allocation3 + $0x84] sm:$0xf] %vm6674_vm2, %v7759_v10  ;;  %v5934_v44 = vadd.f32 %v5789_v0, %v12857_v6  ;;  %v5939_v15 = vadd.f32 %v8593_v22, %v12858_v50  ;;  %v12861_v58 = vld [vmem:[#allocation95_spill] sm:$0xff] }
 0x3d5   :  { %v8597_v62 = vpop.f32.mrf.mxu1  ;;  %v12001_v24 = vpop.f32.mrf.mxu0  ;;  %v7002_v41 = vsel %vm6739_vm3, %v6906_v35, 0.0  ;;  %v5937_v23 = vadd.f32 %v5802_v4, %v12859_v63  ;;  %v7004_v20 = vsel %vm6739_vm3, %v6907_v14, 0.0  ;;  %v7764_v48 = vpack.c.bf16 %v6392_v40, %v6392_v40 }
 0x3d6   :  { %v6808_v55 = vadd.f32 %v6807_v3, %v6806_v12  ;;  %v7003_v36 = vadd.f32 %v7002_v41, %v7001_v46  ;;  %v6809_v33 = vsel %vm6739_vm3, %v6389_v45, 0.0  ;;  %v7006_v28 = vsel %vm6739_vm3, %v6908_v51, 0.0 }
 0x3d7   :  { %v5818_v38 = vpop.f32.mrf.mxu1  ;;  %v12009_v5 = vpop.f32.mrf.mxu0  ;;  %v7762_v2 = vpack.c.bf16 %v6390_v17, %v6390_v17  ;;  %v6909_v56 = vmul.f32 %v6390_v17, %v6390_v17  ;;  %6713 = vst.msk [vmem:[#allocation3 + $0x98] sm:$0xf] %vm6674_vm2, %v7764_v48  ;;  %v6393_v22 = vadd.f32 %v11724_v18, %v6322_v49  ;;  %v6320_v4 = vadd.f32 %v11941_v31, %v5934_v44  ;;  %v12862_v44 = vld [vmem:[#allocation59_spill] sm:$0xff] }
 0x3d8   :  { %v7005_v34 = vadd.f32 %v7004_v20, %v7003_v36  ;;  %v6810_v0 = vadd.f32 %v6809_v33, %v6808_v55  ;;  %v6911_v26 = vmul.f32 %v6392_v40, %v6392_v40  ;;  %v6811_v45 = vsel %vm6739_vm3, %v6390_v17, 0.0 }
 0x3d9   :  { %v8598_v21 = vpop.f32.mrf.mxu1  ;;  %v12016_v3 = vpop.f32.mrf.mxu0  ;;  %6711 = vst.msk [vmem:[#allocation3 + $0x90] sm:$0xf] %vm6674_vm2, %v7762_v2  ;;  %v6325_v39 = vadd.f32 %v11948_v1, %v5939_v15  ;;  %v6323_v25 = vadd.f32 %v11955_v42, %v5937_v23  ;;  %v7008_v52 = vsel %vm6739_vm3, %v6909_v56, 0.0  ;;  %v7765_v47 = vpack.c.bf16 %v6393_v22, %v6393_v22  ;;  %v12860_v42 = vld [vmem:[#allocation94_spill] sm:$0xff] }
 0x3da   :  { %v6812_v14 = vadd.f32 %v6811_v45, %v6810_v0  ;;  %v7007_v43 = vadd.f32 %v7006_v28, %v7005_v34  ;;  %v6912_v31 = vmul.f32 %v6393_v22, %v6393_v22  ;;  %v6391_v7 = vadd.f32 %v11724_v18, %v6320_v4 }
 0x3db   :  { %v5821_v46 = vpop.f32.mrf.mxu1  ;;  %v12023_v61 = vpop.f32.mrf.mxu0  ;;  %v6396_v37 = vadd.f32 %v11724_v18, %v6325_v39  ;;  %v6394_v19 = vadd.f32 %v11724_v18, %v6323_v25  ;;  %v6815_v51 = vsel %vm6739_vm3, %v6392_v40, 0.0  ;;  %6714 = vst.msk [vmem:[#allocation3 + $0x9c] sm:$0xf] %vm6674_vm2, %v7765_v47  ;;  %v5940_v10 = vadd.f32 %v11984_v29, %v12860_v42  ;;  %v12059_v39 = vld [vmem:[%s12223_s4] ss:$0 sm:$0xff]  ;;  %s8795_s4 = smov [#allocation3]  }
 0x3dc   :  { %v7009_v1 = vadd.f32 %v7008_v52, %v7007_v43  ;;  %v5938_v35 = vadd.f32 %v5805_v59, %v12861_v58  ;;  %v7763_v49 = vpack.c.bf16 %v6391_v7, %v6391_v7  ;;  %v6813_v41 = vsel %vm6739_vm3, %v6391_v7, 0.0  ;;  %s7078_s13 = sshll.u32 %s8795_s4, 4  ;;  %s7079_s13 = int_to_ptr.vmem [resolvable:$true] %s7078_s13 }
 0x3dd   :  { %v12033_v12 = vpop.f32.mrf.mxu1  ;;  %v12035_v17 = vpop.f32.mrf.mxu0  ;;  %v6910_v6 = vmul.f32 %v6391_v7, %v6391_v7  ;;  %v5943_v18 = vadd.f32 %v8597_v62, %v12862_v44  ;;  %v7012_v40 = vsel %vm6739_vm3, %v6911_v26, 0.0  ;;  %v6817_v50 = vsel %vm6739_vm3, %v6393_v22, 0.0  ;;  %s8771_s14 = scalar_lea.vmem %s7079_s13, 4096  ;;  %p8776_p1 = scmp.lt.s32.totalorder %s7079_s13, %s7079_s13 }
 0x3de   :  { %v6814_v15 = vadd.f32 %v6813_v41, %v6812_v14  ;;  %v7768_v63 = vpack.c.bf16 %v6396_v37, %v6396_v37  ;;  %v7014_v29 = vsel %vm6739_vm3, %v6912_v31, 0.0  ;;  %6712 = vst.msk [vmem:[#allocation3 + $0x94] sm:$0xf] %vm6674_vm2, %v7763_v49  ;;  %v7766_v20 = vpack.c.bf16 %v6394_v19, %v6394_v19  ;;  %p8772_p0 = scmp.ne.s32.totalorder %s7079_s13, %s8771_s14  ;;  %p8777_p2 = scmp.lt.s32.totalorder %s8771_s14, %s8771_s14 }
 0x3df   :  { %v12041_v23 = vpop.f32.mrf.mxu1  ;;  %v7010_v59 = vsel %vm6739_vm3, %v6910_v6, 0.0  ;;  %v6913_v55 = vmul.f32 %v6394_v19, %v6394_v19  ;;  %v12046_v36 = vpop.f32.mrf.mxu0  ;;  %v6915_v33 = vmul.f32 %v6396_v37, %v6396_v37  ;;  %v6326_v28 = vadd.f32 %v11962_v32, %v5940_v10 }
 0x3e0   :  { %v6816_v48 = vadd.f32 %v6815_v51, %v6814_v15  ;;  %v7011_v62 = vadd.f32 %v7010_v59, %v7009_v1  ;;  %6717 = vst.msk [vmem:[#allocation3 + $0xa8] sm:$0xf] %vm6674_vm2, %v7768_v63  ;;  %6715 = vst.msk [vmem:[#allocation3 + $0xa0] sm:$0xf] %vm6674_vm2, %v7766_v20  ;;  %v6819_v56 = vsel %vm6739_vm3, %v6394_v19, 0.0  ;;  %v6324_v34 = vadd.f32 %v11970_v16, %v5938_v35  ;;  %p8778_p3 = por %p8777_p2, %p8776_p1 }
 0x3e1   :  { %v8602_v2 = vpop.f32.mrf.mxu1  ;;  %v6329_v0 = vadd.f32 %v11978_v11, %v5943_v18  ;;  %v5941_v22 = vadd.f32 %v5818_v38, %v11664_v9  ;;  %v7016_v45 = vsel %vm6739_vm3, %v6913_v55, 0.0  ;;  %v6397_v32 = vadd.f32 %v12059_v39, %v6326_v28  ;;  %v12863_v9 = vld [vmem:[#allocation8_spill] sm:$0xff]  ;;  %v12068_v43 = vpop.f32.mrf.mxu0 }
 0x3e2   :  { %v7013_v4 = vadd.f32 %v7012_v40, %v7011_v62  ;;  %v6818_v26 = vadd.f32 %v6817_v50, %v6816_v48  ;;  %v6395_v14 = vadd.f32 %v12059_v39, %v6324_v34  ;;  %v5944_v38 = vadd.f32 %v8598_v21, %v12863_v9  ;;  %p8779_p4 = pnand %p8778_p3, %p8772_p0 }
 0x3e3   :  { %v12062_v25 = vpop.f32.mrf.mxu1  ;;  %v6400_v16 = vadd.f32 %v12059_v39, %v6329_v0  ;;  %v6327_v11 = vadd.f32 %v11986_v30, %v5941_v22  ;;  %v7769_v31 = vpack.c.bf16 %v6397_v32, %v6397_v32  ;;  %v5942_v7 = vadd.f32 %v5821_v46, %v11670_v13  ;;  %v12081_v44 = vpop.f32.mrf.mxu0 }
 0x3e4   :  { %v6820_v52 = vadd.f32 %v6819_v56, %v6818_v26  ;;  %v7015_v47 = vadd.f32 %v7014_v29, %v7013_v4  ;;  %v6916_v51 = vmul.f32 %v6397_v32, %v6397_v32  ;;  %v7767_v1 = vpack.c.bf16 %v6395_v14, %v6395_v14 }
 0x3e5   :  { %v12071_v19 = vpop.f32.mrf.mxu1  ;;  %v6821_v42 = vsel %vm6739_vm3, %v6395_v14, 0.0  ;;  %v6914_v10 = vmul.f32 %v6395_v14, %v6395_v14  ;;  %v6823_v58 = vsel %vm6739_vm3, %v6396_v37, 0.0  ;;  %6718 = vst.msk [vmem:[#allocation3 + $0xac] sm:$0xf] %vm6674_vm2, %v7769_v31  ;;  %v7772_v21 = vpack.c.bf16 %v6400_v16, %v6400_v16  ;;  %v12101_v22 = vpop.f32.mrf.mxu0 }
 0x3e6   :  { %v7017_v35 = vadd.f32 %v7016_v45, %v7015_v47  ;;  %v6822_v30 = vadd.f32 %v6821_v42, %v6820_v52  ;;  %v7020_v41 = vsel %vm6739_vm3, %v6915_v33, 0.0  ;;  %v6825_v6 = vsel %vm6739_vm3, %v6397_v32, 0.0  ;;  %6716 = vst.msk [vmem:[#allocation3 + $0xa4] sm:$0xf] %vm6674_vm2, %v7767_v1 }
 0x3e7   :  { %v5850_v49 = vpop.f32.mrf.mxu1  ;;  %v7018_v13 = vsel %vm6739_vm3, %v6914_v10, 0.0  ;;  %v6398_v46 = vadd.f32 %v12059_v39, %v6327_v11  ;;  %6721 = vst.msk [vmem:[#allocation3 + $0xb8] sm:$0xf] %vm6674_vm2, %v7772_v21  ;;  %v6330_v40 = vadd.f32 %v11995_v54, %v5944_v38  ;;  %v6328_v50 = vadd.f32 %v12001_v24, %v5942_v7  ;;  %v12864_v24 = vld [vmem:[#allocation10_spill] sm:$0xff] }
 0x3e8   :  { %v6824_v18 = vadd.f32 %v6823_v58, %v6822_v30  ;;  %v7019_v37 = vadd.f32 %v7018_v13, %v7017_v35  ;;  %v7022_v63 = vsel %vm6739_vm3, %v6916_v51, 0.0  ;;  %v6831_v29 = vsel %vm6739_vm3, %v6400_v16, 0.0  ;;  %v12115_v51 = vpop.f32.mrf.mxu0 }
 0x3e9   :  { %v12086_v15 = vpop.f32.mrf.mxu1  ;;  %v7770_v59 = vpack.c.bf16 %v6398_v46, %v6398_v46  ;;  %v6917_v20 = vmul.f32 %v6398_v46, %v6398_v46  ;;  %v6401_v62 = vadd.f32 %v12059_v39, %v6330_v40  ;;  %v6399_v33 = vadd.f32 %v12059_v39, %v6328_v50 }
 0x3ea   :  { %v7021_v55 = vadd.f32 %v7020_v41, %v7019_v37  ;;  %v6826_v48 = vadd.f32 %v6825_v6, %v6824_v18  ;;  %v6827_v54 = vsel %vm6739_vm3, %v6398_v46, 0.0  ;;  %v5947_v56 = vadd.f32 %v12033_v12, %v12864_v24  ;;  %v6252_v37 = vpop.f32.mrf.mxu0 }
 0x3eb   :  { %v12092_v28 = vpop.f32.mrf.mxu1  ;;  %6719 = vst.msk [vmem:[#allocation3 + $0xb0] sm:$0xf] %vm6674_vm2, %v7770_v59  ;;  %v5945_v34 = vadd.f32 %v12041_v23, %v11676_v60  ;;  %v5948_v0 = vadd.f32 %v8602_v2, %v11679_v57  ;;  %v6919_v4 = vmul.f32 %v6400_v16, %v6400_v16  ;;  %v7773_v32 = vpack.c.bf16 %v6401_v62, %v6401_v62 }
 0x3ec   :  { %v6828_v26 = vadd.f32 %v6827_v54, %v6826_v48  ;;  %v7023_v45 = vadd.f32 %v7022_v63, %v7021_v55  ;;  %v7024_v11 = vsel %vm6739_vm3, %v6917_v20, 0.0  ;;  %v7771_v9 = vpack.c.bf16 %v6399_v33, %v6399_v33  ;;  %v12865_v48 = vld [vmem:[#allocation12_spill] sm:$0xff] }
 0x3ed   :  { %v12103_v14 = vpop.f32.mrf.mxu1  ;;  %v6829_v38 = vsel %vm6739_vm3, %v6399_v33, 0.0  ;;  %v6918_v52 = vmul.f32 %v6399_v33, %v6399_v33  ;;  %6722 = vst.msk [vmem:[#allocation3 + $0xbc] sm:$0xf] %vm6674_vm2, %v7773_v32  ;;  %v6333_v57 = vadd.f32 %v12009_v5, %v5947_v56  ;;  %v6331_v23 = vadd.f32 %v12016_v3, %v5945_v34  ;;  %v12141_v34 = vpop.f32.mrf.mxu0  ;;  %v12867_v32 = vld [vmem:[#allocation38_spill] sm:$0xff] }
 0x3ee   :  { %v7025_v12 = vadd.f32 %v7024_v11, %v7023_v45  ;;  %v6830_v60 = vadd.f32 %v6829_v38, %v6828_v26  ;;  %v6920_v16 = vmul.f32 %v6401_v62, %v6401_v62  ;;  %6720 = vst.msk [vmem:[#allocation3 + $0xb4] sm:$0xf] %vm6674_vm2, %v7771_v9  ;;  %v6334_v31 = vadd.f32 %v12023_v61, %v5948_v0  ;;  %v12868_v9 = vld [vmem:[#allocation14_spill] sm:$0xff] }
 0x3ef   :  { %v5866_v2 = vpop.f32.mrf.mxu1  ;;  %v7026_v47 = vsel %vm6739_vm3, %v6918_v52, 0.0  ;;  %v5946_v7 = vadd.f32 %v12062_v25, %v11682_v8  ;;  %v6404_v10 = vadd.f32 %v12059_v39, %v6333_v57  ;;  %v6402_v5 = vadd.f32 %v12059_v39, %v6331_v23 }
 0x3f0   :  { %v6832_v1 = vadd.f32 %v6831_v29, %v6830_v60  ;;  %v7027_v42 = vadd.f32 %v7026_v47, %v7025_v12  ;;  %v7028_v3 = vsel %vm6739_vm3, %v6919_v4, 0.0  ;;  %v6833_v58 = vsel %vm6739_vm3, %v6401_v62, 0.0 }
 0x3f1   :  { %v6405_v35 = vadd.f32 %v12059_v39, %v6334_v31  ;;  %v6332_v30 = vadd.f32 %v12035_v17, %v5946_v7  ;;  %v12123_v61 = vpop.f32.mrf.mxu1  ;;  %v7776_v8 = vpack.c.bf16 %v6404_v10, %v6404_v10  ;;  %v5951_v25 = vadd.f32 %v12071_v19, %v11685_v27  ;;  %v6255_v7 = vpop.f32.mrf.mxu0 }
 0x3f2   :  { %v7029_v21 = vadd.f32 %v7028_v3, %v7027_v42  ;;  %v5949_v41 = vadd.f32 %v5850_v49, %v11688_v53  ;;  %v7030_v6 = vsel %vm6739_vm3, %v6920_v16, 0.0  ;;  %v7774_v13 = vpack.c.bf16 %v6402_v5, %v6402_v5 }
 0x3f3   :  { %v6834_v46 = vadd.f32 %v6833_v58, %v6832_v1  ;;  %v6921_v18 = vmul.f32 %v6402_v5, %v6402_v5  ;;  %6725 = vst.msk [vmem:[#allocation3 + $0xc8] sm:$0xf] %vm6674_vm2, %v7776_v8  ;;  %v6839_v40 = vsel %vm6739_vm3, %v6404_v10, 0.0  ;;  %v6835_v17 = vsel %vm6739_vm3, %v6402_v5, 0.0  ;;  %v5869_v49 = vpop.f32.mrf.mxu1 }
 0x3f4   :  { %v7031_v50 = vadd.f32 %v7030_v6, %v7029_v21  ;;  %v7777_v63 = vpack.c.bf16 %v6405_v35, %v6405_v35  ;;  %v6923_v29 = vmul.f32 %v6404_v10, %v6404_v10  ;;  %6723 = vst.msk [vmem:[#allocation3 + $0xc0] sm:$0xf] %vm6674_vm2, %v7774_v13  ;;  %v6403_v19 = vadd.f32 %v12059_v39, %v6332_v30  ;;  %v8679_v13 = vpop.f32.mrf.mxu0 }
 0x3f5   :  { %v6836_v27 = vadd.f32 %v6835_v17, %v6834_v46  ;;  %v7032_v53 = vsel %vm6739_vm3, %v6921_v18, 0.0  ;;  %v6337_v20 = vadd.f32 %v12046_v36, %v5951_v25  ;;  %v6335_v55 = vadd.f32 %v12068_v43, %v5949_v41  ;;  %v12866_v43 = vld [vmem:[#allocation37_spill] sm:$0xff]  ;;  %v8613_v52 = vpop.f32.mrf.mxu1  ;;  %v12869_v18 = vld [vmem:[#allocation70_spill] sm:$0xff] }
 0x3f6   :  { %v7033_v59 = vadd.f32 %v7032_v53, %v7031_v50  ;;  %6726 = vst.msk [vmem:[#allocation3 + $0xcc] sm:$0xf] %vm6674_vm2, %v7777_v63  ;;  %v5952_v62 = vadd.f32 %v12086_v15, %v12865_v48  ;;  %v6924_v33 = vmul.f32 %v6405_v35, %v6405_v35  ;;  %v7775_v54 = vpack.c.bf16 %v6403_v19, %v6403_v19 }
 0x3f7   :  { %v6837_v24 = vsel %vm6739_vm3, %v6403_v19, 0.0  ;;  %v6922_v56 = vmul.f32 %v6403_v19, %v6403_v19  ;;  %v6408_v4 = vadd.f32 %v12059_v39, %v6337_v20  ;;  %v6406_v26 = vadd.f32 %v12059_v39, %v6335_v55  ;;  %v5882_v58 = vpop.f32.mrf.mxu1 }
 0x3f8   :  { %v6838_v0 = vadd.f32 %v6837_v24, %v6836_v27  ;;  %v6338_v45 = vadd.f32 %v12081_v44, %v5952_v62  ;;  %6724 = vst.msk [vmem:[#allocation3 + $0xc4] sm:$0xf] %vm6674_vm2, %v7775_v54  ;;  %v5950_v15 = vadd.f32 %v12092_v28, %v12866_v43  ;;  %v5955_v11 = vadd.f32 %v12103_v14, %v12867_v32 }
 0x3f9   :  { %v7034_v36 = vsel %vm6739_vm3, %v6922_v56, 0.0  ;;  %v5953_v38 = vadd.f32 %v5866_v2, %v12868_v9  ;;  %v7036_v12 = vsel %vm6739_vm3, %v6923_v29, 0.0  ;;  %v7780_v23 = vpack.c.bf16 %v6408_v4, %v6408_v4  ;;  %v12871_v29 = vld [vmem:[#allocation47_spill] sm:$0xff]  ;;  %v8614_v53 = vpop.f32.mrf.mxu1 }
 0x3fa   :  { %v6840_v60 = vadd.f32 %v6839_v40, %v6838_v0  ;;  %v7035_v57 = vadd.f32 %v7034_v36, %v7033_v59  ;;  %v6841_v44 = vsel %vm6739_vm3, %v6405_v35, 0.0  ;;  %v7038_v16 = vsel %vm6739_vm3, %v6924_v33, 0.0  ;;  %v6268_v33 = vpop.f32.mrf.mxu0  ;;  %v12872_v36 = vld [vmem:[#allocation39_spill] sm:$0xff] }
 0x3fb   :  { %v7778_v47 = vpack.c.bf16 %v6406_v26, %v6406_v26  ;;  %v6925_v31 = vmul.f32 %v6406_v26, %v6406_v26  ;;  %6729 = vst.msk [vmem:[#allocation3 + $0xd8] sm:$0xf] %vm6674_vm2, %v7780_v23  ;;  %v6409_v14 = vadd.f32 %v12059_v39, %v6338_v45  ;;  %v6336_v2 = vadd.f32 %v12101_v22, %v5950_v15  ;;  %v5885_v15 = vpop.f32.mrf.mxu1 }
 0x3fc   :  { %v7037_v1 = vadd.f32 %v7036_v12, %v7035_v57  ;;  %v6842_v28 = vadd.f32 %v6841_v44, %v6840_v60  ;;  %v6927_v42 = vmul.f32 %v6408_v4, %v6408_v4  ;;  %v6843_v10 = vsel %vm6739_vm3, %v6406_v26, 0.0  ;;  %v8680_v23 = vpop.f32.mrf.mxu0 }
 0x3fd   :  { %6727 = vst.msk [vmem:[#allocation3 + $0xd0] sm:$0xf] %vm6674_vm2, %v7778_v47  ;;  %v6341_v5 = vadd.f32 %v12115_v51, %v5955_v11  ;;  %v6339_v3 = vadd.f32 %v6252_v37, %v5953_v38  ;;  %v7040_v21 = vsel %vm6739_vm3, %v6925_v31, 0.0  ;;  %v7781_v8 = vpack.c.bf16 %v6409_v14, %v6409_v14  ;;  %v12870_v37 = vld [vmem:[#allocation16_spill] sm:$0xff]  ;;  %v12874_v31 = vld [vmem:[#allocation73_spill] sm:$0xff] }
 0x3fe   :  { %v6844_v35 = vadd.f32 %v6843_v10, %v6842_v28  ;;  %v7039_v30 = vadd.f32 %v7038_v16, %v7037_v1  ;;  %v6928_v25 = vmul.f32 %v6409_v14, %v6409_v14  ;;  %v6407_v41 = vadd.f32 %v12059_v39, %v6336_v2 }
 0x3ff   :  { %v6412_v6 = vadd.f32 %v12059_v39, %v6341_v5  ;;  %v6410_v22 = vadd.f32 %v12059_v39, %v6339_v3  ;;  %6730 = vst.msk [vmem:[#allocation3 + $0xdc] sm:$0xf] %vm6674_vm2, %v7781_v8  ;;  %v5956_v51 = vadd.f32 %v12123_v61, %v12869_v18  ;;  %v5954_v40 = vadd.f32 %v5869_v49, %v12870_v37 }
 0x400   :  { %v7041_v46 = vadd.f32 %v7040_v21, %v7039_v30  ;;  %v7779_v17 = vpack.c.bf16 %v6407_v41, %v6407_v41  ;;  %v6845_v50 = vsel %vm6739_vm3, %v6407_v41, 0.0  ;;  %v6926_v63 = vmul.f32 %v6407_v41, %v6407_v41  ;;  %v6271_v21 = vpop.f32.mrf.mxu0 }
 0x401   :  { %v5959_v27 = vadd.f32 %v8613_v52, %v12871_v29  ;;  %v6847_v19 = vsel %vm6739_vm3, %v6408_v4, 0.0  ;;  %v7044_v59 = vsel %vm6739_vm3, %v6927_v42, 0.0  ;;  %v6846_v20 = vadd.f32 %v6845_v50, %v6844_v35 }
 0x402   :  { %v7784_v55 = vpack.c.bf16 %v6412_v6, %v6412_v6  ;;  %v6849_v48 = vsel %vm6739_vm3, %v6409_v14, 0.0  ;;  %v7046_v62 = vsel %vm6739_vm3, %v6928_v25, 0.0  ;;  %6728 = vst.msk [vmem:[#allocation3 + $0xd4] sm:$0xf] %vm6674_vm2, %v7779_v17  ;;  %v7042_v61 = vsel %vm6739_vm3, %v6926_v63, 0.0 }
 0x403   :  { %v7782_v49 = vpack.c.bf16 %v6410_v22, %v6410_v22  ;;  %v6848_v54 = vadd.f32 %v6847_v19, %v6846_v20  ;;  %v7043_v24 = vadd.f32 %v7042_v61, %v7041_v46  ;;  %v6931_v56 = vmul.f32 %v6412_v6, %v6412_v6 }
 0x404   :  { %6733 = vst.msk [vmem:[#allocation3 + $0xe8] sm:$0xf] %vm6674_vm2, %v7784_v55  ;;  %v6342_v0 = vadd.f32 %v12141_v34, %v5956_v51  ;;  %v6929_v4 = vmul.f32 %v6410_v22, %v6410_v22  ;;  %v6340_v26 = vadd.f32 %v6255_v7, %v5954_v40  ;;  %v6345_v45 = vadd.f32 %v8679_v13, %v5959_v27  ;;  %v12873_v34 = vld [vmem:[#allocation49_spill] sm:$0xff] }
 0x405   :  { %6731 = vst.msk [vmem:[#allocation3 + $0xe0] sm:$0xf] %vm6674_vm2, %v7782_v49  ;;  %v5957_v43 = vadd.f32 %v5882_v58, %v12872_v36  ;;  %v7045_v32 = vadd.f32 %v7044_v59, %v7043_v24  ;;  %v6850_v11 = vadd.f32 %v6849_v48, %v6848_v54  ;;  %v6851_v9 = vsel %vm6739_vm3, %v6410_v22, 0.0 }
 0x406   :  { %v6413_v38 = vadd.f32 %v12059_v39, %v6342_v0  ;;  %v6411_v52 = vadd.f32 %v12059_v39, %v6340_v26  ;;  %v6416_v12 = vadd.f32 %v12059_v39, %v6345_v45  ;;  %v5960_v57 = vadd.f32 %v8614_v53, %v12873_v34 }
 0x407   :  { %v6343_v60 = vadd.f32 %v6268_v33, %v5957_v43  ;;  %v6852_v44 = vadd.f32 %v6851_v9, %v6850_v11  ;;  %v7047_v16 = vadd.f32 %v7046_v62, %v7045_v32  ;;  %v5958_v7 = vadd.f32 %v5885_v15, %v12874_v31 }
 0x408   :  { %v7785_v47 = vpack.c.bf16 %v6413_v38, %v6413_v38  ;;  %v7048_v1 = vsel %vm6739_vm3, %v6929_v4, 0.0  ;;  %v7783_v28 = vpack.c.bf16 %v6411_v52, %v6411_v52  ;;  %v6853_v14 = vsel %vm6739_vm3, %v6411_v52, 0.0 }
 0x409   :  { %v6930_v2 = vmul.f32 %v6411_v52, %v6411_v52  ;;  %v7049_v42 = vadd.f32 %v7048_v1, %v7047_v16  ;;  %v6854_v10 = vadd.f32 %v6853_v14, %v6852_v44  ;;  %v7788_v5 = vpack.c.bf16 %v6416_v12, %v6416_v12 }
 0x40a   :  { %6734 = vst.msk [vmem:[#allocation3 + $0xec] sm:$0xf] %vm6674_vm2, %v7785_v47  ;;  %v6855_v3 = vsel %vm6739_vm3, %v6412_v6, 0.0  ;;  %v6932_v58 = vmul.f32 %v6413_v38, %v6413_v38  ;;  %6732 = vst.msk [vmem:[#allocation3 + $0xe4] sm:$0xf] %vm6674_vm2, %v7783_v28  ;;  %v6414_v30 = vadd.f32 %v12059_v39, %v6343_v60  ;;  %v6346_v41 = vadd.f32 %v8680_v23, %v5960_v57 }
 0x40b   :  { %v7050_v35 = vsel %vm6739_vm3, %v6930_v2, 0.0  ;;  %v6856_v8 = vadd.f32 %v6855_v3, %v6854_v10  ;;  %6737 = vst.msk [vmem:[#allocation3 + $0xf8] sm:$0xf] %vm6674_vm2, %v7788_v5  ;;  %v6344_v22 = vadd.f32 %v6271_v21, %v5958_v7  ;;  %v7052_v13 = vsel %vm6739_vm3, %v6931_v56, 0.0 }
 0x40c   :  { %v7051_v25 = vadd.f32 %v7050_v35, %v7049_v42  ;;  %v6857_v46 = vsel %vm6739_vm3, %v6413_v38, 0.0  ;;  %v7786_v18 = vpack.c.bf16 %v6414_v30, %v6414_v30  ;;  %v6933_v6 = vmul.f32 %v6414_v30, %v6414_v30 }
 0x40d   :  { %v6858_v37 = vadd.f32 %v6857_v46, %v6856_v8  ;;  %v6417_v40 = vadd.f32 %v12059_v39, %v6346_v41  ;;  %v6415_v17 = vadd.f32 %v12059_v39, %v6344_v22  ;;  %v7054_v50 = vsel %vm6739_vm3, %v6932_v58, 0.0 }
 0x40e   :  { %v7053_v51 = vadd.f32 %v7052_v13, %v7051_v25  ;;  %6735 = vst.msk [vmem:[#allocation3 + $0xf0] sm:$0xf] %vm6674_vm2, %v7786_v18  ;;  %v6859_v63 = vsel %vm6739_vm3, %v6414_v30, 0.0  ;;  %v6935_v29 = vmul.f32 %v6416_v12, %v6416_v12  ;;  %v7056_v59 = vsel %vm6739_vm3, %v6933_v6, 0.0 }
 0x40f   :  { %v6860_v27 = vadd.f32 %v6859_v63, %v6858_v37  ;;  %v7789_v19 = vpack.c.bf16 %v6417_v40, %v6417_v40  ;;  %v7787_v20 = vpack.c.bf16 %v6415_v17, %v6415_v17  ;;  %v6861_v55 = vsel %vm6739_vm3, %v6415_v17, 0.0 }
 0x410   :  { %v7055_v53 = vadd.f32 %v7054_v50, %v7053_v51  ;;  %v6934_v48 = vmul.f32 %v6415_v17, %v6415_v17  ;;  %v6863_v61 = vsel %vm6739_vm3, %v6416_v12, 0.0  ;;  %v6936_v49 = vmul.f32 %v6417_v40, %v6417_v40 }
 0x411   :  { %6738 = vst.msk [vmem:[#allocation3 + $0xfc] sm:$0xf] %vm6674_vm2, %v7789_v19  ;;  %v6862_v62 = vadd.f32 %v6861_v55, %v6860_v27  ;;  %6736 = vst.msk [vmem:[#allocation3 + $0xf4] sm:$0xf] %vm6674_vm2, %v7787_v20 }
 0x412   :  { %v7057_v39 = vadd.f32 %v7056_v59, %v7055_v53  ;;  %v7058_v33 = vsel %vm6739_vm3, %v6934_v48, 0.0 }
 0x413   :  { %v6864_v54 = vadd.f32 %v6863_v61, %v6862_v62 }
 0x414   :  { %v7059_v24 = vadd.f32 %v7058_v33, %v7057_v39 }
 0x415   :  { %8782 = shalt.err (!%p8779_p4)
}
 0x416   :  { %s8796_s15 = smov 64   ;;  %s8797_s16 = smov 4   ;;  %v7060_v56 = vsel %vm6739_vm3, %v6935_v29, 0.0  ;;  %v6865_v0 = vsel %vm6739_vm3, %v6417_v40, 0.0  ;;  %v7062_v45 = vsel %vm6739_vm3, %v6936_v49, 0.0  ;;  %vm7071_vm4 = vcmask 517120  }
 0x417   :  { %7084 = dma.vmem_to_hbm [thread:$0]  %s7079_s13, 4096, %s12224_s5, [#allocation4], %s8796_s15, %s8796_s15, %s8797_s16   ;;  %v6866_v4 = vadd.f32 %v6865_v0, %v6864_v54  ;;  %v7061_v26 = vadd.f32 %v7060_v56, %v7059_v24 }
 0x419   :  { %v6867_v36 = vrot.slane %v6866_v4, 4  ;;  %v7063_v43 = vadd.f32 %v7062_v45, %v7061_v26 }
 0x41b   :  { %v6868_v15 = vadd.f32 %v6867_v36, %v6866_v4  ;;  %v7064_v32 = vrot.slane %v7063_v43, 4 }
 0x41d   :  { %v6869_v11 = vrot.slane %v6868_v15, 2  ;;  %v7065_v9 = vadd.f32 %v7064_v32, %v7063_v43 }
 0x41f   :  { %v6870_v38 = vadd.f32 %v6869_v11, %v6868_v15  ;;  %v7066_v52 = vrot.slane %v7065_v9, 2 }
 0x421   :  { %v6871_v12 = vrot.slane %v6870_v38, 1  ;;  %v7067_v60 = vadd.f32 %v7066_v52, %v7065_v9 }
 0x423   :  { %v7068_v34 = vrot.slane %v7067_v60, 1  ;;  %v6872_v57 = vadd.f32 %v6871_v12, %v6870_v38 }
 0x425   :  { %v7069_v23 = vadd.f32 %v7068_v34, %v7067_v60 }
 0x427   :  { %v7070_v44 = vsel %vm2338_vm0, %v6872_v57, %v7069_v23 }
 0x428   :  { %7072 = vst.msk [vmem:[%s12225_s6] sm:$0x3] %vm7071_vm4, %v7070_v44 }
 0x429   :  { %8791 = dma.done.wait [#allocation4], 4096  }
 0x42a   :  { %8792 = vsyncadd [#allocation4], 4294963200 }
 0x42b   :  { %7092 = vsyncpa [#allocation4], 1 }

</bundles_post_ra>
